<compile_context>
chip_gen: v5e
topology: v5e:2x2
jax: 0.10.0
libtpu: 0.0.40
codegen_flags: <defaults>
</compile_context>

<pallas_src>
import functools

import jax
import jax.numpy as jnp
from jax.experimental import pallas as pl
from jax.experimental.pallas import tpu as pltpu

# Model hyper-parameters (consistent with ChessModel(conv_size, conv_depth, num_classes)).
IN_CH = 12            # chess board planes from Node.split_dims
H = W = 8             # 8x8 board
CONV_SIZE = 32        # filters per conv layer
CONV_DEPTH = 2        # number of 3x3 'same' conv layers
HIDDEN = 64           # hidden dense width
NUM_CLASSES = 8

FEAT_IN = H * W * IN_CH        # 768  : flattened (y, x, c) input features
FEAT_CONV = H * W * CONV_SIZE  # 2048 : flattened (y, x, c) conv features
ROW_FEAT = W * CONV_SIZE       # 256  : one board row of conv features
HIDDEN_PAD = 128               # fc1 width padded to a full lane group
OUT_PAD = 128                  # logits padded to a lane-dense 128-wide block


def _round_up(x, m):
    return -(-x // m) * m


# --------------------------------------------------------------------------
# Kernel: one grid step processes `bt` board positions.
#   conv1 : one dense-folded matmul   (bt, 768) @ (768, 2048)
#   conv2 : 8 row-strip matmuls       (bt, 768) @ (768, 256)   (shared weight)
#   fc1   : (bt, 2048) @ (2048, 128)  (HIDDEN padded to 128)
#   fc2   : (bt, 128)  @ (128, 128)   (num_classes padded to 128, lane-dense)
# All MXU inputs bf16, accumulation and bias/ReLU epilogues f32.
# --------------------------------------------------------------------------
def _mcts_cnn_kernel(x_ref, w1_ref, b1_ref, w2_ref, b2_ref,
                     fc1w_ref, fc1b_ref, fc2w_ref, fc2b_ref, o_ref):
    # conv1: dense fold, K = 768 (3 full 256-chunks).
    h1 = jnp.dot(x_ref[...], w1_ref[...], preferred_element_type=jnp.float32)
    h1 = jnp.maximum(h1 + b1_ref[...], 0.0).astype(jnp.bfloat16)   # (bt, 2048)

    # conv2: row-strip im2col.  Pad one zero board-row on each side; every
    # output row y consumes input rows (y-1, y, y+1) = 768 features and is a
    # (bt, 768) @ (768, 256) matmul against the shared row-strip weight.
    bt = h1.shape[0]
    zrow = jnp.zeros((bt, ROW_FEAT), jnp.bfloat16)
    h_pad = jnp.concatenate([zrow, h1, zrow], axis=1)               # (bt, 2560)
    w2 = w2_ref[...]
    b2 = b2_ref[...]
    rows = []
    for y in range(H):                                              # static unroll (8)
        taps = h_pad[:, y * ROW_FEAT:(y + 3) * ROW_FEAT]            # (bt, 768) bf16
        oy = jnp.dot(taps, w2, preferred_element_type=jnp.float32)  # (bt, 256)
        rows.append(jnp.maximum(oy + b2, 0.0))
    h2 = jnp.concatenate(rows, axis=1).astype(jnp.bfloat16)         # (bt, 2048)

    # fc1 (+ReLU), width padded to 128 lanes.
    z = jnp.dot(h2, fc1w_ref[...], preferred_element_type=jnp.float32)
    z = jnp.maximum(z + fc1b_ref[...], 0.0).astype(jnp.bfloat16)    # (bt, 128)

    # fc2, output padded to 128 lanes -> unmasked lane-dense stores.
    logits = jnp.dot(z, fc2w_ref[...],
                     preferred_element_type=jnp.float32) + fc2b_ref[...]
    o_ref[...] = logits.astype(o_ref.dtype)


# --------------------------------------------------------------------------
# Parameter handling.
# --------------------------------------------------------------------------
def init_params(key):
    """Synthetic parameters in PyTorch-equivalent layouts (all float32)."""
    ks = jax.random.split(key, 8)
    w1 = jax.random.normal(ks[0], (3, 3, IN_CH, CONV_SIZE), jnp.float32) / (9 * IN_CH) ** 0.5
    b1 = 0.01 * jax.random.normal(ks[1], (CONV_SIZE,), jnp.float32)
    w2 = jax.random.normal(ks[2], (3, 3, CONV_SIZE, CONV_SIZE), jnp.float32) / (9 * CONV_SIZE) ** 0.5
    b2 = 0.01 * jax.random.normal(ks[3], (CONV_SIZE,), jnp.float32)
    # fc1 generated in PyTorch NCHW-flatten (C, H, W) row order.
    fc1_chw = jax.random.normal(ks[4], (CONV_SIZE * H * W, HIDDEN), jnp.float32) / FEAT_CONV ** 0.5
    fc1_b = 0.01 * jax.random.normal(ks[5], (HIDDEN,), jnp.float32)
    fc2_w = jax.random.normal(ks[6], (HIDDEN, NUM_CLASSES), jnp.float32) / HIDDEN ** 0.5
    fc2_b = 0.01 * jax.random.normal(ks[7], (NUM_CLASSES,), jnp.float32)
    return (w1, b1, w2, b2, fc1_chw, fc1_b, fc2_w, fc2_b)


def _conv3x3_to_dense(w_hwio):
    """Fold a (3,3,cin,cout) 'same' conv on the 8x8 board into a dense
    (64*cin, 64*cout) matrix acting on (y,x,c)-flattened boards (used for
    conv1, where cin=12 keeps it at 3 MiB bf16).  Built by pushing one-hot
    basis boards through lax.conv, so orderings match by construction."""
    cin = w_hwio.shape[2]
    basis = jnp.eye(H * W * cin, dtype=jnp.float32).reshape(H * W * cin, H, W, cin)
    cols = jax.lax.conv_general_dilated(
        basis, w_hwio, window_strides=(1, 1), padding="SAME",
        dimension_numbers=("NHWC", "HWIO", "NHWC"),
        precision=jax.lax.Precision.HIGHEST)
    return cols.reshape(H * W * cin, H * W * w_hwio.shape[3])


def _conv3x3_to_row_strip(w_hwio):
    """Fold a (3,3,cin,cout) 'same' conv into the (3*W*cin, W*cout) matrix that
    maps 3 stacked board rows (y-1, y, y+1) to one output row (SAME padding
    along x, VALID along y).  Shared by all 8 output rows of the board."""
    cin, cout = w_hwio.shape[2], w_hwio.shape[3]
    k = 3 * W * cin
    basis = jnp.eye(k, dtype=jnp.float32).reshape(k, 3, W, cin)
    cols = jax.lax.conv_general_dilated(
        basis, w_hwio, window_strides=(1, 1),
        padding=((0, 0), (1, 1)),                     # VALID in y (3->1), SAME in x
        dimension_numbers=("NHWC", "HWIO", "NHWC"),
        precision=jax.lax.Precision.HIGHEST)
    return cols.reshape(k, W * cout)


def prepare_params(raw_params):
    """PyTorch-layout f32 params -> kernel form (bf16 weights, f32 biases,
    fc widths padded to 128 lanes for lane-dense epilogue stores)."""
    w1, b1, w2, b2, fc1_chw, fc1_b, fc2_w, fc2_b = raw_params
    d1 = _conv3x3_to_dense(w1).astype(jnp.bfloat16)           # (768, 2048)
    b1_row = jnp.tile(b1, H * W).reshape(1, FEAT_CONV)        # (1, 2048) f32
    w2_row = _conv3x3_to_row_strip(w2).astype(jnp.bfloat16)   # (768, 256)
    b2_row = jnp.tile(b2, W).reshape(1, ROW_FEAT)             # (1, 256)  f32
    # Permute fc1 from PyTorch (C,H,W)-flatten rows to the kernel's (H,W,C) rows.
    fc1_hwc = (fc1_chw.reshape(CONV_SIZE, H, W, HIDDEN)
               .transpose(1, 2, 0, 3)
               .reshape(FEAT_CONV, HIDDEN))
    fc1_pad = jnp.zeros((FEAT_CONV, HIDDEN_PAD), jnp.float32)
    fc1_pad = fc1_pad.at[:, :HIDDEN].set(fc1_hwc).astype(jnp.bfloat16)
    fc1_b_pad = jnp.zeros((1, HIDDEN_PAD), jnp.float32).at[0, :HIDDEN].set(fc1_b)
    fc2_pad = jnp.zeros((HIDDEN_PAD, OUT_PAD), jnp.float32)
    fc2_pad = fc2_pad.at[:HIDDEN, :NUM_CLASSES].set(fc2_w).astype(jnp.bfloat16)
    fc2_b_pad = jnp.zeros((1, OUT_PAD), jnp.float32).at[0, :NUM_CLASSES].set(fc2_b)
    return (d1, b1_row, w2_row, b2_row, fc1_pad, fc1_b_pad, fc2_pad, fc2_b_pad)


def _resident_spec(shape):
    """Constant-index (VMEM-resident) weight/bias spec.  Single-buffered when
    the installed jax supports BlockSpec.pipeline_mode, so the pipeline does
    not allocate a useless second VMEM copy of each weight."""
    idx = lambda b: (0, 0)
    try:
        return pl.BlockSpec(shape, idx, pipeline_mode=pl.Buffered(1))
    except (AttributeError, TypeError):
        return pl.BlockSpec(shape, idx)


# --------------------------------------------------------------------------
# Forward wrapper: batch is tiled along a "parallel" grid axis; weights use
# constant index_maps (single-buffered) so they stay VMEM-resident.
# --------------------------------------------------------------------------
@functools.partial(jax.jit, static_argnames=("batch_tile",))
def mcts_cnn_forward(x_nchw, kernel_params, batch_tile=256):
    """x_nchw: (B, 12, 8, 8) float32 (PyTorch layout) -> (B, num_classes) f32 logits."""
    if batch_tile % 16:
        raise ValueError("batch_tile must be a multiple of 16 (bf16 sublane packing)")
    d1, b1r, w2r, b2r, fc1_w, fc1_b, fc2_w, fc2_b = kernel_params
    B = x_nchw.shape[0]

    # TODO(synk): have the MCTS host code (Node.split_dims) emit flat (B, 768)
    # (y, x, c) planes directly so this tiny transpose leaves the per-call path.
    x = jnp.transpose(x_nchw, (0, 2, 3, 1)).reshape(B, FEAT_IN).astype(jnp.bfloat16)

    # Effective tile: no larger than needed, and (when the batch allows) at
    # least 2 grid steps so v7x's two TensorCores both get work.
    half = _round_up(-(-B // 2), 16)
    bt = max(16, min(batch_tile, half))
    num_tiles = -(-B // bt)
    bp = num_tiles * bt
    if bp != B:
        x = jnp.pad(x, ((0, bp - B), (0, 0)))

    flops = 2 * bp * (FEAT_IN * FEAT_CONV                 # conv1 dense
                      + H * (3 * ROW_FEAT) * ROW_FEAT     # conv2 row strips
                      + FEAT_CONV * HIDDEN_PAD            # fc1
                      + HIDDEN_PAD * OUT_PAD)             # fc2
    bytes_accessed = (int(x.size) * 2
                      + sum(int(p.size) * p.dtype.itemsize for p in kernel_params)
                      + bp * OUT_PAD * 4)

    out = pl.pallas_call(
        _mcts_cnn_kernel,
        out_shape=jax.ShapeDtypeStruct((bp, OUT_PAD), jnp.float32),
        grid=(num_tiles,),
        in_specs=[
            pl.BlockSpec((bt, FEAT_IN), lambda b: (b, 0)),       # x: pipelined per tile
            _resident_spec((FEAT_IN, FEAT_CONV)),                # conv1 dense weight
            _resident_spec((1, FEAT_CONV)),                      # conv1 bias
            _resident_spec((3 * ROW_FEAT, ROW_FEAT)),            # conv2 row-strip weight
            _resident_spec((1, ROW_FEAT)),                       # conv2 bias (one row)
            _resident_spec((FEAT_CONV, HIDDEN_PAD)),             # fc1 weight (padded)
            _resident_spec((1, HIDDEN_PAD)),                     # fc1 bias
            _resident_spec((HIDDEN_PAD, OUT_PAD)),               # fc2 weight (padded)
            _resident_spec((1, OUT_PAD)),                        # fc2 bias
        ],
        out_specs=pl.BlockSpec((bt, OUT_PAD), lambda b: (b, 0)),
        compiler_params=pltpu.CompilerParams(
            dimension_semantics=("parallel",),       # shards batch over v7x's 2 TCs
            vmem_limit_bytes=56 * 1024 * 1024,       # fits v7x's 64 MiB per-TC VMEM
        ),
        cost_estimate=pl.CostEstimate(flops=flops, transcendentals=0,
                                      bytes_accessed=bytes_accessed),
    )(x, d1, b1r, w2r, b2r, fc1_w, fc1_b, fc2_w, fc2_b)
    return out[:B, :NUM_CLASSES]


# --------------------------------------------------------------------------
# Pure-JAX reference (PyTorch semantics, mirroring the kernel's bf16/f32 mix).
# --------------------------------------------------------------------------
def _ref_conv(h_f32, w_f32, b_f32):
    y = jax.lax.conv_general_dilated(
        h_f32.astype(jnp.bfloat16), w_f32.astype(jnp.bfloat16),
        window_strides=(1, 1), padding="SAME",
        dimension_numbers=("NHWC", "HWIO", "NHWC"),
        preferred_element_type=jnp.float32)
    return jnp.maximum(y + b_f32.reshape(1, 1, 1, -1), 0.0)


def reference_forward(x_nchw, raw_params):
    w1, b1, w2, b2, fc1_chw, fc1_b, fc2_w, fc2_b = raw_params
    h = jnp.transpose(x_nchw, (0, 2, 3, 1))            # NHWC
    h = _ref_conv(h, w1, b1)
    h = _ref_conv(h, w2, b2)
    # PyTorch flattens NCHW, i.e. (C, H, W) order:
    hf = jnp.transpose(h, (0, 3, 1, 2)).reshape(h.shape[0], -1)
    z = jnp.dot(hf.astype(jnp.bfloat16), fc1_chw.astype(jnp.bfloat16),
                preferred_element_type=jnp.float32)
    z = jnp.maximum(z + fc1_b.reshape(1, -1), 0.0)
    return jnp.dot(z.astype(jnp.bfloat16), fc2_w.astype(jnp.bfloat16),
                   preferred_element_type=jnp.float32) + fc2_b.reshape(1, -1)


if __name__ == "__main__":
    key = jax.random.PRNGKey(0)
    kx, kp = jax.random.split(key)
    # Small demo batch (production regime is 128-1024 leaf positions per call,
    # which amortizes the one-time ~4 MiB weight DMA and keeps the MXU busy).
    # B=32 with the clamped tile exercises the 2-grid-step / both-TC path.
    B = 32
    # Synthetic board planes: sparse 0/1 occupancy, PyTorch NCHW layout.
    x = (jax.random.uniform(kx, (B, IN_CH, H, W)) < 0.15).astype(jnp.float32)

    raw = init_params(kp)
    kparams = prepare_params(raw)

    out = mcts_cnn_forward(x, kparams, batch_tile=256)
    jax.block_until_ready(out)
    assert out.shape == (B, NUM_CLASSES) and out.dtype == jnp.float32

    ref = reference_forward(x, raw)
    max_err = float(jnp.max(jnp.abs(out - ref)))
    assert max_err < 2e-2, f"kernel mismatch vs reference, max abs err = {max_err}"
    print("KERNEL_OK")
</pallas_src>

<mosaic_0001>
module attributes {stable_mosaic.version = 11 : i64} {
  func.func @_mcts_cnn_kernel(%arg0: i32, %arg1: memref<16x768xbf16, #tpu.memory_space<vmem>>, %arg2: memref<768x2048xbf16, #tpu.memory_space<vmem>>, %arg3: memref<1x2048xf32, #tpu.memory_space<vmem>>, %arg4: memref<768x256xbf16, #tpu.memory_space<vmem>>, %arg5: memref<1x256xf32, #tpu.memory_space<vmem>>, %arg6: memref<2048x128xbf16, #tpu.memory_space<vmem>>, %arg7: memref<1x128xf32, #tpu.memory_space<vmem>>, %arg8: memref<128x128xbf16, #tpu.memory_space<vmem>>, %arg9: memref<1x128xf32, #tpu.memory_space<vmem>>, %arg10: memref<16x128xf32, #tpu.memory_space<vmem>>) attributes {dimension_semantics = [#tpu.dimension_semantics<parallel>], iteration_bounds = array<i64: 2>, scalar_prefetch = 0 : i64, scratch_operands = 0 : i64, tpu.core_type = #tpu.core_type<tc>, window_params = [{transform_indices = @transform_0, window_bounds = array<i64: 16, 768>}, {pipeline_mode = #tpu.pipeline_mode<synchronous>, transform_indices = @transform_1, window_bounds = array<i64: 768, 2048>}, {pipeline_mode = #tpu.pipeline_mode<synchronous>, transform_indices = @transform_2, window_bounds = array<i64: 1, 2048>}, {pipeline_mode = #tpu.pipeline_mode<synchronous>, transform_indices = @transform_3, window_bounds = array<i64: 768, 256>}, {pipeline_mode = #tpu.pipeline_mode<synchronous>, transform_indices = @transform_4, window_bounds = array<i64: 1, 256>}, {pipeline_mode = #tpu.pipeline_mode<synchronous>, transform_indices = @transform_5, window_bounds = array<i64: 2048, 128>}, {pipeline_mode = #tpu.pipeline_mode<synchronous>, transform_indices = @transform_6, window_bounds = array<i64: 1, 128>}, {pipeline_mode = #tpu.pipeline_mode<synchronous>, transform_indices = @transform_7, window_bounds = array<i64: 128, 128>}, {pipeline_mode = #tpu.pipeline_mode<synchronous>, transform_indices = @transform_8, window_bounds = array<i64: 1, 128>}, {transform_indices = @transform_9, window_bounds = array<i64: 16, 128>}]} {
    %c0 = arith.constant 0 : index
    %c0_0 = arith.constant 0 : index
    %0 = vector.load %arg1[%c0, %c0_0] : memref<16x768xbf16, #tpu.memory_space<vmem>>, vector<16x768xbf16>
    %c0_1 = arith.constant 0 : index
    %c0_2 = arith.constant 0 : index
    %1 = vector.load %arg2[%c0_1, %c0_2] : memref<768x2048xbf16, #tpu.memory_space<vmem>>, vector<768x2048xbf16>
    %cst = arith.constant dense<0.000000e+00> : vector<16x2048xf32>
    %2 = tpu.matmul %0, %1, %cst {dimension_numbers = #tpu.dot_dimension_numbers<[1], [0], [0], [1], [0, 0, 1, 1], [], []>} : vector<16x768xbf16>, vector<768x2048xbf16>, vector<16x2048xf32> -> vector<16x2048xf32>
    %c0_3 = arith.constant 0 : index
    %c0_4 = arith.constant 0 : index
    %3 = vector.load %arg3[%c0_3, %c0_4] : memref<1x2048xf32, #tpu.memory_space<vmem>>, vector<1x2048xf32>
    %4 = vector.broadcast %3 : vector<1x2048xf32> to vector<16x2048xf32>
    %5 = arith.addf %2, %4 : vector<16x2048xf32>
    %cst_5 = arith.constant 0.000000e+00 : f32
    %6 = vector.broadcast %cst_5 : f32 to vector<16x2048xf32>
    %7 = arith.maximumf %5, %6 : vector<16x2048xf32>
    %8 = arith.truncf %7 : vector<16x2048xf32> to vector<16x2048xbf16>
    %cst_6 = arith.constant 0.000000e+00 : bf16
    %9 = vector.broadcast %cst_6 : bf16 to vector<16x256xbf16>
    %10 = tpu.concatenate %9, %8, %9 in 1 : vector<16x256xbf16>, vector<16x2048xbf16>, vector<16x256xbf16> -> vector<16x2560xbf16>
    %c0_7 = arith.constant 0 : index
    %c0_8 = arith.constant 0 : index
    %11 = vector.load %arg4[%c0_7, %c0_8] : memref<768x256xbf16, #tpu.memory_space<vmem>>, vector<768x256xbf16>
    %c0_9 = arith.constant 0 : index
    %c0_10 = arith.constant 0 : index
    %12 = vector.load %arg5[%c0_9, %c0_10] : memref<1x256xf32, #tpu.memory_space<vmem>>, vector<1x256xf32>
    %13 = vector.extract_strided_slice %10 {offsets = [0, 0], sizes = [16, 768], strides = [1, 1]} : vector<16x2560xbf16> to vector<16x768xbf16>
    %cst_11 = arith.constant dense<0.000000e+00> : vector<16x256xf32>
    %14 = tpu.matmul %13, %11, %cst_11 {dimension_numbers = #tpu.dot_dimension_numbers<[1], [0], [0], [1], [0, 0, 1, 1], [], []>} : vector<16x768xbf16>, vector<768x256xbf16>, vector<16x256xf32> -> vector<16x256xf32>
    %15 = vector.broadcast %12 : vector<1x256xf32> to vector<16x256xf32>
    %16 = arith.addf %14, %15 : vector<16x256xf32>
    %cst_12 = arith.constant 0.000000e+00 : f32
    %17 = vector.broadcast %cst_12 : f32 to vector<16x256xf32>
    %18 = arith.maximumf %16, %17 : vector<16x256xf32>
    %19 = vector.extract_strided_slice %10 {offsets = [0, 256], sizes = [16, 768], strides = [1, 1]} : vector<16x2560xbf16> to vector<16x768xbf16>
    %cst_13 = arith.constant dense<0.000000e+00> : vector<16x256xf32>
    %20 = tpu.matmul %19, %11, %cst_13 {dimension_numbers = #tpu.dot_dimension_numbers<[1], [0], [0], [1], [0, 0, 1, 1], [], []>} : vector<16x768xbf16>, vector<768x256xbf16>, vector<16x256xf32> -> vector<16x256xf32>
    %21 = vector.broadcast %12 : vector<1x256xf32> to vector<16x256xf32>
    %22 = arith.addf %20, %21 : vector<16x256xf32>
    %cst_14 = arith.constant 0.000000e+00 : f32
    %23 = vector.broadcast %cst_14 : f32 to vector<16x256xf32>
    %24 = arith.maximumf %22, %23 : vector<16x256xf32>
    %25 = vector.extract_strided_slice %10 {offsets = [0, 512], sizes = [16, 768], strides = [1, 1]} : vector<16x2560xbf16> to vector<16x768xbf16>
    %cst_15 = arith.constant dense<0.000000e+00> : vector<16x256xf32>
    %26 = tpu.matmul %25, %11, %cst_15 {dimension_numbers = #tpu.dot_dimension_numbers<[1], [0], [0], [1], [0, 0, 1, 1], [], []>} : vector<16x768xbf16>, vector<768x256xbf16>, vector<16x256xf32> -> vector<16x256xf32>
    %27 = vector.broadcast %12 : vector<1x256xf32> to vector<16x256xf32>
    %28 = arith.addf %26, %27 : vector<16x256xf32>
    %cst_16 = arith.constant 0.000000e+00 : f32
    %29 = vector.broadcast %cst_16 : f32 to vector<16x256xf32>
    %30 = arith.maximumf %28, %29 : vector<16x256xf32>
    %31 = vector.extract_strided_slice %10 {offsets = [0, 768], sizes = [16, 768], strides = [1, 1]} : vector<16x2560xbf16> to vector<16x768xbf16>
    %cst_17 = arith.constant dense<0.000000e+00> : vector<16x256xf32>
    %32 = tpu.matmul %31, %11, %cst_17 {dimension_numbers = #tpu.dot_dimension_numbers<[1], [0], [0], [1], [0, 0, 1, 1], [], []>} : vector<16x768xbf16>, vector<768x256xbf16>, vector<16x256xf32> -> vector<16x256xf32>
    %33 = vector.broadcast %12 : vector<1x256xf32> to vector<16x256xf32>
    %34 = arith.addf %32, %33 : vector<16x256xf32>
    %cst_18 = arith.constant 0.000000e+00 : f32
    %35 = vector.broadcast %cst_18 : f32 to vector<16x256xf32>
    %36 = arith.maximumf %34, %35 : vector<16x256xf32>
    %37 = vector.extract_strided_slice %10 {offsets = [0, 1024], sizes = [16, 768], strides = [1, 1]} : vector<16x2560xbf16> to vector<16x768xbf16>
    %cst_19 = arith.constant dense<0.000000e+00> : vector<16x256xf32>
    %38 = tpu.matmul %37, %11, %cst_19 {dimension_numbers = #tpu.dot_dimension_numbers<[1], [0], [0], [1], [0, 0, 1, 1], [], []>} : vector<16x768xbf16>, vector<768x256xbf16>, vector<16x256xf32> -> vector<16x256xf32>
    %39 = vector.broadcast %12 : vector<1x256xf32> to vector<16x256xf32>
    %40 = arith.addf %38, %39 : vector<16x256xf32>
    %cst_20 = arith.constant 0.000000e+00 : f32
    %41 = vector.broadcast %cst_20 : f32 to vector<16x256xf32>
    %42 = arith.maximumf %40, %41 : vector<16x256xf32>
    %43 = vector.extract_strided_slice %10 {offsets = [0, 1280], sizes = [16, 768], strides = [1, 1]} : vector<16x2560xbf16> to vector<16x768xbf16>
    %cst_21 = arith.constant dense<0.000000e+00> : vector<16x256xf32>
    %44 = tpu.matmul %43, %11, %cst_21 {dimension_numbers = #tpu.dot_dimension_numbers<[1], [0], [0], [1], [0, 0, 1, 1], [], []>} : vector<16x768xbf16>, vector<768x256xbf16>, vector<16x256xf32> -> vector<16x256xf32>
    %45 = vector.broadcast %12 : vector<1x256xf32> to vector<16x256xf32>
    %46 = arith.addf %44, %45 : vector<16x256xf32>
    %cst_22 = arith.constant 0.000000e+00 : f32
    %47 = vector.broadcast %cst_22 : f32 to vector<16x256xf32>
    %48 = arith.maximumf %46, %47 : vector<16x256xf32>
    %49 = vector.extract_strided_slice %10 {offsets = [0, 1536], sizes = [16, 768], strides = [1, 1]} : vector<16x2560xbf16> to vector<16x768xbf16>
    %cst_23 = arith.constant dense<0.000000e+00> : vector<16x256xf32>
    %50 = tpu.matmul %49, %11, %cst_23 {dimension_numbers = #tpu.dot_dimension_numbers<[1], [0], [0], [1], [0, 0, 1, 1], [], []>} : vector<16x768xbf16>, vector<768x256xbf16>, vector<16x256xf32> -> vector<16x256xf32>
    %51 = vector.broadcast %12 : vector<1x256xf32> to vector<16x256xf32>
    %52 = arith.addf %50, %51 : vector<16x256xf32>
    %cst_24 = arith.constant 0.000000e+00 : f32
    %53 = vector.broadcast %cst_24 : f32 to vector<16x256xf32>
    %54 = arith.maximumf %52, %53 : vector<16x256xf32>
    %55 = vector.extract_strided_slice %10 {offsets = [0, 1792], sizes = [16, 768], strides = [1, 1]} : vector<16x2560xbf16> to vector<16x768xbf16>
    %cst_25 = arith.constant dense<0.000000e+00> : vector<16x256xf32>
    %56 = tpu.matmul %55, %11, %cst_25 {dimension_numbers = #tpu.dot_dimension_numbers<[1], [0], [0], [1], [0, 0, 1, 1], [], []>} : vector<16x768xbf16>, vector<768x256xbf16>, vector<16x256xf32> -> vector<16x256xf32>
    %57 = vector.broadcast %12 : vector<1x256xf32> to vector<16x256xf32>
    %58 = arith.addf %56, %57 : vector<16x256xf32>
    %cst_26 = arith.constant 0.000000e+00 : f32
    %59 = vector.broadcast %cst_26 : f32 to vector<16x256xf32>
    %60 = arith.maximumf %58, %59 : vector<16x256xf32>
    %61 = tpu.concatenate %18, %24, %30, %36, %42, %48, %54, %60 in 1 : vector<16x256xf32>, vector<16x256xf32>, vector<16x256xf32>, vector<16x256xf32>, vector<16x256xf32>, vector<16x256xf32>, vector<16x256xf32>, vector<16x256xf32> -> vector<16x2048xf32>
    %62 = arith.truncf %61 : vector<16x2048xf32> to vector<16x2048xbf16>
    %c0_27 = arith.constant 0 : index
    %c0_28 = arith.constant 0 : index
    %63 = vector.load %arg6[%c0_27, %c0_28] : memref<2048x128xbf16, #tpu.memory_space<vmem>>, vector<2048x128xbf16>
    %cst_29 = arith.constant dense<0.000000e+00> : vector<16x128xf32>
    %64 = tpu.matmul %62, %63, %cst_29 {dimension_numbers = #tpu.dot_dimension_numbers<[1], [0], [0], [1], [0, 0, 1, 1], [], []>} : vector<16x2048xbf16>, vector<2048x128xbf16>, vector<16x128xf32> -> vector<16x128xf32>
    %c0_30 = arith.constant 0 : index
    %c0_31 = arith.constant 0 : index
    %65 = vector.load %arg7[%c0_30, %c0_31] : memref<1x128xf32, #tpu.memory_space<vmem>>, vector<1x128xf32>
    %66 = vector.broadcast %65 : vector<1x128xf32> to vector<16x128xf32>
    %67 = arith.addf %64, %66 : vector<16x128xf32>
    %cst_32 = arith.constant 0.000000e+00 : f32
    %68 = vector.broadcast %cst_32 : f32 to vector<16x128xf32>
    %69 = arith.maximumf %67, %68 : vector<16x128xf32>
    %70 = arith.truncf %69 : vector<16x128xf32> to vector<16x128xbf16>
    %c0_33 = arith.constant 0 : index
    %c0_34 = arith.constant 0 : index
    %71 = vector.load %arg8[%c0_33, %c0_34] : memref<128x128xbf16, #tpu.memory_space<vmem>>, vector<128x128xbf16>
    %cst_35 = arith.constant dense<0.000000e+00> : vector<16x128xf32>
    %72 = tpu.matmul %70, %71, %cst_35 {dimension_numbers = #tpu.dot_dimension_numbers<[1], [0], [0], [1], [0, 0, 1, 1], [], []>} : vector<16x128xbf16>, vector<128x128xbf16>, vector<16x128xf32> -> vector<16x128xf32>
    %c0_36 = arith.constant 0 : index
    %c0_37 = arith.constant 0 : index
    %73 = vector.load %arg9[%c0_36, %c0_37] : memref<1x128xf32, #tpu.memory_space<vmem>>, vector<1x128xf32>
    %74 = vector.broadcast %73 : vector<1x128xf32> to vector<16x128xf32>
    %75 = arith.addf %72, %74 : vector<16x128xf32>
    %c0_38 = arith.constant 0 : index
    %c0_39 = arith.constant 0 : index
    %76 = vector.load %arg10[%c0_38, %c0_39] : memref<16x128xf32, #tpu.memory_space<vmem>>, vector<16x128xf32>
    tpu.vector_store %arg10[%c0_38, %c0_39], %75 {strides = array<i32>} : memref<16x128xf32, #tpu.memory_space<vmem>>, vector<16x128xf32>,
    return
  }
  func.func @transform_0(%arg0: i32) -> (i32, i32) {
    %c0_i32 = arith.constant 0 : i32
    %c0_i32_0 = arith.constant 0 : i32
    return %arg0, %c0_i32 : i32, i32
  }
  func.func @transform_1(%arg0: i32) -> (i32, i32) {
    %c0_i32 = arith.constant 0 : i32
    %c0_i32_0 = arith.constant 0 : i32
    %c0_i32_1 = arith.constant 0 : i32
    return %c0_i32, %c0_i32_0 : i32, i32
  }
  func.func @transform_2(%arg0: i32) -> (i32, i32) {
    %c0_i32 = arith.constant 0 : i32
    %c0_i32_0 = arith.constant 0 : i32
    %c0_i32_1 = arith.constant 0 : i32
    return %c0_i32, %c0_i32_0 : i32, i32
  }
  func.func @transform_3(%arg0: i32) -> (i32, i32) {
    %c0_i32 = arith.constant 0 : i32
    %c0_i32_0 = arith.constant 0 : i32
    %c0_i32_1 = arith.constant 0 : i32
    return %c0_i32, %c0_i32_0 : i32, i32
  }
  func.func @transform_4(%arg0: i32) -> (i32, i32) {
    %c0_i32 = arith.constant 0 : i32
    %c0_i32_0 = arith.constant 0 : i32
    %c0_i32_1 = arith.constant 0 : i32
    return %c0_i32, %c0_i32_0 : i32, i32
  }
  func.func @transform_5(%arg0: i32) -> (i32, i32) {
    %c0_i32 = arith.constant 0 : i32
    %c0_i32_0 = arith.constant 0 : i32
    %c0_i32_1 = arith.constant 0 : i32
    return %c0_i32, %c0_i32_0 : i32, i32
  }
  func.func @transform_6(%arg0: i32) -> (i32, i32) {
    %c0_i32 = arith.constant 0 : i32
    %c0_i32_0 = arith.constant 0 : i32
    %c0_i32_1 = arith.constant 0 : i32
    return %c0_i32, %c0_i32_0 : i32, i32
  }
  func.func @transform_7(%arg0: i32) -> (i32, i32) {
    %c0_i32 = arith.constant 0 : i32
    %c0_i32_0 = arith.constant 0 : i32
    %c0_i32_1 = arith.constant 0 : i32
    return %c0_i32, %c0_i32_0 : i32, i32
  }
  func.func @transform_8(%arg0: i32) -> (i32, i32) {
    %c0_i32 = arith.constant 0 : i32
    %c0_i32_0 = arith.constant 0 : i32
    %c0_i32_1 = arith.constant 0 : i32
    return %c0_i32, %c0_i32_0 : i32, i32
  }
  func.func @transform_9(%arg0: i32) -> (i32, i32) {
    %c0_i32 = arith.constant 0 : i32
    %c0_i32_0 = arith.constant 0 : i32
    return %arg0, %c0_i32 : i32, i32
  }
}

</mosaic_0001>

<bundles_post_ra>
// kernel: mcts_cnn_forward.1
= control target key start
LH: loop header
LB: loop body
LE: loop exit
PB: predicated region body
PF: predicated region fallthrough
CT: control target
= control target key end

     0   :  { %14 = vsyncpa [#allocation3], 0  ;;  %s17725_s0 = inlined_call_operand.vmem [shape: bf16[32,768], index: 0, kind: input, shape index: {}]   ;;  %s17726_s1 = inlined_call_operand.hbm [shape: bf16[768,2048], index: 1, kind: input, shape index: {}]   ;;  %s17727_s2 = inlined_call_operand.hbm [shape: f32[1,2048], index: 2, kind: input, shape index: {}]   ;;  %s17728_s3 = inlined_call_operand.hbm [shape: bf16[768,256], index: 3, kind: input, shape index: {}]   ;;  %s17729_s4 = inlined_call_operand.hbm [shape: f32[1,256], index: 4, kind: input, shape index: {}]   ;;  %s17730_s5 = inlined_call_operand.hbm [shape: bf16[2048,128], index: 5, kind: input, shape index: {}]   ;;  %s17731_s6 = inlined_call_operand.hbm [shape: f32[1,128], index: 6, kind: input, shape index: {}]   ;;  %s17732_s7 = inlined_call_operand.hbm [shape: bf16[128,128], index: 7, kind: input, shape index: {}]   ;;  %s17733_s8 = inlined_call_operand.hbm [shape: f32[1,128], index: 8, kind: input, shape index: {}]   ;;  %s17734_s9 = inlined_call_operand.vmem [shape: f32[32,128], index: 9, kind: output, shape index: {}]  }
   0x1   :  { %15 = vsyncpa [#allocation5], 0 }
   0x2   :  { %16 = vsyncpa [#allocation8], 0 }
   0x3   :  { %17 = vsyncpa [#allocation11], 0 }
   0x4   :  { %18 = vsyncpa [#allocation14], 0  ;;  %s15556_s30 = smov 0  }
   0x5 LB: > { %s275_s12 = sshll.u32 %s17727_s2, 4  ;;  %s10065_s13 = sadd.s32 4294967295, %s15490_s30   ;;  %s15490_s30 = sphi %s15556_s30, %s24_s30   ;;  %s276_s12 = int_to_ptr.hbm [resolvable:$true] %s275_s12 }
   0x6   : > { %p10067_p0 = scmp.ge.s32.totalorder %s15490_s30, 1  ;;  %p249_p1 = scmp.lt.s32.totalorder %s15490_s30, 3 }
   0x7   : > { %p15569_p2 = scmp.eq.s32.totalorder %s10065_s13, 0  ;;  %s15492_s16 = smov [#allocation4]  }
   0x8   : > { %p15573_p3 = pnand %p10067_p0, %p249_p1  ;;  %s277_s17 = sshll.u32 %s15492_s16, 4  ;;  %s278_s17 = int_to_ptr.vmem [resolvable:$true] %s277_s17 }
   0x9   : > { %s301_s20 = sshll.u32 %s17729_s4, 4  ;;  %s327_s23 = sshll.u32 %s17731_s6, 4  ;;  %s302_s20 = int_to_ptr.hbm [resolvable:$true] %s301_s20  ;;  %s328_s23 = int_to_ptr.hbm [resolvable:$true] %s327_s23 }
   0xa   : > { %p15155_p4 = pneg %p15573_p3  ;;  %s15493_s25 = smov [#allocation7]  }
   0xb   : > { %s303_s26 = sshll.u32 %s15493_s25, 4  ;;  %s15494_s27 = smov [#allocation10]   ;;  %s304_s26 = int_to_ptr.vmem [resolvable:$true] %s303_s26 }
   0xc   : > { %p15587_p5 = pnand %p15569_p2, %p15155_p4  ;;  %s329_s28 = sshll.u32 %s15494_s27, 4  ;;  %s330_s28 = int_to_ptr.vmem [resolvable:$true] %s329_s28 }
   0xd   : > { %s260_s11 = sshll.u32 %s17726_s1, 4  ;;  %s15495_s16 = smov [#allocation2]   ;;  %s261_s11 = int_to_ptr.hbm [resolvable:$true] %s260_s11 }
   0xe   : > { %15161 = dma.hbm_to_vmem [thread:$0]  (!%p15587_p5), %s276_s12, 256, %s278_s17, [#allocation5]  }
   0xf   : > { %15167 = dma.hbm_to_vmem [thread:$0]  (!%p15587_p5), %s302_s20, 32, %s304_s26, [#allocation8]  }
  0x10   : > { %15173 = dma.hbm_to_vmem [thread:$0]  (!%p15587_p5), %s328_s23, 16, %s330_s28, [#allocation11]  }
  0x11   : > { %s262_s18 = sshll.u32 %s15495_s16, 4  ;;  %s286_s12 = sshll.u32 %s17728_s3, 4  ;;  %s263_s18 = int_to_ptr.vmem [resolvable:$true] %s262_s18  ;;  %s287_s12 = int_to_ptr.hbm [resolvable:$true] %s286_s12 }
  0x12   : > { %s15496_s17 = smov 1024   ;;  %s15497_s20 = smov 64  }
  0x13   : > { %15158 = dma.hbm_to_vmem [thread:$0]  (!%p15587_p5), %s261_s11, 98304, %s263_s18, [#allocation3], %s15496_s17, %s15496_s17, %s15497_s20  }
  0x14   : > { %s15498_s22 = smov [#allocation6]   ;;  %s15499_s26 = smov 128  }
  0x15   : > { %s288_s25 = sshll.u32 %s15498_s22, 4  ;;  %s15500_s27 = smov 8   ;;  %s289_s25 = int_to_ptr.vmem [resolvable:$true] %s288_s25 }
  0x16   : > { %15164 = dma.hbm_to_vmem [thread:$0]  (!%p15587_p5), %s287_s12, 12288, %s289_s25, [#allocation5], %s15499_s26, %s15499_s26, %s15500_s27  }
  0x17   : > { %s312_s29 = sshll.u32 %s17730_s5, 4  ;;  %s15501_s10 = smov [#allocation9]   ;;  %s313_s29 = int_to_ptr.hbm [resolvable:$true] %s312_s29 }
  0x18   : > { %s314_s16 = sshll.u32 %s15501_s10, 4  ;;  %s15502_s19 = smov 4   ;;  %s315_s16 = int_to_ptr.vmem [resolvable:$true] %s314_s16 }
  0x19   : > { %15170 = dma.hbm_to_vmem [thread:$0]  (!%p15587_p5), %s313_s29, 16384, %s315_s16, [#allocation8], %s15497_s20, %s15497_s20, %s15502_s19  }
  0x1a   : > { %s338_s21 = sshll.u32 %s17732_s7, 4  ;;  %s15503_s17 = smov [#allocation12]   ;;  %s339_s21 = int_to_ptr.hbm [resolvable:$true] %s338_s21 }
  0x1b   : > { %s340_s22 = sshll.u32 %s15503_s17, 4  ;;  %s353_s26 = sshll.u32 %s17733_s8, 4  ;;  %s341_s22 = int_to_ptr.vmem [resolvable:$true] %s340_s22  ;;  %s354_s26 = int_to_ptr.hbm [resolvable:$true] %s353_s26 }
  0x1c   : > { %15176 = dma.hbm_to_vmem [thread:$0]  (!%p15587_p5), %s339_s21, 1024, %s341_s22, [#allocation11], %s15497_s20, %s15497_s20, %s15502_s19  }
  0x1d   : > { %s15504_s27 = smov [#allocation13]   ;;  %378 = sbr.rel (%p15573_p3) target bundleno = 2266 (0x8da), region = 56 }
  0x1e   : > { %s355_s23 = sshll.u32 %s15504_s27, 4  ;;  %s356_s23 = int_to_ptr.vmem [resolvable:$true] %s355_s23 }
  0x1f   : > { %15179 = dma.hbm_to_vmem [thread:$0]  (!%p15587_p5), %s354_s26, 16, %s356_s23, [#allocation14]  }
  0x22   : > { %15469 = dma.done.wait (%p15569_p2), [#allocation3], 98304  }
  0x23   : > { %15471 = vsyncadd (%p15569_p2), [#allocation3], 4294868992 }
  0x24   : > { %15473 = dma.done.wait (%p15569_p2), [#allocation5], 12544  }
  0x25   : > { %15475 = vsyncadd (%p15569_p2), [#allocation5], 4294954752 }
  0x26   : > { %15477 = dma.done.wait (%p15569_p2), [#allocation8], 16416  }
  0x27   : > { %15479 = vsyncadd (%p15569_p2), [#allocation8], 4294950880 }
  0x28   : > { %15481 = dma.done.wait (%p15569_p2), [#allocation11], 1040  }
  0x29   : > { %15483 = vsyncadd (%p15569_p2), [#allocation11], 4294966256 }
  0x2a   : > { %15485 = dma.done.wait (%p15569_p2), [#allocation14], 16  }
  0x2b   : > { %15487 = vsyncadd (%p15569_p2), [#allocation14], 4294967280  ;;  %v10564_v0 = vld [vmem:[#allocation2 + $0x380] sm:$0xf]  ;;  %s15646_s14 = sshll.u32 %s10065_s13, 1 }
  0x2c   : > { %v14242_v1 = vld [vmem:[#allocation2 + $0x3bc] sm:$0xf0]  ;;  %p452_p6 = scmp.lt.s32.totalorder %s15646_s14, 3 }
  0x2d   : > { %v11076_v2 = vld [vmem:[#allocation2 + $0x780] sm:$0xf]  ;;  %v10565_v3 = vor.u32 %v14242_v1, %v10564_v0 }
  0x2e   : > { %v14370_v4 = vld [vmem:[#allocation2 + $0x7bc] sm:$0xf0]  ;;  %s18769_s14 = smov (!%p452_p6, %s15646_s14), 3 }
  0x2f   : > { %v11588_v5 = vld [vmem:[#allocation2 + $0xb80] sm:$0xf]  ;;  %v11077_v7 = vor.u32 %v14370_v4, %v11076_v2  ;;  %5145 = vmatpush.bf16.msra.mxu0 %v10565_v3  ;;  %s15122_s13 = smul.u32 24, %s18769_s14  ;;  %s10089_s28 = sshll.u32 %s18769_s14, 3 }
  0x30   : > { %v14498_v6 = vld [vmem:[#allocation2 + $0xbbc] sm:$0xf0]  ;;  %s462_s16 = scalar_lea.vmem %s17734_s9, %s10089_s28 }
  0x31   : > { %v11589_v8 = vor.u32 %v14498_v6, %v11588_v5  ;;  %v12100_v9 = vld [vmem:[#allocation2 + $0xf80] sm:$0xf]  ;;  %5159 = vmatpush.bf16.msra.mxu1 %v11077_v7  ;;  %s15660_s20 = scalar_lea.vmem %s17725_s0, %s15122_s13 }
  0x32   : > { %v14626_v10 = vld [vmem:[#allocation2 + $0xfbc] sm:$0xf0] }
  0x33   : > { %v10500_v11 = vld [vmem:[#allocation2 + $0x300] sm:$0xf]  ;;  %v12101_v12 = vor.u32 %v14626_v10, %v12100_v9  ;;  %5173 = vmatpush.bf16.msra.mxu2 %v11589_v8 }
  0x34   : > { %v14226_v13 = vld [vmem:[#allocation2 + $0x33c] sm:$0xf0] }
  0x35   : > { %v11012_v14 = vld [vmem:[#allocation2 + $0x700] sm:$0xf]  ;;  %v10501_v16 = vor.u32 %v14226_v13, %v10500_v11  ;;  %5187 = vmatpush.bf16.msra.mxu3 %v12101_v12 }
  0x36   : > { %v14354_v15 = vld [vmem:[#allocation2 + $0x73c] sm:$0xf0] }
  0x37   : > { %v11013_v17 = vor.u32 %v14354_v15, %v11012_v14  ;;  %v11524_v18 = vld [vmem:[#allocation2 + $0xb00] sm:$0xf]  ;;  %5146 = vmatpush.bf16.msra.mxu0 %v10501_v16 }
  0x38   : > { %v14482_v19 = vld [vmem:[#allocation2 + $0xb3c] sm:$0xf0] }
  0x39   : > { %v12036_v20 = vld [vmem:[#allocation2 + $0xf00] sm:$0xf]  ;;  %v11525_v21 = vor.u32 %v14482_v19, %v11524_v18  ;;  %5160 = vmatpush.bf16.msra.mxu1 %v11013_v17 }
  0x3a   : > { %v14610_v22 = vld [vmem:[#allocation2 + $0xf3c] sm:$0xf0] }
  0x3b   : > { %v10436_v23 = vld [vmem:[#allocation2 + $0x280] sm:$0xf]  ;;  %v12037_v25 = vor.u32 %v14610_v22, %v12036_v20  ;;  %5174 = vmatpush.bf16.msra.mxu2 %v11525_v21 }
  0x3c   : > { %v14210_v24 = vld [vmem:[#allocation2 + $0x2bc] sm:$0xf0] }
  0x3d   : > { %v10948_v26 = vld [vmem:[#allocation2 + $0x680] sm:$0xf]  ;;  %v10437_v29 = vor.u32 %v14210_v24, %v10436_v23  ;;  %5188 = vmatpush.bf16.msra.mxu3 %v12037_v25 }
  0x3e   : > { %v14338_v27 = vld [vmem:[#allocation2 + $0x6bc] sm:$0xf0] }
  0x3f   : > { %v11460_v28 = vld [vmem:[#allocation2 + $0xa80] sm:$0xf]  ;;  %v10949_v33 = vor.u32 %v14338_v27, %v10948_v26  ;;  %5147 = vmatpush.bf16.msra.mxu0 %v10437_v29 }
  0x40   : > { %v14466_v30 = vld [vmem:[#allocation2 + $0xabc] sm:$0xf0] }
  0x41   : > { %v11972_v31 = vld [vmem:[#allocation2 + $0xe80] sm:$0xf]  ;;  %v11461_v34 = vor.u32 %v14466_v30, %v11460_v28  ;;  %5161 = vmatpush.bf16.msra.mxu1 %v10949_v33  ;;  %v14234_v33 = vld [vmem:[#allocation2 + $0x384] sm:$0xf] }
  0x42   : > { %v14594_v32 = vld [vmem:[#allocation2 + $0xebc] sm:$0xf0] }
  0x43   : > { %v10372_v35 = vld [vmem:[#allocation2 + $0x200] sm:$0xf]  ;;  %v11973_v38 = vor.u32 %v14594_v32, %v11972_v31  ;;  %5175 = vmatpush.bf16.msra.mxu2 %v11461_v34  ;;  %v10566_v34 = vld [vmem:[#allocation2 + $0x3c0] sm:$0xf0] }
  0x44   : > { %v14194_v36 = vld [vmem:[#allocation2 + $0x23c] sm:$0xf0] }
  0x45   : > { %v10884_v37 = vld [vmem:[#allocation2 + $0x600] sm:$0xf]  ;;  %v10373_v44 = vor.u32 %v14194_v36, %v10372_v35  ;;  %5189 = vmatpush.bf16.msra.mxu3 %v11973_v38  ;;  %v11078_v38 = vld [vmem:[#allocation2 + $0x7c0] sm:$0xf0] }
  0x46   : > { %v14322_v39 = vld [vmem:[#allocation2 + $0x63c] sm:$0xf0] }
  0x47   : > { %v11396_v40 = vld [vmem:[#allocation2 + $0xa00] sm:$0xf]  ;;  %v10885_v45 = vor.u32 %v14322_v39, %v10884_v37  ;;  %5148 = vmatpush.bf16.msra.mxu0 %v10373_v44  ;;  %v14362_v37 = vld [vmem:[#allocation2 + $0x784] sm:$0xf] }
  0x48   : > { %v14450_v41 = vld [vmem:[#allocation2 + $0xa3c] sm:$0xf0] }
  0x49   : > { %v11908_v42 = vld [vmem:[#allocation2 + $0xe00] sm:$0xf]  ;;  %v11397_v46 = vor.u32 %v14450_v41, %v11396_v40  ;;  %5162 = vmatpush.bf16.msra.mxu1 %v10885_v45 }
  0x4a   : > { %v14578_v43 = vld [vmem:[#allocation2 + $0xe3c] sm:$0xf0] }
  0x4b   : > { %v10308_v47 = vld [vmem:[#allocation2 + $0x180] sm:$0xf]  ;;  %v11909_v50 = vor.u32 %v14578_v43, %v11908_v42  ;;  %5176 = vmatpush.bf16.msra.mxu2 %v11397_v46  ;;  %v10569_v43 = vor.u32 %v14234_v33, %v10566_v34  ;;  %v10310_v33 = vld [vmem:[#allocation2 + $0x1c0] sm:$0xf0] }
  0x4c   : > { %v14178_v48 = vld [vmem:[#allocation2 + $0x1bc] sm:$0xf0]  ;;  %v14298_v34 = vld [vmem:[#allocation2 + $0x584] sm:$0xf] }
  0x4d   : > { %v10820_v49 = vld [vmem:[#allocation2 + $0x580] sm:$0xf]  ;;  %v10309_v56 = vor.u32 %v14178_v48, %v10308_v47  ;;  %5190 = vmatpush.bf16.msra.mxu3 %v11909_v50  ;;  %v11081_v47 = vor.u32 %v14362_v37, %v11078_v38  ;;  %v14218_v48 = vld [vmem:[#allocation2 + $0x304] sm:$0xf] }
  0x4e   : > { %v14306_v51 = vld [vmem:[#allocation2 + $0x5bc] sm:$0xf0]  ;;  %v14346_v50 = vld [vmem:[#allocation2 + $0x704] sm:$0xf] }
  0x4f   : > { %v11332_v52 = vld [vmem:[#allocation2 + $0x980] sm:$0xf]  ;;  %v10821_v57 = vor.u32 %v14306_v51, %v10820_v49  ;;  %5149 = vmatpush.bf16.msra.mxu0 %v10309_v56  ;;  %v10502_v49 = vld [vmem:[#allocation2 + $0x340] sm:$0xf0] }
  0x50   : > { %v14434_v53 = vld [vmem:[#allocation2 + $0x9bc] sm:$0xf0]  ;;  %v11014_v51 = vld [vmem:[#allocation2 + $0x740] sm:$0xf0] }
  0x51   : > { %v11844_v54 = vld [vmem:[#allocation2 + $0xd80] sm:$0xf]  ;;  %v11333_v58 = vor.u32 %v14434_v53, %v11332_v52  ;;  %5163 = vmatpush.bf16.msra.mxu1 %v10821_v57  ;;  %v14119_v53 = vld [vmem:[%s15660_s20 + $0x14] sm:$0xf0] }
  0x52   : > { %v14562_v55 = vld [vmem:[#allocation2 + $0xdbc] sm:$0xf0] }
  0x53   : > { %v10244_v59 = vld [vmem:[#allocation2 + $0x100] sm:$0xf]  ;;  %v11845_v62 = vor.u32 %v14562_v55, %v11844_v54  ;;  %5177 = vmatpush.bf16.msra.mxu2 %v11333_v58 }
  0x54   : > { %v14162_v60 = vld [vmem:[#allocation2 + $0x13c] sm:$0xf0] }
  0x55   : > { %v10756_v61 = vld [vmem:[#allocation2 + $0x500] sm:$0xf]  ;;  %v10245_v4 = vor.u32 %v14162_v60, %v10244_v59  ;;  %5191 = vmatpush.bf16.msra.mxu3 %v11845_v62  ;;  %v10505_v59 = vor.u32 %v14218_v48, %v10502_v49  ;;  %v14202_v62 = vld [vmem:[#allocation2 + $0x284] sm:$0xf] }
  0x56   : > { %v14290_v63 = vld [vmem:[#allocation2 + $0x53c] sm:$0xf0] }
  0x57   : > { %v11268_v0 = vld [vmem:[#allocation2 + $0x900] sm:$0xf]  ;;  %v10757_v5 = vor.u32 %v14290_v63, %v10756_v61  ;;  %5150 = vmatpush.bf16.msra.mxu0 %v10245_v4  ;;  %v11017_v63 = vor.u32 %v14346_v50, %v11014_v51  ;;  %v10950_v4 = vld [vmem:[#allocation2 + $0x6c0] sm:$0xf0] }
  0x58   : > { %v14418_v1 = vld [vmem:[#allocation2 + $0x93c] sm:$0xf0] }
  0x59   : > { %v11780_v2 = vld [vmem:[#allocation2 + $0xd00] sm:$0xf]  ;;  %v11269_v6 = vor.u32 %v14418_v1, %v11268_v0  ;;  %5164 = vmatpush.bf16.msra.mxu1 %v10757_v5  ;;  %v10438_v0 = vld [vmem:[#allocation2 + $0x2c0] sm:$0xf0] }
  0x5a   : > { %v14546_v3 = vld [vmem:[#allocation2 + $0xd3c] sm:$0xf0]  ;;  %v14116_v1 = vld [vmem:[%s15660_s20 + $0x4] sm:$0xf] }
  0x5b   : > { %v10180_v7 = vld [vmem:[#allocation2 + $0x80] sm:$0xf]  ;;  %v11781_v10 = vor.u32 %v14546_v3, %v11780_v2  ;;  %5178 = vmatpush.bf16.msra.mxu2 %v11269_v6  ;;  %v10094_v2 = vld [vmem:[%s15660_s20 + $0x18] sm:$0xf0]  ;;  %v14330_v3 = vld [vmem:[#allocation2 + $0x684] sm:$0xf] }
  0x5c   : > { %v14146_v8 = vld [vmem:[#allocation2 + $0xbc] sm:$0xf0]  ;;  %v15669_v6 = vor.u32 %v14116_v1, %v10094_v2 }
  0x5d   : > { %v10692_v9 = vld [vmem:[#allocation2 + $0x480] sm:$0xf]  ;;  %v10181_v16 = vor.u32 %v14146_v8, %v10180_v7  ;;  %5192 = vmatpush.bf16.msra.mxu3 %v11781_v10 }
  0x5e   : > { %v14274_v11 = vld [vmem:[#allocation2 + $0x4bc] sm:$0xf0] }
  0x5f   : > { %v11204_v12 = vld [vmem:[#allocation2 + $0x880] sm:$0xf]  ;;  %v10693_v19 = vor.u32 %v14274_v11, %v10692_v9  ;;  %5151 = vmatpush.bf16.msra.mxu0 %v10181_v16  ;;  %v10953_v16 = vor.u32 %v14330_v3, %v10950_v4  ;;  %v14122_v4 = vld [vmem:[#allocation2 + $0x4] sm:$0xf] }
  0x60   : > { %v14402_v13 = vld [vmem:[#allocation2 + $0x8bc] sm:$0xf0] }
  0x61   : > { %v11716_v14 = vld [vmem:[#allocation2 + $0xc80] sm:$0xf]  ;;  %v11205_v20 = vor.u32 %v14402_v13, %v11204_v12  ;;  %5165 = vmatpush.bf16.msra.mxu1 %v10693_v19  ;;  %v10441_v12 = vor.u32 %v14202_v62, %v10438_v0  ;;  %v14186_v13 = vld [vmem:[#allocation2 + $0x204] sm:$0xf] }
  0x62   : > { %v14530_v15 = vld [vmem:[#allocation2 + $0xcbc] sm:$0xf0]  ;;  %v10102_v19 = vld [vmem:[%s15660_s20 + $0x20] sm:$0xf0] }
  0x63   : > { %v10116_v17 = vld [vmem:[#allocation2] sm:$0xf]  ;;  %v11717_v24 = vor.u32 %v14530_v15, %v11716_v14  ;;  %5179 = vmatpush.bf16.msra.mxu2 %v11205_v20  ;;  %v10374_v14 = vld [vmem:[#allocation2 + $0x240] sm:$0xf0]  ;;  %v10100_v15 = vld [vmem:[%s15660_s20 + $0x8] sm:$0xf] }
  0x64   : > { %v14130_v18 = vld [vmem:[#allocation2 + $0x3c] sm:$0xf0]  ;;  %v14314_v20 = vld [vmem:[#allocation2 + $0x604] sm:$0xf] }
  0x65   : > { %v10628_v21 = vld [vmem:[#allocation2 + $0x400] sm:$0xf]  ;;  %v10117_v31 = vor.u32 %v14130_v18, %v10116_v17  ;;  %5193 = vmatpush.bf16.msra.mxu3 %v11717_v24  ;;  %v14117_v18 = vld [vmem:[%s15660_s20 + $0xc] sm:$0xf] }
  0x66   : > { %v14258_v22 = vld [vmem:[#allocation2 + $0x43c] sm:$0xf0] }
  0x67   : > { %v11140_v23 = vld [vmem:[#allocation2 + $0x800] sm:$0xf]  ;;  %v10629_v35 = vor.u32 %v14258_v22, %v10628_v21  ;;  %5152 = vmatpush.bf16.msra.mxu0 %v10117_v31  ;;  %v10886_v21 = vld [vmem:[#allocation2 + $0x640] sm:$0xf0] }
  0x68   : > { %v14386_v25 = vld [vmem:[#allocation2 + $0x83c] sm:$0xf0] }
  0x69   : > { %v11652_v26 = vld [vmem:[#allocation2 + $0xc00] sm:$0xf]  ;;  %v11141_v36 = vor.u32 %v14386_v25, %v11140_v23  ;;  %5166 = vmatpush.bf16.msra.mxu1 %v10629_v35  ;;  %v15678_v23 = vor.u32 %v14117_v18, %v10102_v19  ;;  %v10822_v35 = vld [vmem:[#allocation2 + $0x5c0] sm:$0xf0] }
  0x6a   : > { %v14514_v27 = vld [vmem:[#allocation2 + $0xc3c] sm:$0xf0] }
  0x6b   : > { %v12612_v28 = vld [vmem:[#allocation2 + $0x1380] sm:$0xf]  ;;  %v11653_v39 = vor.u32 %v14514_v27, %v11652_v26  ;;  %5180 = vmatpush.bf16.msra.mxu2 %v11141_v36  ;;  %v10377_v26 = vor.u32 %v14186_v13, %v10374_v14  ;;  %v12102_v13 = vld [vmem:[#allocation2 + $0xfc0] sm:$0xf0] }
  0x6c   : > { %v14754_v29 = vld [vmem:[#allocation2 + $0x13bc] sm:$0xf0]  ;;  %5167 = vmatmul.bf16.vlgmr.msra.gmra.mxu1 %v15669_v6 }
  0x6d   : > { %v13124_v30 = vld [vmem:[#allocation2 + $0x1780] sm:$0xf]  ;;  %v12613_v40 = vor.u32 %v14754_v29, %v12612_v28  ;;  %5194 = vmatpush.bf16.msra.mxu3 %v11653_v39 }
  0x6e   : > { %v14882_v32 = vld [vmem:[#allocation2 + $0x17bc] sm:$0xf0] }
  0x6f   : > { %v12548_v41 = vld [vmem:[#allocation2 + $0x1300] sm:$0xf]  ;;  %v13125_v42 = vor.u32 %v14882_v32, %v13124_v30  ;;  %5201 = vmatpush.bf16.msrb.mxu0 %v12613_v40  ;;  %5229 = vmatpush.bf16.msrb.mxu2 %v10569_v43  ;;  %v10889_v30 = vor.u32 %v14314_v20, %v10886_v21  ;;  %v14170_v32 = vld [vmem:[#allocation2 + $0x184] sm:$0xf]  ;;  %v10108_v21 = vld [vmem:[%s15660_s20 + $0x10] sm:$0xf] }
  0x70   : > { %v14738_v44 = vld [vmem:[#allocation2 + $0x133c] sm:$0xf0]  ;;  %5195 = vmatmul.bf16.vlgmr.msra.gmra.mxu3 %v15678_v23  ;;  %v10313_v38 = vor.u32 %v14170_v32, %v10310_v33  ;;  %v13126_v20 = vld [vmem:[#allocation2 + $0x17c0] sm:$0xf0] }
  0x71   : > { %v13060_v45 = vld [vmem:[#allocation2 + $0x1700] sm:$0xf]  ;;  %v12549_v54 = vor.u32 %v14738_v44, %v12548_v41  ;;  %5215 = vmatpush.bf16.msrb.mxu1 %v13125_v42  ;;  %5243 = vmatpush.bf16.msrb.mxu3 %v11081_v47  ;;  %v10825_v42 = vor.u32 %v14298_v34, %v10822_v35  ;;  %v14154_v44 = vld [vmem:[#allocation2 + $0x104] sm:$0xf] }
  0x72   : > { %v14866_v46 = vld [vmem:[#allocation2 + $0x173c] sm:$0xf0]  ;;  %v10758_v47 = vld [vmem:[#allocation2 + $0x540] sm:$0xf0] }
  0x73   : > { %v10092_v52 = vld [vmem:[%s15660_s20] sm:$0xf]  ;;  %v13061_v58 = vor.u32 %v14866_v46, %v13060_v45  ;;  %5202 = vmatpush.bf16.msrb.mxu0 %v12549_v54  ;;  %5230 = vmatpush.bf16.msrb.mxu2 %v10505_v59  ;;  %v10246_v45 = vld [vmem:[#allocation2 + $0x140] sm:$0xf0] }
  0x74   : > { %v12484_v55 = vld [vmem:[#allocation2 + $0x1280] sm:$0xf]  ;;  %v15664_v57 = vor.u32 %v14119_v53, %v10092_v52  ;;  %v14282_v46 = vld [vmem:[#allocation2 + $0x504] sm:$0xf]  ;;  %v10249_v50 = vor.u32 %v14154_v44, %v10246_v45 }
  0x75   : > { %v14722_v56 = vld [vmem:[#allocation2 + $0x12bc] sm:$0xf0]  ;;  %5216 = vmatpush.bf16.msrb.mxu1 %v13061_v58  ;;  %5244 = vmatpush.bf16.msrb.mxu3 %v11017_v63  ;;  %v10761_v54 = vor.u32 %v14282_v46, %v10758_v47  ;;  %v10182_v58 = vld [vmem:[#allocation2 + $0xc0] sm:$0xf0] }
  0x76   : > { %v12996_v60 = vld [vmem:[#allocation2 + $0x1680] sm:$0xf]  ;;  %5153 = vmatmul.bf16.vlgmr.msra.gmra.mxu0 %v15664_v57  ;;  %v12485_v7 = vor.u32 %v14722_v56, %v12484_v55  ;;  %v14138_v56 = vld [vmem:[#allocation2 + $0x84] sm:$0xf] }
  0x77   : > { %v14850_v61 = vld [vmem:[#allocation2 + $0x16bc] sm:$0xf0]  ;;  %5231 = vmatpush.bf16.msrb.mxu2 %v10441_v12  ;;  %v14266_v59 = vld [vmem:[#allocation2 + $0x484] sm:$0xf]  ;;  %v10185_v2 = vor.u32 %v14138_v56, %v10182_v58 }
  0x78   : > { %v12420_v5 = vld [vmem:[#allocation2 + $0x1200] sm:$0xf]  ;;  %v12997_v11 = vor.u32 %v14850_v61, %v12996_v60  ;;  %5203 = vmatpush.bf16.msrb.mxu0 %v12485_v7  ;;  %v10694_v60 = vld [vmem:[#allocation2 + $0x4c0] sm:$0xf0] }
  0x79   : > { %v14706_v8 = vld [vmem:[#allocation2 + $0x123c] sm:$0xf0]  ;;  %5245 = vmatpush.bf16.msrb.mxu3 %v10953_v16  ;;  %v10697_v7 = vor.u32 %v14266_v59, %v10694_v60  ;;  %v14618_v12 = vld [vmem:[#allocation2 + $0xf84] sm:$0xf] }
  0x7a   : > { %v12932_v9 = vld [vmem:[#allocation2 + $0x1600] sm:$0xf]  ;;  %v12421_v24 = vor.u32 %v14706_v8, %v12420_v5  ;;  %5217 = vmatpush.bf16.msrb.mxu1 %v12997_v11  ;;  %v10118_v5 = vld [vmem:[#allocation2 + $0x40] sm:$0xf0] }
  0x7b   : > { %v14834_v10 = vld [vmem:[#allocation2 + $0x163c] sm:$0xf0]  ;;  %5232 = vmatpush.bf16.msrb.mxu2 %v10377_v26  ;;  %v14250_v8 = vld [vmem:[#allocation2 + $0x404] sm:$0xf]  ;;  %v10121_v19 = vor.u32 %v14122_v4, %v10118_v5 }
  0x7c   : > { %v14120_v17 = vld [vmem:[%s15660_s20 + $0x1c] sm:$0xf0]  ;;  %v12933_v25 = vor.u32 %v14834_v10, %v12932_v9  ;;  %5204 = vmatpush.bf16.msrb.mxu0 %v12421_v24  ;;  %v10630_v9 = vld [vmem:[#allocation2 + $0x440] sm:$0xf0]  ;;  %v14121_v24 = vld [vmem:[%s15660_s20 + $0x24] sm:$0xf0] }
  0x7d   : > { %v15676_v22 = vor.u32 %v14120_v17, %v10100_v15  ;;  %v12356_v27 = vld [vmem:[#allocation2 + $0x1180] sm:$0xf]  ;;  %5246 = vmatpush.bf16.msrb.mxu3 %v10889_v30  ;;  %v14490_v10 = vld [vmem:[#allocation2 + $0xb84] sm:$0xf]  ;;  %v15686_v35 = vor.u32 %v14121_v24, %v10108_v21 }
  0x7e   : > { %v14690_v28 = vld [vmem:[#allocation2 + $0x11bc] sm:$0xf0]  ;;  %5218 = vmatpush.bf16.msrb.mxu1 %v12933_v25  ;;  %v11590_v11 = vld [vmem:[#allocation2 + $0xbc0] sm:$0xf0]  ;;  %v10633_v25 = vor.u32 %v14250_v8, %v10630_v9 }
  0x7f   : > { %v12868_v29 = vld [vmem:[#allocation2 + $0x1580] sm:$0xf]  ;;  %5181 = vmatmul.bf16.vlgmr.msra.gmra.mxu2 %v15676_v22  ;;  %v12357_v36 = vor.u32 %v14690_v28, %v12356_v27  ;;  %v14746_v15 = vld [vmem:[#allocation2 + $0x1384] sm:$0xf]  ;;  %v11593_v26 = vor.u32 %v14490_v10, %v11590_v11  ;;  %v14118_v27 = vld [vmem:[%s15660_s20 + $0x14] sm:$0xf] }
  0x80   : > { %v14818_v31 = vld [vmem:[#allocation2 + $0x15bc] sm:$0xf0]  ;;  %5233 = vmatpush.bf16.msrb.mxu2 %v10313_v38  ;;  %v12614_v16 = vld [vmem:[#allocation2 + $0x13c0] sm:$0xf0]  ;;  %v10110_v28 = vld [vmem:[%s15660_s20 + $0x28] sm:$0xf0] }
  0x81   : > { %v12869_v37 = vor.u32 %v14818_v31, %v12868_v29  ;;  %v12292_v39 = vld [vmem:[#allocation2 + $0x1100] sm:$0xf]  ;;  %5205 = vmatpush.bf16.msrb.mxu0 %v12357_v36  ;;  %5247 = vmatpush.bf16.msrb.mxu3 %v10825_v42  ;;  %v14874_v17 = vld [vmem:[#allocation2 + $0x1784] sm:$0xf]  ;;  %v12105_v29 = vor.u32 %v14618_v12, %v12102_v13  ;;  %v12617_v30 = vor.u32 %v14746_v15, %v12614_v16 }
  0x82   : > { %v14674_v40 = vld [vmem:[#allocation2 + $0x113c] sm:$0xf0]  ;;  %v14474_v31 = vld [vmem:[#allocation2 + $0xb04] sm:$0xf]  ;;  %v13129_v34 = vor.u32 %v14874_v17, %v13126_v20 }
  0x83   : > { %v12804_v41 = vld [vmem:[#allocation2 + $0x1500] sm:$0xf]  ;;  %v12293_v48 = vor.u32 %v14674_v40, %v12292_v39  ;;  %5219 = vmatpush.bf16.msrb.mxu1 %v12869_v37  ;;  %v11526_v32 = vld [vmem:[#allocation2 + $0xb40] sm:$0xf0]  ;;  %v15688_v39 = vor.u32 %v14118_v27, %v10110_v28 }
  0x84   : > { %v14802_v43 = vld [vmem:[#allocation2 + $0x153c] sm:$0xf0]  ;;  %5234 = vmatpush.bf16.msrb.mxu2 %v10249_v50  ;;  %v14602_v33 = vld [vmem:[#allocation2 + $0xf04] sm:$0xf]  ;;  %v11529_v42 = vor.u32 %v14474_v31, %v11526_v32 }
  0x85   : > { %v12805_v49 = vor.u32 %v14802_v43, %v12804_v41  ;;  %v12228_v51 = vld [vmem:[#allocation2 + $0x1080] sm:$0xf]  ;;  %5206 = vmatpush.bf16.msrb.mxu0 %v12293_v48  ;;  %5248 = vmatpush.bf16.msrb.mxu3 %v10761_v54  ;;  %v12038_v36 = vld [vmem:[#allocation2 + $0xf40] sm:$0xf0] }
  0x86   : > { %v14658_v52 = vld [vmem:[#allocation2 + $0x10bc] sm:$0xf0]  ;;  %v14730_v37 = vld [vmem:[#allocation2 + $0x1304] sm:$0xf]  ;;  %v12041_v43 = vor.u32 %v14602_v33, %v12038_v36 }
  0x87   : > { %v12740_v53 = vld [vmem:[#allocation2 + $0x1480] sm:$0xf]  ;;  %v12229_v61 = vor.u32 %v14658_v52, %v12228_v51  ;;  %5220 = vmatpush.bf16.msrb.mxu1 %v12805_v49  ;;  %v12550_v38 = vld [vmem:[#allocation2 + $0x1340] sm:$0xf0] }
  0x88   : > { %v14786_v55 = vld [vmem:[#allocation2 + $0x14bc] sm:$0xf0]  ;;  %5235 = vmatpush.bf16.msrb.mxu2 %v10185_v2  ;;  %v14858_v40 = vld [vmem:[#allocation2 + $0x1704] sm:$0xf]  ;;  %v12553_v44 = vor.u32 %v14730_v37, %v12550_v38 }
  0x89   : > { %v12164_v62 = vld [vmem:[#allocation2 + $0x1000] sm:$0xf]  ;;  %v12741_v1 = vor.u32 %v14786_v55, %v12740_v53  ;;  %5207 = vmatpush.bf16.msrb.mxu0 %v12229_v61  ;;  %5249 = vmatpush.bf16.msrb.mxu3 %v10697_v7  ;;  %v13062_v41 = vld [vmem:[#allocation2 + $0x1740] sm:$0xf0] }
  0x8a   : > { %v14642_v63 = vld [vmem:[#allocation2 + $0x103c] sm:$0xf0]  ;;  %v14458_v45 = vld [vmem:[#allocation2 + $0xa84] sm:$0xf]  ;;  %v13065_v48 = vor.u32 %v14858_v40, %v13062_v41 }
  0x8b   : > { %v12676_v0 = vld [vmem:[#allocation2 + $0x1400] sm:$0xf]  ;;  %v12165_v14 = vor.u32 %v14642_v63, %v12164_v62  ;;  %5221 = vmatpush.bf16.msrb.mxu1 %v12741_v1  ;;  %v11462_v46 = vld [vmem:[#allocation2 + $0xac0] sm:$0xf0] }
  0x8c   : > { %v14770_v3 = vld [vmem:[#allocation2 + $0x143c] sm:$0xf0]  ;;  %5236 = vmatpush.bf16.msrb.mxu2 %v10121_v19  ;;  %v14586_v47 = vld [vmem:[#allocation2 + $0xe84] sm:$0xf]  ;;  %v11465_v54 = vor.u32 %v14458_v45, %v11462_v46 }
  0x8d   : > { %v12677_v18 = vor.u32 %v14770_v3, %v12676_v0  ;;  %5208 = vmatpush.bf16.msrb.mxu0 %v12165_v14  ;;  %5250 = vmatpush.bf16.msrb.mxu3 %v10633_v25  ;;  %v11974_v49 = vld [vmem:[#allocation2 + $0xec0] sm:$0xf0] }
  0x8e   : > { %v14714_v50 = vld [vmem:[#allocation2 + $0x1284] sm:$0xf]  ;;  %v11977_v55 = vor.u32 %v14586_v47, %v11974_v49 }
  0x8f   : > { %5222 = vmatpush.bf16.msrb.mxu1 %v12677_v18  ;;  %v12486_v51 = vld [vmem:[#allocation2 + $0x12c0] sm:$0xf0]  ;;  %5237 = vmatmul.bf16.vlgmr.msrb.gmra.mxu2 %v15664_v57 }
  0x90   : > { %5285 = vmatpush.bf16.msra.mxu2 %v12617_v30  ;;  %5209 = vmatmul.bf16.vlgmr.msrb.gmra.mxu0 %v15686_v35  ;;  %v14842_v52 = vld [vmem:[#allocation2 + $0x1684] sm:$0xf]  ;;  %v12489_v56 = vor.u32 %v14714_v50, %v12486_v51 }
  0x91   : > { %5257 = vmatpush.bf16.msra.mxu0 %v11593_v26  ;;  %5299 = vmatpush.bf16.msra.mxu3 %v13129_v34  ;;  %v12998_v53 = vld [vmem:[#allocation2 + $0x16c0] sm:$0xf0] }
  0x92   : > { %5223 = vmatmul.bf16.vlgmr.msrb.gmra.mxu1 %v15688_v39  ;;  %5251 = vmatmul.bf16.vlgmr.msrb.gmra.mxu3 %v15669_v6  ;;  %v14442_v58 = vld [vmem:[#allocation2 + $0xa04] sm:$0xf]  ;;  %v13001_v61 = vor.u32 %v14842_v52, %v12998_v53 }
  0x93   : > { %5271 = vmatpush.bf16.msra.mxu1 %v12105_v29  ;;  %v11398_v59 = vld [vmem:[#allocation2 + $0xa40] sm:$0xf0] }
  0x94   : > { %5286 = vmatpush.bf16.msra.mxu2 %v12553_v44  ;;  %v14570_v60 = vld [vmem:[#allocation2 + $0xe04] sm:$0xf]  ;;  %v11401_v3 = vor.u32 %v14442_v58, %v11398_v59  ;;  %v14243_v58 = vld [vmem:[#allocation2 + $0x3c4] sm:$0xf0] }
  0x95   : > { %5258 = vmatpush.bf16.msra.mxu0 %v11529_v42  ;;  %5300 = vmatpush.bf16.msra.mxu3 %v13065_v48  ;;  %v11910_v62 = vld [vmem:[#allocation2 + $0xe40] sm:$0xf0]  ;;  %v11084_v59 = vld [vmem:[#allocation2 + $0x788] sm:$0xf] }
  0x96   : > { %v14698_v63 = vld [vmem:[#allocation2 + $0x1204] sm:$0xf]  ;;  %v11913_v4 = vor.u32 %v14570_v60, %v11910_v62  ;;  %v14371_v60 = vld [vmem:[#allocation2 + $0x7c4] sm:$0xf0] }
  0x97   : > { %5272 = vmatpush.bf16.msra.mxu1 %v12041_v43  ;;  %v12422_v0 = vld [vmem:[#allocation2 + $0x1240] sm:$0xf0]  ;;  %v11596_v62 = vld [vmem:[#allocation2 + $0xb88] sm:$0xf] }
  0x98   : > { %v14826_v1 = vld [vmem:[#allocation2 + $0x1604] sm:$0xf]  ;;  %5287 = vmatpush.bf16.msra.mxu2 %v12489_v56  ;;  %v12425_v5 = vor.u32 %v14698_v63, %v12422_v0  ;;  %v10572_v56 = vld [vmem:[#allocation2 + $0x388] sm:$0xf] }
  0x99   : > { %v12934_v2 = vld [vmem:[#allocation2 + $0x1640] sm:$0xf0]  ;;  %5259 = vmatpush.bf16.msra.mxu0 %v11465_v54  ;;  %5301 = vmatpush.bf16.msra.mxu3 %v13001_v61  ;;  %v14499_v63 = vld [vmem:[#allocation2 + $0xbc4] sm:$0xf0] }
  0x9a   : > { %v14426_v7 = vld [vmem:[#allocation2 + $0x984] sm:$0xf]  ;;  %v12937_v10 = vor.u32 %v14826_v1, %v12934_v2  ;;  %v12108_v2 = vld [vmem:[#allocation2 + $0xf88] sm:$0xf] }
  0x9b   : > { %5273 = vmatpush.bf16.msra.mxu1 %v11977_v55  ;;  %v11334_v8 = vld [vmem:[#allocation2 + $0x9c0] sm:$0xf0] }
  0x9c   : > { %v14554_v9 = vld [vmem:[#allocation2 + $0xd84] sm:$0xf]  ;;  %v11337_v16 = vor.u32 %v14426_v7, %v11334_v8  ;;  %5288 = vmatpush.bf16.msra.mxu2 %v12425_v5  ;;  %v10573_v5 = vor.u32 %v14243_v58, %v10572_v56  ;;  %v11085_v7 = vor.u32 %v14371_v60, %v11084_v59  ;;  %v11597_v8 = vor.u32 %v14499_v63, %v11596_v62  ;;  %v11852_v56 = vld [vmem:[#allocation2 + $0xd88] sm:$0xf] }
  0x9d   : > { %v11846_v11 = vld [vmem:[#allocation2 + $0xdc0] sm:$0xf0]  ;;  %5260 = vmatpush.bf16.msra.mxu0 %v11401_v3  ;;  %5302 = vmatpush.bf16.msra.mxu3 %v12937_v10  ;;  %v14627_v3 = vld [vmem:[#allocation2 + $0xfc4] sm:$0xf0] }
  0x9e   : > { %v14682_v12 = vld [vmem:[#allocation2 + $0x1184] sm:$0xf]  ;;  %v11849_v17 = vor.u32 %v14554_v9, %v11846_v11  ;;  %v10508_v9 = vld [vmem:[#allocation2 + $0x308] sm:$0xf] }
  0x9f   : > { %v12358_v13 = vld [vmem:[#allocation2 + $0x11c0] sm:$0xf0]  ;;  %5274 = vmatpush.bf16.msra.mxu1 %v11913_v4  ;;  %v14227_v10 = vld [vmem:[#allocation2 + $0x344] sm:$0xf0] }
  0xa0   : > { %v14810_v14 = vld [vmem:[#allocation2 + $0x1584] sm:$0xf]  ;;  %v12361_v18 = vor.u32 %v14682_v12, %v12358_v13  ;;  %v11020_v11 = vld [vmem:[#allocation2 + $0x708] sm:$0xf]  ;;  %v12109_v12 = vor.u32 %v14627_v3, %v12108_v2 }
  0xa1   : > { %v12870_v15 = vld [vmem:[#allocation2 + $0x15c0] sm:$0xf0]  ;;  %5261 = vmatpush.bf16.msra.mxu0 %v11337_v16  ;;  %v14355_v13 = vld [vmem:[#allocation2 + $0x744] sm:$0xf0] }
  0xa2   : > { %v14410_v19 = vld [vmem:[#allocation2 + $0x904] sm:$0xf]  ;;  %v12873_v24 = vor.u32 %v14810_v14, %v12870_v15  ;;  %5289 = vmatpush.bf16.msra.mxu2 %v12361_v18  ;;  %v11532_v14 = vld [vmem:[#allocation2 + $0xb08] sm:$0xf]  ;;  %v10509_v18 = vor.u32 %v14227_v10, %v10508_v9 }
  0xa3   : > { %v11270_v20 = vld [vmem:[#allocation2 + $0x940] sm:$0xf0]  ;;  %5275 = vmatpush.bf16.msra.mxu1 %v11849_v17  ;;  %v14483_v15 = vld [vmem:[#allocation2 + $0xb44] sm:$0xf0] }
  0xa4   : > { %v14538_v21 = vld [vmem:[#allocation2 + $0xd04] sm:$0xf]  ;;  %v11273_v30 = vor.u32 %v14410_v19, %v11270_v20  ;;  %5303 = vmatpush.bf16.msra.mxu3 %v12873_v24  ;;  %v12044_v16 = vld [vmem:[#allocation2 + $0xf08] sm:$0xf]  ;;  %v11021_v19 = vor.u32 %v14355_v13, %v11020_v11  ;;  %v11533_v20 = vor.u32 %v14483_v15, %v11532_v14 }
  0xa5   : > { %v11782_v25 = vld [vmem:[#allocation2 + $0xd40] sm:$0xf0]  ;;  %v14611_v17 = vld [vmem:[#allocation2 + $0xf44] sm:$0xf0] }
  0xa6   : > { %v14666_v26 = vld [vmem:[#allocation2 + $0x1104] sm:$0xf]  ;;  %v11785_v31 = vor.u32 %v14538_v21, %v11782_v25  ;;  %5262 = vmatpush.bf16.msra.mxu0 %v11273_v30  ;;  %v10444_v21 = vld [vmem:[#allocation2 + $0x288] sm:$0xf] }
  0xa7   : > { %v12294_v27 = vld [vmem:[#allocation2 + $0x1140] sm:$0xf0]  ;;  %v14211_v24 = vld [vmem:[#allocation2 + $0x2c4] sm:$0xf0] }
  0xa8   : > { %v14794_v28 = vld [vmem:[#allocation2 + $0x1504] sm:$0xf]  ;;  %v12297_v32 = vor.u32 %v14666_v26, %v12294_v27  ;;  %5276 = vmatpush.bf16.msra.mxu1 %v11785_v31  ;;  %v10956_v25 = vld [vmem:[#allocation2 + $0x688] sm:$0xf]  ;;  %v12045_v26 = vor.u32 %v14611_v17, %v12044_v16 }
  0xa9   : > { %v12806_v29 = vld [vmem:[#allocation2 + $0x1540] sm:$0xf0]  ;;  %v14339_v27 = vld [vmem:[#allocation2 + $0x6c4] sm:$0xf0] }
  0xaa   : > { %v14394_v33 = vld [vmem:[#allocation2 + $0x884] sm:$0xf]  ;;  %v12809_v37 = vor.u32 %v14794_v28, %v12806_v29  ;;  %5290 = vmatpush.bf16.msra.mxu2 %v12297_v32  ;;  %v11468_v28 = vld [vmem:[#allocation2 + $0xa88] sm:$0xf]  ;;  %v10445_v32 = vor.u32 %v14211_v24, %v10444_v21 }
  0xab   : > { %v11206_v34 = vld [vmem:[#allocation2 + $0x8c0] sm:$0xf0]  ;;  %v14467_v29 = vld [vmem:[#allocation2 + $0xac4] sm:$0xf0] }
  0xac   : > { %v14522_v36 = vld [vmem:[#allocation2 + $0xc84] sm:$0xf]  ;;  %v11209_v45 = vor.u32 %v14394_v33, %v11206_v34  ;;  %5304 = vmatpush.bf16.msra.mxu3 %v12809_v37  ;;  %v11980_v30 = vld [vmem:[#allocation2 + $0xe88] sm:$0xf]  ;;  %v10957_v33 = vor.u32 %v14339_v27, %v10956_v25  ;;  %v11469_v34 = vor.u32 %v14467_v29, %v11468_v28 }
  0xad   : > { %v11718_v38 = vld [vmem:[#allocation2 + $0xcc0] sm:$0xf0]  ;;  %v14595_v31 = vld [vmem:[#allocation2 + $0xec4] sm:$0xf0] }
  0xae   : > { %v14650_v40 = vld [vmem:[#allocation2 + $0x1084] sm:$0xf]  ;;  %v11721_v49 = vor.u32 %v14522_v36, %v11718_v38  ;;  %5263 = vmatpush.bf16.msra.mxu0 %v11209_v45  ;;  %v10380_v36 = vld [vmem:[#allocation2 + $0x208] sm:$0xf] }
  0xaf   : > { %v12230_v41 = vld [vmem:[#allocation2 + $0x10c0] sm:$0xf0]  ;;  %v14195_v37 = vld [vmem:[#allocation2 + $0x244] sm:$0xf0] }
  0xb0   : > { %v14778_v42 = vld [vmem:[#allocation2 + $0x1484] sm:$0xf]  ;;  %v12233_v50 = vor.u32 %v14650_v40, %v12230_v41  ;;  %5277 = vmatpush.bf16.msra.mxu1 %v11721_v49  ;;  %v10892_v38 = vld [vmem:[#allocation2 + $0x608] sm:$0xf]  ;;  %v11981_v40 = vor.u32 %v14595_v31, %v11980_v30 }
  0xb1   : > { %v12742_v43 = vld [vmem:[#allocation2 + $0x14c0] sm:$0xf0]  ;;  %v14323_v41 = vld [vmem:[#allocation2 + $0x644] sm:$0xf0] }
  0xb2   : > { %v14378_v44 = vld [vmem:[#allocation2 + $0x804] sm:$0xf]  ;;  %v12745_v54 = vor.u32 %v14778_v42, %v12742_v43  ;;  %5291 = vmatpush.bf16.msra.mxu2 %v12233_v50  ;;  %v11404_v42 = vld [vmem:[#allocation2 + $0xa08] sm:$0xf] }
  0xb3   : > { %v11142_v46 = vld [vmem:[#allocation2 + $0x840] sm:$0xf0]  ;;  %v14451_v43 = vld [vmem:[#allocation2 + $0xa44] sm:$0xf0] }
  0xb4   : > { %v14506_v47 = vld [vmem:[#allocation2 + $0xc04] sm:$0xf]  ;;  %v11145_v61 = vor.u32 %v14378_v44, %v11142_v46  ;;  %5305 = vmatpush.bf16.msra.mxu3 %v12745_v54  ;;  %v11916_v44 = vld [vmem:[#allocation2 + $0xe08] sm:$0xf]  ;;  %v10381_v46 = vor.u32 %v14195_v37, %v10380_v36 }
  0xb5   : > { %v11654_v48 = vld [vmem:[#allocation2 + $0xc40] sm:$0xf0]  ;;  %v14579_v45 = vld [vmem:[#allocation2 + $0xe44] sm:$0xf0] }
  0xb6   : > { %v14634_v51 = vld [vmem:[#allocation2 + $0x1004] sm:$0xf]  ;;  %v11657_v0 = vor.u32 %v14506_v47, %v11654_v48  ;;  %5264 = vmatpush.bf16.msra.mxu0 %v11145_v61  ;;  %v10893_v47 = vor.u32 %v14323_v41, %v10892_v38  ;;  %v11405_v48 = vor.u32 %v14451_v43, %v11404_v42  ;;  %v10316_v49 = vld [vmem:[#allocation2 + $0x188] sm:$0xf]  ;;  %v14235_v41 = vld [vmem:[#allocation2 + $0x38c] sm:$0xf] }
  0xb7   : > { %v12166_v52 = vld [vmem:[#allocation2 + $0x1040] sm:$0xf0]  ;;  %v14179_v50 = vld [vmem:[#allocation2 + $0x1c4] sm:$0xf0]  ;;  %v10574_v42 = vld [vmem:[#allocation2 + $0x3c8] sm:$0xf0] }
  0xb8   : > { %v14762_v53 = vld [vmem:[#allocation2 + $0x1404] sm:$0xf]  ;;  %v12169_v1 = vor.u32 %v14634_v51, %v12166_v52  ;;  %5278 = vmatpush.bf16.msra.mxu1 %v11657_v0  ;;  %v10828_v51 = vld [vmem:[#allocation2 + $0x588] sm:$0xf]  ;;  %v11917_v52 = vor.u32 %v14579_v45, %v11916_v44  ;;  %v10317_v59 = vor.u32 %v14179_v50, %v10316_v49  ;;  %v14363_v45 = vld [vmem:[#allocation2 + $0x78c] sm:$0xf]  ;;  %v10577_v50 = vor.u32 %v14235_v41, %v10574_v42 }
  0xb9   : > { %v12678_v55 = vld [vmem:[#allocation2 + $0x1440] sm:$0xf0]  ;;  %5265 = vmatmul.bf16.vlgmr.msra.gmra.mxu0 %v15676_v22  ;;  %v11340_v54 = vld [vmem:[#allocation2 + $0x988] sm:$0xf] }
  0xba   : > { %v12681_v4 = vor.u32 %v14762_v53, %v12678_v55  ;;  %5292 = vmatpush.bf16.msra.mxu2 %v12169_v1  ;;  %5313 = vmatpush.bf16.msrb.mxu0 %v10573_v5  ;;  %v14307_v53 = vld [vmem:[#allocation2 + $0x5c4] sm:$0xf0] }
  0xbb   : > { %5279 = vmatmul.bf16.vlgmr.msra.gmra.mxu1 %v15678_v23  ;;  %v14435_v55 = vld [vmem:[#allocation2 + $0x9c4] sm:$0xf0]  ;;  %v10829_v60 = vor.u32 %v14307_v53, %v10828_v51 }
  0xbc   : > { %5306 = vmatpush.bf16.msra.mxu3 %v12681_v4  ;;  %5327 = vmatpush.bf16.msrb.mxu1 %v11085_v7  ;;  %v14563_v58 = vld [vmem:[#allocation2 + $0xdc4] sm:$0xf0]  ;;  %v11341_v61 = vor.u32 %v14435_v55, %v11340_v54 }
  0xbd   : > { %5293 = vmatmul.bf16.vlgmr.msra.gmra.mxu2 %v15686_v35  ;;  %v10252_v62 = vld [vmem:[#allocation2 + $0x108] sm:$0xf]  ;;  %v11853_v1 = vor.u32 %v14563_v58, %v11852_v56  ;;  %v14219_v56 = vld [vmem:[#allocation2 + $0x30c] sm:$0xf] }
  0xbe   : > { %5341 = vmatpush.bf16.msrb.mxu2 %v11597_v8  ;;  %5314 = vmatpush.bf16.msrb.mxu0 %v10509_v18  ;;  %v14163_v63 = vld [vmem:[#allocation2 + $0x144] sm:$0xf0]  ;;  %v10510_v58 = vld [vmem:[#allocation2 + $0x348] sm:$0xf0] }
  0xbf   : > { %5307 = vmatmul.bf16.vlgmr.msra.gmra.mxu3 %v15688_v39  ;;  %v10764_v0 = vld [vmem:[#allocation2 + $0x508] sm:$0xf]  ;;  %v10253_v8 = vor.u32 %v14163_v63, %v10252_v62  ;;  %v10513_v63 = vor.u32 %v14219_v56, %v10510_v58 }
  0xc0   : > { %5355 = vmatpush.bf16.msrb.mxu3 %v12109_v12  ;;  %5328 = vmatpush.bf16.msrb.mxu1 %v11021_v19  ;;  %v14291_v2 = vld [vmem:[#allocation2 + $0x544] sm:$0xf0] }
  0xc1   : > { %v11276_v3 = vld [vmem:[#allocation2 + $0x908] sm:$0xf]  ;;  %v10765_v9 = vor.u32 %v14291_v2, %v10764_v0 }
  0xc2   : > { %5342 = vmatpush.bf16.msrb.mxu2 %v11533_v20  ;;  %5315 = vmatpush.bf16.msrb.mxu0 %v10445_v32  ;;  %v14419_v4 = vld [vmem:[#allocation2 + $0x944] sm:$0xf0] }
  0xc3   : > { %v11788_v5 = vld [vmem:[#allocation2 + $0xd08] sm:$0xf]  ;;  %v11277_v10 = vor.u32 %v14419_v4, %v11276_v3 }
  0xc4   : > { %5356 = vmatpush.bf16.msrb.mxu3 %v12045_v26  ;;  %5329 = vmatpush.bf16.msrb.mxu1 %v10957_v33  ;;  %v14547_v7 = vld [vmem:[#allocation2 + $0xd44] sm:$0xf0] }
  0xc5   : > { %v10188_v11 = vld [vmem:[#allocation2 + $0x88] sm:$0xf]  ;;  %v11789_v14 = vor.u32 %v14547_v7, %v11788_v5  ;;  %v14203_v5 = vld [vmem:[#allocation2 + $0x28c] sm:$0xf] }
  0xc6   : > { %5343 = vmatpush.bf16.msrb.mxu2 %v11469_v34  ;;  %5316 = vmatpush.bf16.msrb.mxu0 %v10381_v46  ;;  %v14147_v12 = vld [vmem:[#allocation2 + $0xc4] sm:$0xf0]  ;;  %v11086_v46 = vld [vmem:[#allocation2 + $0x7c8] sm:$0xf0] }
  0xc7   : > { %v10700_v13 = vld [vmem:[#allocation2 + $0x488] sm:$0xf]  ;;  %v10189_v20 = vor.u32 %v14147_v12, %v10188_v11  ;;  %v11089_v54 = vor.u32 %v14363_v45, %v11086_v46  ;;  %v10446_v7 = vld [vmem:[#allocation2 + $0x2c8] sm:$0xf0] }
  0xc8   : > { %5357 = vmatpush.bf16.msrb.mxu3 %v11981_v40  ;;  %5330 = vmatpush.bf16.msrb.mxu1 %v10893_v47  ;;  %v14275_v15 = vld [vmem:[#allocation2 + $0x4c4] sm:$0xf0]  ;;  %v10449_v12 = vor.u32 %v14203_v5, %v10446_v7  ;;  %v14155_v46 = vld [vmem:[#allocation2 + $0x10c] sm:$0xf] }
  0xc9   : > { %v11212_v16 = vld [vmem:[#allocation2 + $0x888] sm:$0xf]  ;;  %v10701_v25 = vor.u32 %v14275_v15, %v10700_v13  ;;  %v14123_v7 = vld [vmem:[#allocation2 + $0xc] sm:$0xf] }
  0xca   : > { %5344 = vmatpush.bf16.msrb.mxu2 %v11405_v48  ;;  %5317 = vmatpush.bf16.msrb.mxu0 %v10317_v59  ;;  %v14403_v17 = vld [vmem:[#allocation2 + $0x8c4] sm:$0xf0]  ;;  %v14347_v59 = vld [vmem:[#allocation2 + $0x70c] sm:$0xf] }
  0xcb   : > { %v11724_v18 = vld [vmem:[#allocation2 + $0xc88] sm:$0xf]  ;;  %v11213_v26 = vor.u32 %v14403_v17, %v11212_v16 }
  0xcc   : > { %5358 = vmatpush.bf16.msrb.mxu3 %v11917_v52  ;;  %5331 = vmatpush.bf16.msrb.mxu1 %v10829_v60  ;;  %v14531_v19 = vld [vmem:[#allocation2 + $0xcc4] sm:$0xf0]  ;;  %v11022_v60 = vld [vmem:[#allocation2 + $0x748] sm:$0xf0] }
  0xcd   : > { %v10124_v21 = vld [vmem:[#allocation2 + $0x8] sm:$0xf]  ;;  %v11725_v30 = vor.u32 %v14531_v19, %v11724_v18  ;;  %v11025_v3 = vor.u32 %v14347_v59, %v11022_v60  ;;  %v14187_v18 = vld [vmem:[#allocation2 + $0x20c] sm:$0xf] }
  0xce   : > { %5345 = vmatpush.bf16.msrb.mxu2 %v11341_v61  ;;  %5318 = vmatpush.bf16.msrb.mxu0 %v10253_v8  ;;  %v14131_v24 = vld [vmem:[#allocation2 + $0x44] sm:$0xf0]  ;;  %v14331_v8 = vld [vmem:[#allocation2 + $0x68c] sm:$0xf] }
  0xcf   : > { %v10636_v27 = vld [vmem:[#allocation2 + $0x408] sm:$0xf]  ;;  %v10125_v38 = vor.u32 %v14131_v24, %v10124_v21  ;;  %v10382_v19 = vld [vmem:[#allocation2 + $0x248] sm:$0xf0] }
  0xd0   : > { %5359 = vmatpush.bf16.msrb.mxu3 %v11853_v1  ;;  %5332 = vmatpush.bf16.msrb.mxu1 %v10765_v9  ;;  %v14259_v28 = vld [vmem:[#allocation2 + $0x444] sm:$0xf0]  ;;  %v10958_v9 = vld [vmem:[#allocation2 + $0x6c8] sm:$0xf0] }
  0xd1   : > { %v11148_v29 = vld [vmem:[#allocation2 + $0x808] sm:$0xf]  ;;  %v10637_v43 = vor.u32 %v14259_v28, %v10636_v27  ;;  %v10961_v16 = vor.u32 %v14331_v8, %v10958_v9  ;;  %v10894_v21 = vld [vmem:[#allocation2 + $0x648] sm:$0xf0] }
  0xd2   : > { %5346 = vmatpush.bf16.msrb.mxu2 %v11277_v10  ;;  %v14387_v31 = vld [vmem:[#allocation2 + $0x844] sm:$0xf0]  ;;  %5319 = vmatpush.bf16.msrb.mxu0 %v10189_v20  ;;  %v14315_v20 = vld [vmem:[#allocation2 + $0x60c] sm:$0xf] }
  0xd3   : > { %v11660_v32 = vld [vmem:[#allocation2 + $0xc08] sm:$0xf]  ;;  %v11149_v44 = vor.u32 %v14387_v31, %v11148_v29  ;;  %v14139_v59 = vld [vmem:[#allocation2 + $0x8c] sm:$0xf] }
  0xd4   : > { %5360 = vmatpush.bf16.msrb.mxu3 %v11789_v14  ;;  %v14515_v33 = vld [vmem:[#allocation2 + $0xc44] sm:$0xf0]  ;;  %5333 = vmatpush.bf16.msrb.mxu1 %v10701_v25  ;;  %v10190_v60 = vld [vmem:[#allocation2 + $0xc8] sm:$0xf0] }
  0xd5   : > { %v12620_v34 = vld [vmem:[#allocation2 + $0x1388] sm:$0xf]  ;;  %v11661_v47 = vor.u32 %v14515_v33, %v11660_v32  ;;  %v14171_v32 = vld [vmem:[#allocation2 + $0x18c] sm:$0xf] }
  0xd6   : > { %v14755_v36 = vld [vmem:[#allocation2 + $0x13c4] sm:$0xf0]  ;;  %5347 = vmatpush.bf16.msrb.mxu2 %v11213_v26  ;;  %5320 = vmatpush.bf16.msrb.mxu0 %v10125_v38  ;;  %v10385_v26 = vor.u32 %v14187_v18, %v10382_v19  ;;  %v10318_v33 = vld [vmem:[#allocation2 + $0x1c8] sm:$0xf0] }
  0xd7   : > { %v13132_v37 = vld [vmem:[#allocation2 + $0x1788] sm:$0xf]  ;;  %v12621_v48 = vor.u32 %v14755_v36, %v12620_v34  ;;  %v14299_v34 = vld [vmem:[#allocation2 + $0x58c] sm:$0xf] }
  0xd8   : > { %v14883_v40 = vld [vmem:[#allocation2 + $0x17c4] sm:$0xf0]  ;;  %5361 = vmatpush.bf16.msrb.mxu3 %v11725_v30  ;;  %5334 = vmatpush.bf16.msrb.mxu1 %v10637_v43  ;;  %v10897_v30 = vor.u32 %v14315_v20, %v10894_v21  ;;  %v10830_v36 = vld [vmem:[#allocation2 + $0x5c8] sm:$0xf0] }
  0xd9   : > { %v13133_v49 = vor.u32 %v14883_v40, %v13132_v37  ;;  %v12556_v51 = vld [vmem:[#allocation2 + $0x1308] sm:$0xf]  ;;  %5321 = vmatmul.bf16.vlgmr.msrb.gmra.mxu0 %v15664_v57  ;;  %v10321_v40 = vor.u32 %v14171_v32, %v10318_v33  ;;  %v10126_v9 = vld [vmem:[#allocation2 + $0x48] sm:$0xf0] }
  0xda   : > { %v14739_v52 = vld [vmem:[#allocation2 + $0x1344] sm:$0xf0]  ;;  %5348 = vmatpush.bf16.msrb.mxu2 %v11149_v44  ;;  %5369 = vmatpush.bf16.msra.mxu0 %v12621_v48  ;;  %v10833_v44 = vor.u32 %v14299_v34, %v10830_v36  ;;  %v14283_v48 = vld [vmem:[#allocation2 + $0x50c] sm:$0xf]  ;;  %v10129_v20 = vor.u32 %v14123_v7, %v10126_v9 }
  0xdb   : > { %v13068_v53 = vld [vmem:[#allocation2 + $0x1708] sm:$0xf]  ;;  %v12557_v61 = vor.u32 %v14739_v52, %v12556_v51  ;;  %5335 = vmatmul.bf16.vlgmr.msrb.gmra.mxu1 %v15669_v6  ;;  %v12622_v18 = vld [vmem:[#allocation2 + $0x13c8] sm:$0xf0] }
  0xdc   : > { %v14867_v55 = vld [vmem:[#allocation2 + $0x1744] sm:$0xf0]  ;;  %5362 = vmatpush.bf16.msrb.mxu3 %v11661_v47  ;;  %5383 = vmatpush.bf16.msra.mxu1 %v13133_v49  ;;  %v10254_v47 = vld [vmem:[#allocation2 + $0x148] sm:$0xf0] }
  0xdd   : > { %v13069_v62 = vor.u32 %v14867_v55, %v13068_v53  ;;  %v12492_v0 = vld [vmem:[#allocation2 + $0x1288] sm:$0xf]  ;;  %5349 = vmatmul.bf16.vlgmr.msrb.gmra.mxu2 %v15676_v22  ;;  %v10766_v49 = vld [vmem:[#allocation2 + $0x548] sm:$0xf0]  ;;  %v10257_v52 = vor.u32 %v14155_v46, %v10254_v47  ;;  %v15702_v46 = vld [vmem:[#allocation4] sm:$0xff] }
  0xde   : > { %5397 = vmatpush.bf16.msra.mxu2 %v10577_v50  ;;  %v14723_v1 = vld [vmem:[#allocation2 + $0x12c4] sm:$0xf0]  ;;  %5370 = vmatpush.bf16.msra.mxu0 %v12557_v61  ;;  %v10769_v56 = vor.u32 %v14283_v48, %v10766_v49  ;;  %v14267_v61 = vld [vmem:[#allocation2 + $0x48c] sm:$0xf] }
  0xdf   : > { %v13004_v2 = vld [vmem:[#allocation2 + $0x1688] sm:$0xf]  ;;  %v12493_v10 = vor.u32 %v14723_v1, %v12492_v0  ;;  %5363 = vmatmul.bf16.vlgmr.msrb.gmra.mxu3 %v15678_v23  ;;  %v14875_v21 = vld [vmem:[#allocation2 + $0x178c] sm:$0xf] }
  0xe0   : > { %5411 = vmatpush.bf16.msra.mxu3 %v11089_v54  ;;  %v14851_v4 = vld [vmem:[#allocation2 + $0x16c4] sm:$0xf0]  ;;  %5384 = vmatpush.bf16.msra.mxu1 %v13069_v62  ;;  %v10702_v62 = vld [vmem:[#allocation2 + $0x4c8] sm:$0xf0] }
  0xe1   : > { %v13005_v11 = vor.u32 %v14851_v4, %v13004_v2  ;;  %v12428_v13 = vld [vmem:[#allocation2 + $0x1208] sm:$0xf]  ;;  %v10705_v8 = vor.u32 %v14267_v61, %v10702_v62  ;;  %v12046_v33 = vld [vmem:[#allocation2 + $0xf48] sm:$0xf0] }
  0xe2   : > { %5398 = vmatpush.bf16.msra.mxu2 %v10513_v63  ;;  %v14707_v14 = vld [vmem:[#allocation2 + $0x1244] sm:$0xf0]  ;;  %5371 = vmatpush.bf16.msra.mxu0 %v12493_v10  ;;  %v14251_v10 = vld [vmem:[#allocation2 + $0x40c] sm:$0xf] }
  0xe3   : > { %v12940_v15 = vld [vmem:[#allocation2 + $0x1608] sm:$0xf]  ;;  %v12429_v24 = vor.u32 %v14707_v14, %v12428_v13  ;;  %v11598_v13 = vld [vmem:[#allocation2 + $0xbc8] sm:$0xf0] }
  0xe4   : > { %5412 = vmatpush.bf16.msra.mxu3 %v11025_v3  ;;  %v14835_v17 = vld [vmem:[#allocation2 + $0x1644] sm:$0xf0]  ;;  %5385 = vmatpush.bf16.msra.mxu1 %v13005_v11  ;;  %v10193_v3 = vor.u32 %v14139_v59, %v10190_v60  ;;  %v10638_v11 = vld [vmem:[#allocation2 + $0x448] sm:$0xf0] }
  0xe5   : > { %v12941_v25 = vor.u32 %v14835_v17, %v12940_v15  ;;  %v12364_v27 = vld [vmem:[#allocation2 + $0x1188] sm:$0xf]  ;;  %v14619_v14 = vld [vmem:[#allocation2 + $0xf8c] sm:$0xf] }
  0xe6   : > { %5399 = vmatpush.bf16.msra.mxu2 %v10449_v12  ;;  %v14691_v28 = vld [vmem:[#allocation2 + $0x11c4] sm:$0xf0]  ;;  %5372 = vmatpush.bf16.msra.mxu0 %v12429_v24  ;;  %v14491_v12 = vld [vmem:[#allocation2 + $0xb8c] sm:$0xf] }
  0xe7   : > { %v12876_v29 = vld [vmem:[#allocation2 + $0x1588] sm:$0xf]  ;;  %v12365_v37 = vor.u32 %v14691_v28, %v12364_v27  ;;  %v14747_v17 = vld [vmem:[#allocation2 + $0x138c] sm:$0xf] }
  0xe8   : > { %5413 = vmatpush.bf16.msra.mxu3 %v10961_v16  ;;  %v14819_v31 = vld [vmem:[#allocation2 + $0x15c4] sm:$0xf0]  ;;  %5386 = vmatpush.bf16.msra.mxu1 %v12941_v25  ;;  %v12110_v16 = vld [vmem:[#allocation2 + $0xfc8] sm:$0xf0]  ;;  %v10641_v25 = vor.u32 %v14251_v10, %v10638_v11  ;;  %v12625_v28 = vor.u32 %v14747_v17, %v12622_v18 }
  0xe9   : > { %v12877_v38 = vor.u32 %v14819_v31, %v12876_v29  ;;  %v12300_v41 = vld [vmem:[#allocation2 + $0x1108] sm:$0xf]  ;;  %v13134_v24 = vld [vmem:[#allocation2 + $0x17c8] sm:$0xf0]  ;;  %v12113_v27 = vor.u32 %v14619_v14, %v12110_v16  ;;  %v5168_v18 = vpop.f32.mrf.mxu1 }
  0xea   : > { %5400 = vmatpush.bf16.msra.mxu2 %v10385_v26  ;;  %v14675_v42 = vld [vmem:[#allocation2 + $0x1144] sm:$0xf0]  ;;  %5373 = vmatpush.bf16.msra.mxu0 %v12365_v37  ;;  %v11601_v26 = vor.u32 %v14491_v12, %v11598_v13  ;;  %v14475_v29 = vld [vmem:[#allocation2 + $0xb0c] sm:$0xf]  ;;  %v13137_v32 = vor.u32 %v14875_v21, %v13134_v24 }
  0xeb   : > { %v12812_v43 = vld [vmem:[#allocation2 + $0x1508] sm:$0xf]  ;;  %v12301_v50 = vor.u32 %v14675_v42, %v12300_v41  ;;  %v14603_v31 = vld [vmem:[#allocation2 + $0xf0c] sm:$0xf] }
  0xec   : > { %5414 = vmatpush.bf16.msra.mxu3 %v10897_v30  ;;  %v14803_v45 = vld [vmem:[#allocation2 + $0x1544] sm:$0xf0]  ;;  %5387 = vmatpush.bf16.msra.mxu1 %v12877_v38  ;;  %v11534_v30 = vld [vmem:[#allocation2 + $0xb48] sm:$0xf0]  ;;  %v12049_v42 = vor.u32 %v14603_v31, %v12046_v33 }
  0xed   : > { %v12813_v51 = vor.u32 %v14803_v45, %v12812_v43  ;;  %v12236_v53 = vld [vmem:[#allocation2 + $0x1088] sm:$0xf]  ;;  %v14731_v34 = vld [vmem:[#allocation2 + $0x130c] sm:$0xf] }
  0xee   : > { %5401 = vmatpush.bf16.msra.mxu2 %v10321_v40  ;;  %v14659_v54 = vld [vmem:[#allocation2 + $0x10c4] sm:$0xf0]  ;;  %5374 = vmatpush.bf16.msra.mxu0 %v12301_v50  ;;  %v12558_v36 = vld [vmem:[#allocation2 + $0x1348] sm:$0xf0]  ;;  %v11537_v40 = vor.u32 %v14475_v29, %v11534_v30 }
  0xef   : > { %v12748_v55 = vld [vmem:[#allocation2 + $0x1488] sm:$0xf]  ;;  %v12237_v63 = vor.u32 %v14659_v54, %v12236_v53  ;;  %v14859_v37 = vld [vmem:[#allocation2 + $0x170c] sm:$0xf]  ;;  %v12561_v43 = vor.u32 %v14731_v34, %v12558_v36  ;;  %v17738_v54 = vperm.slane %v15702_v46, 0 }
  0xf0   : > { %5415 = vmatpush.bf16.msra.mxu3 %v10833_v44  ;;  %v14787_v58 = vld [vmem:[#allocation2 + $0x14c4] sm:$0xf0]  ;;  %5388 = vmatpush.bf16.msra.mxu1 %v12813_v51  ;;  %v13070_v38 = vld [vmem:[#allocation2 + $0x1748] sm:$0xf0] }
  0xf1   : > { %v12172_v0 = vld [vmem:[#allocation2 + $0x1008] sm:$0xf]  ;;  %v12749_v2 = vor.u32 %v14787_v58, %v12748_v55  ;;  %v14459_v41 = vld [vmem:[#allocation2 + $0xa8c] sm:$0xf]  ;;  %v13073_v47 = vor.u32 %v14859_v37, %v13070_v38 }
  0xf2   : > { %v14643_v1 = vld [vmem:[#allocation2 + $0x1044] sm:$0xf0]  ;;  %5402 = vmatpush.bf16.msra.mxu2 %v10257_v52  ;;  %5375 = vmatpush.bf16.msra.mxu0 %v12237_v63  ;;  %v11470_v44 = vld [vmem:[#allocation2 + $0xac8] sm:$0xf0] }
  0xf3   : > { %v12684_v4 = vld [vmem:[#allocation2 + $0x1408] sm:$0xf]  ;;  %v12173_v15 = vor.u32 %v14643_v1, %v12172_v0  ;;  %v14587_v45 = vld [vmem:[#allocation2 + $0xe8c] sm:$0xf]  ;;  %v11473_v53 = vor.u32 %v14459_v41, %v11470_v44 }
  0xf4   : > { %v14771_v5 = vld [vmem:[#allocation2 + $0x1444] sm:$0xf0]  ;;  %5416 = vmatpush.bf16.msra.mxu3 %v10769_v56  ;;  %5389 = vmatpush.bf16.msra.mxu1 %v12749_v2  ;;  %v11982_v48 = vld [vmem:[#allocation2 + $0xec8] sm:$0xf0] }
  0xf5   : > { %v12685_v19 = vor.u32 %v14771_v5, %v12684_v4  ;;  %v14715_v49 = vld [vmem:[#allocation2 + $0x128c] sm:$0xf]  ;;  %v11985_v55 = vor.u32 %v14587_v45, %v11982_v48 }
  0xf6   : > { %5403 = vmatpush.bf16.msra.mxu2 %v10193_v3  ;;  %5376 = vmatpush.bf16.msra.mxu0 %v12173_v15  ;;  %v12494_v50 = vld [vmem:[#allocation2 + $0x12c8] sm:$0xf0]  ;;  %v5154_v3 = vpop.f32.mrf.mxu0 }
  0xf7   : > { %v14843_v51 = vld [vmem:[#allocation2 + $0x168c] sm:$0xf]  ;;  %v12497_v56 = vor.u32 %v14715_v49, %v12494_v50  ;;  %v5155_v5 = vadd.f32 %v5154_v3, %v17738_v54  ;;  %v11092_v3 = vld [vmem:[#allocation2 + $0x790] sm:$0xf]  ;;  %v12766_v54 = vld [vmem:[#allocation2 + $0x14d8] sm:$0xf0] }
  0xf8   : > { %5417 = vmatpush.bf16.msra.mxu3 %v10705_v8  ;;  %5390 = vmatpush.bf16.msra.mxu1 %v12685_v19  ;;  %v13006_v52 = vld [vmem:[#allocation2 + $0x16c8] sm:$0xf0] }
  0xf9   : > { %5377 = vmatmul.bf16.vlgmr.msra.gmra.mxu0 %v15686_v35  ;;  %v14443_v58 = vld [vmem:[#allocation2 + $0xa0c] sm:$0xf]  ;;  %v13009_v61 = vor.u32 %v14843_v51, %v13006_v52 }
  0xfa   : > { %5404 = vmatpush.bf16.msra.mxu2 %v10129_v20  ;;  %5425 = vmatpush.bf16.msrb.mxu0 %v11601_v26  ;;  %v11406_v59 = vld [vmem:[#allocation2 + $0xa48] sm:$0xf0]  ;;  %v5169_v20 = vadd.f32 %v5168_v18, %v5155_v5 }
  0xfb   : > { %5391 = vmatmul.bf16.vlgmr.msra.gmra.mxu1 %v15688_v39  ;;  %v14571_v60 = vld [vmem:[#allocation2 + $0xe0c] sm:$0xf]  ;;  %v11409_v4 = vor.u32 %v14443_v58, %v11406_v59 }
  0xfc   : > { %5418 = vmatpush.bf16.msra.mxu3 %v10641_v25  ;;  %5439 = vmatpush.bf16.msrb.mxu1 %v12113_v27  ;;  %v11918_v62 = vld [vmem:[#allocation2 + $0xe48] sm:$0xf0] }
  0xfd   : > { %5405 = vmatmul.bf16.vlgmr.msra.gmra.mxu2 %v15664_v57  ;;  %v14699_v63 = vld [vmem:[#allocation2 + $0x120c] sm:$0xf]  ;;  %v11921_v7 = vor.u32 %v14571_v60, %v11918_v62 }
  0xfe   : > { %5453 = vmatpush.bf16.msrb.mxu2 %v12625_v28  ;;  %5426 = vmatpush.bf16.msrb.mxu0 %v11537_v40  ;;  %v12430_v0 = vld [vmem:[#allocation2 + $0x1248] sm:$0xf0] }
  0xff   : > { %5419 = vmatmul.bf16.vlgmr.msra.gmra.mxu3 %v15669_v6  ;;  %v14827_v1 = vld [vmem:[#allocation2 + $0x160c] sm:$0xf]  ;;  %v12433_v8 = vor.u32 %v14699_v63, %v12430_v0 }
 0x100   : > { %5467 = vmatpush.bf16.msrb.mxu3 %v13137_v32  ;;  %5440 = vmatpush.bf16.msrb.mxu1 %v12049_v42  ;;  %v12942_v2 = vld [vmem:[#allocation2 + $0x1648] sm:$0xf0] }
 0x101   : > { %v14427_v9 = vld [vmem:[#allocation2 + $0x98c] sm:$0xf]  ;;  %v12945_v12 = vor.u32 %v14827_v1, %v12942_v2  ;;  %v10580_v1 = vld [vmem:[#allocation2 + $0x390] sm:$0xf] }
 0x102   : > { %5454 = vmatpush.bf16.msrb.mxu2 %v12561_v43  ;;  %5427 = vmatpush.bf16.msrb.mxu0 %v11473_v53  ;;  %v11342_v10 = vld [vmem:[#allocation2 + $0x9c8] sm:$0xf0]  ;;  %v5182_v59 = vpop.f32.mrf.mxu2  ;;  %v14244_v2 = vld [vmem:[#allocation2 + $0x3cc] sm:$0xf0] }
 0x103   : > { %v14555_v11 = vld [vmem:[#allocation2 + $0xd8c] sm:$0xf]  ;;  %v11345_v19 = vor.u32 %v14427_v9, %v11342_v10  ;;  %v5183_v0 = vadd.f32 %v5182_v59, %v5169_v20  ;;  %v14500_v9 = vld [vmem:[#allocation2 + $0xbcc] sm:$0xf0] }
 0x104   : > { %5468 = vmatpush.bf16.msrb.mxu3 %v13073_v47  ;;  %5441 = vmatpush.bf16.msrb.mxu1 %v11985_v55  ;;  %v11854_v13 = vld [vmem:[#allocation2 + $0xdc8] sm:$0xf0]  ;;  %v10516_v20 = vld [vmem:[#allocation2 + $0x310] sm:$0xf] }
 0x105   : > { %v14683_v14 = vld [vmem:[#allocation2 + $0x118c] sm:$0xf]  ;;  %v11857_v21 = vor.u32 %v14555_v11, %v11854_v13  ;;  %v12116_v13 = vld [vmem:[#allocation2 + $0xf90] sm:$0xf] }
 0x106   : > { %5455 = vmatpush.bf16.msrb.mxu2 %v12497_v56  ;;  %v12366_v15 = vld [vmem:[#allocation2 + $0x11c8] sm:$0xf0]  ;;  %5428 = vmatpush.bf16.msrb.mxu0 %v11409_v4  ;;  %v5196_v4 = vpop.f32.mrf.mxu3 }
 0x107   : > { %v14811_v16 = vld [vmem:[#allocation2 + $0x158c] sm:$0xf]  ;;  %v12369_v24 = vor.u32 %v14683_v14, %v12366_v15  ;;  %v15711_v10 = vadd.f32 %v5196_v4, %v5183_v0  ;;  %v14628_v14 = vld [vmem:[#allocation2 + $0xfcc] sm:$0xf0] }
 0x108   : > { %5469 = vmatpush.bf16.msrb.mxu3 %v13009_v61  ;;  %v12878_v17 = vld [vmem:[#allocation2 + $0x15c8] sm:$0xf0]  ;;  %5442 = vmatpush.bf16.msrb.mxu1 %v11921_v7  ;;  %v14372_v7 = vld [vmem:[#allocation2 + $0x7cc] sm:$0xf0] }
 0x109   : > { %v14411_v25 = vld [vmem:[#allocation2 + $0x90c] sm:$0xf]  ;;  %v12881_v28 = vor.u32 %v14811_v16, %v12878_v17  ;;  %v10581_v16 = vor.u32 %v14244_v2, %v10580_v1  ;;  %v11093_v17 = vor.u32 %v14372_v7, %v11092_v3  ;;  %v14180_v7 = vld [vmem:[#allocation2 + $0x1cc] sm:$0xf0] }
 0x10a   : > { %5456 = vmatpush.bf16.msrb.mxu2 %v12433_v8  ;;  %v11278_v26 = vld [vmem:[#allocation2 + $0x948] sm:$0xf0]  ;;  %5429 = vmatpush.bf16.msrb.mxu0 %v11345_v19  ;;  %v11604_v8 = vld [vmem:[#allocation2 + $0xb90] sm:$0xf]  ;;  %v15713_v19 = vpop.f32.mrf.mxu0  ;;  %v15721_v59 = vpop.f32.mrf.mxu2 }
 0x10b   : > { %v14539_v27 = vld [vmem:[#allocation2 + $0xd0c] sm:$0xf]  ;;  %v11281_v34 = vor.u32 %v14411_v25, %v11278_v26  ;;  %v11605_v18 = vor.u32 %v14500_v9, %v11604_v8  ;;  %v12117_v25 = vor.u32 %v14628_v14, %v12116_v13  ;;  %v14356_v26 = vld [vmem:[#allocation2 + $0x74c] sm:$0xf0] }
 0x10c   : > { %5470 = vmatpush.bf16.msrb.mxu3 %v12945_v12  ;;  %v11790_v29 = vld [vmem:[#allocation2 + $0xd48] sm:$0xf0]  ;;  %5443 = vmatpush.bf16.msrb.mxu1 %v11857_v21  ;;  %v14228_v21 = vld [vmem:[#allocation2 + $0x34c] sm:$0xf0] }
 0x10d   : > { %v14667_v30 = vld [vmem:[#allocation2 + $0x110c] sm:$0xf]  ;;  %v11793_v36 = vor.u32 %v14539_v27, %v11790_v29  ;;  %v11540_v27 = vld [vmem:[#allocation2 + $0xb10] sm:$0xf] }
 0x10e   : > { %v12302_v31 = vld [vmem:[#allocation2 + $0x1148] sm:$0xf0]  ;;  %5457 = vmatpush.bf16.msrb.mxu2 %v12369_v24  ;;  %5430 = vmatpush.bf16.msrb.mxu0 %v11281_v34  ;;  %v11028_v24 = vld [vmem:[#allocation2 + $0x710] sm:$0xf]  ;;  %v15724_v1 = vpop.f32.mrf.mxu3 }
 0x10f   : > { %v14795_v32 = vld [vmem:[#allocation2 + $0x150c] sm:$0xf]  ;;  %v12305_v37 = vor.u32 %v14667_v30, %v12302_v31  ;;  %v12052_v29 = vld [vmem:[#allocation2 + $0xf10] sm:$0xf]  ;;  %v15715_v31 = vpop.f32.mrf.mxu1 }
 0x110   : > { %v12814_v33 = vld [vmem:[#allocation2 + $0x1548] sm:$0xf0]  ;;  %5471 = vmatpush.bf16.msrb.mxu3 %v12881_v28  ;;  %5444 = vmatpush.bf16.msrb.mxu1 %v11793_v36  ;;  %v14484_v28 = vld [vmem:[#allocation2 + $0xb4c] sm:$0xf0] }
 0x111   : > { %v14395_v38 = vld [vmem:[#allocation2 + $0x88c] sm:$0xf]  ;;  %v12817_v42 = vor.u32 %v14795_v32, %v12814_v33  ;;  %v14612_v30 = vld [vmem:[#allocation2 + $0xf4c] sm:$0xf0]  ;;  %v10517_v32 = vor.u32 %v14228_v21, %v10516_v20  ;;  %v11029_v33 = vor.u32 %v14356_v26, %v11028_v24  ;;  %v11541_v34 = vor.u32 %v14484_v28, %v11540_v27 }
 0x112   : > { %v11214_v40 = vld [vmem:[#allocation2 + $0x8c8] sm:$0xf0]  ;;  %5458 = vmatpush.bf16.msrb.mxu2 %v12305_v37  ;;  %v10452_v36 = vld [vmem:[#allocation2 + $0x290] sm:$0xf] }
 0x113   : > { %v14523_v41 = vld [vmem:[#allocation2 + $0xc8c] sm:$0xf]  ;;  %v11217_v49 = vor.u32 %v14395_v38, %v11214_v40  ;;  %v14212_v37 = vld [vmem:[#allocation2 + $0x2cc] sm:$0xf0]  ;;  %v12053_v40 = vor.u32 %v14612_v30, %v12052_v29  ;;  %v5238_v30 = vpop.f32.mrf.mxu2 }
 0x114   : > { %v11726_v43 = vld [vmem:[#allocation2 + $0xcc8] sm:$0xf0]  ;;  %5472 = vmatpush.bf16.msrb.mxu3 %v12817_v42  ;;  %v10964_v38 = vld [vmem:[#allocation2 + $0x690] sm:$0xf] }
 0x115   : > { %v14651_v44 = vld [vmem:[#allocation2 + $0x108c] sm:$0xf]  ;;  %v11729_v52 = vor.u32 %v14523_v41, %v11726_v43  ;;  %5431 = vmatpush.bf16.msrb.mxu0 %v11217_v49  ;;  %v14340_v41 = vld [vmem:[#allocation2 + $0x6cc] sm:$0xf0] }
 0x116   : > { %v12238_v45 = vld [vmem:[#allocation2 + $0x10c8] sm:$0xf0]  ;;  %v11476_v42 = vld [vmem:[#allocation2 + $0xa90] sm:$0xf] }
 0x117   : > { %v14779_v47 = vld [vmem:[#allocation2 + $0x148c] sm:$0xf]  ;;  %v12241_v53 = vor.u32 %v14651_v44, %v12238_v45  ;;  %5445 = vmatpush.bf16.msrb.mxu1 %v11729_v52  ;;  %v14468_v43 = vld [vmem:[#allocation2 + $0xacc] sm:$0xf0]  ;;  %v5224_v4 = vpop.f32.mrf.mxu1 }
 0x118   : > { %v12750_v48 = vld [vmem:[#allocation2 + $0x14c8] sm:$0xf0]  ;;  %v11988_v44 = vld [vmem:[#allocation2 + $0xe90] sm:$0xf]  ;;  %v11477_v49 = vor.u32 %v14468_v43, %v11476_v42 }
 0x119   : > { %v14379_v50 = vld [vmem:[#allocation2 + $0x80c] sm:$0xf]  ;;  %v12753_v60 = vor.u32 %v14779_v47, %v12750_v48  ;;  %5459 = vmatpush.bf16.msrb.mxu2 %v12241_v53  ;;  %v14596_v45 = vld [vmem:[#allocation2 + $0xecc] sm:$0xf0]  ;;  %v10453_v47 = vor.u32 %v14212_v37, %v10452_v36  ;;  %v10965_v48 = vor.u32 %v14340_v41, %v10964_v38  ;;  %v5252_v37 = vpop.f32.mrf.mxu3 }
 0x11a   : > { %v11150_v51 = vld [vmem:[#allocation2 + $0x848] sm:$0xf0]  ;;  %v10900_v52 = vld [vmem:[#allocation2 + $0x610] sm:$0xf]  ;;  %v11989_v53 = vor.u32 %v14596_v45, %v11988_v44 }
 0x11b   : > { %v14507_v55 = vld [vmem:[#allocation2 + $0xc0c] sm:$0xf]  ;;  %v11153_v5 = vor.u32 %v14379_v50, %v11150_v51  ;;  %5473 = vmatpush.bf16.msrb.mxu3 %v12753_v60  ;;  %v10388_v50 = vld [vmem:[#allocation2 + $0x210] sm:$0xf]  ;;  %v5210_v60 = vpop.f32.mrf.mxu0 }
 0x11c   : > { %v11662_v56 = vld [vmem:[#allocation2 + $0xc48] sm:$0xf0]  ;;  %v14196_v51 = vld [vmem:[#allocation2 + $0x24c] sm:$0xf0] }
 0x11d   : > { %v14635_v58 = vld [vmem:[#allocation2 + $0x100c] sm:$0xf]  ;;  %v11665_v11 = vor.u32 %v14507_v55, %v11662_v56  ;;  %5432 = vmatpush.bf16.msrb.mxu0 %v11153_v5  ;;  %v14324_v55 = vld [vmem:[#allocation2 + $0x64c] sm:$0xf0]  ;;  %v10389_v0 = vor.u32 %v14196_v51, %v10388_v50 }
 0x11e   : > { %v12174_v61 = vld [vmem:[#allocation2 + $0x1048] sm:$0xf0]  ;;  %v11412_v56 = vld [vmem:[#allocation2 + $0xa10] sm:$0xf]  ;;  %v10901_v2 = vor.u32 %v14324_v55, %v10900_v52 }
 0x11f   : > { %v14763_v62 = vld [vmem:[#allocation2 + $0x140c] sm:$0xf]  ;;  %v12177_v12 = vor.u32 %v14635_v58, %v12174_v61  ;;  %5446 = vmatpush.bf16.msrb.mxu1 %v11665_v11  ;;  %v14452_v58 = vld [vmem:[#allocation2 + $0xa4c] sm:$0xf0] }
 0x120   : > { %v12686_v63 = vld [vmem:[#allocation2 + $0x1448] sm:$0xf0]  ;;  %5433 = vmatmul.bf16.vlgmr.msrb.gmra.mxu0 %v15676_v22  ;;  %v11924_v61 = vld [vmem:[#allocation2 + $0xe10] sm:$0xf]  ;;  %v11413_v3 = vor.u32 %v14452_v58, %v11412_v56 }
 0x121   : > { %v12689_v15 = vor.u32 %v14763_v62, %v12686_v63  ;;  %5460 = vmatpush.bf16.msrb.mxu2 %v12177_v12  ;;  %5481 = vmatpush.bf16.msra.mxu0 %v10581_v16  ;;  %v14580_v62 = vld [vmem:[#allocation2 + $0xe4c] sm:$0xf0]  ;;  %v5211_v63 = vadd.f32 %v5210_v60, %v15711_v10  ;;  %v17739_v16 = vperm.slane %v15702_v46, 1 }
 0x122   : > { %5447 = vmatmul.bf16.vlgmr.msrb.gmra.mxu1 %v15678_v23  ;;  %v10324_v5 = vld [vmem:[#allocation2 + $0x190] sm:$0xf]  ;;  %v11925_v9 = vor.u32 %v14580_v62, %v11924_v61 }
 0x123   : > { %5474 = vmatpush.bf16.msrb.mxu3 %v12689_v15  ;;  %5495 = vmatpush.bf16.msra.mxu1 %v11093_v17  ;;  %v10836_v8 = vld [vmem:[#allocation2 + $0x590] sm:$0xf]  ;;  %v15726_v11 = vadd.f32 %v5224_v4, %v5211_v63  ;;  %v10325_v17 = vor.u32 %v14180_v7, %v10324_v5 }
 0x124   : > { %5461 = vmatmul.bf16.vlgmr.msrb.gmra.mxu2 %v15686_v35  ;;  %v14308_v12 = vld [vmem:[#allocation2 + $0x5cc] sm:$0xf0] }
 0x125   : > { %5509 = vmatpush.bf16.msra.mxu2 %v11605_v18  ;;  %5482 = vmatpush.bf16.msra.mxu0 %v10517_v32  ;;  %v11348_v13 = vld [vmem:[#allocation2 + $0x990] sm:$0xf]  ;;  %v10837_v18 = vor.u32 %v14308_v12, %v10836_v8  ;;  %v14236_v12 = vld [vmem:[#allocation2 + $0x394] sm:$0xf] }
 0x126   : > { %5475 = vmatmul.bf16.vlgmr.msrb.gmra.mxu3 %v15688_v39  ;;  %v14436_v14 = vld [vmem:[#allocation2 + $0x9cc] sm:$0xf0] }
 0x127   : > { %5523 = vmatpush.bf16.msra.mxu3 %v12117_v25  ;;  %5496 = vmatpush.bf16.msra.mxu1 %v11029_v33  ;;  %v11860_v15 = vld [vmem:[#allocation2 + $0xd90] sm:$0xf]  ;;  %v11349_v20 = vor.u32 %v14436_v14, %v11348_v13  ;;  %v10582_v13 = vld [vmem:[#allocation2 + $0x3d0] sm:$0xf0] }
 0x128   : > { %v14564_v10 = vld [vmem:[#allocation2 + $0xdcc] sm:$0xf0] }
 0x129   : > { %5510 = vmatpush.bf16.msra.mxu2 %v11541_v34  ;;  %5483 = vmatpush.bf16.msra.mxu0 %v10453_v47  ;;  %v10260_v21 = vld [vmem:[#allocation2 + $0x110] sm:$0xf]  ;;  %v11861_v26 = vor.u32 %v14564_v10, %v11860_v15  ;;  %v5239_v34 = vadd.f32 %v5238_v30, %v17739_v16  ;;  %v14364_v10 = vld [vmem:[#allocation2 + $0x794] sm:$0xf]  ;;  %v10532_v16 = vld [vmem:[#allocation2 + $0x320] sm:$0xf] }
 0x12a   : > { %v14164_v24 = vld [vmem:[#allocation2 + $0x14c] sm:$0xf0]  ;;  %v14220_v30 = vld [vmem:[#allocation2 + $0x314] sm:$0xf] }
 0x12b   : > { %5524 = vmatpush.bf16.msra.mxu3 %v12053_v40  ;;  %5497 = vmatpush.bf16.msra.mxu1 %v10965_v48  ;;  %v10772_v25 = vld [vmem:[#allocation2 + $0x510] sm:$0xf]  ;;  %v10261_v36 = vor.u32 %v14164_v24, %v10260_v21  ;;  %v15731_v44 = vadd.f32 %v5252_v37, %v5239_v34  ;;  %v10585_v24 = vor.u32 %v14236_v12, %v10582_v13  ;;  %v14348_v34 = vld [vmem:[#allocation2 + $0x714] sm:$0xf] }
 0x12c   : > { %v14292_v27 = vld [vmem:[#allocation2 + $0x54c] sm:$0xf0] }
 0x12d   : > { %5511 = vmatpush.bf16.msra.mxu2 %v11477_v49  ;;  %5484 = vmatpush.bf16.msra.mxu0 %v10389_v0  ;;  %v11284_v28 = vld [vmem:[#allocation2 + $0x910] sm:$0xf]  ;;  %v10773_v38 = vor.u32 %v14292_v27, %v10772_v25 }
 0x12e   : > { %v14420_v29 = vld [vmem:[#allocation2 + $0x94c] sm:$0xf0] }
 0x12f   : > { %5525 = vmatpush.bf16.msra.mxu3 %v11989_v53  ;;  %5498 = vmatpush.bf16.msra.mxu1 %v10901_v2  ;;  %v11796_v32 = vld [vmem:[#allocation2 + $0xd10] sm:$0xf]  ;;  %v11285_v40 = vor.u32 %v14420_v29, %v11284_v28 }
 0x130   : > { %v14548_v33 = vld [vmem:[#allocation2 + $0xd4c] sm:$0xf0] }
 0x131   : > { %5512 = vmatpush.bf16.msra.mxu2 %v11413_v3  ;;  %5485 = vmatpush.bf16.msra.mxu0 %v10325_v17  ;;  %v10196_v41 = vld [vmem:[#allocation2 + $0x90] sm:$0xf]  ;;  %v11797_v45 = vor.u32 %v14548_v33, %v11796_v32  ;;  %v11094_v17 = vld [vmem:[#allocation2 + $0x7d0] sm:$0xf0]  ;;  %v15733_v33 = vpop.f32.mrf.mxu0 }
 0x132   : > { %v14148_v42 = vld [vmem:[#allocation2 + $0xcc] sm:$0xf0]  ;;  %v11097_v28 = vor.u32 %v14364_v10, %v11094_v17  ;;  %v10518_v32 = vld [vmem:[#allocation2 + $0x350] sm:$0xf0] }
 0x133   : > { %5526 = vmatpush.bf16.msra.mxu3 %v11925_v9  ;;  %5499 = vmatpush.bf16.msra.mxu1 %v10837_v18  ;;  %v10708_v43 = vld [vmem:[#allocation2 + $0x490] sm:$0xf]  ;;  %v10197_v52 = vor.u32 %v14148_v42, %v10196_v41  ;;  %v10521_v41 = vor.u32 %v14220_v30, %v10518_v32 }
 0x134   : > { %v14276_v47 = vld [vmem:[#allocation2 + $0x4cc] sm:$0xf0] }
 0x135   : > { %5513 = vmatpush.bf16.msra.mxu2 %v11349_v20  ;;  %v11220_v48 = vld [vmem:[#allocation2 + $0x890] sm:$0xf]  ;;  %5486 = vmatpush.bf16.msra.mxu0 %v10261_v36  ;;  %v10709_v56 = vor.u32 %v14276_v47, %v10708_v43  ;;  %v11030_v36 = vld [vmem:[#allocation2 + $0x750] sm:$0xf0] }
 0x136   : > { %v14404_v49 = vld [vmem:[#allocation2 + $0x8cc] sm:$0xf0]  ;;  %v11033_v47 = vor.u32 %v14348_v34, %v11030_v36 }
 0x137   : > { %5527 = vmatpush.bf16.msra.mxu3 %v11861_v26  ;;  %v11732_v50 = vld [vmem:[#allocation2 + $0xc90] sm:$0xf]  ;;  %5500 = vmatpush.bf16.msra.mxu1 %v10773_v38  ;;  %v11221_v58 = vor.u32 %v14404_v49, %v11220_v48  ;;  %v15735_v38 = vpop.f32.mrf.mxu1  ;;  %v14204_v49 = vld [vmem:[#allocation2 + $0x294] sm:$0xf] }
 0x138   : > { %v14532_v51 = vld [vmem:[#allocation2 + $0xccc] sm:$0xf0] }
 0x139   : > { %v10132_v53 = vld [vmem:[#allocation2 + $0x10] sm:$0xf]  ;;  %5514 = vmatpush.bf16.msra.mxu2 %v11285_v40  ;;  %v11733_v63 = vor.u32 %v14532_v51, %v11732_v50  ;;  %5487 = vmatpush.bf16.msra.mxu0 %v10197_v52  ;;  %v10454_v50 = vld [vmem:[#allocation2 + $0x2d0] sm:$0xf0] }
 0x13a   : > { %v14132_v55 = vld [vmem:[#allocation2 + $0x4c] sm:$0xf0]  ;;  %v14332_v51 = vld [vmem:[#allocation2 + $0x694] sm:$0xf] }
 0x13b   : > { %v10644_v60 = vld [vmem:[#allocation2 + $0x410] sm:$0xf]  ;;  %5528 = vmatpush.bf16.msra.mxu3 %v11797_v45  ;;  %v10133_v8 = vor.u32 %v14132_v55, %v10132_v53  ;;  %5501 = vmatpush.bf16.msra.mxu1 %v10709_v56  ;;  %v10966_v52 = vld [vmem:[#allocation2 + $0x6d0] sm:$0xf0]  ;;  %v15740_v55 = vpop.f32.mrf.mxu2 }
 0x13c   : > { %v14260_v61 = vld [vmem:[#allocation2 + $0x44c] sm:$0xf0] }
 0x13d   : > { %v11156_v62 = vld [vmem:[#allocation2 + $0x810] sm:$0xf]  ;;  %5515 = vmatpush.bf16.msra.mxu2 %v11221_v58  ;;  %v10645_v14 = vor.u32 %v14260_v61, %v10644_v60  ;;  %5488 = vmatpush.bf16.msra.mxu0 %v10133_v8  ;;  %v10457_v58 = vor.u32 %v14204_v49, %v10454_v50  ;;  %v15743_v60 = vpop.f32.mrf.mxu3  ;;  %v10902_v8 = vld [vmem:[#allocation2 + $0x650] sm:$0xf0] }
 0x13e   : > { %v14388_v0 = vld [vmem:[#allocation2 + $0x84c] sm:$0xf0]  ;;  %v10774_v49 = vld [vmem:[#allocation2 + $0x550] sm:$0xf0] }
 0x13f   : > { %v11668_v2 = vld [vmem:[#allocation2 + $0xc10] sm:$0xf]  ;;  %v11157_v15 = vor.u32 %v14388_v0, %v11156_v62  ;;  %5529 = vmatpush.bf16.msra.mxu3 %v11733_v63  ;;  %5502 = vmatpush.bf16.msra.mxu1 %v10645_v14  ;;  %v10969_v0 = vor.u32 %v14332_v51, %v10966_v52 }
 0x140   : > { %v14516_v3 = vld [vmem:[#allocation2 + $0xc4c] sm:$0xf0]  ;;  %5489 = vmatmul.bf16.vlgmr.msra.gmra.mxu0 %v15664_v57 }
 0x141   : > { %v12628_v4 = vld [vmem:[#allocation2 + $0x1390] sm:$0xf]  ;;  %v11669_v18 = vor.u32 %v14516_v3, %v11668_v2  ;;  %5516 = vmatpush.bf16.msra.mxu2 %v11157_v15  ;;  %v14188_v3 = vld [vmem:[#allocation2 + $0x214] sm:$0xf]  ;;  %v5280_v15 = vpop.f32.mrf.mxu1 }
 0x142   : > { %v14756_v5 = vld [vmem:[#allocation2 + $0x13cc] sm:$0xf0]  ;;  %5503 = vmatmul.bf16.vlgmr.msra.gmra.mxu1 %v15669_v6 }
 0x143   : > { %v13140_v7 = vld [vmem:[#allocation2 + $0x1790] sm:$0xf]  ;;  %v12629_v20 = vor.u32 %v14756_v5, %v12628_v4  ;;  %5530 = vmatpush.bf16.msra.mxu3 %v11669_v18  ;;  %v10390_v4 = vld [vmem:[#allocation2 + $0x250] sm:$0xf0]  ;;  %v5266_v5 = vpop.f32.mrf.mxu0 }
 0x144   : > { %v14884_v9 = vld [vmem:[#allocation2 + $0x17cc] sm:$0xf0]  ;;  %5517 = vmatmul.bf16.vlgmr.msra.gmra.mxu2 %v15676_v22  ;;  %v10393_v14 = vor.u32 %v14188_v3, %v10390_v4  ;;  %v6489_v3 = vmax.f32 %v15726_v11, 0.0  ;;  %v14252_v11 = vld [vmem:[#allocation2 + $0x414] sm:$0xf] }
 0x145   : > { %v13141_v21 = vor.u32 %v14884_v9, %v13140_v7  ;;  %v12564_v25 = vld [vmem:[#allocation2 + $0x1310] sm:$0xf]  ;;  %5537 = vmatpush.bf16.msrb.mxu0 %v12629_v20  ;;  %5565 = vmatpush.bf16.msrb.mxu2 %v10585_v24  ;;  %v14316_v7 = vld [vmem:[#allocation2 + $0x614] sm:$0xf]  ;;  %v5267_v9 = vadd.f32 %v5266_v5, %v15731_v44 }
 0x146   : > { %v14740_v26 = vld [vmem:[#allocation2 + $0x134c] sm:$0xf0]  ;;  %5531 = vmatmul.bf16.vlgmr.msra.gmra.mxu3 %v15678_v23  ;;  %v10905_v20 = vor.u32 %v14316_v7, %v10902_v8  ;;  %v14268_v5 = vld [vmem:[#allocation2 + $0x494] sm:$0xf] }
 0x147   : > { %v13076_v27 = vld [vmem:[#allocation2 + $0x1710] sm:$0xf]  ;;  %v12565_v37 = vor.u32 %v14740_v26, %v12564_v25  ;;  %5551 = vmatpush.bf16.msrb.mxu1 %v13141_v21  ;;  %5579 = vmatpush.bf16.msrb.mxu3 %v11097_v28  ;;  %v5281_v21 = vadd.f32 %v5280_v15, %v5267_v9  ;;  %v14172_v25 = vld [vmem:[#allocation2 + $0x194] sm:$0xf] }
 0x148   : > { %v14868_v29 = vld [vmem:[#allocation2 + $0x174c] sm:$0xf0]  ;;  %v10326_v26 = vld [vmem:[#allocation2 + $0x1d0] sm:$0xf0] }
 0x149   : > { %v13077_v40 = vor.u32 %v14868_v29, %v13076_v27  ;;  %v12500_v42 = vld [vmem:[#allocation2 + $0x1290] sm:$0xf]  ;;  %5538 = vmatpush.bf16.msrb.mxu0 %v12565_v37  ;;  %5566 = vmatpush.bf16.msrb.mxu2 %v10521_v41  ;;  %v14300_v27 = vld [vmem:[#allocation2 + $0x594] sm:$0xf]  ;;  %v10329_v30 = vor.u32 %v14172_v25, %v10326_v26 }
 0x14a   : > { %v14724_v43 = vld [vmem:[#allocation2 + $0x12cc] sm:$0xf0]  ;;  %v10838_v28 = vld [vmem:[#allocation2 + $0x5d0] sm:$0xf0] }
 0x14b   : > { %v13012_v45 = vld [vmem:[#allocation2 + $0x1690] sm:$0xf]  ;;  %v12501_v53 = vor.u32 %v14724_v43, %v12500_v42  ;;  %5552 = vmatpush.bf16.msrb.mxu1 %v13077_v40  ;;  %5580 = vmatpush.bf16.msrb.mxu3 %v11033_v47  ;;  %v10841_v37 = vor.u32 %v14300_v27, %v10838_v28  ;;  %v5294_v40 = vpop.f32.mrf.mxu2  ;;  %v14156_v42 = vld [vmem:[#allocation2 + $0x114] sm:$0xf]  ;;  %v5308_v47 = vpop.f32.mrf.mxu3 }
 0x14c   : > { %v14852_v48 = vld [vmem:[#allocation2 + $0x16cc] sm:$0xf0]  ;;  %v10262_v43 = vld [vmem:[#allocation2 + $0x150] sm:$0xf0] }
 0x14d   : > { %v13013_v56 = vor.u32 %v14852_v48, %v13012_v45  ;;  %v12436_v61 = vld [vmem:[#allocation2 + $0x1210] sm:$0xf]  ;;  %5539 = vmatpush.bf16.msrb.mxu0 %v12501_v53  ;;  %5567 = vmatpush.bf16.msrb.mxu2 %v10457_v58  ;;  %v5295_v45 = vadd.f32 %v5294_v40, %v5281_v21  ;;  %v14284_v48 = vld [vmem:[#allocation2 + $0x514] sm:$0xf]  ;;  %v10265_v53 = vor.u32 %v14156_v42, %v10262_v43 }
 0x14e   : > { %v14708_v62 = vld [vmem:[#allocation2 + $0x124c] sm:$0xf0]  ;;  %v10710_v7 = vld [vmem:[#allocation2 + $0x4d0] sm:$0xf0] }
 0x14f   : > { %v12948_v63 = vld [vmem:[#allocation2 + $0x1610] sm:$0xf]  ;;  %v12437_v12 = vor.u32 %v14708_v62, %v12436_v61  ;;  %5553 = vmatpush.bf16.msrb.mxu1 %v13013_v56  ;;  %5581 = vmatpush.bf16.msrb.mxu3 %v10969_v0  ;;  %v5309_v51 = vadd.f32 %v5308_v47, %v5295_v45  ;;  %v10777_v62 = vor.u32 %v14284_v48, %v10774_v49  ;;  %v14140_v0 = vld [vmem:[#allocation2 + $0x94] sm:$0xf] }
 0x150   : > { %v14836_v2 = vld [vmem:[#allocation2 + $0x164c] sm:$0xf0]  ;;  %v10134_v21 = vld [vmem:[#allocation2 + $0x50] sm:$0xf0] }
 0x151   : > { %v12949_v13 = vor.u32 %v14836_v2, %v12948_v63  ;;  %v12372_v10 = vld [vmem:[#allocation2 + $0x1190] sm:$0xf]  ;;  %5540 = vmatpush.bf16.msrb.mxu0 %v12437_v12  ;;  %5568 = vmatpush.bf16.msrb.mxu2 %v10393_v14  ;;  %v10198_v2 = vld [vmem:[#allocation2 + $0xd0] sm:$0xf0]  ;;  %v6490_v4 = vmax.f32 %v5309_v51, 0.0 }
 0x152   : > { %v14692_v17 = vld [vmem:[#allocation2 + $0x11cc] sm:$0xf0]  ;;  %v10201_v15 = vor.u32 %v14140_v0, %v10198_v2  ;;  %v14492_v25 = vld [vmem:[#allocation2 + $0xb94] sm:$0xf] }
 0x153   : > { %v12884_v18 = vld [vmem:[#allocation2 + $0x1590] sm:$0xf]  ;;  %v12373_v29 = vor.u32 %v14692_v17, %v12372_v10  ;;  %5554 = vmatpush.bf16.msrb.mxu1 %v12949_v13  ;;  %5582 = vmatpush.bf16.msrb.mxu3 %v10905_v20  ;;  %v15747_v13 = vpack.c.bf16 %v6490_v4, %v6489_v3  ;;  %v10713_v20 = vor.u32 %v14268_v5, %v10710_v7  ;;  %v11606_v26 = vld [vmem:[#allocation2 + $0xbd0] sm:$0xf0] }
 0x154   : > { %v14820_v24 = vld [vmem:[#allocation2 + $0x15cc] sm:$0xf0]  ;;  %v14620_v27 = vld [vmem:[#allocation2 + $0xf94] sm:$0xf] }
 0x155   : > { %v12885_v44 = vor.u32 %v14820_v24, %v12884_v18  ;;  %v12308_v32 = vld [vmem:[#allocation2 + $0x1110] sm:$0xf]  ;;  %5541 = vmatpush.bf16.msrb.mxu0 %v12373_v29  ;;  %5569 = vmatpush.bf16.msrb.mxu2 %v10329_v30  ;;  %v14124_v18 = vld [vmem:[#allocation2 + $0x14] sm:$0xf] }
 0x156   : > { %v14676_v34 = vld [vmem:[#allocation2 + $0x114c] sm:$0xf0]  ;;  %v10646_v24 = vld [vmem:[#allocation2 + $0x450] sm:$0xf0] }
 0x157   : > { %v12820_v36 = vld [vmem:[#allocation2 + $0x1510] sm:$0xf]  ;;  %v12309_v50 = vor.u32 %v14676_v34, %v12308_v32  ;;  %5555 = vmatpush.bf16.msrb.mxu1 %v12885_v44  ;;  %5583 = vmatpush.bf16.msrb.mxu3 %v10841_v37  ;;  %v12118_v29 = vld [vmem:[#allocation2 + $0xfd0] sm:$0xf0]  ;;  %v10137_v34 = vor.u32 %v14124_v18, %v10134_v21  ;;  %v10649_v40 = vor.u32 %v14252_v11, %v10646_v24  ;;  %v15758_v24 = vpop.f32.mrf.mxu2 }
 0x158   : > { %v14804_v41 = vld [vmem:[#allocation2 + $0x154c] sm:$0xf0]  ;;  %v14748_v44 = vld [vmem:[#allocation2 + $0x1394] sm:$0xf]  ;;  %v12121_v42 = vor.u32 %v14620_v27, %v12118_v29 }
 0x159   : > { %v12821_v52 = vor.u32 %v14804_v41, %v12820_v36  ;;  %v12244_v56 = vld [vmem:[#allocation2 + $0x1090] sm:$0xf]  ;;  %5542 = vmatpush.bf16.msrb.mxu0 %v12309_v50  ;;  %5570 = vmatpush.bf16.msrb.mxu2 %v10265_v53  ;;  %v12630_v30 = vld [vmem:[#allocation2 + $0x13d0] sm:$0xf0]  ;;  %v11609_v41 = vor.u32 %v14492_v25, %v11606_v26  ;;  %v15749_v53 = vpop.f32.mrf.mxu0 }
 0x15a   : > { %v14660_v58 = vld [vmem:[#allocation2 + $0x10cc] sm:$0xf0]  ;;  %v14876_v36 = vld [vmem:[#allocation2 + $0x1794] sm:$0xf]  ;;  %v12633_v43 = vor.u32 %v14748_v44, %v12630_v30 }
 0x15b   : > { %v12756_v61 = vld [vmem:[#allocation2 + $0x1490] sm:$0xf]  ;;  %v12245_v8 = vor.u32 %v14660_v58, %v12244_v56  ;;  %5556 = vmatpush.bf16.msrb.mxu1 %v12821_v52  ;;  %5584 = vmatpush.bf16.msrb.mxu3 %v10777_v62  ;;  %v13142_v37 = vld [vmem:[#allocation2 + $0x17d0] sm:$0xf0]  ;;  %v15751_v62 = vpop.f32.mrf.mxu1 }
 0x15c   : > { %v14788_v63 = vld [vmem:[#allocation2 + $0x14cc] sm:$0xf0]  ;;  %v14476_v45 = vld [vmem:[#allocation2 + $0xb14] sm:$0xf]  ;;  %v13145_v49 = vor.u32 %v14876_v36, %v13142_v37 }
 0x15d   : > { %v12180_v9 = vld [vmem:[#allocation2 + $0x1010] sm:$0xf]  ;;  %v12757_v14 = vor.u32 %v14788_v63, %v12756_v61  ;;  %5543 = vmatpush.bf16.msrb.mxu0 %v12245_v8  ;;  %5571 = vmatpush.bf16.msrb.mxu2 %v10201_v15  ;;  %v11542_v47 = vld [vmem:[#allocation2 + $0xb50] sm:$0xf0] }
 0x15e   : > { %v14644_v12 = vld [vmem:[#allocation2 + $0x104c] sm:$0xf0]  ;;  %v14604_v48 = vld [vmem:[#allocation2 + $0xf14] sm:$0xf]  ;;  %v11545_v61 = vor.u32 %v14476_v45, %v11542_v47 }
 0x15f   : > { %v12692_v10 = vld [vmem:[#allocation2 + $0x1410] sm:$0xf]  ;;  %v12181_v28 = vor.u32 %v14644_v12, %v12180_v9  ;;  %5557 = vmatpush.bf16.msrb.mxu1 %v12757_v14  ;;  %5585 = vmatpush.bf16.msrb.mxu3 %v10713_v20  ;;  %v12054_v50 = vld [vmem:[#allocation2 + $0xf50] sm:$0xf0] }
 0x160   : > { %v14772_v17 = vld [vmem:[#allocation2 + $0x144c] sm:$0xf0]  ;;  %v14732_v51 = vld [vmem:[#allocation2 + $0x1314] sm:$0xf]  ;;  %v12057_v63 = vor.u32 %v14604_v48, %v12054_v50 }
 0x161   : > { %v12693_v32 = vor.u32 %v14772_v17, %v12692_v10  ;;  %5544 = vmatpush.bf16.msrb.mxu0 %v12181_v28  ;;  %v12566_v52 = vld [vmem:[#allocation2 + $0x1350] sm:$0xf0]  ;;  %5572 = vmatpush.bf16.msrb.mxu2 %v10137_v34  ;;  %v17735_v10 = vperm.slane %v15702_v46, 2  ;;  %v5322_v30 = vpop.f32.mrf.mxu0 }
 0x162   : > { %v14860_v56 = vld [vmem:[#allocation2 + $0x1714] sm:$0xf]  ;;  %v12569_v0 = vor.u32 %v14732_v51, %v12566_v52 }
 0x163   : > { %5558 = vmatpush.bf16.msrb.mxu1 %v12693_v32  ;;  %v13078_v58 = vld [vmem:[#allocation2 + $0x1750] sm:$0xf0]  ;;  %5586 = vmatpush.bf16.msrb.mxu3 %v10649_v40  ;;  %v15760_v32 = vpop.f32.mrf.mxu3  ;;  %v5323_v36 = vadd.f32 %v5322_v30, %v17735_v10  ;;  %v5336_v45 = vpop.f32.mrf.mxu1  ;;  %v12574_v10 = vld [vmem:[#allocation2 + $0x1358] sm:$0xf0] }
 0x164   : > { %v14460_v2 = vld [vmem:[#allocation2 + $0xa94] sm:$0xf]  ;;  %5545 = vmatmul.bf16.vlgmr.msrb.gmra.mxu0 %v15686_v35  ;;  %v13081_v5 = vor.u32 %v14860_v56, %v13078_v58  ;;  %5573 = vmatmul.bf16.vlgmr.msrb.gmra.mxu2 %v15664_v57 }
 0x165   : > { %5593 = vmatpush.bf16.msra.mxu0 %v11609_v41  ;;  %5621 = vmatpush.bf16.msra.mxu2 %v12633_v43  ;;  %v11478_v3 = vld [vmem:[#allocation2 + $0xad0] sm:$0xf0]  ;;  %v5337_v51 = vadd.f32 %v5336_v45, %v5323_v36 }
 0x166   : > { %v14588_v4 = vld [vmem:[#allocation2 + $0xe94] sm:$0xf]  ;;  %5559 = vmatmul.bf16.vlgmr.msrb.gmra.mxu1 %v15688_v39  ;;  %v11481_v15 = vor.u32 %v14460_v2, %v11478_v3  ;;  %5587 = vmatmul.bf16.vlgmr.msrb.gmra.mxu3 %v15669_v6 }
 0x167   : > { %5607 = vmatpush.bf16.msra.mxu1 %v12121_v42  ;;  %5635 = vmatpush.bf16.msra.mxu3 %v13145_v49  ;;  %v11990_v7 = vld [vmem:[#allocation2 + $0xed0] sm:$0xf0] }
 0x168   : > { %v14716_v8 = vld [vmem:[#allocation2 + $0x1294] sm:$0xf]  ;;  %v11993_v17 = vor.u32 %v14588_v4, %v11990_v7 }
 0x169   : > { %v12502_v9 = vld [vmem:[#allocation2 + $0x12d0] sm:$0xf0]  ;;  %5594 = vmatpush.bf16.msra.mxu0 %v11545_v61  ;;  %5622 = vmatpush.bf16.msra.mxu2 %v12569_v0 }
 0x16a   : > { %v14844_v12 = vld [vmem:[#allocation2 + $0x1694] sm:$0xf]  ;;  %v12505_v18 = vor.u32 %v14716_v8, %v12502_v9  ;;  %v5350_v9 = vpop.f32.mrf.mxu2 }
 0x16b   : > { %v13014_v14 = vld [vmem:[#allocation2 + $0x16d0] sm:$0xf0]  ;;  %5608 = vmatpush.bf16.msra.mxu1 %v12057_v63  ;;  %5636 = vmatpush.bf16.msra.mxu3 %v13081_v5 }
 0x16c   : > { %v14444_v20 = vld [vmem:[#allocation2 + $0xa14] sm:$0xf]  ;;  %v13017_v25 = vor.u32 %v14844_v12, %v13014_v14 }
 0x16d   : > { %v11414_v21 = vld [vmem:[#allocation2 + $0xa50] sm:$0xf0]  ;;  %5595 = vmatpush.bf16.msra.mxu0 %v11481_v15  ;;  %5623 = vmatpush.bf16.msra.mxu2 %v12505_v18  ;;  %v5351_v15 = vadd.f32 %v5350_v9, %v5337_v51  ;;  %v5364_v18 = vpop.f32.mrf.mxu3 }
 0x16e   : > { %v14572_v11 = vld [vmem:[#allocation2 + $0xe14] sm:$0xf]  ;;  %v11417_v34 = vor.u32 %v14444_v20, %v11414_v21 }
 0x16f   : > { %v11926_v26 = vld [vmem:[#allocation2 + $0xe50] sm:$0xf0]  ;;  %5609 = vmatpush.bf16.msra.mxu1 %v11993_v17  ;;  %5637 = vmatpush.bf16.msra.mxu3 %v13017_v25 }
 0x170   : > { %v14700_v27 = vld [vmem:[#allocation2 + $0x1214] sm:$0xf]  ;;  %v11929_v37 = vor.u32 %v14572_v11, %v11926_v26 }
 0x171   : > { %v12438_v28 = vld [vmem:[#allocation2 + $0x1250] sm:$0xf0]  ;;  %5596 = vmatpush.bf16.msra.mxu0 %v11417_v34 }
 0x172   : > { %v14828_v29 = vld [vmem:[#allocation2 + $0x1614] sm:$0xf]  ;;  %v12441_v40 = vor.u32 %v14700_v27, %v12438_v28  ;;  %v15764_v27 = vadd.f32 %v5364_v18, %v5351_v15  ;;  %v10524_v18 = vld [vmem:[#allocation2 + $0x318] sm:$0xf] }
 0x173   : > { %v12950_v44 = vld [vmem:[#allocation2 + $0x1650] sm:$0xf0]  ;;  %5610 = vmatpush.bf16.msra.mxu1 %v11929_v37 }
 0x174   : > { %v14428_v41 = vld [vmem:[#allocation2 + $0x994] sm:$0xf]  ;;  %v12953_v47 = vor.u32 %v14828_v29, %v12950_v44  ;;  %5624 = vmatpush.bf16.msra.mxu2 %v12441_v40 }
 0x175   : > { %v11350_v42 = vld [vmem:[#allocation2 + $0x9d0] sm:$0xf0] }
 0x176   : > { %v14556_v43 = vld [vmem:[#allocation2 + $0xd94] sm:$0xf]  ;;  %v11353_v58 = vor.u32 %v14428_v41, %v11350_v42  ;;  %5638 = vmatpush.bf16.msra.mxu3 %v12953_v47 }
 0x177   : > { %v11862_v48 = vld [vmem:[#allocation2 + $0xdd0] sm:$0xf0] }
 0x178   : > { %v14684_v49 = vld [vmem:[#allocation2 + $0x1194] sm:$0xf]  ;;  %v11865_v61 = vor.u32 %v14556_v43, %v11862_v48  ;;  %5597 = vmatpush.bf16.msra.mxu0 %v11353_v58  ;;  %v14245_v58 = vld [vmem:[#allocation2 + $0x3d4] sm:$0xf0] }
 0x179   : > { %v12374_v50 = vld [vmem:[#allocation2 + $0x11d0] sm:$0xf0] }
 0x17a   : > { %v14812_v52 = vld [vmem:[#allocation2 + $0x1594] sm:$0xf]  ;;  %v12377_v63 = vor.u32 %v14684_v49, %v12374_v50  ;;  %5611 = vmatpush.bf16.msra.mxu1 %v11865_v61  ;;  %v11100_v61 = vld [vmem:[#allocation2 + $0x798] sm:$0xf] }
 0x17b   : > { %v12886_v56 = vld [vmem:[#allocation2 + $0x15d0] sm:$0xf0] }
 0x17c   : > { %v14412_v0 = vld [vmem:[#allocation2 + $0x914] sm:$0xf]  ;;  %v12889_v4 = vor.u32 %v14812_v52, %v12886_v56  ;;  %5625 = vmatpush.bf16.msra.mxu2 %v12377_v63  ;;  %v10588_v56 = vld [vmem:[#allocation2 + $0x398] sm:$0xf] }
 0x17d   : > { %v11286_v2 = vld [vmem:[#allocation2 + $0x950] sm:$0xf0] }
 0x17e   : > { %v14540_v3 = vld [vmem:[#allocation2 + $0xd14] sm:$0xf]  ;;  %v11289_v17 = vor.u32 %v14412_v0, %v11286_v2  ;;  %5639 = vmatpush.bf16.msra.mxu3 %v12889_v4  ;;  %v14373_v0 = vld [vmem:[#allocation2 + $0x7d4] sm:$0xf0] }
 0x17f   : > { %v11798_v5 = vld [vmem:[#allocation2 + $0xd50] sm:$0xf0]  ;;  %v11612_v2 = vld [vmem:[#allocation2 + $0xb98] sm:$0xf] }
 0x180   : > { %v14668_v7 = vld [vmem:[#allocation2 + $0x1114] sm:$0xf]  ;;  %v11801_v20 = vor.u32 %v14540_v3, %v11798_v5  ;;  %5598 = vmatpush.bf16.msra.mxu0 %v11289_v17  ;;  %v14501_v3 = vld [vmem:[#allocation2 + $0xbd4] sm:$0xf0]  ;;  %v15766_v17 = vpop.f32.mrf.mxu0 }
 0x181   : > { %v12310_v8 = vld [vmem:[#allocation2 + $0x1150] sm:$0xf0]  ;;  %v11613_v15 = vor.u32 %v14501_v3, %v11612_v2  ;;  %v14325_v2 = vld [vmem:[#allocation2 + $0x654] sm:$0xf0] }
 0x182   : > { %v14796_v12 = vld [vmem:[#allocation2 + $0x1514] sm:$0xf]  ;;  %v12313_v21 = vor.u32 %v14668_v7, %v12310_v8  ;;  %5612 = vmatpush.bf16.msra.mxu1 %v11801_v20  ;;  %v12124_v7 = vld [vmem:[#allocation2 + $0xf98] sm:$0xf] }
 0x183   : > { %v12822_v14 = vld [vmem:[#allocation2 + $0x1550] sm:$0xf0]  ;;  %v14629_v8 = vld [vmem:[#allocation2 + $0xfd4] sm:$0xf0] }
 0x184   : > { %v14396_v11 = vld [vmem:[#allocation2 + $0x894] sm:$0xf]  ;;  %v12825_v28 = vor.u32 %v14796_v12, %v12822_v14  ;;  %5626 = vmatpush.bf16.msra.mxu2 %v12313_v21  ;;  %v10589_v12 = vor.u32 %v14245_v58, %v10588_v56  ;;  %v11101_v14 = vor.u32 %v14373_v0, %v11100_v61  ;;  %v14229_v20 = vld [vmem:[#allocation2 + $0x354] sm:$0xf0] }
 0x185   : > { %v11222_v25 = vld [vmem:[#allocation2 + $0x8d0] sm:$0xf0]  ;;  %v11036_v21 = vld [vmem:[#allocation2 + $0x718] sm:$0xf] }
 0x186   : > { %v14524_v26 = vld [vmem:[#allocation2 + $0xc94] sm:$0xf]  ;;  %v11225_v37 = vor.u32 %v14396_v11, %v11222_v25  ;;  %5640 = vmatpush.bf16.msra.mxu3 %v12825_v28  ;;  %v12125_v11 = vor.u32 %v14629_v8, %v12124_v7  ;;  %v14357_v25 = vld [vmem:[#allocation2 + $0x754] sm:$0xf0] }
 0x187   : > { %v11734_v29 = vld [vmem:[#allocation2 + $0xcd0] sm:$0xf0]  ;;  %v14485_v28 = vld [vmem:[#allocation2 + $0xb54] sm:$0xf0] }
 0x188   : > { %v14652_v44 = vld [vmem:[#allocation2 + $0x1094] sm:$0xf]  ;;  %v11737_v42 = vor.u32 %v14524_v26, %v11734_v29  ;;  %5599 = vmatpush.bf16.msra.mxu0 %v11225_v37  ;;  %v11548_v26 = vld [vmem:[#allocation2 + $0xb18] sm:$0xf]  ;;  %v5378_v7 = vpop.f32.mrf.mxu0 }
 0x189   : > { %v12246_v30 = vld [vmem:[#allocation2 + $0x10d0] sm:$0xf0]  ;;  %v12060_v29 = vld [vmem:[#allocation2 + $0xf18] sm:$0xf]  ;;  %v11549_v37 = vor.u32 %v14485_v28, %v11548_v26 }
 0x18a   : > { %v14780_v34 = vld [vmem:[#allocation2 + $0x1494] sm:$0xf]  ;;  %v12249_v43 = vor.u32 %v14652_v44, %v12246_v30  ;;  %5613 = vmatpush.bf16.msra.mxu1 %v11737_v42  ;;  %v14613_v44 = vld [vmem:[#allocation2 + $0xf54] sm:$0xf0]  ;;  %v15768_v30 = vpop.f32.mrf.mxu1 }
 0x18b   : > { %v12758_v36 = vld [vmem:[#allocation2 + $0x14d0] sm:$0xf0]  ;;  %v10972_v42 = vld [vmem:[#allocation2 + $0x698] sm:$0xf] }
 0x18c   : > { %v14380_v40 = vld [vmem:[#allocation2 + $0x814] sm:$0xf]  ;;  %v12761_v49 = vor.u32 %v14780_v34, %v12758_v36  ;;  %5627 = vmatpush.bf16.msra.mxu2 %v12249_v43  ;;  %v10525_v34 = vor.u32 %v14229_v20, %v10524_v18  ;;  %v11037_v36 = vor.u32 %v14357_v25, %v11036_v21  ;;  %v12061_v43 = vor.u32 %v14613_v44, %v12060_v29  ;;  %v10396_v58 = vld [vmem:[#allocation2 + $0x218] sm:$0xf] }
 0x18d   : > { %v11158_v41 = vld [vmem:[#allocation2 + $0x850] sm:$0xf0]  ;;  %v14197_v61 = vld [vmem:[#allocation2 + $0x254] sm:$0xf0] }
 0x18e   : > { %v14508_v45 = vld [vmem:[#allocation2 + $0xc14] sm:$0xf]  ;;  %v11161_v63 = vor.u32 %v14380_v40, %v11158_v41  ;;  %5641 = vmatpush.bf16.msra.mxu3 %v12761_v49  ;;  %v10460_v40 = vld [vmem:[#allocation2 + $0x298] sm:$0xf] }
 0x18f   : > { %v11670_v47 = vld [vmem:[#allocation2 + $0xc50] sm:$0xf0]  ;;  %v14213_v41 = vld [vmem:[#allocation2 + $0x2d4] sm:$0xf0] }
 0x190   : > { %v14636_v48 = vld [vmem:[#allocation2 + $0x1014] sm:$0xf]  ;;  %v11673_v4 = vor.u32 %v14508_v45, %v11670_v47  ;;  %5600 = vmatpush.bf16.msra.mxu0 %v11161_v63  ;;  %v14341_v45 = vld [vmem:[#allocation2 + $0x6d4] sm:$0xf0] }
 0x191   : > { %v12182_v50 = vld [vmem:[#allocation2 + $0x1050] sm:$0xf0]  ;;  %v11484_v47 = vld [vmem:[#allocation2 + $0xa98] sm:$0xf] }
 0x192   : > { %v14764_v51 = vld [vmem:[#allocation2 + $0x1414] sm:$0xf]  ;;  %v12185_v5 = vor.u32 %v14636_v48, %v12182_v50  ;;  %5614 = vmatpush.bf16.msra.mxu1 %v11673_v4  ;;  %v14469_v48 = vld [vmem:[#allocation2 + $0xad4] sm:$0xf0]  ;;  %v5392_v21 = vpop.f32.mrf.mxu1 }
 0x193   : > { %v12694_v52 = vld [vmem:[#allocation2 + $0x1450] sm:$0xf0]  ;;  %5601 = vmatmul.bf16.vlgmr.msra.gmra.mxu0 %v15676_v22  ;;  %v11996_v49 = vld [vmem:[#allocation2 + $0xe98] sm:$0xf]  ;;  %v11485_v56 = vor.u32 %v14469_v48, %v11484_v47 }
 0x194   : > { %v12697_v9 = vor.u32 %v14764_v51, %v12694_v52  ;;  %5628 = vmatpush.bf16.msra.mxu2 %v12185_v5  ;;  %5649 = vmatpush.bf16.msrb.mxu0 %v10589_v12  ;;  %v14597_v50 = vld [vmem:[#allocation2 + $0xed4] sm:$0xf0]  ;;  %v10461_v51 = vor.u32 %v14213_v41, %v10460_v40  ;;  %v10973_v52 = vor.u32 %v14341_v45, %v10972_v42  ;;  %v15774_v5 = vpop.f32.mrf.mxu2  ;;  %v15781_v40 = vld [vmem:[#allocation4] sm:$0xff] }
 0x195   : > { %5615 = vmatmul.bf16.vlgmr.msra.gmra.mxu1 %v15678_v23  ;;  %v10908_v63 = vld [vmem:[#allocation2 + $0x618] sm:$0xf]  ;;  %v11997_v0 = vor.u32 %v14597_v50, %v11996_v49  ;;  %v5379_v12 = vadd.f32 %v5378_v7, %v15764_v27  ;;  %17977 = vst [vmem:[#allocation20_spill] sm:$0xff] %v15781_v40  ;;  %v17736_v41 = vperm.slane %v15781_v40, 3 }
 0x196   : > { %5642 = vmatpush.bf16.msra.mxu3 %v12697_v9  ;;  %5663 = vmatpush.bf16.msrb.mxu1 %v11101_v14  ;;  %v11420_v3 = vld [vmem:[#allocation2 + $0xa18] sm:$0xf]  ;;  %v10397_v14 = vor.u32 %v14197_v61, %v10396_v58  ;;  %v10909_v18 = vor.u32 %v14325_v2, %v10908_v63 }
 0x197   : > { %5629 = vmatmul.bf16.vlgmr.msra.gmra.mxu2 %v15686_v35  ;;  %v14453_v4 = vld [vmem:[#allocation2 + $0xa54] sm:$0xf0]  ;;  %v15779_v29 = vadd.f32 %v5392_v21, %v5379_v12 }
 0x198   : > { %5677 = vmatpush.bf16.msrb.mxu2 %v11613_v15  ;;  %5650 = vmatpush.bf16.msrb.mxu0 %v10525_v34  ;;  %v11932_v8 = vld [vmem:[#allocation2 + $0xe18] sm:$0xf]  ;;  %v15777_v15 = vpop.f32.mrf.mxu3  ;;  %v11421_v20 = vor.u32 %v14453_v4, %v11420_v3 }
 0x199   : > { %5643 = vmatmul.bf16.vlgmr.msra.gmra.mxu3 %v15688_v39  ;;  %v14581_v9 = vld [vmem:[#allocation2 + $0xe54] sm:$0xf0] }
 0x19a   : > { %5691 = vmatpush.bf16.msrb.mxu3 %v12125_v11  ;;  %5664 = vmatpush.bf16.msrb.mxu1 %v11037_v36  ;;  %v10332_v11 = vld [vmem:[#allocation2 + $0x198] sm:$0xf]  ;;  %v11933_v28 = vor.u32 %v14581_v9, %v11932_v8 }
 0x19b   : > { %v14181_v25 = vld [vmem:[#allocation2 + $0x1d4] sm:$0xf0] }
 0x19c   : > { %5678 = vmatpush.bf16.msrb.mxu2 %v11549_v37  ;;  %5651 = vmatpush.bf16.msrb.mxu0 %v10461_v51  ;;  %v10844_v26 = vld [vmem:[#allocation2 + $0x598] sm:$0xf]  ;;  %v10333_v42 = vor.u32 %v14181_v25, %v10332_v11  ;;  %v5406_v58 = vpop.f32.mrf.mxu2 }
 0x19d   : > { %v14309_v44 = vld [vmem:[#allocation2 + $0x5d4] sm:$0xf0] }
 0x19e   : > { %5692 = vmatpush.bf16.msrb.mxu3 %v12061_v43  ;;  %5665 = vmatpush.bf16.msrb.mxu1 %v10973_v52  ;;  %v11356_v34 = vld [vmem:[#allocation2 + $0x998] sm:$0xf]  ;;  %v10845_v43 = vor.u32 %v14309_v44, %v10844_v26 }
 0x19f   : > { %v14437_v36 = vld [vmem:[#allocation2 + $0x9d4] sm:$0xf0] }
 0x1a0   : > { %5679 = vmatpush.bf16.msrb.mxu2 %v11485_v56  ;;  %v11868_v37 = vld [vmem:[#allocation2 + $0xd98] sm:$0xf]  ;;  %5652 = vmatpush.bf16.msrb.mxu0 %v10397_v14  ;;  %v11357_v45 = vor.u32 %v14437_v36, %v11356_v34  ;;  %v5420_v3 = vpop.f32.mrf.mxu3 }
 0x1a1   : > { %v14565_v27 = vld [vmem:[#allocation2 + $0xdd4] sm:$0xf0] }
 0x1a2   : > { %5693 = vmatpush.bf16.msrb.mxu3 %v11997_v0  ;;  %5666 = vmatpush.bf16.msrb.mxu1 %v10909_v18  ;;  %v10268_v47 = vld [vmem:[#allocation2 + $0x118] sm:$0xf]  ;;  %v11869_v50 = vor.u32 %v14565_v27, %v11868_v37  ;;  %v5407_v0 = vadd.f32 %v5406_v58, %v17736_v41 }
 0x1a3   : > { %v14165_v48 = vld [vmem:[#allocation2 + $0x154] sm:$0xf0] }
 0x1a4   : > { %5680 = vmatpush.bf16.msrb.mxu2 %v11421_v20  ;;  %v10780_v49 = vld [vmem:[#allocation2 + $0x518] sm:$0xf]  ;;  %5653 = vmatpush.bf16.msrb.mxu0 %v10333_v42  ;;  %v10269_v2 = vor.u32 %v14165_v48, %v10268_v47  ;;  %v15786_v14 = vadd.f32 %v5420_v3, %v5407_v0  ;;  %v14365_v3 = vld [vmem:[#allocation2 + $0x79c] sm:$0xf] }
 0x1a5   : > { %v14293_v51 = vld [vmem:[#allocation2 + $0x554] sm:$0xf0] }
 0x1a6   : > { %5694 = vmatpush.bf16.msrb.mxu3 %v11933_v28  ;;  %v11292_v52 = vld [vmem:[#allocation2 + $0x918] sm:$0xf]  ;;  %5667 = vmatpush.bf16.msrb.mxu1 %v10845_v43  ;;  %v10781_v4 = vor.u32 %v14293_v51, %v10780_v49 }
 0x1a7   : > { %v14421_v56 = vld [vmem:[#allocation2 + $0x954] sm:$0xf0] }
 0x1a8   : > { %v11804_v61 = vld [vmem:[#allocation2 + $0xd18] sm:$0xf]  ;;  %5681 = vmatpush.bf16.msrb.mxu2 %v11357_v45  ;;  %v11293_v7 = vor.u32 %v14421_v56, %v11292_v52  ;;  %5654 = vmatpush.bf16.msrb.mxu0 %v10269_v2 }
 0x1a9   : > { %v14549_v63 = vld [vmem:[#allocation2 + $0xd54] sm:$0xf0] }
 0x1aa   : > { %v10204_v8 = vld [vmem:[#allocation2 + $0x98] sm:$0xf]  ;;  %5695 = vmatpush.bf16.msrb.mxu3 %v11869_v50  ;;  %v11805_v18 = vor.u32 %v14549_v63, %v11804_v61  ;;  %5668 = vmatpush.bf16.msrb.mxu1 %v10781_v4  ;;  %v14237_v61 = vld [vmem:[#allocation2 + $0x39c] sm:$0xf] }
 0x1ab   : > { %v14149_v9 = vld [vmem:[#allocation2 + $0xd4] sm:$0xf0]  ;;  %v10590_v63 = vld [vmem:[#allocation2 + $0x3d8] sm:$0xf0] }
 0x1ac   : > { %v10716_v12 = vld [vmem:[#allocation2 + $0x498] sm:$0xf]  ;;  %v10205_v28 = vor.u32 %v14149_v9, %v10204_v8  ;;  %5682 = vmatpush.bf16.msrb.mxu2 %v11293_v7  ;;  %v11102_v4 = vld [vmem:[#allocation2 + $0x7d8] sm:$0xf0] }
 0x1ad   : > { %v14277_v20 = vld [vmem:[#allocation2 + $0x4d4] sm:$0xf0] }
 0x1ae   : > { %v11228_v21 = vld [vmem:[#allocation2 + $0x898] sm:$0xf]  ;;  %v10717_v36 = vor.u32 %v14277_v20, %v10716_v12  ;;  %5696 = vmatpush.bf16.msrb.mxu3 %v11805_v18  ;;  %5655 = vmatpush.bf16.msrb.mxu0 %v10205_v28  ;;  %v10593_v12 = vor.u32 %v14237_v61, %v10590_v63  ;;  %v10526_v28 = vld [vmem:[#allocation2 + $0x358] sm:$0xf0]  ;;  %v15795_v63 = vpop.f32.mrf.mxu2 }
 0x1af   : > { %v14405_v11 = vld [vmem:[#allocation2 + $0x8d4] sm:$0xf0] }
 0x1b0   : > { %v11740_v25 = vld [vmem:[#allocation2 + $0xc98] sm:$0xf]  ;;  %v11229_v37 = vor.u32 %v14405_v11, %v11228_v21  ;;  %5669 = vmatpush.bf16.msrb.mxu1 %v10717_v36  ;;  %v11105_v11 = vor.u32 %v14365_v3, %v11102_v4  ;;  %v11038_v36 = vld [vmem:[#allocation2 + $0x758] sm:$0xf0]  ;;  %v15798_v3 = vpop.f32.mrf.mxu3 }
 0x1b1   : > { %v14533_v26 = vld [vmem:[#allocation2 + $0xcd4] sm:$0xf0] }
 0x1b2   : > { %v10140_v44 = vld [vmem:[#allocation2 + $0x18] sm:$0xf]  ;;  %v11741_v45 = vor.u32 %v14533_v26, %v11740_v25  ;;  %5683 = vmatpush.bf16.msrb.mxu2 %v11229_v37  ;;  %v14221_v26 = vld [vmem:[#allocation2 + $0x31c] sm:$0xf] }
 0x1b3   : > { %v14133_v34 = vld [vmem:[#allocation2 + $0x54] sm:$0xf0] }
 0x1b4   : > { %v10652_v27 = vld [vmem:[#allocation2 + $0x418] sm:$0xf]  ;;  %v10141_v56 = vor.u32 %v14133_v34, %v10140_v44  ;;  %5697 = vmatpush.bf16.msrb.mxu3 %v11741_v45  ;;  %v15788_v44 = vpop.f32.mrf.mxu0  ;;  %v14349_v34 = vld [vmem:[#allocation2 + $0x71c] sm:$0xf] }
 0x1b5   : > { %v14261_v42 = vld [vmem:[#allocation2 + $0x454] sm:$0xf0]  ;;  %17978 = vst [vmem:[#allocation21_spill] sm:$0xff] %v15788_v44 }
 0x1b6   : > { %v11164_v43 = vld [vmem:[#allocation2 + $0x818] sm:$0xf]  ;;  %v10653_v0 = vor.u32 %v14261_v42, %v10652_v27  ;;  %5656 = vmatpush.bf16.msrb.mxu0 %v10141_v56  ;;  %v15790_v27 = vpop.f32.mrf.mxu1  ;;  %v14333_v56 = vld [vmem:[#allocation2 + $0x69c] sm:$0xf] }
 0x1b7   : > { %v14389_v47 = vld [vmem:[#allocation2 + $0x854] sm:$0xf0]  ;;  %17979 = vst [vmem:[#allocation22_spill] sm:$0xff] %v15790_v27  ;;  %v11556_v27 = vld [vmem:[#allocation2 + $0xb20] sm:$0xf] }
 0x1b8   : > { %v11676_v48 = vld [vmem:[#allocation2 + $0xc18] sm:$0xf]  ;;  %v11165_v2 = vor.u32 %v14389_v47, %v11164_v43  ;;  %5670 = vmatpush.bf16.msrb.mxu1 %v10653_v0  ;;  %v10529_v43 = vor.u32 %v14221_v26, %v10526_v28 }
 0x1b9   : > { %v14517_v49 = vld [vmem:[#allocation2 + $0xc54] sm:$0xf0]  ;;  %5657 = vmatmul.bf16.vlgmr.msrb.gmra.mxu0 %v15664_v57 }
 0x1ba   : > { %v12636_v50 = vld [vmem:[#allocation2 + $0x1398] sm:$0xf]  ;;  %v11677_v7 = vor.u32 %v14517_v49, %v11676_v48  ;;  %5684 = vmatpush.bf16.msrb.mxu2 %v11165_v2  ;;  %v11041_v49 = vor.u32 %v14349_v34, %v11038_v36 }
 0x1bb   : > { %v14757_v51 = vld [vmem:[#allocation2 + $0x13d4] sm:$0xf0]  ;;  %5671 = vmatmul.bf16.vlgmr.msrb.gmra.mxu1 %v15669_v6 }
 0x1bc   : > { %v13148_v52 = vld [vmem:[#allocation2 + $0x1798] sm:$0xf]  ;;  %v12637_v8 = vor.u32 %v14757_v51, %v12636_v50  ;;  %5698 = vmatpush.bf16.msrb.mxu3 %v11677_v7  ;;  %v14205_v51 = vld [vmem:[#allocation2 + $0x29c] sm:$0xf] }
 0x1bd   : > { %v14885_v58 = vld [vmem:[#allocation2 + $0x17d4] sm:$0xf0]  ;;  %5685 = vmatmul.bf16.vlgmr.msrb.gmra.mxu2 %v15676_v22 }
 0x1be   : > { %v13149_v9 = vor.u32 %v14885_v58, %v13148_v52  ;;  %v12572_v18 = vld [vmem:[#allocation2 + $0x1318] sm:$0xf]  ;;  %5705 = vmatpush.bf16.msra.mxu0 %v12637_v8  ;;  %5733 = vmatpush.bf16.msra.mxu2 %v10593_v12  ;;  %v10462_v52 = vld [vmem:[#allocation2 + $0x2d8] sm:$0xf0] }
 0x1bf   : > { %v14741_v20 = vld [vmem:[#allocation2 + $0x1354] sm:$0xf0]  ;;  %v10974_v58 = vld [vmem:[#allocation2 + $0x6d8] sm:$0xf0]  ;;  %5699 = vmatmul.bf16.vlgmr.msrb.gmra.mxu3 %v15678_v23  ;;  %v10465_v2 = vor.u32 %v14205_v51, %v10462_v52 }
 0x1c0   : > { %v13084_v21 = vld [vmem:[#allocation2 + $0x1718] sm:$0xf]  ;;  %v12573_v37 = vor.u32 %v14741_v20, %v12572_v18  ;;  %5719 = vmatpush.bf16.msra.mxu1 %v13149_v9  ;;  %5747 = vmatpush.bf16.msra.mxu3 %v11105_v11  ;;  %v10977_v9 = vor.u32 %v14333_v56, %v10974_v58  ;;  %v14189_v18 = vld [vmem:[#allocation2 + $0x21c] sm:$0xf] }
 0x1c1   : > { %v14869_v25 = vld [vmem:[#allocation2 + $0x1754] sm:$0xf0]  ;;  %v10398_v20 = vld [vmem:[#allocation2 + $0x258] sm:$0xf0] }
 0x1c2   : > { %v13085_v42 = vor.u32 %v14869_v25, %v13084_v21  ;;  %v12508_v45 = vld [vmem:[#allocation2 + $0x1298] sm:$0xf]  ;;  %5706 = vmatpush.bf16.msra.mxu0 %v12573_v37  ;;  %5734 = vmatpush.bf16.msra.mxu2 %v10529_v43  ;;  %v5434_v21 = vpop.f32.mrf.mxu0  ;;  %v14317_v11 = vld [vmem:[#allocation2 + $0x61c] sm:$0xf]  ;;  %v10401_v36 = vor.u32 %v14189_v18, %v10398_v20  ;;  %v5448_v37 = vpop.f32.mrf.mxu1 }
 0x1c3   : > { %v14725_v47 = vld [vmem:[#allocation2 + $0x12d4] sm:$0xf0]  ;;  %v10910_v25 = vld [vmem:[#allocation2 + $0x658] sm:$0xf0]  ;;  %v5435_v26 = vadd.f32 %v5434_v21, %v15786_v14  ;;  %v5476_v21 = vpop.f32.mrf.mxu3 }
 0x1c4   : > { %v13020_v48 = vld [vmem:[#allocation2 + $0x1698] sm:$0xf]  ;;  %v12509_v61 = vor.u32 %v14725_v47, %v12508_v45  ;;  %5720 = vmatpush.bf16.msra.mxu1 %v13085_v42  ;;  %5748 = vmatpush.bf16.msra.mxu3 %v11041_v49  ;;  %v10913_v47 = vor.u32 %v14317_v11, %v10910_v25  ;;  %v10334_v51 = vld [vmem:[#allocation2 + $0x1d8] sm:$0xf0] }
 0x1c5   : > { %v14853_v50 = vld [vmem:[#allocation2 + $0x16d4] sm:$0xf0]  ;;  %v14301_v52 = vld [vmem:[#allocation2 + $0x59c] sm:$0xf] }
 0x1c6   : > { %v13021_v0 = vor.u32 %v14853_v50, %v13020_v48  ;;  %v12444_v4 = vld [vmem:[#allocation2 + $0x1218] sm:$0xf]  ;;  %5707 = vmatpush.bf16.msra.mxu0 %v12509_v61  ;;  %5735 = vmatpush.bf16.msra.mxu2 %v10465_v2  ;;  %v5449_v48 = vadd.f32 %v5448_v37, %v5435_v26  ;;  %v14173_v50 = vld [vmem:[#allocation2 + $0x19c] sm:$0xf] }
 0x1c7   : > { %v14709_v7 = vld [vmem:[#allocation2 + $0x1254] sm:$0xf0]  ;;  %v10846_v56 = vld [vmem:[#allocation2 + $0x5d8] sm:$0xf0]  ;;  %v10337_v61 = vor.u32 %v14173_v50, %v10334_v51 }
 0x1c8   : > { %v12956_v8 = vld [vmem:[#allocation2 + $0x1618] sm:$0xf]  ;;  %v12445_v28 = vor.u32 %v14709_v7, %v12444_v4  ;;  %5721 = vmatpush.bf16.msra.mxu1 %v13021_v0  ;;  %5749 = vmatpush.bf16.msra.mxu3 %v10977_v9  ;;  %v10849_v7 = vor.u32 %v14301_v52, %v10846_v56  ;;  %v10270_v18 = vld [vmem:[#allocation2 + $0x158] sm:$0xf0] }
 0x1c9   : > { %v14837_v12 = vld [vmem:[#allocation2 + $0x1654] sm:$0xf0]  ;;  %v14285_v11 = vld [vmem:[#allocation2 + $0x51c] sm:$0xf] }
 0x1ca   : > { %v12957_v34 = vor.u32 %v14837_v12, %v12956_v8  ;;  %v12380_v42 = vld [vmem:[#allocation2 + $0x1198] sm:$0xf]  ;;  %5708 = vmatpush.bf16.msra.mxu0 %v12445_v28  ;;  %5736 = vmatpush.bf16.msra.mxu2 %v10401_v36  ;;  %v5462_v8 = vpop.f32.mrf.mxu2  ;;  %v14157_v12 = vld [vmem:[#allocation2 + $0x11c] sm:$0xf]  ;;  %v15804_v41 = vpop.f32.mrf.mxu0 }
 0x1cb   : > { %v14693_v43 = vld [vmem:[#allocation2 + $0x11d4] sm:$0xf0]  ;;  %v5463_v20 = vadd.f32 %v5462_v8, %v5449_v48  ;;  %v10782_v25 = vld [vmem:[#allocation2 + $0x558] sm:$0xf0]  ;;  %v10273_v36 = vor.u32 %v14157_v12, %v10270_v18  ;;  %v6491_v48 = vmax.f32 %v15779_v29, 0.0 }
 0x1cc   : > { %v12892_v45 = vld [vmem:[#allocation2 + $0x1598] sm:$0xf]  ;;  %v12381_v58 = vor.u32 %v14693_v43, %v12380_v42  ;;  %5722 = vmatpush.bf16.msra.mxu1 %v12957_v34  ;;  %5750 = vmatpush.bf16.msra.mxu3 %v10913_v47  ;;  %v10206_v50 = vld [vmem:[#allocation2 + $0xd8] sm:$0xf0] }
 0x1cd   : > { %v14821_v49 = vld [vmem:[#allocation2 + $0x15d4] sm:$0xf0]  ;;  %v5477_v28 = vadd.f32 %v5476_v21, %v5463_v20  ;;  %v14269_v52 = vld [vmem:[#allocation2 + $0x49c] sm:$0xf] }
 0x1ce   : > { %v12893_v14 = vor.u32 %v14821_v49, %v12892_v45  ;;  %v12316_v0 = vld [vmem:[#allocation2 + $0x1118] sm:$0xf]  ;;  %5709 = vmatpush.bf16.msra.mxu0 %v12381_v58  ;;  %5737 = vmatpush.bf16.msra.mxu2 %v10337_v61  ;;  %v10785_v45 = vor.u32 %v14285_v11, %v10782_v25  ;;  %v14141_v49 = vld [vmem:[#allocation2 + $0x9c] sm:$0xf] }
 0x1cf   : > { %v14677_v2 = vld [vmem:[#allocation2 + $0x1154] sm:$0xf0]  ;;  %v6492_v51 = vmax.f32 %v5477_v28, 0.0  ;;  %v10718_v56 = vld [vmem:[#allocation2 + $0x4d8] sm:$0xf0] }
 0x1d0   : > { %v12828_v4 = vld [vmem:[#allocation2 + $0x1518] sm:$0xf]  ;;  %v12317_v26 = vor.u32 %v14677_v2, %v12316_v0  ;;  %5723 = vmatpush.bf16.msra.mxu1 %v12893_v14  ;;  %5751 = vmatpush.bf16.msra.mxu3 %v10849_v7  ;;  %v10721_v12 = vor.u32 %v14269_v52, %v10718_v56  ;;  %v10142_v18 = vld [vmem:[#allocation2 + $0x58] sm:$0xf0] }
 0x1d1   : > { %v14805_v9 = vld [vmem:[#allocation2 + $0x1554] sm:$0xf0]  ;;  %v15802_v0 = vpack.c.bf16 %v6492_v51, %v6491_v48  ;;  %v14253_v29 = vld [vmem:[#allocation2 + $0x41c] sm:$0xf] }
 0x1d2   : > { %v12829_v34 = vor.u32 %v14805_v9, %v12828_v4  ;;  %v12252_v37 = vld [vmem:[#allocation2 + $0x1098] sm:$0xf]  ;;  %5710 = vmatpush.bf16.msra.mxu0 %v12317_v26  ;;  %5738 = vmatpush.bf16.msra.mxu2 %v10273_v36  ;;  %v10209_v4 = vor.u32 %v14141_v49, %v10206_v50  ;;  %v14125_v9 = vld [vmem:[#allocation2 + $0x1c] sm:$0xf] }
 0x1d3   : > { %v14661_v42 = vld [vmem:[#allocation2 + $0x10d4] sm:$0xf0]  ;;  %17980 = vst [vmem:[#allocation23_spill] sm:$0xff] %v15802_v0  ;;  %v10654_v20 = vld [vmem:[#allocation2 + $0x458] sm:$0xf0]  ;;  %v10145_v36 = vor.u32 %v14125_v9, %v10142_v18 }
 0x1d4   : > { %v12764_v43 = vld [vmem:[#allocation2 + $0x1498] sm:$0xf]  ;;  %v12253_v58 = vor.u32 %v14661_v42, %v12252_v37  ;;  %5724 = vmatpush.bf16.msra.mxu1 %v12829_v34  ;;  %5752 = vmatpush.bf16.msra.mxu3 %v10785_v45  ;;  %v14493_v21 = vld [vmem:[#allocation2 + $0xb9c] sm:$0xf]  ;;  %v10657_v45 = vor.u32 %v14253_v29, %v10654_v20  ;;  %v14230_v0 = vld [vmem:[#allocation2 + $0x35c] sm:$0xf0] }
 0x1d5   : > { %v14789_v47 = vld [vmem:[#allocation2 + $0x14d4] sm:$0xf0]  ;;  %v11614_v11 = vld [vmem:[#allocation2 + $0xbd8] sm:$0xf0] }
 0x1d6   : > { %v12188_v14 = vld [vmem:[#allocation2 + $0x1018] sm:$0xf]  ;;  %v12765_v2 = vor.u32 %v14789_v47, %v12764_v43  ;;  %v14621_v25 = vld [vmem:[#allocation2 + $0xf9c] sm:$0xf]  ;;  %5711 = vmatpush.bf16.msra.mxu0 %v12253_v58  ;;  %5739 = vmatpush.bf16.msra.mxu2 %v10209_v4  ;;  %v11617_v49 = vor.u32 %v14493_v21, %v11614_v11 }
 0x1d7   : > { %v14645_v61 = vld [vmem:[#allocation2 + $0x1054] sm:$0xf0]  ;;  %v12126_v28 = vld [vmem:[#allocation2 + $0xfd8] sm:$0xf0] }
 0x1d8   : > { %v12700_v7 = vld [vmem:[#allocation2 + $0x1418] sm:$0xf]  ;;  %v12189_v26 = vor.u32 %v14645_v61, %v12188_v14  ;;  %v14749_v37 = vld [vmem:[#allocation2 + $0x139c] sm:$0xf]  ;;  %5725 = vmatpush.bf16.msra.mxu1 %v12765_v2  ;;  %5753 = vmatpush.bf16.msra.mxu3 %v10721_v12  ;;  %v12129_v50 = vor.u32 %v14621_v25, %v12126_v28 }
 0x1d9   : > { %v14773_v8 = vld [vmem:[#allocation2 + $0x1454] sm:$0xf0]  ;;  %v12638_v42 = vld [vmem:[#allocation2 + $0x13d8] sm:$0xf0] }
 0x1da   : > { %v12701_v34 = vor.u32 %v14773_v8, %v12700_v7  ;;  %v14877_v43 = vld [vmem:[#allocation2 + $0x179c] sm:$0xf]  ;;  %v12641_v48 = vor.u32 %v14749_v37, %v12638_v42  ;;  %5712 = vmatpush.bf16.msra.mxu0 %v12189_v26  ;;  %5740 = vmatpush.bf16.msra.mxu2 %v10145_v36  ;;  %v15806_v8 = vpop.f32.mrf.mxu1 }
 0x1db   : > { %v13150_v47 = vld [vmem:[#allocation2 + $0x17d8] sm:$0xf0] }
 0x1dc   : > { %v14477_v51 = vld [vmem:[#allocation2 + $0xb1c] sm:$0xf]  ;;  %v13153_v58 = vor.u32 %v14877_v43, %v13150_v47  ;;  %5726 = vmatpush.bf16.msra.mxu1 %v12701_v34  ;;  %5754 = vmatpush.bf16.msra.mxu3 %v10657_v45 }
 0x1dd   : > { %v11550_v52 = vld [vmem:[#allocation2 + $0xb58] sm:$0xf0]  ;;  %5713 = vmatmul.bf16.vlgmr.msra.gmra.mxu0 %v15686_v35  ;;  %5741 = vmatmul.bf16.vlgmr.msra.gmra.mxu2 %v15664_v57 }
 0x1de   : > { %v14605_v56 = vld [vmem:[#allocation2 + $0xf1c] sm:$0xf]  ;;  %5761 = vmatpush.bf16.msrb.mxu0 %v11617_v49  ;;  %v11553_v7 = vor.u32 %v14477_v51, %v11550_v52  ;;  %5789 = vmatpush.bf16.msrb.mxu2 %v12641_v48  ;;  %v15813_v49 = vpop.f32.mrf.mxu2 }
 0x1df   : > { %v12062_v14 = vld [vmem:[#allocation2 + $0xf58] sm:$0xf0]  ;;  %5727 = vmatmul.bf16.vlgmr.msra.gmra.mxu1 %v15688_v39  ;;  %5755 = vmatmul.bf16.vlgmr.msra.gmra.mxu3 %v15669_v6  ;;  %17981 = vst [vmem:[#allocation24_spill] sm:$0xff] %v15813_v49 }
 0x1e0   : > { %v14733_v61 = vld [vmem:[#allocation2 + $0x131c] sm:$0xf]  ;;  %5775 = vmatpush.bf16.msrb.mxu1 %v12129_v50  ;;  %v12065_v9 = vor.u32 %v14605_v56, %v12062_v14  ;;  %5803 = vmatpush.bf16.msrb.mxu3 %v13153_v58  ;;  %v5490_v14 = vpop.f32.mrf.mxu0 }
 0x1e1   : > { %v14861_v2 = vld [vmem:[#allocation2 + $0x171c] sm:$0xf]  ;;  %v12577_v12 = vor.u32 %v14733_v61, %v12574_v10  ;;  %v17737_v10 = vperm.slane %v15781_v40, 4  ;;  %v15815_v61 = vpop.f32.mrf.mxu3 }
 0x1e2   : > { %v13086_v4 = vld [vmem:[#allocation2 + $0x1758] sm:$0xf0]  ;;  %5762 = vmatpush.bf16.msrb.mxu0 %v11553_v7  ;;  %17982 = vst [vmem:[#allocation25_spill] sm:$0xff] %v15815_v61  ;;  %v10534_v61 = vld [vmem:[#allocation2 + $0x360] sm:$0xf0] }
 0x1e3   : > { %v14461_v18 = vld [vmem:[#allocation2 + $0xa9c] sm:$0xf]  ;;  %v13089_v21 = vor.u32 %v14861_v2, %v13086_v4  ;;  %5790 = vmatpush.bf16.msrb.mxu2 %v12577_v12  ;;  %v5491_v4 = vadd.f32 %v5490_v14, %v17737_v10 }
 0x1e4   : > { %v11486_v29 = vld [vmem:[#allocation2 + $0xad8] sm:$0xf0]  ;;  %5776 = vmatpush.bf16.msrb.mxu1 %v12065_v9 }
 0x1e5   : > { %v14589_v20 = vld [vmem:[#allocation2 + $0xe9c] sm:$0xf]  ;;  %v11489_v42 = vor.u32 %v14461_v18, %v11486_v29  ;;  %5804 = vmatpush.bf16.msrb.mxu3 %v13089_v21 }
 0x1e6   : > { %v11998_v11 = vld [vmem:[#allocation2 + $0xed8] sm:$0xf0] }
 0x1e7   : > { %v14717_v25 = vld [vmem:[#allocation2 + $0x129c] sm:$0xf]  ;;  %v12001_v34 = vor.u32 %v14589_v20, %v11998_v11  ;;  %5763 = vmatpush.bf16.msrb.mxu0 %v11489_v42  ;;  %v5504_v20 = vpop.f32.mrf.mxu1 }
 0x1e8   : > { %v12510_v26 = vld [vmem:[#allocation2 + $0x12d8] sm:$0xf0] }
 0x1e9   : > { %v14845_v28 = vld [vmem:[#allocation2 + $0x169c] sm:$0xf]  ;;  %v12513_v36 = vor.u32 %v14717_v25, %v12510_v26  ;;  %5777 = vmatpush.bf16.msrb.mxu1 %v12001_v34 }
 0x1ea   : > { %v13022_v37 = vld [vmem:[#allocation2 + $0x16d8] sm:$0xf0] }
 0x1eb   : > { %v14445_v43 = vld [vmem:[#allocation2 + $0xa1c] sm:$0xf]  ;;  %v13025_v50 = vor.u32 %v14845_v28, %v13022_v37  ;;  %5791 = vmatpush.bf16.msrb.mxu2 %v12513_v36  ;;  %v5505_v28 = vadd.f32 %v5504_v20, %v5491_v4 }
 0x1ec   : > { %v11422_v47 = vld [vmem:[#allocation2 + $0xa58] sm:$0xf0] }
 0x1ed   : > { %v14573_v45 = vld [vmem:[#allocation2 + $0xe1c] sm:$0xf]  ;;  %v11425_v2 = vor.u32 %v14445_v43, %v11422_v47  ;;  %5805 = vmatpush.bf16.msrb.mxu3 %v13025_v50 }
 0x1ee   : > { %v11934_v48 = vld [vmem:[#allocation2 + $0xe58] sm:$0xf0] }
 0x1ef   : > { %v14701_v51 = vld [vmem:[#allocation2 + $0x121c] sm:$0xf]  ;;  %v11937_v7 = vor.u32 %v14573_v45, %v11934_v48  ;;  %5764 = vmatpush.bf16.msrb.mxu0 %v11425_v2  ;;  %v5532_v2 = vpop.f32.mrf.mxu3 }
 0x1f0   : > { %v12446_v52 = vld [vmem:[#allocation2 + $0x1258] sm:$0xf0] }
 0x1f1   : > { %v14829_v56 = vld [vmem:[#allocation2 + $0x161c] sm:$0xf]  ;;  %v12449_v9 = vor.u32 %v14701_v51, %v12446_v52  ;;  %5778 = vmatpush.bf16.msrb.mxu1 %v11937_v7 }
 0x1f2   : > { %v12958_v58 = vld [vmem:[#allocation2 + $0x1658] sm:$0xf0] }
 0x1f3   : > { %v14429_v12 = vld [vmem:[#allocation2 + $0x99c] sm:$0xf]  ;;  %v12961_v21 = vor.u32 %v14829_v56, %v12958_v58  ;;  %5792 = vmatpush.bf16.msrb.mxu2 %v12449_v9  ;;  %v5518_v58 = vpop.f32.mrf.mxu2 }
 0x1f4   : > { %v11358_v18 = vld [vmem:[#allocation2 + $0x9d8] sm:$0xf0]  ;;  %v5519_v4 = vadd.f32 %v5518_v58, %v5505_v28  ;;  %v10596_v58 = vld [vmem:[#allocation2 + $0x3a0] sm:$0xf] }
 0x1f5   : > { %v14557_v29 = vld [vmem:[#allocation2 + $0xd9c] sm:$0xf]  ;;  %v11361_v43 = vor.u32 %v14429_v12, %v11358_v18  ;;  %5806 = vmatpush.bf16.msrb.mxu3 %v12961_v21 }
 0x1f6   : > { %v11870_v11 = vld [vmem:[#allocation2 + $0xdd8] sm:$0xf0] }
 0x1f7   : > { %v14685_v25 = vld [vmem:[#allocation2 + $0x119c] sm:$0xf]  ;;  %v11873_v34 = vor.u32 %v14557_v29, %v11870_v11  ;;  %5765 = vmatpush.bf16.msrb.mxu0 %v11361_v43  ;;  %v15819_v11 = vadd.f32 %v5532_v2, %v5519_v4  ;;  %v11108_v4 = vld [vmem:[#allocation2 + $0x7a0] sm:$0xf] }
 0x1f8   : > { %v12382_v26 = vld [vmem:[#allocation2 + $0x11d8] sm:$0xf0]  ;;  %v14374_v2 = vld [vmem:[#allocation2 + $0x7dc] sm:$0xf0] }
 0x1f9   : > { %v14813_v37 = vld [vmem:[#allocation2 + $0x159c] sm:$0xf]  ;;  %v12385_v36 = vor.u32 %v14685_v25, %v12382_v26  ;;  %5779 = vmatpush.bf16.msrb.mxu1 %v11873_v34 }
 0x1fa   : > { %v12894_v42 = vld [vmem:[#allocation2 + $0x15d8] sm:$0xf0] }
 0x1fb   : > { %v14413_v47 = vld [vmem:[#allocation2 + $0x91c] sm:$0xf]  ;;  %v12897_v51 = vor.u32 %v14813_v37, %v12894_v42  ;;  %5793 = vmatpush.bf16.msrb.mxu2 %v12385_v36 }
 0x1fc   : > { %v11294_v45 = vld [vmem:[#allocation2 + $0x958] sm:$0xf0] }
 0x1fd   : > { %v14541_v48 = vld [vmem:[#allocation2 + $0xd1c] sm:$0xf]  ;;  %v11297_v20 = vor.u32 %v14413_v47, %v11294_v45  ;;  %5807 = vmatpush.bf16.msrb.mxu3 %v12897_v51 }
 0x1fe   : > { %v11806_v52 = vld [vmem:[#allocation2 + $0xd58] sm:$0xf0] }
 0x1ff   : > { %v14669_v50 = vld [vmem:[#allocation2 + $0x111c] sm:$0xf]  ;;  %v11809_v7 = vor.u32 %v14541_v48, %v11806_v52  ;;  %5766 = vmatpush.bf16.msrb.mxu0 %v11297_v20 }
 0x200   : > { %v12318_v56 = vld [vmem:[#allocation2 + $0x1158] sm:$0xf0] }
 0x201   : > { %v14797_v14 = vld [vmem:[#allocation2 + $0x151c] sm:$0xf]  ;;  %v12321_v9 = vor.u32 %v14669_v50, %v12318_v56  ;;  %5780 = vmatpush.bf16.msrb.mxu1 %v11809_v7 }
 0x202   : > { %v12830_v10 = vld [vmem:[#allocation2 + $0x1558] sm:$0xf0] }
 0x203   : > { %v14397_v12 = vld [vmem:[#allocation2 + $0x89c] sm:$0xf]  ;;  %v12833_v21 = vor.u32 %v14797_v14, %v12830_v10  ;;  %5794 = vmatpush.bf16.msrb.mxu2 %v12321_v9  ;;  %v14246_v14 = vld [vmem:[#allocation2 + $0x3dc] sm:$0xf0] }
 0x204   : > { %v11230_v18 = vld [vmem:[#allocation2 + $0x8d8] sm:$0xf0] }
 0x205   : > { %v14525_v29 = vld [vmem:[#allocation2 + $0xc9c] sm:$0xf]  ;;  %v11233_v28 = vor.u32 %v14397_v12, %v11230_v18  ;;  %5808 = vmatpush.bf16.msrb.mxu3 %v12833_v21  ;;  %v11620_v12 = vld [vmem:[#allocation2 + $0xba0] sm:$0xf] }
 0x206   : > { %v11742_v25 = vld [vmem:[#allocation2 + $0xcd8] sm:$0xf0]  ;;  %v14502_v18 = vld [vmem:[#allocation2 + $0xbdc] sm:$0xf0] }
 0x207   : > { %v14653_v26 = vld [vmem:[#allocation2 + $0x109c] sm:$0xf]  ;;  %v11745_v34 = vor.u32 %v14525_v29, %v11742_v25  ;;  %5767 = vmatpush.bf16.msrb.mxu0 %v11233_v28  ;;  %v12132_v29 = vld [vmem:[#allocation2 + $0xfa0] sm:$0xf] }
 0x208   : > { %v12254_v37 = vld [vmem:[#allocation2 + $0x10d8] sm:$0xf0]  ;;  %v14630_v25 = vld [vmem:[#allocation2 + $0xfdc] sm:$0xf0] }
 0x209   : > { %v14781_v42 = vld [vmem:[#allocation2 + $0x149c] sm:$0xf]  ;;  %v12257_v36 = vor.u32 %v14653_v26, %v12254_v37  ;;  %5781 = vmatpush.bf16.msrb.mxu1 %v11745_v34  ;;  %v11109_v26 = vor.u32 %v14374_v2, %v11108_v4  ;;  %v11621_v37 = vor.u32 %v14502_v18, %v11620_v12  ;;  %v11044_v28 = vld [vmem:[#allocation2 + $0x720] sm:$0xf] }
 0x20a   : > { %v14381_v43 = vld [vmem:[#allocation2 + $0x81c] sm:$0xf]  ;;  %v12769_v50 = vor.u32 %v14781_v42, %v12766_v54  ;;  %v10597_v54 = vor.u32 %v14246_v14, %v10596_v58  ;;  %v15821_v42 = vpop.f32.mrf.mxu0  ;;  %v14486_v34 = vld [vmem:[#allocation2 + $0xb5c] sm:$0xf0] }
 0x20b   : > { %v11166_v47 = vld [vmem:[#allocation2 + $0x858] sm:$0xf0]  ;;  %5795 = vmatpush.bf16.msrb.mxu2 %v12257_v36  ;;  %17983 = vst [vmem:[#allocation26_spill] sm:$0xff] %v15821_v42  ;;  %v12068_v36 = vld [vmem:[#allocation2 + $0xf20] sm:$0xf] }
 0x20c   : > { %v14509_v45 = vld [vmem:[#allocation2 + $0xc1c] sm:$0xf]  ;;  %v11169_v20 = vor.u32 %v14381_v43, %v11166_v47  ;;  %5809 = vmatpush.bf16.msrb.mxu3 %v12769_v50  ;;  %v12133_v43 = vor.u32 %v14630_v25, %v12132_v29  ;;  %v14358_v47 = vld [vmem:[#allocation2 + $0x75c] sm:$0xf0] }
 0x20d   : > { %v11678_v48 = vld [vmem:[#allocation2 + $0xc58] sm:$0xf0]  ;;  %v11045_v50 = vor.u32 %v14358_v47, %v11044_v28  ;;  %v10980_v58 = vld [vmem:[#allocation2 + $0x6a0] sm:$0xf] }
 0x20e   : > { %v14637_v52 = vld [vmem:[#allocation2 + $0x101c] sm:$0xf]  ;;  %v11681_v7 = vor.u32 %v14509_v45, %v11678_v48  ;;  %5768 = vmatpush.bf16.msrb.mxu0 %v11169_v20  ;;  %v14614_v45 = vld [vmem:[#allocation2 + $0xf5c] sm:$0xf0]  ;;  %v15823_v48 = vpop.f32.mrf.mxu1 }
 0x20f   : > { %v12190_v51 = vld [vmem:[#allocation2 + $0x1058] sm:$0xf0]  ;;  %17984 = vst [vmem:[#allocation27_spill] sm:$0xff] %v15823_v48  ;;  %v12069_v14 = vor.u32 %v14614_v45, %v12068_v36  ;;  %v14342_v4 = vld [vmem:[#allocation2 + $0x6dc] sm:$0xf0]  ;;  %v15832_v45 = vpop.f32.mrf.mxu3 }
 0x210   : > { %v14765_v10 = vld [vmem:[#allocation2 + $0x141c] sm:$0xf]  ;;  %v12193_v9 = vor.u32 %v14637_v52, %v12190_v51  ;;  %5782 = vmatpush.bf16.msrb.mxu1 %v11681_v7  ;;  %v10533_v52 = vor.u32 %v14230_v0, %v10532_v16  ;;  %v11557_v51 = vor.u32 %v14486_v34, %v11556_v27  ;;  %v11492_v20 = vld [vmem:[#allocation2 + $0xaa0] sm:$0xf]  ;;  %v10981_v0 = vor.u32 %v14342_v4, %v10980_v58 }
 0x211   : > { %v12702_v56 = vld [vmem:[#allocation2 + $0x1458] sm:$0xf0]  ;;  %5769 = vmatmul.bf16.vlgmr.msrb.gmra.mxu0 %v15676_v22  ;;  %v14470_v2 = vld [vmem:[#allocation2 + $0xadc] sm:$0xf0]  ;;  %17986 = vst [vmem:[#allocation29_spill] sm:$0xff] %v15832_v45 }
 0x212   : > { %v12705_v21 = vor.u32 %v14765_v10, %v12702_v56  ;;  %5796 = vmatpush.bf16.msrb.mxu2 %v12193_v9  ;;  %5817 = vmatpush.bf16.msra.mxu0 %v10597_v54  ;;  %v10468_v10 = vld [vmem:[#allocation2 + $0x2a0] sm:$0xf]  ;;  %v11493_v18 = vor.u32 %v14470_v2, %v11492_v20  ;;  %v5546_v28 = vpop.f32.mrf.mxu0 }
 0x213   : > { %v14214_v56 = vld [vmem:[#allocation2 + $0x2dc] sm:$0xf0]  ;;  %5783 = vmatmul.bf16.vlgmr.msrb.gmra.mxu1 %v15678_v23  ;;  %v5547_v34 = vadd.f32 %v5546_v28, %v15819_v11 }
 0x214   : > { %5810 = vmatpush.bf16.msrb.mxu3 %v12705_v21  ;;  %5831 = vmatpush.bf16.msra.mxu1 %v11109_v26  ;;  %v12004_v12 = vld [vmem:[#allocation2 + $0xea0] sm:$0xf]  ;;  %v10469_v27 = vor.u32 %v14214_v56, %v10468_v10 }
 0x215   : > { %5797 = vmatmul.bf16.vlgmr.msrb.gmra.mxu2 %v15686_v35  ;;  %v14598_v16 = vld [vmem:[#allocation2 + $0xedc] sm:$0xf0] }
 0x216   : > { %5845 = vmatpush.bf16.msra.mxu2 %v11621_v37  ;;  %5818 = vmatpush.bf16.msra.mxu0 %v10533_v52  ;;  %v10404_v7 = vld [vmem:[#allocation2 + $0x220] sm:$0xf]  ;;  %v12005_v25 = vor.u32 %v14598_v16, %v12004_v12  ;;  %v15829_v37 = vpop.f32.mrf.mxu2 }
 0x217   : > { %5811 = vmatmul.bf16.vlgmr.msrb.gmra.mxu3 %v15688_v39  ;;  %v14198_v9 = vld [vmem:[#allocation2 + $0x25c] sm:$0xf0]  ;;  %17985 = vst [vmem:[#allocation28_spill] sm:$0xff] %v15829_v37 }
 0x218   : > { %5859 = vmatpush.bf16.msra.mxu3 %v12133_v43  ;;  %5832 = vmatpush.bf16.msra.mxu1 %v11045_v50  ;;  %v10916_v29 = vld [vmem:[#allocation2 + $0x620] sm:$0xf]  ;;  %v10405_v36 = vor.u32 %v14198_v9, %v10404_v7 }
 0x219   : > { %v14326_v21 = vld [vmem:[#allocation2 + $0x65c] sm:$0xf0] }
 0x21a   : > { %5846 = vmatpush.bf16.msra.mxu2 %v11557_v51  ;;  %v11428_v54 = vld [vmem:[#allocation2 + $0xa20] sm:$0xf]  ;;  %5819 = vmatpush.bf16.msra.mxu0 %v10469_v27  ;;  %v10917_v52 = vor.u32 %v14326_v21, %v10916_v29  ;;  %v5560_v51 = vpop.f32.mrf.mxu1  ;;  %v17741_v27 = vperm.slane %v15781_v40, 5  ;;  %v15841_v44 = vpop.f32.mrf.mxu0 }
 0x21b   : > { %v14454_v26 = vld [vmem:[#allocation2 + $0xa5c] sm:$0xf0]  ;;  %v15834_v4 = vadd.f32 %v5560_v51, %v5547_v34  ;;  %17987 = vst [vmem:[#allocation30_spill] sm:$0xff] %v15841_v44 }
 0x21c   : > { %5860 = vmatpush.bf16.msra.mxu3 %v12069_v14  ;;  %v11940_v43 = vld [vmem:[#allocation2 + $0xe20] sm:$0xf]  ;;  %5833 = vmatpush.bf16.msra.mxu1 %v10981_v0  ;;  %v11429_v50 = vor.u32 %v14454_v26, %v11428_v54 }
 0x21d   : > { %v14582_v47 = vld [vmem:[#allocation2 + $0xe5c] sm:$0xf0] }
 0x21e   : > { %5847 = vmatpush.bf16.msra.mxu2 %v11493_v18  ;;  %v10340_v10 = vld [vmem:[#allocation2 + $0x1a0] sm:$0xf]  ;;  %v11941_v14 = vor.u32 %v14582_v47, %v11940_v43  ;;  %5820 = vmatpush.bf16.msra.mxu0 %v10405_v36  ;;  %v5574_v43 = vpop.f32.mrf.mxu2 }
 0x21f   : > { %v14182_v56 = vld [vmem:[#allocation2 + $0x1dc] sm:$0xf0]  ;;  %v5575_v51 = vadd.f32 %v5574_v43, %v17741_v27  ;;  %v10598_v27 = vld [vmem:[#allocation2 + $0x3e0] sm:$0xf0] }
 0x220   : > { %v10852_v58 = vld [vmem:[#allocation2 + $0x5a0] sm:$0xf]  ;;  %5861 = vmatpush.bf16.msra.mxu3 %v12005_v25  ;;  %v10341_v0 = vor.u32 %v14182_v56, %v10340_v10  ;;  %5834 = vmatpush.bf16.msra.mxu1 %v10917_v52  ;;  %v5588_v52 = vpop.f32.mrf.mxu3 }
 0x221   : > { %v14310_v20 = vld [vmem:[#allocation2 + $0x5dc] sm:$0xf0] }
 0x222   : > { %v11364_v2 = vld [vmem:[#allocation2 + $0x9a0] sm:$0xf]  ;;  %5848 = vmatpush.bf16.msra.mxu2 %v11429_v50  ;;  %v10853_v18 = vor.u32 %v14310_v20, %v10852_v58  ;;  %5821 = vmatpush.bf16.msra.mxu0 %v10341_v0  ;;  %v15839_v20 = vadd.f32 %v5588_v52, %v5575_v51 }
 0x223   : > { %v14438_v12 = vld [vmem:[#allocation2 + $0x9dc] sm:$0xf0] }
 0x224   : > { %v11876_v16 = vld [vmem:[#allocation2 + $0xda0] sm:$0xf]  ;;  %v11365_v7 = vor.u32 %v14438_v12, %v11364_v2  ;;  %5862 = vmatpush.bf16.msra.mxu3 %v11941_v14  ;;  %5835 = vmatpush.bf16.msra.mxu1 %v10853_v18 }
 0x225   : > { %v14566_v11 = vld [vmem:[#allocation2 + $0xddc] sm:$0xf0] }
 0x226   : > { %v10276_v9 = vld [vmem:[#allocation2 + $0x120] sm:$0xf]  ;;  %v11877_v25 = vor.u32 %v14566_v11, %v11876_v16  ;;  %5849 = vmatpush.bf16.msra.mxu2 %v11365_v7 }
 0x227   : > { %v14166_v29 = vld [vmem:[#allocation2 + $0x15c] sm:$0xf0] }
 0x228   : > { %v10788_v21 = vld [vmem:[#allocation2 + $0x520] sm:$0xf]  ;;  %v10277_v36 = vor.u32 %v14166_v29, %v10276_v9  ;;  %5863 = vmatpush.bf16.msra.mxu3 %v11877_v25 }
 0x229   : > { %v14294_v54 = vld [vmem:[#allocation2 + $0x55c] sm:$0xf0] }
 0x22a   : > { %v11300_v26 = vld [vmem:[#allocation2 + $0x920] sm:$0xf]  ;;  %v10789_v50 = vor.u32 %v14294_v54, %v10788_v21  ;;  %5822 = vmatpush.bf16.msra.mxu0 %v10277_v36 }
 0x22b   : > { %v14422_v28 = vld [vmem:[#allocation2 + $0x95c] sm:$0xf0] }
 0x22c   : > { %v11812_v47 = vld [vmem:[#allocation2 + $0xd20] sm:$0xf]  ;;  %v11301_v10 = vor.u32 %v14422_v28, %v11300_v26  ;;  %5836 = vmatpush.bf16.msra.mxu1 %v10789_v50 }
 0x22d   : > { %v14550_v34 = vld [vmem:[#allocation2 + $0xd5c] sm:$0xf0] }
 0x22e   : > { %v10212_v56 = vld [vmem:[#allocation2 + $0xa0] sm:$0xf]  ;;  %v11813_v2 = vor.u32 %v14550_v34, %v11812_v47  ;;  %5850 = vmatpush.bf16.msra.mxu2 %v11301_v10 }
 0x22f   : > { %v14150_v58 = vld [vmem:[#allocation2 + $0xdc] sm:$0xf0] }
 0x230   : > { %v10724_v14 = vld [vmem:[#allocation2 + $0x4a0] sm:$0xf]  ;;  %v10213_v0 = vor.u32 %v14150_v58, %v10212_v56  ;;  %5864 = vmatpush.bf16.msra.mxu3 %v11813_v2  ;;  %v14238_v58 = vld [vmem:[#allocation2 + $0x3a4] sm:$0xf] }
 0x231   : > { %v14278_v12 = vld [vmem:[#allocation2 + $0x4dc] sm:$0xf0] }
 0x232   : > { %v11236_v16 = vld [vmem:[#allocation2 + $0x8a0] sm:$0xf]  ;;  %v10725_v18 = vor.u32 %v14278_v12, %v10724_v14  ;;  %5823 = vmatpush.bf16.msra.mxu0 %v10213_v0  ;;  %v14366_v14 = vld [vmem:[#allocation2 + $0x7a4] sm:$0xf] }
 0x233   : > { %v14406_v11 = vld [vmem:[#allocation2 + $0x8dc] sm:$0xf0]  ;;  %v11110_v12 = vld [vmem:[#allocation2 + $0x7e0] sm:$0xf0] }
 0x234   : > { %v11748_v45 = vld [vmem:[#allocation2 + $0xca0] sm:$0xf]  ;;  %v11237_v7 = vor.u32 %v14406_v11, %v11236_v16  ;;  %5837 = vmatpush.bf16.msra.mxu1 %v10725_v18  ;;  %v10601_v16 = vor.u32 %v14238_v58, %v10598_v27  ;;  %v11113_v0 = vor.u32 %v14366_v14, %v11110_v12  ;;  %v14350_v18 = vld [vmem:[#allocation2 + $0x724] sm:$0xf] }
 0x235   : > { %v14534_v37 = vld [vmem:[#allocation2 + $0xcdc] sm:$0xf0] }
 0x236   : > { %v10148_v9 = vld [vmem:[#allocation2 + $0x20] sm:$0xf]  ;;  %v11749_v28 = vor.u32 %v14534_v37, %v11748_v45  ;;  %5851 = vmatpush.bf16.msra.mxu2 %v11237_v7  ;;  %v11046_v7 = vld [vmem:[#allocation2 + $0x760] sm:$0xf0] }
 0x237   : > { %v14134_v29 = vld [vmem:[#allocation2 + $0x5c] sm:$0xf0] }
 0x238   : > { %v10660_v21 = vld [vmem:[#allocation2 + $0x420] sm:$0xf]  ;;  %v10149_v36 = vor.u32 %v14134_v29, %v10148_v9  ;;  %5865 = vmatpush.bf16.msra.mxu3 %v11749_v28  ;;  %v14222_v29 = vld [vmem:[#allocation2 + $0x324] sm:$0xf] }
 0x239   : > { %v14262_v54 = vld [vmem:[#allocation2 + $0x45c] sm:$0xf0] }
 0x23a   : > { %v11172_v26 = vld [vmem:[#allocation2 + $0x820] sm:$0xf]  ;;  %v10661_v50 = vor.u32 %v14262_v54, %v10660_v21  ;;  %5824 = vmatpush.bf16.msra.mxu0 %v10149_v36  ;;  %v15843_v54 = vpop.f32.mrf.mxu1  ;;  %v14334_v36 = vld [vmem:[#allocation2 + $0x6a4] sm:$0xf] }
 0x23b   : > { %v14390_v25 = vld [vmem:[#allocation2 + $0x85c] sm:$0xf0]  ;;  %17988 = vst [vmem:[#allocation31_spill] sm:$0xff] %v15843_v54  ;;  %v12582_v54 = vld [vmem:[#allocation2 + $0x1360] sm:$0xf0] }
 0x23c   : > { %v11684_v43 = vld [vmem:[#allocation2 + $0xc20] sm:$0xf]  ;;  %v11173_v10 = vor.u32 %v14390_v25, %v11172_v26  ;;  %5838 = vmatpush.bf16.msra.mxu1 %v10661_v50  ;;  %v10537_v26 = vor.u32 %v14222_v29, %v10534_v61  ;;  %v15851_v50 = vpop.f32.mrf.mxu3 }
 0x23d   : > { %v14518_v47 = vld [vmem:[#allocation2 + $0xc5c] sm:$0xf0]  ;;  %5825 = vmatmul.bf16.vlgmr.msra.gmra.mxu0 %v15664_v57  ;;  %17990 = vst [vmem:[#allocation33_spill] sm:$0xff] %v15851_v50  ;;  %v11564_v50 = vld [vmem:[#allocation2 + $0xb28] sm:$0xf] }
 0x23e   : > { %v12644_v34 = vld [vmem:[#allocation2 + $0x13a0] sm:$0xf]  ;;  %v11685_v2 = vor.u32 %v14518_v47, %v11684_v43  ;;  %5852 = vmatpush.bf16.msra.mxu2 %v11173_v10  ;;  %v11049_v47 = vor.u32 %v14350_v18, %v11046_v7 }
 0x23f   : > { %v14758_v51 = vld [vmem:[#allocation2 + $0x13dc] sm:$0xf0]  ;;  %5839 = vmatmul.bf16.vlgmr.msra.gmra.mxu1 %v15669_v6 }
 0x240   : > { %v13156_v52 = vld [vmem:[#allocation2 + $0x17a0] sm:$0xf]  ;;  %v12645_v37 = vor.u32 %v14758_v51, %v12644_v34  ;;  %5866 = vmatpush.bf16.msra.mxu3 %v11685_v2  ;;  %v14206_v51 = vld [vmem:[#allocation2 + $0x2a4] sm:$0xf] }
 0x241   : > { %v14886_v56 = vld [vmem:[#allocation2 + $0x17dc] sm:$0xf0]  ;;  %5853 = vmatmul.bf16.vlgmr.msra.gmra.mxu2 %v15676_v22 }
 0x242   : > { %v13157_v45 = vor.u32 %v14886_v56, %v13156_v52  ;;  %v12580_v11 = vld [vmem:[#allocation2 + $0x1320] sm:$0xf]  ;;  %5873 = vmatpush.bf16.msrb.mxu0 %v12645_v37  ;;  %5901 = vmatpush.bf16.msrb.mxu2 %v10601_v16  ;;  %v10470_v52 = vld [vmem:[#allocation2 + $0x2e0] sm:$0xf0] }
 0x243   : > { %v14742_v48 = vld [vmem:[#allocation2 + $0x135c] sm:$0xf0]  ;;  %v10982_v56 = vld [vmem:[#allocation2 + $0x6e0] sm:$0xf0]  ;;  %5867 = vmatmul.bf16.vlgmr.msra.gmra.mxu3 %v15678_v23  ;;  %v10473_v58 = vor.u32 %v14206_v51, %v10470_v52 }
 0x244   : > { %v13092_v42 = vld [vmem:[#allocation2 + $0x1720] sm:$0xf]  ;;  %v12581_v21 = vor.u32 %v14742_v48, %v12580_v11  ;;  %5887 = vmatpush.bf16.msrb.mxu1 %v13157_v45  ;;  %5915 = vmatpush.bf16.msrb.mxu3 %v11113_v0  ;;  %v10985_v2 = vor.u32 %v14334_v36, %v10982_v56  ;;  %v14190_v45 = vld [vmem:[#allocation2 + $0x224] sm:$0xf]  ;;  %v5602_v11 = vpop.f32.mrf.mxu0 }
 0x245   : > { %v14870_v9 = vld [vmem:[#allocation2 + $0x175c] sm:$0xf0]  ;;  %v10406_v16 = vld [vmem:[#allocation2 + $0x260] sm:$0xf0]  ;;  %v5603_v29 = vadd.f32 %v5602_v11, %v15839_v20 }
 0x246   : > { %v13093_v27 = vor.u32 %v14870_v9, %v13092_v42  ;;  %v12516_v28 = vld [vmem:[#allocation2 + $0x12a0] sm:$0xf]  ;;  %5874 = vmatpush.bf16.msrb.mxu0 %v12581_v21  ;;  %v15848_v42 = vpop.f32.mrf.mxu2  ;;  %5902 = vmatpush.bf16.msrb.mxu2 %v10537_v26  ;;  %v14318_v0 = vld [vmem:[#allocation2 + $0x624] sm:$0xf]  ;;  %v10409_v21 = vor.u32 %v14190_v45, %v10406_v16 }
 0x247   : > { %v14726_v25 = vld [vmem:[#allocation2 + $0x12dc] sm:$0xf0]  ;;  %17989 = vst [vmem:[#allocation32_spill] sm:$0xff] %v15848_v42  ;;  %v10918_v9 = vld [vmem:[#allocation2 + $0x660] sm:$0xf0] }
 0x248   : > { %v13028_v43 = vld [vmem:[#allocation2 + $0x16a0] sm:$0xf]  ;;  %v12517_v48 = vor.u32 %v14726_v25, %v12516_v28  ;;  %5888 = vmatpush.bf16.msrb.mxu1 %v13093_v27  ;;  %5916 = vmatpush.bf16.msrb.mxu3 %v11049_v47  ;;  %v5616_v27 = vpop.f32.mrf.mxu1  ;;  %v14174_v51 = vld [vmem:[#allocation2 + $0x1a4] sm:$0xf] }
 0x249   : > { %v14854_v34 = vld [vmem:[#allocation2 + $0x16dc] sm:$0xf0]  ;;  %v5617_v47 = vadd.f32 %v5616_v27, %v5603_v29  ;;  %v10342_v52 = vld [vmem:[#allocation2 + $0x1e0] sm:$0xf0] }
 0x24a   : > { %v13029_v61 = vor.u32 %v14854_v34, %v13028_v43  ;;  %v12452_v10 = vld [vmem:[#allocation2 + $0x1220] sm:$0xf]  ;;  %5875 = vmatpush.bf16.msrb.mxu0 %v12517_v48  ;;  %5903 = vmatpush.bf16.msrb.mxu2 %v10473_v58  ;;  %v10921_v43 = vor.u32 %v14318_v0, %v10918_v9  ;;  %v14302_v36 = vld [vmem:[#allocation2 + $0x5a4] sm:$0xf]  ;;  %v5644_v0 = vpop.f32.mrf.mxu3 }
 0x24b   : > { %v14710_v14 = vld [vmem:[#allocation2 + $0x125c] sm:$0xf0]  ;;  %v10854_v56 = vld [vmem:[#allocation2 + $0x5e0] sm:$0xf0] }
 0x24c   : > { %v12964_v12 = vld [vmem:[#allocation2 + $0x1620] sm:$0xf]  ;;  %v12453_v18 = vor.u32 %v14710_v14, %v12452_v10  ;;  %5889 = vmatpush.bf16.msrb.mxu1 %v13029_v61  ;;  %5917 = vmatpush.bf16.msrb.mxu3 %v10985_v2  ;;  %v10345_v61 = vor.u32 %v14174_v51, %v10342_v52  ;;  %v14158_v45 = vld [vmem:[#allocation2 + $0x124] sm:$0xf]  ;;  %v15857_v44 = vpop.f32.mrf.mxu0 }
 0x24d   : > { %v14838_v37 = vld [vmem:[#allocation2 + $0x165c] sm:$0xf0]  ;;  %v10278_v16 = vld [vmem:[#allocation2 + $0x160] sm:$0xf0]  ;;  %17992 = vst [vmem:[#allocation35_spill] sm:$0xff] %v15857_v44 }
 0x24e   : > { %v12965_v7 = vor.u32 %v14838_v37, %v12964_v12  ;;  %v12388_v26 = vld [vmem:[#allocation2 + $0x11a0] sm:$0xf]  ;;  %5876 = vmatpush.bf16.msrb.mxu0 %v12453_v18  ;;  %5904 = vmatpush.bf16.msrb.mxu2 %v10409_v21  ;;  %v10857_v12 = vor.u32 %v14302_v36, %v10854_v56  ;;  %v5630_v37 = vpop.f32.mrf.mxu2  ;;  %v14286_v9 = vld [vmem:[#allocation2 + $0x524] sm:$0xf]  ;;  %v10281_v27 = vor.u32 %v14158_v45, %v10278_v16  ;;  %v14231_v44 = vld [vmem:[#allocation2 + $0x364] sm:$0xf0] }
 0x24f   : > { %v14694_v28 = vld [vmem:[#allocation2 + $0x11dc] sm:$0xf0]  ;;  %v5631_v11 = vadd.f32 %v5630_v37, %v5617_v47  ;;  %v10790_v29 = vld [vmem:[#allocation2 + $0x560] sm:$0xf0]  ;;  %v6493_v47 = vmax.f32 %v15834_v4, 0.0 }
 0x250   : > { %v12900_v25 = vld [vmem:[#allocation2 + $0x15a0] sm:$0xf]  ;;  %v12389_v48 = vor.u32 %v14694_v28, %v12388_v26  ;;  %5890 = vmatpush.bf16.msrb.mxu1 %v12965_v7  ;;  %5918 = vmatpush.bf16.msrb.mxu3 %v10921_v43  ;;  %v10793_v43 = vor.u32 %v14286_v9, %v10790_v29  ;;  %v14142_v51 = vld [vmem:[#allocation2 + $0xa4] sm:$0xf] }
 0x251   : > { %v14822_v34 = vld [vmem:[#allocation2 + $0x15dc] sm:$0xf0]  ;;  %v5645_v7 = vadd.f32 %v5644_v0, %v5631_v11  ;;  %v10214_v52 = vld [vmem:[#allocation2 + $0xe0] sm:$0xf0] }
 0x252   : > { %v12901_v20 = vor.u32 %v14822_v34, %v12900_v25  ;;  %v12324_v58 = vld [vmem:[#allocation2 + $0x1120] sm:$0xf]  ;;  %5877 = vmatpush.bf16.msrb.mxu0 %v12389_v48  ;;  %5905 = vmatpush.bf16.msrb.mxu2 %v10345_v61  ;;  %v14270_v56 = vld [vmem:[#allocation2 + $0x4a4] sm:$0xf] }
 0x253   : > { %v14678_v10 = vld [vmem:[#allocation2 + $0x115c] sm:$0xf0]  ;;  %v6494_v36 = vmax.f32 %v5645_v7, 0.0  ;;  %v10726_v37 = vld [vmem:[#allocation2 + $0x4e0] sm:$0xf0] }
 0x254   : > { %v12836_v14 = vld [vmem:[#allocation2 + $0x1520] sm:$0xf]  ;;  %v12325_v18 = vor.u32 %v14678_v10, %v12324_v58  ;;  %5891 = vmatpush.bf16.msrb.mxu1 %v12901_v20  ;;  %5919 = vmatpush.bf16.msrb.mxu3 %v10857_v12  ;;  %v14126_v45 = vld [vmem:[#allocation2 + $0x24] sm:$0xf]  ;;  %v10729_v16 = vor.u32 %v14270_v56, %v10726_v37 }
 0x255   : > { %v14806_v2 = vld [vmem:[#allocation2 + $0x155c] sm:$0xf0]  ;;  %v15855_v58 = vpack.c.bf16 %v6494_v36, %v6493_v47  ;;  %v10150_v11 = vld [vmem:[#allocation2 + $0x60] sm:$0xf0] }
 0x256   : > { %v12837_v21 = vor.u32 %v14806_v2, %v12836_v14  ;;  %v12260_v26 = vld [vmem:[#allocation2 + $0x10a0] sm:$0xf]  ;;  %5878 = vmatpush.bf16.msrb.mxu0 %v12325_v18  ;;  %5906 = vmatpush.bf16.msrb.mxu2 %v10281_v27  ;;  %v10217_v14 = vor.u32 %v14142_v51, %v10214_v52  ;;  %v14254_v4 = vld [vmem:[#allocation2 + $0x424] sm:$0xf]  ;;  %v10153_v27 = vor.u32 %v14126_v45, %v10150_v11 }
 0x257   : > { %v14662_v28 = vld [vmem:[#allocation2 + $0x10dc] sm:$0xf0]  ;;  %17991 = vst [vmem:[#allocation34_spill] sm:$0xff] %v15855_v58  ;;  %v10662_v0 = vld [vmem:[#allocation2 + $0x460] sm:$0xf0] }
 0x258   : > { %v12772_v25 = vld [vmem:[#allocation2 + $0x14a0] sm:$0xf]  ;;  %v12261_v48 = vor.u32 %v14662_v28, %v12260_v26  ;;  %5892 = vmatpush.bf16.msrb.mxu1 %v12837_v21  ;;  %5920 = vmatpush.bf16.msrb.mxu3 %v10793_v43  ;;  %v14494_v9 = vld [vmem:[#allocation2 + $0xba4] sm:$0xf]  ;;  %v10665_v43 = vor.u32 %v14254_v4, %v10662_v0 }
 0x259   : > { %v14790_v34 = vld [vmem:[#allocation2 + $0x14dc] sm:$0xf0]  ;;  %v11622_v29 = vld [vmem:[#allocation2 + $0xbe0] sm:$0xf0] }
 0x25a   : > { %v12196_v20 = vld [vmem:[#allocation2 + $0x1020] sm:$0xf]  ;;  %v12773_v10 = vor.u32 %v14790_v34, %v12772_v25  ;;  %v14622_v18 = vld [vmem:[#allocation2 + $0xfa4] sm:$0xf]  ;;  %5879 = vmatpush.bf16.msrb.mxu0 %v12261_v48  ;;  %5907 = vmatpush.bf16.msrb.mxu2 %v10217_v14  ;;  %v11625_v51 = vor.u32 %v14494_v9, %v11622_v29 }
 0x25b   : > { %v14646_v61 = vld [vmem:[#allocation2 + $0x105c] sm:$0xf0]  ;;  %v12134_v26 = vld [vmem:[#allocation2 + $0xfe0] sm:$0xf0] }
 0x25c   : > { %v12708_v12 = vld [vmem:[#allocation2 + $0x1420] sm:$0xf]  ;;  %v12197_v7 = vor.u32 %v14646_v61, %v12196_v20  ;;  %v14750_v28 = vld [vmem:[#allocation2 + $0x13a4] sm:$0xf]  ;;  %5893 = vmatpush.bf16.msrb.mxu1 %v12773_v10  ;;  %5921 = vmatpush.bf16.msrb.mxu3 %v10729_v16  ;;  %v12137_v52 = vor.u32 %v14622_v18, %v12134_v26 }
 0x25d   : > { %v14774_v2 = vld [vmem:[#allocation2 + $0x145c] sm:$0xf0]  ;;  %v12646_v47 = vld [vmem:[#allocation2 + $0x13e0] sm:$0xf0] }
 0x25e   : > { %v12709_v21 = vor.u32 %v14774_v2, %v12708_v12  ;;  %v14878_v25 = vld [vmem:[#allocation2 + $0x17a4] sm:$0xf]  ;;  %v12649_v36 = vor.u32 %v14750_v28, %v12646_v47  ;;  %5880 = vmatpush.bf16.msrb.mxu0 %v12197_v7  ;;  %5908 = vmatpush.bf16.msrb.mxu2 %v10153_v27  ;;  %v15859_v2 = vpop.f32.mrf.mxu1 }
 0x25f   : > { %v13158_v34 = vld [vmem:[#allocation2 + $0x17e0] sm:$0xf0]  ;;  %17993 = vst [vmem:[#allocation36_spill] sm:$0xff] %v15859_v2  ;;  %v10540_v2 = vld [vmem:[#allocation2 + $0x328] sm:$0xf] }
 0x260   : > { %v14478_v56 = vld [vmem:[#allocation2 + $0xb24] sm:$0xf]  ;;  %v13161_v48 = vor.u32 %v14878_v25, %v13158_v34  ;;  %5894 = vmatpush.bf16.msrb.mxu1 %v12709_v21  ;;  %5922 = vmatpush.bf16.msrb.mxu3 %v10665_v43 }
 0x261   : > { %v11558_v37 = vld [vmem:[#allocation2 + $0xb60] sm:$0xf0]  ;;  %5881 = vmatmul.bf16.vlgmr.msrb.gmra.mxu0 %v15686_v35  ;;  %5909 = vmatmul.bf16.vlgmr.msrb.gmra.mxu2 %v15664_v57 }
 0x262   : > { %v14606_v58 = vld [vmem:[#allocation2 + $0xf24] sm:$0xf]  ;;  %5929 = vmatpush.bf16.msra.mxu0 %v11625_v51  ;;  %v11561_v12 = vor.u32 %v14478_v56, %v11558_v37  ;;  %5957 = vmatpush.bf16.msra.mxu2 %v12649_v36  ;;  %v15868_v51 = vpop.f32.mrf.mxu2 }
 0x263   : > { %v12070_v20 = vld [vmem:[#allocation2 + $0xf60] sm:$0xf0]  ;;  %5895 = vmatmul.bf16.vlgmr.msrb.gmra.mxu1 %v15688_v39  ;;  %5923 = vmatmul.bf16.vlgmr.msrb.gmra.mxu3 %v15669_v6  ;;  %17995 = vst [vmem:[#allocation38_spill] sm:$0xff] %v15868_v51 }
 0x264   : > { %v14734_v61 = vld [vmem:[#allocation2 + $0x1324] sm:$0xf]  ;;  %5943 = vmatpush.bf16.msra.mxu1 %v12137_v52  ;;  %v12073_v45 = vor.u32 %v14606_v58, %v12070_v20  ;;  %5971 = vmatpush.bf16.msra.mxu3 %v13161_v48 }
 0x265   : > { %v14862_v10 = vld [vmem:[#allocation2 + $0x1724] sm:$0xf]  ;;  %v12585_v16 = vor.u32 %v14734_v61, %v12582_v54  ;;  %v5658_v61 = vpop.f32.mrf.mxu0 }
 0x266   : > { %v13094_v14 = vld [vmem:[#allocation2 + $0x1760] sm:$0xf0]  ;;  %5930 = vmatpush.bf16.msra.mxu0 %v11561_v12 }
 0x267   : > { %v14462_v11 = vld [vmem:[#allocation2 + $0xaa4] sm:$0xf]  ;;  %v13097_v9 = vor.u32 %v14862_v10, %v13094_v14  ;;  %5958 = vmatpush.bf16.msra.mxu2 %v12585_v16  ;;  %v15870_v10 = vpop.f32.mrf.mxu3 }
 0x268   : > { %v11494_v4 = vld [vmem:[#allocation2 + $0xae0] sm:$0xf0]  ;;  %5944 = vmatpush.bf16.msra.mxu1 %v12073_v45  ;;  %17996 = vst [vmem:[#allocation39_spill] sm:$0xff] %v15870_v10 }
 0x269   : > { %v14590_v0 = vld [vmem:[#allocation2 + $0xea4] sm:$0xf]  ;;  %v11497_v47 = vor.u32 %v14462_v11, %v11494_v4  ;;  %5972 = vmatpush.bf16.msra.mxu3 %v13097_v9  ;;  %v5672_v9 = vpop.f32.mrf.mxu1 }
 0x26a   : > { %v12006_v29 = vld [vmem:[#allocation2 + $0xee0] sm:$0xf0] }
 0x26b   : > { %v14718_v18 = vld [vmem:[#allocation2 + $0x12a4] sm:$0xf]  ;;  %v12009_v21 = vor.u32 %v14590_v0, %v12006_v29  ;;  %5931 = vmatpush.bf16.msra.mxu0 %v11497_v47 }
 0x26c   : > { %v12518_v7 = vld [vmem:[#allocation2 + $0x12e0] sm:$0xf0] }
 0x26d   : > { %v14846_v26 = vld [vmem:[#allocation2 + $0x16a4] sm:$0xf]  ;;  %v12521_v27 = vor.u32 %v14718_v18, %v12518_v7  ;;  %5945 = vmatpush.bf16.msra.mxu1 %v12009_v21 }
 0x26e   : > { %v13030_v28 = vld [vmem:[#allocation2 + $0x16e0] sm:$0xf0] }
 0x26f   : > { %v15865_v54 = vld [vmem:[#allocation4] sm:$0xff]  ;;  %v13033_v52 = vor.u32 %v14846_v26, %v13030_v28  ;;  %5959 = vmatpush.bf16.msra.mxu2 %v12521_v27 }
 0x270   : > { %17994 = vst [vmem:[#allocation37_spill] sm:$0xff] %v15865_v54  ;;  %v17743_v58 = vperm.slane %v15865_v54, 6  ;;  %v14446_v25 = vld [vmem:[#allocation2 + $0xa24] sm:$0xf] }
 0x271   : > { %v11430_v34 = vld [vmem:[#allocation2 + $0xa60] sm:$0xf0]  ;;  %5973 = vmatpush.bf16.msra.mxu3 %v13033_v52 }
 0x272   : > { %v14574_v43 = vld [vmem:[#allocation2 + $0xe24] sm:$0xf]  ;;  %v11433_v14 = vor.u32 %v14446_v25, %v11430_v34  ;;  %v5659_v12 = vadd.f32 %v5658_v61, %v17743_v58 }
 0x273   : > { %v11942_v36 = vld [vmem:[#allocation2 + $0xe60] sm:$0xf0] }
 0x274   : > { %v14702_v56 = vld [vmem:[#allocation2 + $0x1224] sm:$0xf]  ;;  %v11945_v45 = vor.u32 %v14574_v43, %v11942_v36  ;;  %v5673_v28 = vadd.f32 %v5672_v9, %v5659_v12  ;;  %5932 = vmatpush.bf16.msra.mxu0 %v11433_v14  ;;  %v5700_v14 = vpop.f32.mrf.mxu3 }
 0x275   : > { %v12454_v37 = vld [vmem:[#allocation2 + $0x1260] sm:$0xf0] }
 0x276   : > { %v14830_v48 = vld [vmem:[#allocation2 + $0x1624] sm:$0xf]  ;;  %v12457_v16 = vor.u32 %v14702_v56, %v12454_v37  ;;  %5946 = vmatpush.bf16.msra.mxu1 %v11945_v45 }
 0x277   : > { %v12966_v20 = vld [vmem:[#allocation2 + $0x1660] sm:$0xf0] }
 0x278   : > { %v14430_v11 = vld [vmem:[#allocation2 + $0x9a4] sm:$0xf]  ;;  %v12969_v29 = vor.u32 %v14830_v48, %v12966_v20  ;;  %5960 = vmatpush.bf16.msra.mxu2 %v12457_v16  ;;  %v5686_v20 = vpop.f32.mrf.mxu2 }
 0x279   : > { %v11366_v4 = vld [vmem:[#allocation2 + $0x9e0] sm:$0xf0]  ;;  %v5687_v12 = vadd.f32 %v5686_v20, %v5673_v28  ;;  %v10604_v20 = vld [vmem:[#allocation2 + $0x3a8] sm:$0xf] }
 0x27a   : > { %v14558_v0 = vld [vmem:[#allocation2 + $0xda4] sm:$0xf]  ;;  %v11369_v25 = vor.u32 %v14430_v11, %v11366_v4  ;;  %5974 = vmatpush.bf16.msra.mxu3 %v12969_v29 }
 0x27b   : > { %v11878_v18 = vld [vmem:[#allocation2 + $0xde0] sm:$0xf0] }
 0x27c   : > { %v14686_v7 = vld [vmem:[#allocation2 + $0x11a4] sm:$0xf]  ;;  %v11881_v21 = vor.u32 %v14558_v0, %v11878_v18  ;;  %5933 = vmatpush.bf16.msra.mxu0 %v11369_v25  ;;  %v15874_v18 = vadd.f32 %v5700_v14, %v5687_v12  ;;  %v11116_v12 = vld [vmem:[#allocation2 + $0x7a8] sm:$0xf] }
 0x27d   : > { %v12390_v26 = vld [vmem:[#allocation2 + $0x11e0] sm:$0xf0]  ;;  %v14375_v14 = vld [vmem:[#allocation2 + $0x7e4] sm:$0xf0] }
 0x27e   : > { %v14814_v10 = vld [vmem:[#allocation2 + $0x15a4] sm:$0xf]  ;;  %v12393_v27 = vor.u32 %v14686_v7, %v12390_v26  ;;  %5947 = vmatpush.bf16.msra.mxu1 %v11881_v21 }
 0x27f   : > { %v12902_v47 = vld [vmem:[#allocation2 + $0x15e0] sm:$0xf0] }
 0x280   : > { %v14414_v34 = vld [vmem:[#allocation2 + $0x924] sm:$0xf]  ;;  %v12905_v56 = vor.u32 %v14814_v10, %v12902_v47  ;;  %5961 = vmatpush.bf16.msra.mxu2 %v12393_v27 }
 0x281   : > { %v11302_v43 = vld [vmem:[#allocation2 + $0x960] sm:$0xf0] }
 0x282   : > { %v14542_v36 = vld [vmem:[#allocation2 + $0xd24] sm:$0xf]  ;;  %v11305_v9 = vor.u32 %v14414_v34, %v11302_v43  ;;  %5975 = vmatpush.bf16.msra.mxu3 %v12905_v56 }
 0x283   : > { %v11814_v37 = vld [vmem:[#allocation2 + $0xd60] sm:$0xf0] }
 0x284   : > { %v14670_v52 = vld [vmem:[#allocation2 + $0x1124] sm:$0xf]  ;;  %v11817_v45 = vor.u32 %v14542_v36, %v11814_v37  ;;  %5934 = vmatpush.bf16.msra.mxu0 %v11305_v9 }
 0x285   : > { %v12326_v48 = vld [vmem:[#allocation2 + $0x1160] sm:$0xf0] }
 0x286   : > { %v14798_v61 = vld [vmem:[#allocation2 + $0x1524] sm:$0xf]  ;;  %v12329_v16 = vor.u32 %v14670_v52, %v12326_v48  ;;  %5948 = vmatpush.bf16.msra.mxu1 %v11817_v45 }
 0x287   : > { %v12838_v58 = vld [vmem:[#allocation2 + $0x1560] sm:$0xf0] }
 0x288   : > { %v14398_v11 = vld [vmem:[#allocation2 + $0x8a4] sm:$0xf]  ;;  %v12841_v10 = vor.u32 %v14798_v61, %v12838_v58  ;;  %5962 = vmatpush.bf16.msra.mxu2 %v12329_v16  ;;  %v14247_v61 = vld [vmem:[#allocation2 + $0x3e4] sm:$0xf0] }
 0x289   : > { %v11238_v4 = vld [vmem:[#allocation2 + $0x8e0] sm:$0xf0] }
 0x28a   : > { %v14526_v0 = vld [vmem:[#allocation2 + $0xca4] sm:$0xf]  ;;  %v11241_v28 = vor.u32 %v14398_v11, %v11238_v4  ;;  %5976 = vmatpush.bf16.msra.mxu3 %v12841_v10  ;;  %v11628_v11 = vld [vmem:[#allocation2 + $0xba8] sm:$0xf] }
 0x28b   : > { %v11750_v29 = vld [vmem:[#allocation2 + $0xce0] sm:$0xf0]  ;;  %v14503_v4 = vld [vmem:[#allocation2 + $0xbe4] sm:$0xf0] }
 0x28c   : > { %v14654_v7 = vld [vmem:[#allocation2 + $0x10a4] sm:$0xf]  ;;  %v11753_v21 = vor.u32 %v14526_v0, %v11750_v29  ;;  %5935 = vmatpush.bf16.msra.mxu0 %v11241_v28  ;;  %v12140_v0 = vld [vmem:[#allocation2 + $0xfa8] sm:$0xf] }
 0x28d   : > { %v12262_v26 = vld [vmem:[#allocation2 + $0x10e0] sm:$0xf0]  ;;  %v14631_v29 = vld [vmem:[#allocation2 + $0xfe4] sm:$0xf0] }
 0x28e   : > { %v14782_v47 = vld [vmem:[#allocation2 + $0x14a4] sm:$0xf]  ;;  %v12265_v27 = vor.u32 %v14654_v7, %v12262_v26  ;;  %5949 = vmatpush.bf16.msra.mxu1 %v11753_v21  ;;  %v11117_v7 = vor.u32 %v14375_v14, %v11116_v12  ;;  %v11629_v26 = vor.u32 %v14503_v4, %v11628_v11  ;;  %v11052_v28 = vld [vmem:[#allocation2 + $0x728] sm:$0xf] }
 0x28f   : > { %v12774_v51 = vld [vmem:[#allocation2 + $0x14e0] sm:$0xf0]  ;;  %v14487_v21 = vld [vmem:[#allocation2 + $0xb64] sm:$0xf0] }
 0x290   : > { %v14382_v25 = vld [vmem:[#allocation2 + $0x824] sm:$0xf]  ;;  %v12777_v52 = vor.u32 %v14782_v47, %v12774_v51  ;;  %5963 = vmatpush.bf16.msra.mxu2 %v12265_v27  ;;  %v10605_v51 = vor.u32 %v14247_v61, %v10604_v20  ;;  %v15876_v47 = vpop.f32.mrf.mxu0  ;;  %v12076_v27 = vld [vmem:[#allocation2 + $0xf28] sm:$0xf] }
 0x291   : > { %v11174_v34 = vld [vmem:[#allocation2 + $0x860] sm:$0xf0]  ;;  %17997 = vst [vmem:[#allocation40_spill] sm:$0xff] %v15876_v47  ;;  %v10988_v20 = vld [vmem:[#allocation2 + $0x6a8] sm:$0xf] }
 0x292   : > { %v14510_v43 = vld [vmem:[#allocation2 + $0xc24] sm:$0xf]  ;;  %v11177_v9 = vor.u32 %v14382_v25, %v11174_v34  ;;  %5977 = vmatpush.bf16.msra.mxu3 %v12777_v52  ;;  %v12141_v25 = vor.u32 %v14631_v29, %v12140_v0  ;;  %v14359_v34 = vld [vmem:[#allocation2 + $0x764] sm:$0xf0] }
 0x293   : > { %v11686_v36 = vld [vmem:[#allocation2 + $0xc60] sm:$0xf0]  ;;  %v11053_v52 = vor.u32 %v14359_v34, %v11052_v28  ;;  %v14343_v12 = vld [vmem:[#allocation2 + $0x6e4] sm:$0xf0] }
 0x294   : > { %v14638_v37 = vld [vmem:[#allocation2 + $0x1024] sm:$0xf]  ;;  %v11689_v45 = vor.u32 %v14510_v43, %v11686_v36  ;;  %5936 = vmatpush.bf16.msra.mxu0 %v11177_v9  ;;  %v14615_v43 = vld [vmem:[#allocation2 + $0xf64] sm:$0xf0]  ;;  %v15878_v36 = vpop.f32.mrf.mxu1 }
 0x295   : > { %v12198_v56 = vld [vmem:[#allocation2 + $0x1060] sm:$0xf0]  ;;  %17998 = vst [vmem:[#allocation41_spill] sm:$0xff] %v15878_v36  ;;  %v12077_v61 = vor.u32 %v14615_v43, %v12076_v27  ;;  %v11500_v9 = vld [vmem:[#allocation2 + $0xaa8] sm:$0xf]  ;;  %v15887_v43 = vpop.f32.mrf.mxu3 }
 0x296   : > { %v14766_v58 = vld [vmem:[#allocation2 + $0x1424] sm:$0xf]  ;;  %v12201_v16 = vor.u32 %v14638_v37, %v12198_v56  ;;  %5950 = vmatpush.bf16.msra.mxu1 %v11689_v45  ;;  %v10541_v37 = vor.u32 %v14231_v44, %v10540_v2  ;;  %v11565_v56 = vor.u32 %v14487_v21, %v11564_v50  ;;  %v14471_v14 = vld [vmem:[#allocation2 + $0xae4] sm:$0xf0]  ;;  %v10989_v2 = vor.u32 %v14343_v12, %v10988_v20 }
 0x297   : > { %v12710_v48 = vld [vmem:[#allocation2 + $0x1460] sm:$0xf0]  ;;  %5937 = vmatmul.bf16.vlgmr.msra.gmra.mxu0 %v15676_v22  ;;  %v12012_v11 = vld [vmem:[#allocation2 + $0xea8] sm:$0xf]  ;;  %v11501_v4 = vor.u32 %v14471_v14, %v11500_v9  ;;  %18000 = vst [vmem:[#allocation43_spill] sm:$0xff] %v15887_v43 }
 0x298   : > { %v12713_v10 = vor.u32 %v14766_v58, %v12710_v48  ;;  %5964 = vmatpush.bf16.msra.mxu2 %v12201_v16  ;;  %5985 = vmatpush.bf16.msrb.mxu0 %v10605_v51  ;;  %v10476_v58 = vld [vmem:[#allocation2 + $0x2a8] sm:$0xf]  ;;  %v5714_v28 = vpop.f32.mrf.mxu0 }
 0x299   : > { %v14215_v48 = vld [vmem:[#allocation2 + $0x2e4] sm:$0xf0]  ;;  %5951 = vmatmul.bf16.vlgmr.msra.gmra.mxu1 %v15678_v23  ;;  %v5715_v21 = vadd.f32 %v5714_v28, %v15874_v18 }
 0x29a   : > { %5978 = vmatpush.bf16.msra.mxu3 %v12713_v10  ;;  %5999 = vmatpush.bf16.msrb.mxu1 %v11117_v7  ;;  %v14599_v44 = vld [vmem:[#allocation2 + $0xee4] sm:$0xf0]  ;;  %v10477_v50 = vor.u32 %v14215_v48, %v10476_v58 }
 0x29b   : > { %5965 = vmatmul.bf16.vlgmr.msra.gmra.mxu2 %v15686_v35  ;;  %v10412_v45 = vld [vmem:[#allocation2 + $0x228] sm:$0xf]  ;;  %v12013_v29 = vor.u32 %v14599_v44, %v12012_v11 }
 0x29c   : > { %6013 = vmatpush.bf16.msrb.mxu2 %v11629_v26  ;;  %5986 = vmatpush.bf16.msrb.mxu0 %v10541_v37  ;;  %v14199_v16 = vld [vmem:[#allocation2 + $0x264] sm:$0xf0]  ;;  %v15884_v26 = vpop.f32.mrf.mxu2 }
 0x29d   : > { %5979 = vmatmul.bf16.vlgmr.msra.gmra.mxu3 %v15688_v39  ;;  %v10924_v0 = vld [vmem:[#allocation2 + $0x628] sm:$0xf]  ;;  %17999 = vst [vmem:[#allocation42_spill] sm:$0xff] %v15884_v26  ;;  %v10413_v27 = vor.u32 %v14199_v16, %v10412_v45 }
 0x29e   : > { %6027 = vmatpush.bf16.msrb.mxu3 %v12141_v25  ;;  %6000 = vmatpush.bf16.msrb.mxu1 %v11053_v52  ;;  %v14327_v10 = vld [vmem:[#allocation2 + $0x664] sm:$0xf0] }
 0x29f   : > { %v11436_v51 = vld [vmem:[#allocation2 + $0xa28] sm:$0xf]  ;;  %v10925_v37 = vor.u32 %v14327_v10, %v10924_v0 }
 0x2a0   : > { %6014 = vmatpush.bf16.msrb.mxu2 %v11565_v56  ;;  %v14455_v7 = vld [vmem:[#allocation2 + $0xa64] sm:$0xf0]  ;;  %5987 = vmatpush.bf16.msrb.mxu0 %v10477_v50  ;;  %v5728_v56 = vpop.f32.mrf.mxu1  ;;  %v17744_v50 = vperm.slane %v15865_v54, 7  ;;  %v10542_v54 = vld [vmem:[#allocation2 + $0x368] sm:$0xf0]  ;;  %v15896_v42 = vpop.f32.mrf.mxu0 }
 0x2a1   : > { %v11948_v25 = vld [vmem:[#allocation2 + $0xe28] sm:$0xf]  ;;  %v11437_v52 = vor.u32 %v14455_v7, %v11436_v51  ;;  %v15889_v12 = vadd.f32 %v5728_v56, %v5715_v21  ;;  %18001 = vst [vmem:[#allocation44_spill] sm:$0xff] %v15896_v42 }
 0x2a2   : > { %6028 = vmatpush.bf16.msrb.mxu3 %v12077_v61  ;;  %v14583_v34 = vld [vmem:[#allocation2 + $0xe64] sm:$0xf0]  ;;  %6001 = vmatpush.bf16.msrb.mxu1 %v10989_v2 }
 0x2a3   : > { %v10348_v58 = vld [vmem:[#allocation2 + $0x1a8] sm:$0xf]  ;;  %v11949_v61 = vor.u32 %v14583_v34, %v11948_v25 }
 0x2a4   : > { %6015 = vmatpush.bf16.msrb.mxu2 %v11501_v4  ;;  %v14183_v48 = vld [vmem:[#allocation2 + $0x1e4] sm:$0xf0]  ;;  %5988 = vmatpush.bf16.msrb.mxu0 %v10413_v27  ;;  %v5742_v25 = vpop.f32.mrf.mxu2 }
 0x2a5   : > { %v10860_v20 = vld [vmem:[#allocation2 + $0x5a8] sm:$0xf]  ;;  %v10349_v2 = vor.u32 %v14183_v48, %v10348_v58  ;;  %v5743_v56 = vadd.f32 %v5742_v25, %v17744_v50  ;;  %v10606_v50 = vld [vmem:[#allocation2 + $0x3e8] sm:$0xf0] }
 0x2a6   : > { %6029 = vmatpush.bf16.msrb.mxu3 %v12013_v29  ;;  %v14311_v9 = vld [vmem:[#allocation2 + $0x5e4] sm:$0xf0]  ;;  %6002 = vmatpush.bf16.msrb.mxu1 %v10925_v37  ;;  %v5756_v37 = vpop.f32.mrf.mxu3 }
 0x2a7   : > { %v11372_v14 = vld [vmem:[#allocation2 + $0x9a8] sm:$0xf]  ;;  %v10861_v4 = vor.u32 %v14311_v9, %v10860_v20  ;;  %v15894_v9 = vadd.f32 %v5756_v37, %v5743_v56 }
 0x2a8   : > { %v14439_v11 = vld [vmem:[#allocation2 + $0x9e4] sm:$0xf0]  ;;  %6016 = vmatpush.bf16.msrb.mxu2 %v11437_v52  ;;  %5989 = vmatpush.bf16.msrb.mxu0 %v10349_v2 }
 0x2a9   : > { %v11884_v44 = vld [vmem:[#allocation2 + $0xda8] sm:$0xf]  ;;  %v11373_v45 = vor.u32 %v14439_v11, %v11372_v14 }
 0x2aa   : > { %v14567_v18 = vld [vmem:[#allocation2 + $0xde4] sm:$0xf0]  ;;  %6030 = vmatpush.bf16.msrb.mxu3 %v11949_v61  ;;  %6003 = vmatpush.bf16.msrb.mxu1 %v10861_v4 }
 0x2ab   : > { %v10284_v16 = vld [vmem:[#allocation2 + $0x128] sm:$0xf]  ;;  %v11885_v29 = vor.u32 %v14567_v18, %v11884_v44 }
 0x2ac   : > { %v14167_v0 = vld [vmem:[#allocation2 + $0x164] sm:$0xf0]  ;;  %6017 = vmatpush.bf16.msrb.mxu2 %v11373_v45 }
 0x2ad   : > { %v10796_v10 = vld [vmem:[#allocation2 + $0x528] sm:$0xf]  ;;  %v10285_v27 = vor.u32 %v14167_v0, %v10284_v16 }
 0x2ae   : > { %v14295_v51 = vld [vmem:[#allocation2 + $0x564] sm:$0xf0]  ;;  %6031 = vmatpush.bf16.msrb.mxu3 %v11885_v29 }
 0x2af   : > { %v11308_v7 = vld [vmem:[#allocation2 + $0x928] sm:$0xf]  ;;  %v10797_v52 = vor.u32 %v14295_v51, %v10796_v10  ;;  %5990 = vmatpush.bf16.msrb.mxu0 %v10285_v27 }
 0x2b0   : > { %v14423_v28 = vld [vmem:[#allocation2 + $0x964] sm:$0xf0] }
 0x2b1   : > { %v11820_v34 = vld [vmem:[#allocation2 + $0xd28] sm:$0xf]  ;;  %v11309_v58 = vor.u32 %v14423_v28, %v11308_v7  ;;  %6004 = vmatpush.bf16.msrb.mxu1 %v10797_v52 }
 0x2b2   : > { %v14551_v21 = vld [vmem:[#allocation2 + $0xd64] sm:$0xf0] }
 0x2b3   : > { %v10220_v48 = vld [vmem:[#allocation2 + $0xa8] sm:$0xf]  ;;  %v11821_v14 = vor.u32 %v14551_v21, %v11820_v34  ;;  %6018 = vmatpush.bf16.msrb.mxu2 %v11309_v58 }
 0x2b4   : > { %v14151_v20 = vld [vmem:[#allocation2 + $0xe4] sm:$0xf0] }
 0x2b5   : > { %v10732_v61 = vld [vmem:[#allocation2 + $0x4a8] sm:$0xf]  ;;  %v10221_v2 = vor.u32 %v14151_v20, %v10220_v48  ;;  %6032 = vmatpush.bf16.msrb.mxu3 %v11821_v14  ;;  %v14239_v20 = vld [vmem:[#allocation2 + $0x3ac] sm:$0xf] }
 0x2b6   : > { %v14279_v11 = vld [vmem:[#allocation2 + $0x4e4] sm:$0xf0] }
 0x2b7   : > { %v11244_v44 = vld [vmem:[#allocation2 + $0x8a8] sm:$0xf]  ;;  %v10733_v4 = vor.u32 %v14279_v11, %v10732_v61  ;;  %5991 = vmatpush.bf16.msrb.mxu0 %v10221_v2  ;;  %v14367_v61 = vld [vmem:[#allocation2 + $0x7ac] sm:$0xf] }
 0x2b8   : > { %v14407_v18 = vld [vmem:[#allocation2 + $0x8e4] sm:$0xf0]  ;;  %v11118_v11 = vld [vmem:[#allocation2 + $0x7e8] sm:$0xf0] }
 0x2b9   : > { %v11756_v43 = vld [vmem:[#allocation2 + $0xca8] sm:$0xf]  ;;  %v11245_v45 = vor.u32 %v14407_v18, %v11244_v44  ;;  %6005 = vmatpush.bf16.msrb.mxu1 %v10733_v4  ;;  %v10609_v44 = vor.u32 %v14239_v20, %v10606_v50  ;;  %v11121_v2 = vor.u32 %v14367_v61, %v11118_v11  ;;  %v14351_v4 = vld [vmem:[#allocation2 + $0x72c] sm:$0xf] }
 0x2ba   : > { %v14535_v26 = vld [vmem:[#allocation2 + $0xce4] sm:$0xf0] }
 0x2bb   : > { %v10156_v16 = vld [vmem:[#allocation2 + $0x28] sm:$0xf]  ;;  %v11757_v28 = vor.u32 %v14535_v26, %v11756_v43  ;;  %6019 = vmatpush.bf16.msrb.mxu2 %v11245_v45  ;;  %v11054_v45 = vld [vmem:[#allocation2 + $0x768] sm:$0xf0] }
 0x2bc   : > { %v14135_v0 = vld [vmem:[#allocation2 + $0x64] sm:$0xf0] }
 0x2bd   : > { %v10668_v10 = vld [vmem:[#allocation2 + $0x428] sm:$0xf]  ;;  %v10157_v27 = vor.u32 %v14135_v0, %v10156_v16  ;;  %6033 = vmatpush.bf16.msrb.mxu3 %v11757_v28  ;;  %v14223_v0 = vld [vmem:[#allocation2 + $0x32c] sm:$0xf] }
 0x2be   : > { %v14263_v51 = vld [vmem:[#allocation2 + $0x464] sm:$0xf0] }
 0x2bf   : > { %v11180_v7 = vld [vmem:[#allocation2 + $0x828] sm:$0xf]  ;;  %v10669_v52 = vor.u32 %v14263_v51, %v10668_v10  ;;  %5992 = vmatpush.bf16.msrb.mxu0 %v10157_v27  ;;  %v15898_v51 = vpop.f32.mrf.mxu1  ;;  %v14335_v27 = vld [vmem:[#allocation2 + $0x6ac] sm:$0xf] }
 0x2c0   : > { %v14391_v29 = vld [vmem:[#allocation2 + $0x864] sm:$0xf0]  ;;  %18002 = vst [vmem:[#allocation45_spill] sm:$0xff] %v15898_v51  ;;  %v12590_v51 = vld [vmem:[#allocation2 + $0x1368] sm:$0xf0] }
 0x2c1   : > { %v11692_v25 = vld [vmem:[#allocation2 + $0xc28] sm:$0xf]  ;;  %v11181_v58 = vor.u32 %v14391_v29, %v11180_v7  ;;  %6006 = vmatpush.bf16.msrb.mxu1 %v10669_v52  ;;  %v10545_v7 = vor.u32 %v14223_v0, %v10542_v54  ;;  %v15906_v52 = vpop.f32.mrf.mxu3 }
 0x2c2   : > { %v14519_v34 = vld [vmem:[#allocation2 + $0xc64] sm:$0xf0]  ;;  %5993 = vmatmul.bf16.vlgmr.msrb.gmra.mxu0 %v15664_v57  ;;  %18004 = vst [vmem:[#allocation47_spill] sm:$0xff] %v15906_v52  ;;  %v11572_v52 = vld [vmem:[#allocation2 + $0xb30] sm:$0xf] }
 0x2c3   : > { %v12652_v21 = vld [vmem:[#allocation2 + $0x13a8] sm:$0xf]  ;;  %v11693_v14 = vor.u32 %v14519_v34, %v11692_v25  ;;  %6020 = vmatpush.bf16.msrb.mxu2 %v11181_v58  ;;  %v11057_v34 = vor.u32 %v14351_v4, %v11054_v45 }
 0x2c4   : > { %v14759_v56 = vld [vmem:[#allocation2 + $0x13e4] sm:$0xf0]  ;;  %6007 = vmatmul.bf16.vlgmr.msrb.gmra.mxu1 %v15669_v6 }
 0x2c5   : > { %v13164_v37 = vld [vmem:[#allocation2 + $0x17a8] sm:$0xf]  ;;  %v12653_v26 = vor.u32 %v14759_v56, %v12652_v21  ;;  %6034 = vmatpush.bf16.msrb.mxu3 %v11693_v14  ;;  %v14207_v56 = vld [vmem:[#allocation2 + $0x2ac] sm:$0xf] }
 0x2c6   : > { %v14887_v48 = vld [vmem:[#allocation2 + $0x17e4] sm:$0xf0]  ;;  %6021 = vmatmul.bf16.vlgmr.msrb.gmra.mxu2 %v15676_v22 }
 0x2c7   : > { %v13165_v43 = vor.u32 %v14887_v48, %v13164_v37  ;;  %v12588_v18 = vld [vmem:[#allocation2 + $0x1328] sm:$0xf]  ;;  %6041 = vmatpush.bf16.msra.mxu0 %v12653_v26  ;;  %6069 = vmatpush.bf16.msra.mxu2 %v10609_v44  ;;  %v10478_v37 = vld [vmem:[#allocation2 + $0x2e8] sm:$0xf0] }
 0x2c8   : > { %v14743_v36 = vld [vmem:[#allocation2 + $0x1364] sm:$0xf0]  ;;  %v10990_v48 = vld [vmem:[#allocation2 + $0x6e8] sm:$0xf0]  ;;  %6035 = vmatmul.bf16.vlgmr.msrb.gmra.mxu3 %v15678_v23  ;;  %v10481_v20 = vor.u32 %v14207_v56, %v10478_v37 }
 0x2c9   : > { %v13100_v47 = vld [vmem:[#allocation2 + $0x1728] sm:$0xf]  ;;  %v12589_v10 = vor.u32 %v14743_v36, %v12588_v18  ;;  %6055 = vmatpush.bf16.msra.mxu1 %v13165_v43  ;;  %6083 = vmatpush.bf16.msra.mxu3 %v11121_v2  ;;  %v10993_v14 = vor.u32 %v14335_v27, %v10990_v48  ;;  %v14191_v43 = vld [vmem:[#allocation2 + $0x22c] sm:$0xf]  ;;  %v5770_v18 = vpop.f32.mrf.mxu0 }
 0x2ca   : > { %v14871_v16 = vld [vmem:[#allocation2 + $0x1764] sm:$0xf0]  ;;  %v10414_v44 = vld [vmem:[#allocation2 + $0x268] sm:$0xf0]  ;;  %v5771_v0 = vadd.f32 %v5770_v18, %v15894_v9 }
 0x2cb   : > { %v13101_v50 = vor.u32 %v14871_v16, %v13100_v47  ;;  %v12524_v28 = vld [vmem:[#allocation2 + $0x12a8] sm:$0xf]  ;;  %6042 = vmatpush.bf16.msra.mxu0 %v12589_v10  ;;  %v15903_v47 = vpop.f32.mrf.mxu2  ;;  %6070 = vmatpush.bf16.msra.mxu2 %v10545_v7  ;;  %v14319_v2 = vld [vmem:[#allocation2 + $0x62c] sm:$0xf]  ;;  %v10417_v10 = vor.u32 %v14191_v43, %v10414_v44 }
 0x2cc   : > { %v14727_v29 = vld [vmem:[#allocation2 + $0x12e4] sm:$0xf0]  ;;  %18003 = vst [vmem:[#allocation46_spill] sm:$0xff] %v15903_v47  ;;  %v10926_v16 = vld [vmem:[#allocation2 + $0x668] sm:$0xf0] }
 0x2cd   : > { %v13036_v25 = vld [vmem:[#allocation2 + $0x16a8] sm:$0xf]  ;;  %v12525_v36 = vor.u32 %v14727_v29, %v12524_v28  ;;  %6056 = vmatpush.bf16.msra.mxu1 %v13101_v50  ;;  %6084 = vmatpush.bf16.msra.mxu3 %v11057_v34  ;;  %v5784_v50 = vpop.f32.mrf.mxu1  ;;  %v14175_v56 = vld [vmem:[#allocation2 + $0x1ac] sm:$0xf]  ;;  %v10550_v47 = vld [vmem:[#allocation2 + $0x370] sm:$0xf0] }
 0x2ce   : > { %v14855_v21 = vld [vmem:[#allocation2 + $0x16e4] sm:$0xf0]  ;;  %v5785_v34 = vadd.f32 %v5784_v50, %v5771_v0  ;;  %v10350_v37 = vld [vmem:[#allocation2 + $0x1e8] sm:$0xf0] }
 0x2cf   : > { %v13037_v54 = vor.u32 %v14855_v21, %v13036_v25  ;;  %v12460_v58 = vld [vmem:[#allocation2 + $0x1228] sm:$0xf]  ;;  %6043 = vmatpush.bf16.msra.mxu0 %v12525_v36  ;;  %6071 = vmatpush.bf16.msra.mxu2 %v10481_v20  ;;  %v10929_v25 = vor.u32 %v14319_v2, %v10926_v16  ;;  %v14303_v27 = vld [vmem:[#allocation2 + $0x5ac] sm:$0xf]  ;;  %v5812_v2 = vpop.f32.mrf.mxu3 }
 0x2d0   : > { %v14711_v61 = vld [vmem:[#allocation2 + $0x1264] sm:$0xf0]  ;;  %v10862_v48 = vld [vmem:[#allocation2 + $0x5e8] sm:$0xf0] }
 0x2d1   : > { %v12972_v11 = vld [vmem:[#allocation2 + $0x1628] sm:$0xf]  ;;  %v12461_v4 = vor.u32 %v14711_v61, %v12460_v58  ;;  %6057 = vmatpush.bf16.msra.mxu1 %v13037_v54  ;;  %6085 = vmatpush.bf16.msra.mxu3 %v10993_v14  ;;  %v10353_v54 = vor.u32 %v14175_v56, %v10350_v37  ;;  %v14159_v43 = vld [vmem:[#allocation2 + $0x12c] sm:$0xf]  ;;  %v15912_v42 = vpop.f32.mrf.mxu0 }
 0x2d2   : > { %v14839_v26 = vld [vmem:[#allocation2 + $0x1664] sm:$0xf0]  ;;  %v10286_v44 = vld [vmem:[#allocation2 + $0x168] sm:$0xf0]  ;;  %18006 = vst [vmem:[#allocation49_spill] sm:$0xff] %v15912_v42 }
 0x2d3   : > { %v12973_v45 = vor.u32 %v14839_v26, %v12972_v11  ;;  %v12396_v7 = vld [vmem:[#allocation2 + $0x11a8] sm:$0xf]  ;;  %6044 = vmatpush.bf16.msra.mxu0 %v12461_v4  ;;  %6072 = vmatpush.bf16.msra.mxu2 %v10417_v10  ;;  %v10865_v11 = vor.u32 %v14303_v27, %v10862_v48  ;;  %v5798_v26 = vpop.f32.mrf.mxu2  ;;  %v14287_v16 = vld [vmem:[#allocation2 + $0x52c] sm:$0xf]  ;;  %v10289_v50 = vor.u32 %v14159_v43, %v10286_v44  ;;  %v14232_v42 = vld [vmem:[#allocation2 + $0x36c] sm:$0xf0] }
 0x2d4   : > { %v14695_v28 = vld [vmem:[#allocation2 + $0x11e4] sm:$0xf0]  ;;  %v5799_v18 = vadd.f32 %v5798_v26, %v5785_v34  ;;  %v10798_v0 = vld [vmem:[#allocation2 + $0x568] sm:$0xf0]  ;;  %v6495_v34 = vmax.f32 %v15889_v12, 0.0 }
 0x2d5   : > { %v12908_v29 = vld [vmem:[#allocation2 + $0x15a8] sm:$0xf]  ;;  %v12397_v36 = vor.u32 %v14695_v28, %v12396_v7  ;;  %6058 = vmatpush.bf16.msra.mxu1 %v12973_v45  ;;  %6086 = vmatpush.bf16.msra.mxu3 %v10929_v25  ;;  %v10801_v25 = vor.u32 %v14287_v16, %v10798_v0  ;;  %v14143_v56 = vld [vmem:[#allocation2 + $0xac] sm:$0xf] }
 0x2d6   : > { %v14823_v21 = vld [vmem:[#allocation2 + $0x15e4] sm:$0xf0]  ;;  %v5813_v45 = vadd.f32 %v5812_v2, %v5799_v18  ;;  %v10222_v37 = vld [vmem:[#allocation2 + $0xe8] sm:$0xf0] }
 0x2d7   : > { %v12909_v9 = vor.u32 %v14823_v21, %v12908_v29  ;;  %v12332_v20 = vld [vmem:[#allocation2 + $0x1128] sm:$0xf]  ;;  %6045 = vmatpush.bf16.msra.mxu0 %v12397_v36  ;;  %6073 = vmatpush.bf16.msra.mxu2 %v10353_v54  ;;  %v14271_v48 = vld [vmem:[#allocation2 + $0x4ac] sm:$0xf] }
 0x2d8   : > { %v14679_v58 = vld [vmem:[#allocation2 + $0x1164] sm:$0xf0]  ;;  %v6496_v27 = vmax.f32 %v5813_v45, 0.0  ;;  %v10734_v26 = vld [vmem:[#allocation2 + $0x4e8] sm:$0xf0] }
 0x2d9   : > { %v12844_v61 = vld [vmem:[#allocation2 + $0x1528] sm:$0xf]  ;;  %v12333_v4 = vor.u32 %v14679_v58, %v12332_v20  ;;  %6059 = vmatpush.bf16.msra.mxu1 %v12909_v9  ;;  %6087 = vmatpush.bf16.msra.mxu3 %v10865_v11  ;;  %v14127_v43 = vld [vmem:[#allocation2 + $0x2c] sm:$0xf]  ;;  %v10737_v44 = vor.u32 %v14271_v48, %v10734_v26 }
 0x2da   : > { %v14807_v14 = vld [vmem:[#allocation2 + $0x1564] sm:$0xf0]  ;;  %v15910_v20 = vpack.c.bf16 %v6496_v27, %v6495_v34  ;;  %v10158_v18 = vld [vmem:[#allocation2 + $0x68] sm:$0xf0] }
 0x2db   : > { %v12845_v10 = vor.u32 %v14807_v14, %v12844_v61  ;;  %v12268_v7 = vld [vmem:[#allocation2 + $0x10a8] sm:$0xf]  ;;  %6046 = vmatpush.bf16.msra.mxu0 %v12333_v4  ;;  %6074 = vmatpush.bf16.msra.mxu2 %v10289_v50  ;;  %v10225_v61 = vor.u32 %v14143_v56, %v10222_v37  ;;  %v14255_v12 = vld [vmem:[#allocation2 + $0x42c] sm:$0xf]  ;;  %v10161_v50 = vor.u32 %v14127_v43, %v10158_v18  ;;  %v15914_v43 = vpop.f32.mrf.mxu1 }
 0x2dc   : > { %v14663_v28 = vld [vmem:[#allocation2 + $0x10e4] sm:$0xf0]  ;;  %18005 = vst [vmem:[#allocation48_spill] sm:$0xff] %v15910_v20  ;;  %v10670_v2 = vld [vmem:[#allocation2 + $0x468] sm:$0xf0] }
 0x2dd   : > { %v12780_v29 = vld [vmem:[#allocation2 + $0x14a8] sm:$0xf]  ;;  %v12269_v36 = vor.u32 %v14663_v28, %v12268_v7  ;;  %6060 = vmatpush.bf16.msra.mxu1 %v12845_v10  ;;  %6088 = vmatpush.bf16.msra.mxu3 %v10801_v25  ;;  %v14495_v16 = vld [vmem:[#allocation2 + $0xbac] sm:$0xf]  ;;  %v10673_v25 = vor.u32 %v14255_v12, %v10670_v2  ;;  %18007 = vst [vmem:[#allocation50_spill] sm:$0xff] %v15914_v43 }
 0x2de   : > { %v14791_v21 = vld [vmem:[#allocation2 + $0x14e4] sm:$0xf0]  ;;  %v11630_v0 = vld [vmem:[#allocation2 + $0xbe8] sm:$0xf0]  ;;  %v10548_v43 = vld [vmem:[#allocation2 + $0x330] sm:$0xf] }
 0x2df   : > { %v12204_v9 = vld [vmem:[#allocation2 + $0x1028] sm:$0xf]  ;;  %v12781_v58 = vor.u32 %v14791_v21, %v12780_v29  ;;  %v14623_v4 = vld [vmem:[#allocation2 + $0xfac] sm:$0xf]  ;;  %6047 = vmatpush.bf16.msra.mxu0 %v12269_v36  ;;  %6075 = vmatpush.bf16.msra.mxu2 %v10225_v61  ;;  %v11633_v56 = vor.u32 %v14495_v16, %v11630_v0 }
 0x2e0   : > { %v14647_v54 = vld [vmem:[#allocation2 + $0x1064] sm:$0xf0]  ;;  %v12142_v7 = vld [vmem:[#allocation2 + $0xfe8] sm:$0xf0] }
 0x2e1   : > { %v12716_v11 = vld [vmem:[#allocation2 + $0x1428] sm:$0xf]  ;;  %v12205_v45 = vor.u32 %v14647_v54, %v12204_v9  ;;  %v14751_v28 = vld [vmem:[#allocation2 + $0x13ac] sm:$0xf]  ;;  %6061 = vmatpush.bf16.msra.mxu1 %v12781_v58  ;;  %6089 = vmatpush.bf16.msra.mxu3 %v10737_v44  ;;  %v12145_v37 = vor.u32 %v14623_v4, %v12142_v7 }
 0x2e2   : > { %v14775_v14 = vld [vmem:[#allocation2 + $0x1464] sm:$0xf0]  ;;  %v12654_v34 = vld [vmem:[#allocation2 + $0x13e8] sm:$0xf0] }
 0x2e3   : > { %v12717_v10 = vor.u32 %v14775_v14, %v12716_v11  ;;  %v14879_v29 = vld [vmem:[#allocation2 + $0x17ac] sm:$0xf]  ;;  %v12657_v27 = vor.u32 %v14751_v28, %v12654_v34  ;;  %6048 = vmatpush.bf16.msra.mxu0 %v12205_v45  ;;  %6076 = vmatpush.bf16.msra.mxu2 %v10161_v50 }
 0x2e4   : > { %v13166_v21 = vld [vmem:[#allocation2 + $0x17e8] sm:$0xf0] }
 0x2e5   : > { %v14479_v48 = vld [vmem:[#allocation2 + $0xb2c] sm:$0xf]  ;;  %v13169_v36 = vor.u32 %v14879_v29, %v13166_v21  ;;  %6062 = vmatpush.bf16.msra.mxu1 %v12717_v10  ;;  %6090 = vmatpush.bf16.msra.mxu3 %v10673_v25 }
 0x2e6   : > { %v11566_v26 = vld [vmem:[#allocation2 + $0xb68] sm:$0xf0]  ;;  %6049 = vmatmul.bf16.vlgmr.msra.gmra.mxu0 %v15686_v35  ;;  %6077 = vmatmul.bf16.vlgmr.msra.gmra.mxu2 %v15664_v57 }
 0x2e7   : > { %v14607_v20 = vld [vmem:[#allocation2 + $0xf2c] sm:$0xf]  ;;  %6097 = vmatpush.bf16.msrb.mxu0 %v11633_v56  ;;  %v11569_v11 = vor.u32 %v14479_v48, %v11566_v26  ;;  %6125 = vmatpush.bf16.msrb.mxu2 %v12657_v27  ;;  %v15923_v56 = vpop.f32.mrf.mxu2 }
 0x2e8   : > { %v12078_v9 = vld [vmem:[#allocation2 + $0xf68] sm:$0xf0]  ;;  %6063 = vmatmul.bf16.vlgmr.msra.gmra.mxu1 %v15688_v39  ;;  %6091 = vmatmul.bf16.vlgmr.msra.gmra.mxu3 %v15669_v6  ;;  %18009 = vst [vmem:[#allocation52_spill] sm:$0xff] %v15923_v56 }
 0x2e9   : > { %v14735_v54 = vld [vmem:[#allocation2 + $0x132c] sm:$0xf]  ;;  %6111 = vmatpush.bf16.msrb.mxu1 %v12145_v37  ;;  %v12081_v44 = vor.u32 %v14607_v20, %v12078_v9  ;;  %6139 = vmatpush.bf16.msrb.mxu3 %v13169_v36 }
 0x2ea   : > { %v14863_v58 = vld [vmem:[#allocation2 + $0x172c] sm:$0xf]  ;;  %v12593_v18 = vor.u32 %v14735_v54, %v12590_v51  ;;  %v5826_v54 = vpop.f32.mrf.mxu0 }
 0x2eb   : > { %v13102_v61 = vld [vmem:[#allocation2 + $0x1768] sm:$0xf0]  ;;  %6098 = vmatpush.bf16.msrb.mxu0 %v11569_v11 }
 0x2ec   : > { %v14463_v14 = vld [vmem:[#allocation2 + $0xaac] sm:$0xf]  ;;  %v13105_v0 = vor.u32 %v14863_v58, %v13102_v61  ;;  %6126 = vmatpush.bf16.msrb.mxu2 %v12593_v18  ;;  %v15925_v58 = vpop.f32.mrf.mxu3 }
 0x2ed   : > { %v11502_v12 = vld [vmem:[#allocation2 + $0xae8] sm:$0xf0]  ;;  %6112 = vmatpush.bf16.msrb.mxu1 %v12081_v44  ;;  %18010 = vst [vmem:[#allocation53_spill] sm:$0xff] %v15925_v58 }
 0x2ee   : > { %v14591_v2 = vld [vmem:[#allocation2 + $0xeac] sm:$0xf]  ;;  %v11505_v20 = vor.u32 %v14463_v14, %v11502_v12  ;;  %6140 = vmatpush.bf16.msrb.mxu3 %v13105_v0  ;;  %v5840_v0 = vpop.f32.mrf.mxu1 }
 0x2ef   : > { %v15916_v16 = vld [vmem:[#allocation4 + $0x8] sm:$0xff] }
 0x2f0   : > { %18008 = vst [vmem:[#allocation51_spill] sm:$0xff] %v15916_v16  ;;  %v12014_v4 = vld [vmem:[#allocation2 + $0xee8] sm:$0xf0]  ;;  %v17748_v51 = vperm.slane %v15916_v16, 0  ;;  %6099 = vmatpush.bf16.msrb.mxu0 %v11505_v20 }
 0x2f1   : > { %v14719_v45 = vld [vmem:[#allocation2 + $0x12ac] sm:$0xf]  ;;  %v12017_v10 = vor.u32 %v14591_v2, %v12014_v4 }
 0x2f2   : > { %v12526_v7 = vld [vmem:[#allocation2 + $0x12e8] sm:$0xf0]  ;;  %v5827_v11 = vadd.f32 %v5826_v54, %v17748_v51 }
 0x2f3   : > { %v14847_v28 = vld [vmem:[#allocation2 + $0x16ac] sm:$0xf]  ;;  %v12529_v50 = vor.u32 %v14719_v45, %v12526_v7  ;;  %6113 = vmatpush.bf16.msrb.mxu1 %v12017_v10 }
 0x2f4   : > { %v13038_v34 = vld [vmem:[#allocation2 + $0x16e8] sm:$0xf0] }
 0x2f5   : > { %v14447_v29 = vld [vmem:[#allocation2 + $0xa2c] sm:$0xf]  ;;  %v13041_v37 = vor.u32 %v14847_v28, %v13038_v34  ;;  %6127 = vmatpush.bf16.msrb.mxu2 %v12529_v50  ;;  %v5841_v34 = vadd.f32 %v5840_v0, %v5827_v11 }
 0x2f6   : > { %v11438_v21 = vld [vmem:[#allocation2 + $0xa68] sm:$0xf0] }
 0x2f7   : > { %v14575_v25 = vld [vmem:[#allocation2 + $0xe2c] sm:$0xf]  ;;  %v11441_v61 = vor.u32 %v14447_v29, %v11438_v21  ;;  %6141 = vmatpush.bf16.msrb.mxu3 %v13041_v37 }
 0x2f8   : > { %v11950_v27 = vld [vmem:[#allocation2 + $0xe68] sm:$0xf0] }
 0x2f9   : > { %v14703_v48 = vld [vmem:[#allocation2 + $0x122c] sm:$0xf]  ;;  %v11953_v14 = vor.u32 %v14575_v25, %v11950_v27  ;;  %6100 = vmatpush.bf16.msrb.mxu0 %v11441_v61  ;;  %v5868_v61 = vpop.f32.mrf.mxu3 }
 0x2fa   : > { %v12462_v26 = vld [vmem:[#allocation2 + $0x1268] sm:$0xf0] }
 0x2fb   : > { %v14831_v36 = vld [vmem:[#allocation2 + $0x162c] sm:$0xf]  ;;  %v12465_v44 = vor.u32 %v14703_v48, %v12462_v26  ;;  %6114 = vmatpush.bf16.msrb.mxu1 %v11953_v14 }
 0x2fc   : > { %v12974_v9 = vld [vmem:[#allocation2 + $0x1668] sm:$0xf0] }
 0x2fd   : > { %v14431_v18 = vld [vmem:[#allocation2 + $0x9ac] sm:$0xf]  ;;  %v12977_v4 = vor.u32 %v14831_v36, %v12974_v9  ;;  %6128 = vmatpush.bf16.msrb.mxu2 %v12465_v44  ;;  %v5854_v9 = vpop.f32.mrf.mxu2 }
 0x2fe   : > { %v11374_v12 = vld [vmem:[#allocation2 + $0x9e8] sm:$0xf0]  ;;  %v5855_v11 = vadd.f32 %v5854_v9, %v5841_v34  ;;  %v10612_v9 = vld [vmem:[#allocation2 + $0x3b0] sm:$0xf] }
 0x2ff   : > { %v14559_v2 = vld [vmem:[#allocation2 + $0xdac] sm:$0xf]  ;;  %v11377_v29 = vor.u32 %v14431_v18, %v11374_v12  ;;  %6142 = vmatpush.bf16.msrb.mxu3 %v12977_v4 }
 0x300   : > { %v11886_v45 = vld [vmem:[#allocation2 + $0xde8] sm:$0xf0] }
 0x301   : > { %v14687_v7 = vld [vmem:[#allocation2 + $0x11ac] sm:$0xf]  ;;  %v11889_v10 = vor.u32 %v14559_v2, %v11886_v45  ;;  %6101 = vmatpush.bf16.msrb.mxu0 %v11377_v29  ;;  %v15929_v45 = vadd.f32 %v5868_v61, %v5855_v11  ;;  %v11124_v11 = vld [vmem:[#allocation2 + $0x7b0] sm:$0xf] }
 0x302   : > { %v12398_v28 = vld [vmem:[#allocation2 + $0x11e8] sm:$0xf0]  ;;  %v14376_v61 = vld [vmem:[#allocation2 + $0x7ec] sm:$0xf0] }
 0x303   : > { %v14815_v58 = vld [vmem:[#allocation2 + $0x15ac] sm:$0xf]  ;;  %v12401_v50 = vor.u32 %v14687_v7, %v12398_v28  ;;  %6115 = vmatpush.bf16.msrb.mxu1 %v11889_v10 }
 0x304   : > { %v12910_v20 = vld [vmem:[#allocation2 + $0x15e8] sm:$0xf0] }
 0x305   : > { %v14415_v21 = vld [vmem:[#allocation2 + $0x92c] sm:$0xf]  ;;  %v12913_v48 = vor.u32 %v14815_v58, %v12910_v20  ;;  %6129 = vmatpush.bf16.msrb.mxu2 %v12401_v50 }
 0x306   : > { %v11310_v25 = vld [vmem:[#allocation2 + $0x968] sm:$0xf0] }
 0x307   : > { %v14543_v27 = vld [vmem:[#allocation2 + $0xd2c] sm:$0xf]  ;;  %v11313_v0 = vor.u32 %v14415_v21, %v11310_v25  ;;  %6143 = vmatpush.bf16.msrb.mxu3 %v12913_v48 }
 0x308   : > { %v11822_v26 = vld [vmem:[#allocation2 + $0xd68] sm:$0xf0] }
 0x309   : > { %v14671_v37 = vld [vmem:[#allocation2 + $0x112c] sm:$0xf]  ;;  %v11825_v14 = vor.u32 %v14543_v27, %v11822_v26  ;;  %6102 = vmatpush.bf16.msrb.mxu0 %v11313_v0 }
 0x30a   : > { %v12334_v36 = vld [vmem:[#allocation2 + $0x1168] sm:$0xf0] }
 0x30b   : > { %v14799_v54 = vld [vmem:[#allocation2 + $0x152c] sm:$0xf]  ;;  %v12337_v44 = vor.u32 %v14671_v37, %v12334_v36  ;;  %6116 = vmatpush.bf16.msrb.mxu1 %v11825_v14 }
 0x30c   : > { %v12846_v51 = vld [vmem:[#allocation2 + $0x1568] sm:$0xf0] }
 0x30d   : > { %v14399_v18 = vld [vmem:[#allocation2 + $0x8ac] sm:$0xf]  ;;  %v12849_v58 = vor.u32 %v14799_v54, %v12846_v51  ;;  %6130 = vmatpush.bf16.msrb.mxu2 %v12337_v44  ;;  %v14248_v54 = vld [vmem:[#allocation2 + $0x3ec] sm:$0xf0] }
 0x30e   : > { %v11246_v12 = vld [vmem:[#allocation2 + $0x8e8] sm:$0xf0] }
 0x30f   : > { %v14527_v2 = vld [vmem:[#allocation2 + $0xcac] sm:$0xf]  ;;  %v11249_v34 = vor.u32 %v14399_v18, %v11246_v12  ;;  %6144 = vmatpush.bf16.msrb.mxu3 %v12849_v58  ;;  %v11636_v18 = vld [vmem:[#allocation2 + $0xbb0] sm:$0xf] }
 0x310   : > { %v11758_v4 = vld [vmem:[#allocation2 + $0xce8] sm:$0xf0]  ;;  %v14504_v12 = vld [vmem:[#allocation2 + $0xbec] sm:$0xf0] }
 0x311   : > { %v14655_v7 = vld [vmem:[#allocation2 + $0x10ac] sm:$0xf]  ;;  %v11761_v10 = vor.u32 %v14527_v2, %v11758_v4  ;;  %6103 = vmatpush.bf16.msrb.mxu0 %v11249_v34  ;;  %v12148_v2 = vld [vmem:[#allocation2 + $0xfb0] sm:$0xf] }
 0x312   : > { %v12270_v28 = vld [vmem:[#allocation2 + $0x10e8] sm:$0xf0]  ;;  %v14632_v4 = vld [vmem:[#allocation2 + $0xfec] sm:$0xf0] }
 0x313   : > { %v14783_v20 = vld [vmem:[#allocation2 + $0x14ac] sm:$0xf]  ;;  %v12273_v50 = vor.u32 %v14655_v7, %v12270_v28  ;;  %6117 = vmatpush.bf16.msrb.mxu1 %v11761_v10  ;;  %v11125_v7 = vor.u32 %v14376_v61, %v11124_v11  ;;  %v11637_v28 = vor.u32 %v14504_v12, %v11636_v18  ;;  %v11060_v34 = vld [vmem:[#allocation2 + $0x730] sm:$0xf] }
 0x314   : > { %v12782_v56 = vld [vmem:[#allocation2 + $0x14e8] sm:$0xf0]  ;;  %v14488_v10 = vld [vmem:[#allocation2 + $0xb6c] sm:$0xf0] }
 0x315   : > { %v14383_v29 = vld [vmem:[#allocation2 + $0x82c] sm:$0xf]  ;;  %v12785_v37 = vor.u32 %v14783_v20, %v12782_v56  ;;  %6131 = vmatpush.bf16.msrb.mxu2 %v12273_v50  ;;  %v10613_v56 = vor.u32 %v14248_v54, %v10612_v9  ;;  %v15931_v20 = vpop.f32.mrf.mxu0  ;;  %v12084_v50 = vld [vmem:[#allocation2 + $0xf30] sm:$0xf] }
 0x316   : > { %v11182_v21 = vld [vmem:[#allocation2 + $0x868] sm:$0xf0]  ;;  %18011 = vst [vmem:[#allocation54_spill] sm:$0xff] %v15931_v20  ;;  %v10996_v9 = vld [vmem:[#allocation2 + $0x6b0] sm:$0xf] }
 0x317   : > { %v14511_v25 = vld [vmem:[#allocation2 + $0xc2c] sm:$0xf]  ;;  %v11185_v0 = vor.u32 %v14383_v29, %v11182_v21  ;;  %6145 = vmatpush.bf16.msrb.mxu3 %v12785_v37  ;;  %v12149_v29 = vor.u32 %v14632_v4, %v12148_v2  ;;  %v14360_v21 = vld [vmem:[#allocation2 + $0x76c] sm:$0xf0] }
 0x318   : > { %v11694_v27 = vld [vmem:[#allocation2 + $0xc68] sm:$0xf0]  ;;  %v11061_v37 = vor.u32 %v14360_v21, %v11060_v34  ;;  %v14344_v11 = vld [vmem:[#allocation2 + $0x6ec] sm:$0xf0] }
 0x319   : > { %v14639_v26 = vld [vmem:[#allocation2 + $0x102c] sm:$0xf]  ;;  %v11697_v14 = vor.u32 %v14511_v25, %v11694_v27  ;;  %6104 = vmatpush.bf16.msrb.mxu0 %v11185_v0  ;;  %v14616_v25 = vld [vmem:[#allocation2 + $0xf6c] sm:$0xf0]  ;;  %v15933_v27 = vpop.f32.mrf.mxu1 }
 0x31a   : > { %v12206_v48 = vld [vmem:[#allocation2 + $0x1068] sm:$0xf0]  ;;  %18012 = vst [vmem:[#allocation55_spill] sm:$0xff] %v15933_v27  ;;  %v12085_v54 = vor.u32 %v14616_v25, %v12084_v50  ;;  %v11508_v0 = vld [vmem:[#allocation2 + $0xab0] sm:$0xf]  ;;  %v15942_v25 = vpop.f32.mrf.mxu3 }
 0x31b   : > { %v14767_v51 = vld [vmem:[#allocation2 + $0x142c] sm:$0xf]  ;;  %v12209_v44 = vor.u32 %v14639_v26, %v12206_v48  ;;  %6118 = vmatpush.bf16.msrb.mxu1 %v11697_v14  ;;  %v10549_v26 = vor.u32 %v14232_v42, %v10548_v43  ;;  %v11573_v48 = vor.u32 %v14488_v10, %v11572_v52  ;;  %v14472_v61 = vld [vmem:[#allocation2 + $0xaec] sm:$0xf0]  ;;  %v10997_v43 = vor.u32 %v14344_v11, %v10996_v9 }
 0x31c   : > { %v12718_v36 = vld [vmem:[#allocation2 + $0x1468] sm:$0xf0]  ;;  %6105 = vmatmul.bf16.vlgmr.msrb.gmra.mxu0 %v15676_v22  ;;  %v12020_v18 = vld [vmem:[#allocation2 + $0xeb0] sm:$0xf]  ;;  %v11509_v12 = vor.u32 %v14472_v61, %v11508_v0  ;;  %18014 = vst [vmem:[#allocation57_spill] sm:$0xff] %v15942_v25 }
 0x31d   : > { %v12721_v58 = vor.u32 %v14767_v51, %v12718_v36  ;;  %6132 = vmatpush.bf16.msrb.mxu2 %v12209_v44  ;;  %6153 = vmatpush.bf16.msra.mxu0 %v10613_v56  ;;  %v10484_v51 = vld [vmem:[#allocation2 + $0x2b0] sm:$0xf]  ;;  %v5882_v34 = vpop.f32.mrf.mxu0 }
 0x31e   : > { %v14216_v36 = vld [vmem:[#allocation2 + $0x2ec] sm:$0xf0]  ;;  %6119 = vmatmul.bf16.vlgmr.msrb.gmra.mxu1 %v15678_v23  ;;  %v5883_v10 = vadd.f32 %v5882_v34, %v15929_v45 }
 0x31f   : > { %6146 = vmatpush.bf16.msrb.mxu3 %v12721_v58  ;;  %6167 = vmatpush.bf16.msra.mxu1 %v11125_v7  ;;  %v14600_v42 = vld [vmem:[#allocation2 + $0xeec] sm:$0xf0]  ;;  %v10485_v52 = vor.u32 %v14216_v36, %v10484_v51 }
 0x320   : > { %6133 = vmatmul.bf16.vlgmr.msrb.gmra.mxu2 %v15686_v35  ;;  %v10420_v14 = vld [vmem:[#allocation2 + $0x230] sm:$0xf]  ;;  %v12021_v4 = vor.u32 %v14600_v42, %v12020_v18 }
 0x321   : > { %6181 = vmatpush.bf16.msra.mxu2 %v11637_v28  ;;  %6154 = vmatpush.bf16.msra.mxu0 %v10549_v26  ;;  %v14200_v44 = vld [vmem:[#allocation2 + $0x26c] sm:$0xf0]  ;;  %v15939_v28 = vpop.f32.mrf.mxu2 }
 0x322   : > { %6147 = vmatmul.bf16.vlgmr.msrb.gmra.mxu3 %v15688_v39  ;;  %v10932_v2 = vld [vmem:[#allocation2 + $0x630] sm:$0xf]  ;;  %18013 = vst [vmem:[#allocation56_spill] sm:$0xff] %v15939_v28  ;;  %v10421_v50 = vor.u32 %v14200_v44, %v10420_v14 }
 0x323   : > { %6195 = vmatpush.bf16.msra.mxu3 %v12149_v29  ;;  %6168 = vmatpush.bf16.msra.mxu1 %v11061_v37  ;;  %v14328_v58 = vld [vmem:[#allocation2 + $0x66c] sm:$0xf0] }
 0x324   : > { %v11444_v56 = vld [vmem:[#allocation2 + $0xa30] sm:$0xf]  ;;  %v10933_v26 = vor.u32 %v14328_v58, %v10932_v2 }
 0x325   : > { %6182 = vmatpush.bf16.msra.mxu2 %v11573_v48  ;;  %v14456_v7 = vld [vmem:[#allocation2 + $0xa6c] sm:$0xf0]  ;;  %6155 = vmatpush.bf16.msra.mxu0 %v10485_v52  ;;  %v5896_v48 = vpop.f32.mrf.mxu1  ;;  %v17749_v52 = vperm.slane %v15916_v16, 1  ;;  %v15951_v49 = vpop.f32.mrf.mxu0 }
 0x326   : > { %v11956_v29 = vld [vmem:[#allocation2 + $0xe30] sm:$0xf]  ;;  %v11445_v37 = vor.u32 %v14456_v7, %v11444_v56  ;;  %v15944_v11 = vadd.f32 %v5896_v48, %v5883_v10  ;;  %18015 = vst [vmem:[#allocation58_spill] sm:$0xff] %v15951_v49 }
 0x327   : > { %6196 = vmatpush.bf16.msra.mxu3 %v12085_v54  ;;  %v14584_v21 = vld [vmem:[#allocation2 + $0xe6c] sm:$0xf0]  ;;  %6169 = vmatpush.bf16.msra.mxu1 %v10997_v43 }
 0x328   : > { %v10356_v51 = vld [vmem:[#allocation2 + $0x1b0] sm:$0xf]  ;;  %v11957_v54 = vor.u32 %v14584_v21, %v11956_v29 }
 0x329   : > { %6183 = vmatpush.bf16.msra.mxu2 %v11509_v12  ;;  %v14184_v36 = vld [vmem:[#allocation2 + $0x1ec] sm:$0xf0]  ;;  %6156 = vmatpush.bf16.msra.mxu0 %v10421_v50  ;;  %v5910_v29 = vpop.f32.mrf.mxu2 }
 0x32a   : > { %v10868_v9 = vld [vmem:[#allocation2 + $0x5b0] sm:$0xf]  ;;  %v10357_v43 = vor.u32 %v14184_v36, %v10356_v51  ;;  %v5911_v48 = vadd.f32 %v5910_v29, %v17749_v52  ;;  %v10614_v52 = vld [vmem:[#allocation2 + $0x3f0] sm:$0xf0] }
 0x32b   : > { %6197 = vmatpush.bf16.msra.mxu3 %v12021_v4  ;;  %v14312_v0 = vld [vmem:[#allocation2 + $0x5ec] sm:$0xf0]  ;;  %6170 = vmatpush.bf16.msra.mxu1 %v10933_v26  ;;  %v5924_v26 = vpop.f32.mrf.mxu3 }
 0x32c   : > { %v11380_v61 = vld [vmem:[#allocation2 + $0x9b0] sm:$0xf]  ;;  %v10869_v12 = vor.u32 %v14312_v0, %v10868_v9  ;;  %v15949_v0 = vadd.f32 %v5924_v26, %v5911_v48 }
 0x32d   : > { %v14440_v18 = vld [vmem:[#allocation2 + $0x9ec] sm:$0xf0]  ;;  %6184 = vmatpush.bf16.msra.mxu2 %v11445_v37  ;;  %6157 = vmatpush.bf16.msra.mxu0 %v10357_v43 }
 0x32e   : > { %v11892_v42 = vld [vmem:[#allocation2 + $0xdb0] sm:$0xf]  ;;  %v11381_v14 = vor.u32 %v14440_v18, %v11380_v61 }
 0x32f   : > { %v14568_v45 = vld [vmem:[#allocation2 + $0xdec] sm:$0xf0]  ;;  %6198 = vmatpush.bf16.msra.mxu3 %v11957_v54  ;;  %6171 = vmatpush.bf16.msra.mxu1 %v10869_v12 }
 0x330   : > { %v10292_v44 = vld [vmem:[#allocation2 + $0x130] sm:$0xf]  ;;  %v11893_v4 = vor.u32 %v14568_v45, %v11892_v42 }
 0x331   : > { %v14168_v2 = vld [vmem:[#allocation2 + $0x16c] sm:$0xf0]  ;;  %6185 = vmatpush.bf16.msra.mxu2 %v11381_v14 }
 0x332   : > { %v10804_v58 = vld [vmem:[#allocation2 + $0x530] sm:$0xf]  ;;  %v10293_v50 = vor.u32 %v14168_v2, %v10292_v44 }
 0x333   : > { %v14296_v56 = vld [vmem:[#allocation2 + $0x56c] sm:$0xf0]  ;;  %6199 = vmatpush.bf16.msra.mxu3 %v11893_v4 }
 0x334   : > { %v11316_v7 = vld [vmem:[#allocation2 + $0x930] sm:$0xf]  ;;  %v10805_v37 = vor.u32 %v14296_v56, %v10804_v58  ;;  %6158 = vmatpush.bf16.msra.mxu0 %v10293_v50 }
 0x335   : > { %v14424_v34 = vld [vmem:[#allocation2 + $0x96c] sm:$0xf0] }
 0x336   : > { %v11828_v21 = vld [vmem:[#allocation2 + $0xd30] sm:$0xf]  ;;  %v11317_v51 = vor.u32 %v14424_v34, %v11316_v7  ;;  %6172 = vmatpush.bf16.msra.mxu1 %v10805_v37 }
 0x337   : > { %v14552_v10 = vld [vmem:[#allocation2 + $0xd6c] sm:$0xf0] }
 0x338   : > { %v10228_v36 = vld [vmem:[#allocation2 + $0xb0] sm:$0xf]  ;;  %v11829_v61 = vor.u32 %v14552_v10, %v11828_v21  ;;  %6186 = vmatpush.bf16.msra.mxu2 %v11317_v51 }
 0x339   : > { %v14152_v9 = vld [vmem:[#allocation2 + $0xec] sm:$0xf0] }
 0x33a   : > { %v10740_v54 = vld [vmem:[#allocation2 + $0x4b0] sm:$0xf]  ;;  %v10229_v43 = vor.u32 %v14152_v9, %v10228_v36  ;;  %6200 = vmatpush.bf16.msra.mxu3 %v11829_v61  ;;  %v14240_v9 = vld [vmem:[#allocation2 + $0x3b4] sm:$0xf] }
 0x33b   : > { %v14280_v18 = vld [vmem:[#allocation2 + $0x4ec] sm:$0xf0] }
 0x33c   : > { %v11252_v42 = vld [vmem:[#allocation2 + $0x8b0] sm:$0xf]  ;;  %v10741_v12 = vor.u32 %v14280_v18, %v10740_v54  ;;  %6159 = vmatpush.bf16.msra.mxu0 %v10229_v43  ;;  %v14368_v54 = vld [vmem:[#allocation2 + $0x7b4] sm:$0xf] }
 0x33d   : > { %v14408_v45 = vld [vmem:[#allocation2 + $0x8ec] sm:$0xf0]  ;;  %v11126_v18 = vld [vmem:[#allocation2 + $0x7f0] sm:$0xf0] }
 0x33e   : > { %v11764_v25 = vld [vmem:[#allocation2 + $0xcb0] sm:$0xf]  ;;  %v11253_v14 = vor.u32 %v14408_v45, %v11252_v42  ;;  %6173 = vmatpush.bf16.msra.mxu1 %v10741_v12  ;;  %v10617_v42 = vor.u32 %v14240_v9, %v10614_v52  ;;  %v11129_v43 = vor.u32 %v14368_v54, %v11126_v18  ;;  %v14352_v12 = vld [vmem:[#allocation2 + $0x734] sm:$0xf] }
 0x33f   : > { %v14536_v28 = vld [vmem:[#allocation2 + $0xcec] sm:$0xf0] }
 0x340   : > { %v10164_v44 = vld [vmem:[#allocation2 + $0x30] sm:$0xf]  ;;  %v11765_v34 = vor.u32 %v14536_v28, %v11764_v25  ;;  %6187 = vmatpush.bf16.msra.mxu2 %v11253_v14  ;;  %v11062_v14 = vld [vmem:[#allocation2 + $0x770] sm:$0xf0] }
 0x341   : > { %v14136_v2 = vld [vmem:[#allocation2 + $0x6c] sm:$0xf0] }
 0x342   : > { %v10676_v58 = vld [vmem:[#allocation2 + $0x430] sm:$0xf]  ;;  %v10165_v50 = vor.u32 %v14136_v2, %v10164_v44  ;;  %6201 = vmatpush.bf16.msra.mxu3 %v11765_v34  ;;  %v14224_v2 = vld [vmem:[#allocation2 + $0x334] sm:$0xf] }
 0x343   : > { %v14264_v56 = vld [vmem:[#allocation2 + $0x46c] sm:$0xf0] }
 0x344   : > { %v11188_v7 = vld [vmem:[#allocation2 + $0x830] sm:$0xf]  ;;  %v10677_v37 = vor.u32 %v14264_v56, %v10676_v58  ;;  %6160 = vmatpush.bf16.msra.mxu0 %v10165_v50  ;;  %v15953_v56 = vpop.f32.mrf.mxu1  ;;  %v14336_v50 = vld [vmem:[#allocation2 + $0x6b4] sm:$0xf] }
 0x345   : > { %v14392_v4 = vld [vmem:[#allocation2 + $0x86c] sm:$0xf0]  ;;  %18016 = vst [vmem:[#allocation59_spill] sm:$0xff] %v15953_v56  ;;  %v12598_v56 = vld [vmem:[#allocation2 + $0x1370] sm:$0xf0] }
 0x346   : > { %v11700_v29 = vld [vmem:[#allocation2 + $0xc30] sm:$0xf]  ;;  %v11189_v51 = vor.u32 %v14392_v4, %v11188_v7  ;;  %6174 = vmatpush.bf16.msra.mxu1 %v10677_v37  ;;  %v10553_v7 = vor.u32 %v14224_v2, %v10550_v47  ;;  %v15961_v37 = vpop.f32.mrf.mxu3 }
 0x347   : > { %v14520_v21 = vld [vmem:[#allocation2 + $0xc6c] sm:$0xf0]  ;;  %6161 = vmatmul.bf16.vlgmr.msra.gmra.mxu0 %v15664_v57  ;;  %18018 = vst [vmem:[#allocation61_spill] sm:$0xff] %v15961_v37  ;;  %v13116_v37 = vld [vmem:[#allocation2 + $0x1738] sm:$0xf] }
 0x348   : > { %v12660_v10 = vld [vmem:[#allocation2 + $0x13b0] sm:$0xf]  ;;  %v11701_v61 = vor.u32 %v14520_v21, %v11700_v29  ;;  %6188 = vmatpush.bf16.msra.mxu2 %v11189_v51  ;;  %v11065_v21 = vor.u32 %v14352_v12, %v11062_v14 }
 0x349   : > { %v14760_v48 = vld [vmem:[#allocation2 + $0x13ec] sm:$0xf0]  ;;  %6175 = vmatmul.bf16.vlgmr.msra.gmra.mxu1 %v15669_v6 }
 0x34a   : > { %v13172_v26 = vld [vmem:[#allocation2 + $0x17b0] sm:$0xf]  ;;  %v12661_v28 = vor.u32 %v14760_v48, %v12660_v10  ;;  %6202 = vmatpush.bf16.msra.mxu3 %v11701_v61  ;;  %v14208_v48 = vld [vmem:[#allocation2 + $0x2b4] sm:$0xf] }
 0x34b   : > { %v14888_v36 = vld [vmem:[#allocation2 + $0x17ec] sm:$0xf0]  ;;  %6189 = vmatmul.bf16.vlgmr.msra.gmra.mxu2 %v15676_v22 }
 0x34c   : > { %v13173_v25 = vor.u32 %v14888_v36, %v13172_v26  ;;  %v12596_v45 = vld [vmem:[#allocation2 + $0x1330] sm:$0xf]  ;;  %6209 = vmatpush.bf16.msrb.mxu0 %v12661_v28  ;;  %6237 = vmatpush.bf16.msrb.mxu2 %v10617_v42  ;;  %v10486_v26 = vld [vmem:[#allocation2 + $0x2f0] sm:$0xf0] }
 0x34d   : > { %v14744_v27 = vld [vmem:[#allocation2 + $0x136c] sm:$0xf0]  ;;  %v10998_v36 = vld [vmem:[#allocation2 + $0x6f0] sm:$0xf0]  ;;  %6203 = vmatmul.bf16.vlgmr.msra.gmra.mxu3 %v15678_v23  ;;  %v10489_v9 = vor.u32 %v14208_v48, %v10486_v26 }
 0x34e   : > { %v13108_v20 = vld [vmem:[#allocation2 + $0x1730] sm:$0xf]  ;;  %v12597_v58 = vor.u32 %v14744_v27, %v12596_v45  ;;  %6223 = vmatpush.bf16.msrb.mxu1 %v13173_v25  ;;  %6251 = vmatpush.bf16.msrb.mxu3 %v11129_v43  ;;  %v11001_v61 = vor.u32 %v14336_v50, %v10998_v36  ;;  %v14192_v25 = vld [vmem:[#allocation2 + $0x234] sm:$0xf]  ;;  %v5938_v45 = vpop.f32.mrf.mxu0 }
 0x34f   : > { %v14872_v44 = vld [vmem:[#allocation2 + $0x176c] sm:$0xf0]  ;;  %v10422_v42 = vld [vmem:[#allocation2 + $0x270] sm:$0xf0]  ;;  %v5939_v2 = vadd.f32 %v5938_v45, %v15949_v0 }
 0x350   : > { %v13109_v52 = vor.u32 %v14872_v44, %v13108_v20  ;;  %v12532_v34 = vld [vmem:[#allocation2 + $0x12b0] sm:$0xf]  ;;  %6210 = vmatpush.bf16.msrb.mxu0 %v12597_v58  ;;  %v15958_v20 = vpop.f32.mrf.mxu2  ;;  %6238 = vmatpush.bf16.msrb.mxu2 %v10553_v7  ;;  %v14320_v43 = vld [vmem:[#allocation2 + $0x634] sm:$0xf]  ;;  %v10425_v58 = vor.u32 %v14192_v25, %v10422_v42 }
 0x351   : > { %v14728_v4 = vld [vmem:[#allocation2 + $0x12ec] sm:$0xf0]  ;;  %18017 = vst [vmem:[#allocation60_spill] sm:$0xff] %v15958_v20  ;;  %v10934_v44 = vld [vmem:[#allocation2 + $0x670] sm:$0xf0] }
 0x352   : > { %v13044_v29 = vld [vmem:[#allocation2 + $0x16b0] sm:$0xf]  ;;  %v12533_v27 = vor.u32 %v14728_v4, %v12532_v34  ;;  %6224 = vmatpush.bf16.msrb.mxu1 %v13109_v52  ;;  %6252 = vmatpush.bf16.msrb.mxu3 %v11065_v21  ;;  %v5952_v52 = vpop.f32.mrf.mxu1  ;;  %v14176_v48 = vld [vmem:[#allocation2 + $0x1b4] sm:$0xf]  ;;  %v10558_v20 = vld [vmem:[#allocation2 + $0x378] sm:$0xf0] }
 0x353   : > { %v14856_v10 = vld [vmem:[#allocation2 + $0x16ec] sm:$0xf0]  ;;  %v5953_v21 = vadd.f32 %v5952_v52, %v5939_v2  ;;  %v10358_v26 = vld [vmem:[#allocation2 + $0x1f0] sm:$0xf0] }
 0x354   : > { %v13045_v47 = vor.u32 %v14856_v10, %v13044_v29  ;;  %v12468_v51 = vld [vmem:[#allocation2 + $0x1230] sm:$0xf]  ;;  %6211 = vmatpush.bf16.msrb.mxu0 %v12533_v27  ;;  %6239 = vmatpush.bf16.msrb.mxu2 %v10489_v9  ;;  %v10937_v29 = vor.u32 %v14320_v43, %v10934_v44  ;;  %v14304_v50 = vld [vmem:[#allocation2 + $0x5b4] sm:$0xf]  ;;  %v5980_v43 = vpop.f32.mrf.mxu3 }
 0x355   : > { %v14712_v54 = vld [vmem:[#allocation2 + $0x126c] sm:$0xf0]  ;;  %v10870_v36 = vld [vmem:[#allocation2 + $0x5f0] sm:$0xf0] }
 0x356   : > { %v12980_v18 = vld [vmem:[#allocation2 + $0x1630] sm:$0xf]  ;;  %v12469_v12 = vor.u32 %v14712_v54, %v12468_v51  ;;  %6225 = vmatpush.bf16.msrb.mxu1 %v13045_v47  ;;  %6253 = vmatpush.bf16.msrb.mxu3 %v11001_v61  ;;  %v10361_v47 = vor.u32 %v14176_v48, %v10358_v26  ;;  %v14160_v25 = vld [vmem:[#allocation2 + $0x134] sm:$0xf]  ;;  %v15967_v49 = vpop.f32.mrf.mxu0 }
 0x357   : > { %v14840_v28 = vld [vmem:[#allocation2 + $0x166c] sm:$0xf0]  ;;  %v10294_v42 = vld [vmem:[#allocation2 + $0x170] sm:$0xf0]  ;;  %18020 = vst [vmem:[#allocation63_spill] sm:$0xff] %v15967_v49 }
 0x358   : > { %v12981_v14 = vor.u32 %v14840_v28, %v12980_v18  ;;  %v12404_v7 = vld [vmem:[#allocation2 + $0x11b0] sm:$0xf]  ;;  %6212 = vmatpush.bf16.msrb.mxu0 %v12469_v12  ;;  %6240 = vmatpush.bf16.msrb.mxu2 %v10425_v58  ;;  %v10873_v18 = vor.u32 %v14304_v50, %v10870_v36  ;;  %v5966_v28 = vpop.f32.mrf.mxu2  ;;  %v14288_v44 = vld [vmem:[#allocation2 + $0x534] sm:$0xf]  ;;  %v10297_v52 = vor.u32 %v14160_v25, %v10294_v42  ;;  %v11580_v49 = vld [vmem:[#allocation2 + $0xb38] sm:$0xf] }
 0x359   : > { %v14696_v34 = vld [vmem:[#allocation2 + $0x11ec] sm:$0xf0]  ;;  %v5967_v45 = vadd.f32 %v5966_v28, %v5953_v21  ;;  %v10806_v2 = vld [vmem:[#allocation2 + $0x570] sm:$0xf0]  ;;  %v6497_v21 = vmax.f32 %v15944_v11, 0.0 }
 0x35a   : > { %v12916_v4 = vld [vmem:[#allocation2 + $0x15b0] sm:$0xf]  ;;  %v12405_v27 = vor.u32 %v14696_v34, %v12404_v7  ;;  %6226 = vmatpush.bf16.msrb.mxu1 %v12981_v14  ;;  %6254 = vmatpush.bf16.msrb.mxu3 %v10937_v29  ;;  %v10809_v29 = vor.u32 %v14288_v44, %v10806_v2  ;;  %v14144_v48 = vld [vmem:[#allocation2 + $0xb4] sm:$0xf] }
 0x35b   : > { %v14824_v10 = vld [vmem:[#allocation2 + $0x15ec] sm:$0xf0]  ;;  %v5981_v14 = vadd.f32 %v5980_v43, %v5967_v45  ;;  %v10230_v26 = vld [vmem:[#allocation2 + $0xf0] sm:$0xf0] }
 0x35c   : > { %v12917_v0 = vor.u32 %v14824_v10, %v12916_v4  ;;  %v12340_v9 = vld [vmem:[#allocation2 + $0x1130] sm:$0xf]  ;;  %6213 = vmatpush.bf16.msrb.mxu0 %v12405_v27  ;;  %6241 = vmatpush.bf16.msrb.mxu2 %v10361_v47  ;;  %v14272_v36 = vld [vmem:[#allocation2 + $0x4b4] sm:$0xf] }
 0x35d   : > { %v14680_v51 = vld [vmem:[#allocation2 + $0x116c] sm:$0xf0]  ;;  %v6498_v50 = vmax.f32 %v5981_v14, 0.0  ;;  %v10742_v28 = vld [vmem:[#allocation2 + $0x4f0] sm:$0xf0] }
 0x35e   : > { %v12852_v54 = vld [vmem:[#allocation2 + $0x1530] sm:$0xf]  ;;  %v12341_v12 = vor.u32 %v14680_v51, %v12340_v9  ;;  %6227 = vmatpush.bf16.msrb.mxu1 %v12917_v0  ;;  %6255 = vmatpush.bf16.msrb.mxu3 %v10873_v18  ;;  %v14128_v25 = vld [vmem:[#allocation2 + $0x34] sm:$0xf]  ;;  %v10745_v42 = vor.u32 %v14272_v36, %v10742_v28 }
 0x35f   : > { %v14808_v61 = vld [vmem:[#allocation2 + $0x156c] sm:$0xf0]  ;;  %v15965_v9 = vpack.c.bf16 %v6498_v50, %v6497_v21  ;;  %v10166_v45 = vld [vmem:[#allocation2 + $0x70] sm:$0xf0] }
 0x360   : > { %v12853_v58 = vor.u32 %v14808_v61, %v12852_v54  ;;  %v12276_v7 = vld [vmem:[#allocation2 + $0x10b0] sm:$0xf]  ;;  %6214 = vmatpush.bf16.msrb.mxu0 %v12341_v12  ;;  %6242 = vmatpush.bf16.msrb.mxu2 %v10297_v52  ;;  %v10233_v54 = vor.u32 %v14144_v48, %v10230_v26  ;;  %v14256_v11 = vld [vmem:[#allocation2 + $0x434] sm:$0xf]  ;;  %v10169_v52 = vor.u32 %v14128_v25, %v10166_v45 }
 0x361   : > { %v14664_v34 = vld [vmem:[#allocation2 + $0x10ec] sm:$0xf0]  ;;  %18019 = vst [vmem:[#allocation62_spill] sm:$0xff] %v15965_v9  ;;  %v10678_v43 = vld [vmem:[#allocation2 + $0x470] sm:$0xf0] }
 0x362   : > { %v12788_v4 = vld [vmem:[#allocation2 + $0x14b0] sm:$0xf]  ;;  %v12277_v27 = vor.u32 %v14664_v34, %v12276_v7  ;;  %6228 = vmatpush.bf16.msrb.mxu1 %v12853_v58  ;;  %6256 = vmatpush.bf16.msrb.mxu3 %v10809_v29  ;;  %v14496_v44 = vld [vmem:[#allocation2 + $0xbb4] sm:$0xf]  ;;  %v10681_v29 = vor.u32 %v14256_v11, %v10678_v43 }
 0x363   : > { %v14792_v10 = vld [vmem:[#allocation2 + $0x14ec] sm:$0xf0]  ;;  %v11638_v2 = vld [vmem:[#allocation2 + $0xbf0] sm:$0xf0] }
 0x364   : > { %v12212_v0 = vld [vmem:[#allocation2 + $0x1030] sm:$0xf]  ;;  %v12789_v51 = vor.u32 %v14792_v10, %v12788_v4  ;;  %v14624_v12 = vld [vmem:[#allocation2 + $0xfb4] sm:$0xf]  ;;  %6215 = vmatpush.bf16.msrb.mxu0 %v12277_v27  ;;  %6243 = vmatpush.bf16.msrb.mxu2 %v10233_v54  ;;  %v11641_v48 = vor.u32 %v14496_v44, %v11638_v2 }
 0x365   : > { %v14648_v47 = vld [vmem:[#allocation2 + $0x106c] sm:$0xf0]  ;;  %v12150_v7 = vld [vmem:[#allocation2 + $0xff0] sm:$0xf0] }
 0x366   : > { %v12724_v18 = vld [vmem:[#allocation2 + $0x1430] sm:$0xf]  ;;  %v12213_v14 = vor.u32 %v14648_v47, %v12212_v0  ;;  %v14752_v34 = vld [vmem:[#allocation2 + $0x13b4] sm:$0xf]  ;;  %6229 = vmatpush.bf16.msrb.mxu1 %v12789_v51  ;;  %6257 = vmatpush.bf16.msrb.mxu3 %v10745_v42  ;;  %v12153_v26 = vor.u32 %v14624_v12, %v12150_v7 }
 0x367   : > { %v14776_v61 = vld [vmem:[#allocation2 + $0x146c] sm:$0xf0]  ;;  %v12662_v21 = vld [vmem:[#allocation2 + $0x13f0] sm:$0xf0] }
 0x368   : > { %v12725_v58 = vor.u32 %v14776_v61, %v12724_v18  ;;  %v14880_v4 = vld [vmem:[#allocation2 + $0x17b4] sm:$0xf]  ;;  %v12665_v50 = vor.u32 %v14752_v34, %v12662_v21  ;;  %6216 = vmatpush.bf16.msrb.mxu0 %v12213_v14  ;;  %6244 = vmatpush.bf16.msrb.mxu2 %v10169_v52  ;;  %v15969_v61 = vpop.f32.mrf.mxu1 }
 0x369   : > { %v13174_v10 = vld [vmem:[#allocation2 + $0x17f0] sm:$0xf0]  ;;  %18021 = vst [vmem:[#allocation64_spill] sm:$0xff] %v15969_v61  ;;  %v14233_v61 = vld [vmem:[#allocation2 + $0x374] sm:$0xf0] }
 0x36a   : > { %v14480_v36 = vld [vmem:[#allocation2 + $0xb34] sm:$0xf]  ;;  %v13177_v27 = vor.u32 %v14880_v4, %v13174_v10  ;;  %6230 = vmatpush.bf16.msrb.mxu1 %v12725_v58  ;;  %6258 = vmatpush.bf16.msrb.mxu3 %v10681_v29  ;;  %v15976_v29 = vpop.f32.mrf.mxu2 }
 0x36b   : > { %v11574_v28 = vld [vmem:[#allocation2 + $0xb70] sm:$0xf0]  ;;  %6217 = vmatmul.bf16.vlgmr.msrb.gmra.mxu0 %v15686_v35  ;;  %6245 = vmatmul.bf16.vlgmr.msrb.gmra.mxu2 %v15664_v57  ;;  %18022 = vst [vmem:[#allocation65_spill] sm:$0xff] %v15976_v29  ;;  %v10556_v29 = vld [vmem:[#allocation2 + $0x338] sm:$0xf] }
 0x36c   : > { %v14608_v9 = vld [vmem:[#allocation2 + $0xf34] sm:$0xf]  ;;  %6265 = vmatpush.bf16.msra.mxu0 %v11641_v48  ;;  %v11577_v18 = vor.u32 %v14480_v36, %v11574_v28  ;;  %6293 = vmatpush.bf16.msra.mxu2 %v12665_v50 }
 0x36d   : > { %v12086_v0 = vld [vmem:[#allocation2 + $0xf70] sm:$0xf0]  ;;  %6231 = vmatmul.bf16.vlgmr.msrb.gmra.mxu1 %v15688_v39  ;;  %6259 = vmatmul.bf16.vlgmr.msrb.gmra.mxu3 %v15669_v6 }
 0x36e   : > { %v14736_v47 = vld [vmem:[#allocation2 + $0x1334] sm:$0xf]  ;;  %6279 = vmatpush.bf16.msra.mxu1 %v12153_v26  ;;  %v12089_v25 = vor.u32 %v14608_v9, %v12086_v0  ;;  %6307 = vmatpush.bf16.msra.mxu3 %v13177_v27  ;;  %v5994_v0 = vpop.f32.mrf.mxu0 }
 0x36f   : > { %v14864_v51 = vld [vmem:[#allocation2 + $0x1734] sm:$0xf]  ;;  %v12601_v42 = vor.u32 %v14736_v47, %v12598_v56  ;;  %v17751_v56 = vperm.slane %v15916_v16, 2  ;;  %v15978_v47 = vpop.f32.mrf.mxu3 }
 0x370   : > { %v13110_v54 = vld [vmem:[#allocation2 + $0x1770] sm:$0xf0]  ;;  %6266 = vmatpush.bf16.msra.mxu0 %v11577_v18  ;;  %18023 = vst [vmem:[#allocation66_spill] sm:$0xff] %v15978_v47 }
 0x371   : > { %v14464_v45 = vld [vmem:[#allocation2 + $0xab4] sm:$0xf]  ;;  %v13113_v44 = vor.u32 %v14864_v51, %v13110_v54  ;;  %6294 = vmatpush.bf16.msra.mxu2 %v12601_v42  ;;  %v5995_v54 = vadd.f32 %v5994_v0, %v17751_v56 }
 0x372   : > { %v11510_v11 = vld [vmem:[#allocation2 + $0xaf0] sm:$0xf0]  ;;  %6280 = vmatpush.bf16.msra.mxu1 %v12089_v25 }
 0x373   : > { %v14592_v43 = vld [vmem:[#allocation2 + $0xeb4] sm:$0xf]  ;;  %v11513_v21 = vor.u32 %v14464_v45, %v11510_v11  ;;  %6308 = vmatpush.bf16.msra.mxu3 %v13113_v44 }
 0x374   : > { %v12022_v2 = vld [vmem:[#allocation2 + $0xef0] sm:$0xf0] }
 0x375   : > { %v14720_v12 = vld [vmem:[#allocation2 + $0x12b4] sm:$0xf]  ;;  %v12025_v9 = vor.u32 %v14592_v43, %v12022_v2  ;;  %6267 = vmatpush.bf16.msra.mxu0 %v11513_v21  ;;  %v6008_v43 = vpop.f32.mrf.mxu1 }
 0x376   : > { %v12534_v14 = vld [vmem:[#allocation2 + $0x12f0] sm:$0xf0] }
 0x377   : > { %v14848_v7 = vld [vmem:[#allocation2 + $0x16b4] sm:$0xf]  ;;  %v12537_v58 = vor.u32 %v14720_v12, %v12534_v14  ;;  %6281 = vmatpush.bf16.msra.mxu1 %v12025_v9 }
 0x378   : > { %v13046_v34 = vld [vmem:[#allocation2 + $0x16f0] sm:$0xf0] }
 0x379   : > { %v14448_v52 = vld [vmem:[#allocation2 + $0xa34] sm:$0xf]  ;;  %v13049_v48 = vor.u32 %v14848_v7, %v13046_v34  ;;  %6295 = vmatpush.bf16.msra.mxu2 %v12537_v58  ;;  %v6009_v7 = vadd.f32 %v6008_v43, %v5995_v54 }
 0x37a   : > { %v11446_v4 = vld [vmem:[#allocation2 + $0xa70] sm:$0xf0] }
 0x37b   : > { %v14576_v10 = vld [vmem:[#allocation2 + $0xe34] sm:$0xf]  ;;  %v11449_v51 = vor.u32 %v14448_v52, %v11446_v4  ;;  %6309 = vmatpush.bf16.msra.mxu3 %v13049_v48 }
 0x37c   : > { %v11958_v26 = vld [vmem:[#allocation2 + $0xe70] sm:$0xf0] }
 0x37d   : > { %v14704_v50 = vld [vmem:[#allocation2 + $0x1234] sm:$0xf]  ;;  %v11961_v18 = vor.u32 %v14576_v10, %v11958_v26  ;;  %6268 = vmatpush.bf16.msra.mxu0 %v11449_v51  ;;  %v6036_v51 = vpop.f32.mrf.mxu3 }
 0x37e   : > { %v12470_v36 = vld [vmem:[#allocation2 + $0x1270] sm:$0xf0] }
 0x37f   : > { %v14832_v28 = vld [vmem:[#allocation2 + $0x1634] sm:$0xf]  ;;  %v12473_v25 = vor.u32 %v14704_v50, %v12470_v36  ;;  %6282 = vmatpush.bf16.msra.mxu1 %v11961_v18 }
 0x380   : > { %v12982_v27 = vld [vmem:[#allocation2 + $0x1670] sm:$0xf0] }
 0x381   : > { %v14432_v42 = vld [vmem:[#allocation2 + $0x9b4] sm:$0xf]  ;;  %v12985_v44 = vor.u32 %v14832_v28, %v12982_v27  ;;  %6296 = vmatpush.bf16.msra.mxu2 %v12473_v25  ;;  %v6022_v27 = vpop.f32.mrf.mxu2 }
 0x382   : > { %v11382_v45 = vld [vmem:[#allocation2 + $0x9f0] sm:$0xf0]  ;;  %v6023_v54 = vadd.f32 %v6022_v27, %v6009_v7  ;;  %v10620_v27 = vld [vmem:[#allocation2 + $0x3b8] sm:$0xf] }
 0x383   : > { %v14560_v11 = vld [vmem:[#allocation2 + $0xdb4] sm:$0xf]  ;;  %v11385_v52 = vor.u32 %v14432_v42, %v11382_v45  ;;  %6310 = vmatpush.bf16.msra.mxu3 %v12985_v44 }
 0x384   : > { %v11894_v2 = vld [vmem:[#allocation2 + $0xdf0] sm:$0xf0] }
 0x385   : > { %v14688_v12 = vld [vmem:[#allocation2 + $0x11b4] sm:$0xf]  ;;  %v11897_v9 = vor.u32 %v14560_v11, %v11894_v2  ;;  %6269 = vmatpush.bf16.msra.mxu0 %v11385_v52  ;;  %v15982_v2 = vadd.f32 %v6036_v51, %v6023_v54  ;;  %v11132_v54 = vld [vmem:[#allocation2 + $0x7b8] sm:$0xf] }
 0x386   : > { %v12406_v14 = vld [vmem:[#allocation2 + $0x11f0] sm:$0xf0]  ;;  %v14377_v51 = vld [vmem:[#allocation2 + $0x7f4] sm:$0xf0] }
 0x387   : > { %v14816_v34 = vld [vmem:[#allocation2 + $0x15b4] sm:$0xf]  ;;  %v12409_v58 = vor.u32 %v14688_v12, %v12406_v14  ;;  %6283 = vmatpush.bf16.msra.mxu1 %v11897_v9 }
 0x388   : > { %v12918_v21 = vld [vmem:[#allocation2 + $0x15f0] sm:$0xf0] }
 0x389   : > { %v14416_v4 = vld [vmem:[#allocation2 + $0x934] sm:$0xf]  ;;  %v12921_v50 = vor.u32 %v14816_v34, %v12918_v21  ;;  %6297 = vmatpush.bf16.msra.mxu2 %v12409_v58 }
 0x38a   : > { %v11318_v10 = vld [vmem:[#allocation2 + $0x970] sm:$0xf0] }
 0x38b   : > { %v14544_v26 = vld [vmem:[#allocation2 + $0xd34] sm:$0xf]  ;;  %v11321_v43 = vor.u32 %v14416_v4, %v11318_v10  ;;  %6311 = vmatpush.bf16.msra.mxu3 %v12921_v50 }
 0x38c   : > { %v11830_v36 = vld [vmem:[#allocation2 + $0xd70] sm:$0xf0] }
 0x38d   : > { %v14672_v48 = vld [vmem:[#allocation2 + $0x1134] sm:$0xf]  ;;  %v11833_v18 = vor.u32 %v14544_v26, %v11830_v36  ;;  %6270 = vmatpush.bf16.msra.mxu0 %v11321_v43 }
 0x38e   : > { %v12342_v28 = vld [vmem:[#allocation2 + $0x1170] sm:$0xf0] }
 0x38f   : > { %v14800_v0 = vld [vmem:[#allocation2 + $0x1534] sm:$0xf]  ;;  %v12345_v25 = vor.u32 %v14672_v48, %v12342_v28  ;;  %6284 = vmatpush.bf16.msra.mxu1 %v11833_v18 }
 0x390   : > { %v12854_v56 = vld [vmem:[#allocation2 + $0x1570] sm:$0xf0] }
 0x391   : > { %v14400_v42 = vld [vmem:[#allocation2 + $0x8b4] sm:$0xf]  ;;  %v12857_v44 = vor.u32 %v14800_v0, %v12854_v56  ;;  %6298 = vmatpush.bf16.msra.mxu2 %v12345_v25  ;;  %v14249_v0 = vld [vmem:[#allocation2 + $0x3f4] sm:$0xf0] }
 0x392   : > { %v11254_v45 = vld [vmem:[#allocation2 + $0x8f0] sm:$0xf0] }
 0x393   : > { %v14528_v11 = vld [vmem:[#allocation2 + $0xcb4] sm:$0xf]  ;;  %v11257_v7 = vor.u32 %v14400_v42, %v11254_v45  ;;  %6312 = vmatpush.bf16.msra.mxu3 %v12857_v44  ;;  %v11644_v42 = vld [vmem:[#allocation2 + $0xbb8] sm:$0xf] }
 0x394   : > { %v11766_v12 = vld [vmem:[#allocation2 + $0xcf0] sm:$0xf0]  ;;  %v14505_v45 = vld [vmem:[#allocation2 + $0xbf4] sm:$0xf0] }
 0x395   : > { %v14656_v14 = vld [vmem:[#allocation2 + $0x10b4] sm:$0xf]  ;;  %v11769_v9 = vor.u32 %v14528_v11, %v11766_v12  ;;  %6271 = vmatpush.bf16.msra.mxu0 %v11257_v7  ;;  %v12156_v11 = vld [vmem:[#allocation2 + $0xfb8] sm:$0xf] }
 0x396   : > { %v12278_v34 = vld [vmem:[#allocation2 + $0x10f0] sm:$0xf0]  ;;  %v14633_v12 = vld [vmem:[#allocation2 + $0xff4] sm:$0xf0] }
 0x397   : > { %v14784_v21 = vld [vmem:[#allocation2 + $0x14b4] sm:$0xf]  ;;  %v12281_v58 = vor.u32 %v14656_v14, %v12278_v34  ;;  %6285 = vmatpush.bf16.msra.mxu1 %v11769_v9  ;;  %v11133_v14 = vor.u32 %v14377_v51, %v11132_v54  ;;  %v11645_v34 = vor.u32 %v14505_v45, %v11644_v42  ;;  %v11068_v7 = vld [vmem:[#allocation2 + $0x738] sm:$0xf] }
 0x398   : > { %v12790_v47 = vld [vmem:[#allocation2 + $0x14f0] sm:$0xf0]  ;;  %v14489_v9 = vld [vmem:[#allocation2 + $0xb74] sm:$0xf0] }
 0x399   : > { %v14384_v52 = vld [vmem:[#allocation2 + $0x834] sm:$0xf]  ;;  %v12793_v48 = vor.u32 %v14784_v21, %v12790_v47  ;;  %6299 = vmatpush.bf16.msra.mxu2 %v12281_v58  ;;  %v10621_v47 = vor.u32 %v14249_v0, %v10620_v27  ;;  %v15984_v21 = vpop.f32.mrf.mxu0  ;;  %v12092_v58 = vld [vmem:[#allocation2 + $0xf38] sm:$0xf] }
 0x39a   : > { %v11190_v4 = vld [vmem:[#allocation2 + $0x870] sm:$0xf0]  ;;  %18024 = vst [vmem:[#allocation67_spill] sm:$0xff] %v15984_v21  ;;  %v11004_v27 = vld [vmem:[#allocation2 + $0x6b8] sm:$0xf] }
 0x39b   : > { %v14512_v10 = vld [vmem:[#allocation2 + $0xc34] sm:$0xf]  ;;  %v11193_v43 = vor.u32 %v14384_v52, %v11190_v4  ;;  %6313 = vmatpush.bf16.msra.mxu3 %v12793_v48  ;;  %v12157_v52 = vor.u32 %v14633_v12, %v12156_v11  ;;  %v14361_v4 = vld [vmem:[#allocation2 + $0x774] sm:$0xf0] }
 0x39c   : > { %v11702_v26 = vld [vmem:[#allocation2 + $0xc70] sm:$0xf0]  ;;  %v11069_v48 = vor.u32 %v14361_v4, %v11068_v7  ;;  %v14345_v54 = vld [vmem:[#allocation2 + $0x6f4] sm:$0xf0] }
 0x39d   : > { %v14640_v36 = vld [vmem:[#allocation2 + $0x1034] sm:$0xf]  ;;  %v11705_v18 = vor.u32 %v14512_v10, %v11702_v26  ;;  %6272 = vmatpush.bf16.msra.mxu0 %v11193_v43  ;;  %v14617_v10 = vld [vmem:[#allocation2 + $0xf74] sm:$0xf0]  ;;  %v15986_v26 = vpop.f32.mrf.mxu1 }
 0x39e   : > { %v12214_v50 = vld [vmem:[#allocation2 + $0x1070] sm:$0xf0]  ;;  %18025 = vst [vmem:[#allocation68_spill] sm:$0xff] %v15986_v26  ;;  %v12093_v0 = vor.u32 %v14617_v10, %v12092_v58  ;;  %v11516_v43 = vld [vmem:[#allocation2 + $0xab8] sm:$0xf]  ;;  %v15995_v10 = vpop.f32.mrf.mxu3 }
 0x39f   : > { %v14768_v56 = vld [vmem:[#allocation2 + $0x1434] sm:$0xf]  ;;  %v12217_v25 = vor.u32 %v14640_v36, %v12214_v50  ;;  %6286 = vmatpush.bf16.msra.mxu1 %v11705_v18  ;;  %v10557_v36 = vor.u32 %v14233_v61, %v10556_v29  ;;  %v11581_v50 = vor.u32 %v14489_v9, %v11580_v49  ;;  %v14473_v51 = vld [vmem:[#allocation2 + $0xaf4] sm:$0xf0]  ;;  %v11005_v29 = vor.u32 %v14345_v54, %v11004_v27 }
 0x3a0   : > { %v12726_v28 = vld [vmem:[#allocation2 + $0x1470] sm:$0xf0]  ;;  %6273 = vmatmul.bf16.vlgmr.msra.gmra.mxu0 %v15676_v22  ;;  %v12028_v42 = vld [vmem:[#allocation2 + $0xeb8] sm:$0xf]  ;;  %v11517_v45 = vor.u32 %v14473_v51, %v11516_v43  ;;  %18027 = vst [vmem:[#allocation70_spill] sm:$0xff] %v15995_v10 }
 0x3a1   : > { %v12729_v44 = vor.u32 %v14768_v56, %v12726_v28  ;;  %6300 = vmatpush.bf16.msra.mxu2 %v12217_v25  ;;  %6321 = vmatpush.bf16.msrb.mxu0 %v10621_v47  ;;  %v10492_v56 = vld [vmem:[#allocation2 + $0x2b8] sm:$0xf]  ;;  %v6050_v7 = vpop.f32.mrf.mxu0 }
 0x3a2   : > { %v14217_v28 = vld [vmem:[#allocation2 + $0x2f4] sm:$0xf0]  ;;  %6287 = vmatmul.bf16.vlgmr.msra.gmra.mxu1 %v15678_v23  ;;  %v6051_v9 = vadd.f32 %v6050_v7, %v15982_v2 }
 0x3a3   : > { %6314 = vmatpush.bf16.msra.mxu3 %v12729_v44  ;;  %6335 = vmatpush.bf16.msrb.mxu1 %v11133_v14  ;;  %v14601_v61 = vld [vmem:[#allocation2 + $0xef4] sm:$0xf0]  ;;  %v10493_v49 = vor.u32 %v14217_v28, %v10492_v56 }
 0x3a4   : > { %6301 = vmatmul.bf16.vlgmr.msra.gmra.mxu2 %v15686_v35  ;;  %v10428_v18 = vld [vmem:[#allocation2 + $0x238] sm:$0xf]  ;;  %v12029_v12 = vor.u32 %v14601_v61, %v12028_v42 }
 0x3a5   : > { %6349 = vmatpush.bf16.msrb.mxu2 %v11645_v34  ;;  %6322 = vmatpush.bf16.msrb.mxu0 %v10557_v36  ;;  %v14201_v25 = vld [vmem:[#allocation2 + $0x274] sm:$0xf0]  ;;  %v15992_v34 = vpop.f32.mrf.mxu2 }
 0x3a6   : > { %6315 = vmatmul.bf16.vlgmr.msra.gmra.mxu3 %v15688_v39  ;;  %v10940_v11 = vld [vmem:[#allocation2 + $0x638] sm:$0xf]  ;;  %18026 = vst [vmem:[#allocation69_spill] sm:$0xff] %v15992_v34  ;;  %v10429_v58 = vor.u32 %v14201_v25, %v10428_v18 }
 0x3a7   : > { %6363 = vmatpush.bf16.msrb.mxu3 %v12157_v52  ;;  %6336 = vmatpush.bf16.msrb.mxu1 %v11069_v48  ;;  %v14329_v44 = vld [vmem:[#allocation2 + $0x674] sm:$0xf0] }
 0x3a8   : > { %v11452_v47 = vld [vmem:[#allocation2 + $0xa38] sm:$0xf]  ;;  %v10941_v36 = vor.u32 %v14329_v44, %v10940_v11 }
 0x3a9   : > { %6350 = vmatpush.bf16.msrb.mxu2 %v11581_v50  ;;  %v14457_v14 = vld [vmem:[#allocation2 + $0xa74] sm:$0xf0]  ;;  %6323 = vmatpush.bf16.msrb.mxu0 %v10493_v49  ;;  %v6064_v50 = vpop.f32.mrf.mxu1  ;;  %v15999_v49 = vld [vmem:[#allocation4 + $0x8] sm:$0xff]  ;;  %v16006_v16 = vpop.f32.mrf.mxu0 }
 0x3aa   : > { %v11964_v52 = vld [vmem:[#allocation2 + $0xe38] sm:$0xf]  ;;  %v11453_v48 = vor.u32 %v14457_v14, %v11452_v47  ;;  %v15997_v54 = vadd.f32 %v6064_v50, %v6051_v9  ;;  %18028 = vst [vmem:[#allocation71_spill] sm:$0xff] %v15999_v49 }
 0x3ab   : > { %6364 = vmatpush.bf16.msrb.mxu3 %v12093_v0  ;;  %v14585_v4 = vld [vmem:[#allocation2 + $0xe74] sm:$0xf0]  ;;  %6337 = vmatpush.bf16.msrb.mxu1 %v11005_v29  ;;  %v17752_v29 = vperm.slane %v15999_v49, 3  ;;  %18029 = vst [vmem:[#allocation72_spill] sm:$0xff] %v16006_v16 }
 0x3ac   : > { %v10364_v56 = vld [vmem:[#allocation2 + $0x1b8] sm:$0xf]  ;;  %v11965_v0 = vor.u32 %v14585_v4, %v11964_v52 }
 0x3ad   : > { %6351 = vmatpush.bf16.msrb.mxu2 %v11517_v45  ;;  %v14185_v28 = vld [vmem:[#allocation2 + $0x1f4] sm:$0xf0]  ;;  %6324 = vmatpush.bf16.msrb.mxu0 %v10429_v58  ;;  %v6078_v4 = vpop.f32.mrf.mxu2 }
 0x3ae   : > { %v10876_v27 = vld [vmem:[#allocation2 + $0x5b8] sm:$0xf]  ;;  %v10365_v45 = vor.u32 %v14185_v28, %v10364_v56  ;;  %v6079_v10 = vadd.f32 %v6078_v4, %v17752_v29  ;;  %v10622_v29 = vld [vmem:[#allocation2 + $0x3f8] sm:$0xf0] }
 0x3af   : > { %6365 = vmatpush.bf16.msrb.mxu3 %v12029_v12  ;;  %v14313_v43 = vld [vmem:[#allocation2 + $0x5f4] sm:$0xf0]  ;;  %6338 = vmatpush.bf16.msrb.mxu1 %v10941_v36  ;;  %v6092_v36 = vpop.f32.mrf.mxu3 }
 0x3b0   : > { %v11388_v51 = vld [vmem:[#allocation2 + $0x9b8] sm:$0xf]  ;;  %v10877_v18 = vor.u32 %v14313_v43, %v10876_v27  ;;  %v16004_v43 = vadd.f32 %v6092_v36, %v6079_v10 }
 0x3b1   : > { %v14441_v42 = vld [vmem:[#allocation2 + $0x9f4] sm:$0xf0]  ;;  %6352 = vmatpush.bf16.msrb.mxu2 %v11453_v48  ;;  %6325 = vmatpush.bf16.msrb.mxu0 %v10365_v45 }
 0x3b2   : > { %v11900_v61 = vld [vmem:[#allocation2 + $0xdb8] sm:$0xf]  ;;  %v11389_v25 = vor.u32 %v14441_v42, %v11388_v51 }
 0x3b3   : > { %v14569_v2 = vld [vmem:[#allocation2 + $0xdf4] sm:$0xf0]  ;;  %6366 = vmatpush.bf16.msrb.mxu3 %v11965_v0  ;;  %6339 = vmatpush.bf16.msrb.mxu1 %v10877_v18 }
 0x3b4   : > { %v10300_v11 = vld [vmem:[#allocation2 + $0x138] sm:$0xf]  ;;  %v11901_v47 = vor.u32 %v14569_v2, %v11900_v61 }
 0x3b5   : > { %v14169_v12 = vld [vmem:[#allocation2 + $0x174] sm:$0xf0]  ;;  %6353 = vmatpush.bf16.msrb.mxu2 %v11389_v25 }
 0x3b6   : > { %v10812_v44 = vld [vmem:[#allocation2 + $0x538] sm:$0xf]  ;;  %v10301_v58 = vor.u32 %v14169_v12, %v10300_v11 }
 0x3b7   : > { %v14297_v14 = vld [vmem:[#allocation2 + $0x574] sm:$0xf0]  ;;  %6367 = vmatpush.bf16.msrb.mxu3 %v11901_v47 }
 0x3b8   : > { %v11324_v7 = vld [vmem:[#allocation2 + $0x938] sm:$0xf]  ;;  %v10813_v48 = vor.u32 %v14297_v14, %v10812_v44  ;;  %6326 = vmatpush.bf16.msrb.mxu0 %v10301_v58 }
 0x3b9   : > { %v14425_v52 = vld [vmem:[#allocation2 + $0x974] sm:$0xf0] }
 0x3ba   : > { %v11836_v9 = vld [vmem:[#allocation2 + $0xd38] sm:$0xf]  ;;  %v11325_v56 = vor.u32 %v14425_v52, %v11324_v7  ;;  %6340 = vmatpush.bf16.msrb.mxu1 %v10813_v48 }
 0x3bb   : > { %v14553_v50 = vld [vmem:[#allocation2 + $0xd74] sm:$0xf0] }
 0x3bc   : > { %v10236_v28 = vld [vmem:[#allocation2 + $0xb8] sm:$0xf]  ;;  %v11837_v51 = vor.u32 %v14553_v50, %v11836_v9  ;;  %6354 = vmatpush.bf16.msrb.mxu2 %v11325_v56 }
 0x3bd   : > { %v14153_v27 = vld [vmem:[#allocation2 + $0xf4] sm:$0xf0] }
 0x3be   : > { %v10748_v0 = vld [vmem:[#allocation2 + $0x4b8] sm:$0xf]  ;;  %v10237_v45 = vor.u32 %v14153_v27, %v10236_v28  ;;  %6368 = vmatpush.bf16.msrb.mxu3 %v11837_v51  ;;  %v14241_v27 = vld [vmem:[#allocation2 + $0x3bc] sm:$0xf] }
 0x3bf   : > { %v14281_v42 = vld [vmem:[#allocation2 + $0x4f4] sm:$0xf0] }
 0x3c0   : > { %v11260_v61 = vld [vmem:[#allocation2 + $0x8b8] sm:$0xf]  ;;  %v10749_v18 = vor.u32 %v14281_v42, %v10748_v0  ;;  %6327 = vmatpush.bf16.msrb.mxu0 %v10237_v45  ;;  %v14369_v0 = vld [vmem:[#allocation2 + $0x7bc] sm:$0xf] }
 0x3c1   : > { %v14409_v2 = vld [vmem:[#allocation2 + $0x8f4] sm:$0xf0]  ;;  %v11134_v42 = vld [vmem:[#allocation2 + $0x7f8] sm:$0xf0] }
 0x3c2   : > { %v11772_v34 = vld [vmem:[#allocation2 + $0xcb8] sm:$0xf]  ;;  %v11261_v25 = vor.u32 %v14409_v2, %v11260_v61  ;;  %6341 = vmatpush.bf16.msrb.mxu1 %v10749_v18  ;;  %v10625_v61 = vor.u32 %v14241_v27, %v10622_v29  ;;  %v11137_v45 = vor.u32 %v14369_v0, %v11134_v42  ;;  %v14353_v18 = vld [vmem:[#allocation2 + $0x73c] sm:$0xf] }
 0x3c3   : > { %v14537_v26 = vld [vmem:[#allocation2 + $0xcf4] sm:$0xf0] }
 0x3c4   : > { %v10172_v11 = vld [vmem:[#allocation2 + $0x38] sm:$0xf]  ;;  %v11773_v10 = vor.u32 %v14537_v26, %v11772_v34  ;;  %6355 = vmatpush.bf16.msrb.mxu2 %v11261_v25  ;;  %v11070_v25 = vld [vmem:[#allocation2 + $0x778] sm:$0xf0] }
 0x3c5   : > { %v14137_v12 = vld [vmem:[#allocation2 + $0x74] sm:$0xf0] }
 0x3c6   : > { %v10684_v44 = vld [vmem:[#allocation2 + $0x438] sm:$0xf]  ;;  %v10173_v58 = vor.u32 %v14137_v12, %v10172_v11  ;;  %6369 = vmatpush.bf16.msrb.mxu3 %v11773_v10  ;;  %v14225_v12 = vld [vmem:[#allocation2 + $0x33c] sm:$0xf] }
 0x3c7   : > { %v14265_v14 = vld [vmem:[#allocation2 + $0x474] sm:$0xf0] }
 0x3c8   : > { %v11196_v7 = vld [vmem:[#allocation2 + $0x838] sm:$0xf]  ;;  %v10685_v48 = vor.u32 %v14265_v14, %v10684_v44  ;;  %6328 = vmatpush.bf16.msrb.mxu0 %v10173_v58  ;;  %v16008_v14 = vpop.f32.mrf.mxu1  ;;  %v14337_v58 = vld [vmem:[#allocation2 + $0x6bc] sm:$0xf] }
 0x3c9   : > { %v14393_v47 = vld [vmem:[#allocation2 + $0x874] sm:$0xf0]  ;;  %18030 = vst [vmem:[#allocation73_spill] sm:$0xff] %v16008_v14  ;;  %v12606_v14 = vld [vmem:[#allocation2 + $0x1378] sm:$0xf0] }
 0x3ca   : > { %v11708_v52 = vld [vmem:[#allocation2 + $0xc38] sm:$0xf]  ;;  %v11197_v56 = vor.u32 %v14393_v47, %v11196_v7  ;;  %6342 = vmatpush.bf16.msrb.mxu1 %v10685_v48  ;;  %v10561_v7 = vor.u32 %v14225_v12, %v10558_v20  ;;  %v16016_v48 = vpop.f32.mrf.mxu3 }
 0x3cb   : > { %v14521_v4 = vld [vmem:[#allocation2 + $0xc74] sm:$0xf0]  ;;  %6329 = vmatmul.bf16.vlgmr.msrb.gmra.mxu0 %v15664_v57  ;;  %18032 = vst [vmem:[#allocation75_spill] sm:$0xff] %v16016_v48  ;;  %v18072_v48 = vperm.slane %v15781_v40, 3 }
 0x3cc   : > { %v12668_v9 = vld [vmem:[#allocation2 + $0x13b8] sm:$0xf]  ;;  %v11709_v51 = vor.u32 %v14521_v4, %v11708_v52  ;;  %6356 = vmatpush.bf16.msrb.mxu2 %v11197_v56  ;;  %v11073_v4 = vor.u32 %v14353_v18, %v11070_v25 }
 0x3cd   : > { %v14761_v50 = vld [vmem:[#allocation2 + $0x13f4] sm:$0xf0]  ;;  %6343 = vmatmul.bf16.vlgmr.msrb.gmra.mxu1 %v15669_v6 }
 0x3ce   : > { %v13180_v36 = vld [vmem:[#allocation2 + $0x17b8] sm:$0xf]  ;;  %v12669_v26 = vor.u32 %v14761_v50, %v12668_v9  ;;  %6370 = vmatpush.bf16.msrb.mxu3 %v11709_v51  ;;  %v14209_v50 = vld [vmem:[#allocation2 + $0x2bc] sm:$0xf] }
 0x3cf   : > { %v14889_v28 = vld [vmem:[#allocation2 + $0x17f4] sm:$0xf0]  ;;  %6357 = vmatmul.bf16.vlgmr.msrb.gmra.mxu2 %v15676_v22 }
 0x3d0   : > { %v13181_v34 = vor.u32 %v14889_v28, %v13180_v36  ;;  %v12604_v2 = vld [vmem:[#allocation2 + $0x1338] sm:$0xf]  ;;  %6377 = vmatpush.bf16.msra.mxu0 %v12669_v26  ;;  %6405 = vmatpush.bf16.msra.mxu2 %v10625_v61  ;;  %v10494_v36 = vld [vmem:[#allocation2 + $0x2f8] sm:$0xf0] }
 0x3d1   : > { %v14745_v21 = vld [vmem:[#allocation2 + $0x1374] sm:$0xf0]  ;;  %v11006_v28 = vld [vmem:[#allocation2 + $0x6f8] sm:$0xf0]  ;;  %6371 = vmatmul.bf16.vlgmr.msrb.gmra.mxu3 %v15678_v23  ;;  %v10497_v27 = vor.u32 %v14209_v50, %v10494_v36 }
 0x3d2   : > { %v14873_v11 = vld [vmem:[#allocation2 + $0x1774] sm:$0xf0]  ;;  %v12605_v44 = vor.u32 %v14745_v21, %v12604_v2  ;;  %6391 = vmatpush.bf16.msra.mxu1 %v13181_v34  ;;  %6419 = vmatpush.bf16.msra.mxu3 %v11137_v45  ;;  %v11009_v51 = vor.u32 %v14337_v58, %v11006_v28  ;;  %v14193_v34 = vld [vmem:[#allocation2 + $0x23c] sm:$0xf]  ;;  %v6106_v2 = vpop.f32.mrf.mxu0 }
 0x3d3   : > { %v13117_v29 = vor.u32 %v14873_v11, %v13116_v37  ;;  %v12540_v10 = vld [vmem:[#allocation2 + $0x12b8] sm:$0xf]  ;;  %v16013_v37 = vpop.f32.mrf.mxu2  ;;  %v10430_v61 = vld [vmem:[#allocation2 + $0x278] sm:$0xf0]  ;;  %v6107_v12 = vadd.f32 %v6106_v2, %v16004_v43 }
 0x3d4   : > { %v14729_v47 = vld [vmem:[#allocation2 + $0x12f4] sm:$0xf0]  ;;  %6378 = vmatpush.bf16.msra.mxu0 %v12605_v44  ;;  %18031 = vst [vmem:[#allocation74_spill] sm:$0xff] %v16013_v37  ;;  %6406 = vmatpush.bf16.msra.mxu2 %v10561_v7  ;;  %v14321_v45 = vld [vmem:[#allocation2 + $0x63c] sm:$0xf]  ;;  %v10433_v44 = vor.u32 %v14193_v34, %v10430_v61 }
 0x3d5   : > { %v13052_v52 = vld [vmem:[#allocation2 + $0x16b8] sm:$0xf]  ;;  %v12541_v21 = vor.u32 %v14729_v47, %v12540_v10  ;;  %v10942_v11 = vld [vmem:[#allocation2 + $0x678] sm:$0xf0]  ;;  %v13310_v37 = vld [vmem:[#allocation6 + $0xf8] sm:$0xf0] }
 0x3d6   : > { %v14857_v9 = vld [vmem:[#allocation2 + $0x16f4] sm:$0xf0]  ;;  %6392 = vmatpush.bf16.msra.mxu1 %v13117_v29  ;;  %6420 = vmatpush.bf16.msra.mxu3 %v11073_v4  ;;  %v6120_v29 = vpop.f32.mrf.mxu1  ;;  %v14177_v50 = vld [vmem:[#allocation2 + $0x1bc] sm:$0xf] }
 0x3d7   : > { %v13053_v20 = vor.u32 %v14857_v9, %v13052_v52  ;;  %v12476_v56 = vld [vmem:[#allocation2 + $0x1238] sm:$0xf]  ;;  %v10945_v52 = vor.u32 %v14321_v45, %v10942_v11  ;;  %v6121_v4 = vadd.f32 %v6120_v29, %v6107_v12  ;;  %v10366_v36 = vld [vmem:[#allocation2 + $0x1f8] sm:$0xf0]  ;;  %v6148_v45 = vpop.f32.mrf.mxu3 }
 0x3d8   : > { %v14713_v0 = vld [vmem:[#allocation2 + $0x1274] sm:$0xf0]  ;;  %6379 = vmatpush.bf16.msra.mxu0 %v12541_v21  ;;  %6407 = vmatpush.bf16.msra.mxu2 %v10497_v27  ;;  %v14305_v58 = vld [vmem:[#allocation2 + $0x5bc] sm:$0xf] }
 0x3d9   : > { %v12988_v42 = vld [vmem:[#allocation2 + $0x1638] sm:$0xf]  ;;  %v12477_v18 = vor.u32 %v14713_v0, %v12476_v56  ;;  %v10878_v28 = vld [vmem:[#allocation2 + $0x5f8] sm:$0xf0] }
 0x3da   : > { %v14841_v26 = vld [vmem:[#allocation2 + $0x1674] sm:$0xf0]  ;;  %6393 = vmatpush.bf16.msra.mxu1 %v13053_v20  ;;  %6421 = vmatpush.bf16.msra.mxu3 %v11009_v51  ;;  %v10369_v20 = vor.u32 %v14177_v50, %v10366_v36  ;;  %v14161_v34 = vld [vmem:[#allocation2 + $0x13c] sm:$0xf]  ;;  %v16022_v16 = vpop.f32.mrf.mxu0 }
 0x3db   : > { %v12989_v25 = vor.u32 %v14841_v26, %v12988_v42  ;;  %v12412_v7 = vld [vmem:[#allocation2 + $0x11b8] sm:$0xf]  ;;  %v10881_v42 = vor.u32 %v14305_v58, %v10878_v28  ;;  %v6134_v26 = vpop.f32.mrf.mxu2  ;;  %v10302_v61 = vld [vmem:[#allocation2 + $0x178] sm:$0xf0]  ;;  %18034 = vst [vmem:[#allocation77_spill] sm:$0xff] %v16022_v16 }
 0x3dc   : > { %v14697_v10 = vld [vmem:[#allocation2 + $0x11f4] sm:$0xf0]  ;;  %6380 = vmatpush.bf16.msra.mxu0 %v12477_v18  ;;  %6408 = vmatpush.bf16.msra.mxu2 %v10433_v44  ;;  %v6135_v2 = vadd.f32 %v6134_v26, %v6121_v4  ;;  %v14289_v11 = vld [vmem:[#allocation2 + $0x53c] sm:$0xf]  ;;  %v10305_v29 = vor.u32 %v14161_v34, %v10302_v61  ;;  %v6499_v4 = vmax.f32 %v15997_v54, 0.0 }
 0x3dd   : > { %v12924_v47 = vld [vmem:[#allocation2 + $0x15b8] sm:$0xf]  ;;  %v12413_v21 = vor.u32 %v14697_v10, %v12412_v7  ;;  %v10814_v12 = vld [vmem:[#allocation2 + $0x578] sm:$0xf0]  ;;  %v13564_v16 = vld [vmem:[#allocation6 + $0x2f0] sm:$0xf] }
 0x3de   : > { %v14825_v9 = vld [vmem:[#allocation2 + $0x15f4] sm:$0xf0]  ;;  %6394 = vmatpush.bf16.msra.mxu1 %v12989_v25  ;;  %6422 = vmatpush.bf16.msra.mxu3 %v10945_v52  ;;  %v6149_v25 = vadd.f32 %v6148_v45, %v6135_v2  ;;  %v10817_v52 = vor.u32 %v14289_v11, %v10814_v12  ;;  %v14145_v50 = vld [vmem:[#allocation2 + $0xbc] sm:$0xf] }
 0x3df   : > { %v12925_v43 = vor.u32 %v14825_v9, %v12924_v47  ;;  %v12348_v27 = vld [vmem:[#allocation2 + $0x1138] sm:$0xf]  ;;  %v10238_v36 = vld [vmem:[#allocation2 + $0xf8] sm:$0xf0] }
 0x3e0   : > { %v14681_v56 = vld [vmem:[#allocation2 + $0x1174] sm:$0xf0]  ;;  %6381 = vmatpush.bf16.msra.mxu0 %v12413_v21  ;;  %6409 = vmatpush.bf16.msra.mxu2 %v10369_v20  ;;  %v6500_v58 = vmax.f32 %v6149_v25, 0.0  ;;  %v14273_v28 = vld [vmem:[#allocation2 + $0x4bc] sm:$0xf] }
 0x3e1   : > { %v12860_v0 = vld [vmem:[#allocation2 + $0x1538] sm:$0xf]  ;;  %v12349_v18 = vor.u32 %v14681_v56, %v12348_v27  ;;  %v10750_v26 = vld [vmem:[#allocation2 + $0x4f8] sm:$0xf0] }
 0x3e2   : > { %v14809_v51 = vld [vmem:[#allocation2 + $0x1574] sm:$0xf0]  ;;  %6395 = vmatpush.bf16.msra.mxu1 %v12925_v43  ;;  %6423 = vmatpush.bf16.msra.mxu3 %v10881_v42  ;;  %v16020_v27 = vpack.c.bf16 %v6500_v58, %v6499_v4  ;;  %v14129_v34 = vld [vmem:[#allocation2 + $0x3c] sm:$0xf]  ;;  %v10753_v61 = vor.u32 %v14273_v28, %v10750_v26 }
 0x3e3   : > { %v12861_v44 = vor.u32 %v14809_v51, %v12860_v0  ;;  %v12284_v7 = vld [vmem:[#allocation2 + $0x10b8] sm:$0xf]  ;;  %v10241_v0 = vor.u32 %v14145_v50, %v10238_v36  ;;  %v10174_v2 = vld [vmem:[#allocation2 + $0x78] sm:$0xf0] }
 0x3e4   : > { %v14665_v10 = vld [vmem:[#allocation2 + $0x10f4] sm:$0xf0]  ;;  %6382 = vmatpush.bf16.msra.mxu0 %v12349_v18  ;;  %18033 = vst [vmem:[#allocation76_spill] sm:$0xff] %v16020_v27  ;;  %6410 = vmatpush.bf16.msra.mxu2 %v10305_v29  ;;  %v14257_v54 = vld [vmem:[#allocation2 + $0x43c] sm:$0xf]  ;;  %v10177_v29 = vor.u32 %v14129_v34, %v10174_v2 }
 0x3e5   : > { %v12796_v47 = vld [vmem:[#allocation2 + $0x14b8] sm:$0xf]  ;;  %v12285_v21 = vor.u32 %v14665_v10, %v12284_v7  ;;  %v10686_v45 = vld [vmem:[#allocation2 + $0x478] sm:$0xf0] }
 0x3e6   : > { %v14793_v9 = vld [vmem:[#allocation2 + $0x14f4] sm:$0xf0]  ;;  %6396 = vmatpush.bf16.msra.mxu1 %v12861_v44  ;;  %6424 = vmatpush.bf16.msra.mxu3 %v10817_v52  ;;  %v14497_v11 = vld [vmem:[#allocation2 + $0xbbc] sm:$0xf]  ;;  %v10689_v52 = vor.u32 %v14257_v54, %v10686_v45 }
 0x3e7   : > { %v12220_v43 = vld [vmem:[#allocation2 + $0x1038] sm:$0xf]  ;;  %v12797_v56 = vor.u32 %v14793_v9, %v12796_v47  ;;  %v11646_v12 = vld [vmem:[#allocation2 + $0xbf8] sm:$0xf0] }
 0x3e8   : > { %v14649_v20 = vld [vmem:[#allocation2 + $0x1074] sm:$0xf0]  ;;  %v14625_v18 = vld [vmem:[#allocation2 + $0xfbc] sm:$0xf]  ;;  %6383 = vmatpush.bf16.msra.mxu0 %v12285_v21  ;;  %6411 = vmatpush.bf16.msra.mxu2 %v10241_v0  ;;  %v11649_v50 = vor.u32 %v14497_v11, %v11646_v12 }
 0x3e9   : > { %v12732_v42 = vld [vmem:[#allocation2 + $0x1438] sm:$0xf]  ;;  %v12221_v25 = vor.u32 %v14649_v20, %v12220_v43  ;;  %v12158_v7 = vld [vmem:[#allocation2 + $0xff8] sm:$0xf0] }
 0x3ea   : > { %v14777_v51 = vld [vmem:[#allocation2 + $0x1474] sm:$0xf0]  ;;  %v14753_v10 = vld [vmem:[#allocation2 + $0x13bc] sm:$0xf]  ;;  %6397 = vmatpush.bf16.msra.mxu1 %v12797_v56  ;;  %6425 = vmatpush.bf16.msra.mxu3 %v10753_v61  ;;  %v12161_v36 = vor.u32 %v14625_v18, %v12158_v7 }
 0x3eb   : > { %v12670_v4 = vld [vmem:[#allocation2 + $0x13f8] sm:$0xf0]  ;;  %v12733_v44 = vor.u32 %v14777_v51, %v12732_v42  ;;  %v16024_v51 = vpop.f32.mrf.mxu1 }
 0x3ec   : > { %v14881_v47 = vld [vmem:[#allocation2 + $0x17bc] sm:$0xf]  ;;  %v12673_v58 = vor.u32 %v14753_v10, %v12670_v4  ;;  %6384 = vmatpush.bf16.msra.mxu0 %v12221_v25  ;;  %6412 = vmatpush.bf16.msra.mxu2 %v10177_v29  ;;  %18035 = vst [vmem:[#allocation78_spill] sm:$0xff] %v16024_v51  ;;  %v14969_v51 = vld [vmem:[#allocation6 + $0x274] sm:$0xf0] }
 0x3ed   : > { %v13182_v9 = vld [vmem:[#allocation2 + $0x17f8] sm:$0xf0] }
 0x3ee   : > { %v14481_v28 = vld [vmem:[#allocation2 + $0xb3c] sm:$0xf]  ;;  %v13185_v21 = vor.u32 %v14881_v47, %v13182_v9  ;;  %6398 = vmatpush.bf16.msra.mxu1 %v12733_v44  ;;  %6426 = vmatpush.bf16.msra.mxu3 %v10689_v52  ;;  %v16031_v52 = vpop.f32.mrf.mxu2 }
 0x3ef   : > { %v11582_v26 = vld [vmem:[#allocation2 + $0xb78] sm:$0xf0]  ;;  %6385 = vmatmul.bf16.vlgmr.msra.gmra.mxu0 %v15686_v35  ;;  %6413 = vmatmul.bf16.vlgmr.msra.gmra.mxu2 %v15664_v57  ;;  %18036 = vst [vmem:[#allocation79_spill] sm:$0xff] %v16031_v52  ;;  %v13500_v52 = vld [vmem:[#allocation6 + $0x270] sm:$0xf] }
 0x3f0   : > { %v14609_v27 = vld [vmem:[#allocation2 + $0xf3c] sm:$0xf]  ;;  %6433 = vmatpush.bf16.msrb.mxu0 %v11649_v50  ;;  %v11585_v42 = vor.u32 %v14481_v28, %v11582_v26  ;;  %6461 = vmatpush.bf16.msrb.mxu2 %v12673_v58 }
 0x3f1   : > { %v12094_v43 = vld [vmem:[#allocation2 + $0xf78] sm:$0xf0]  ;;  %6399 = vmatmul.bf16.vlgmr.msra.gmra.mxu1 %v15688_v39  ;;  %6427 = vmatmul.bf16.vlgmr.msra.gmra.mxu3 %v15669_v6  ;;  %v16033_v6 = vpop.f32.mrf.mxu3 }
 0x3f2   : > { %v14737_v20 = vld [vmem:[#allocation2 + $0x133c] sm:$0xf]  ;;  %6447 = vmatpush.bf16.msrb.mxu1 %v12161_v36  ;;  %v12097_v34 = vor.u32 %v14609_v27, %v12094_v43  ;;  %6475 = vmatpush.bf16.msrb.mxu3 %v13185_v21  ;;  %v6162_v21 = vpop.f32.mrf.mxu0  ;;  %18037 = vst [vmem:[#allocation80_spill] sm:$0xff] %v16033_v6  ;;  %v14939_v6 = vld [vmem:[#allocation6 + $0x184] sm:$0xf0] }
 0x3f3   : > { %v14865_v56 = vld [vmem:[#allocation2 + $0x173c] sm:$0xf]  ;;  %v12609_v61 = vor.u32 %v14737_v20, %v12606_v14  ;;  %v17756_v14 = vperm.slane %v15999_v49, 4 }
 0x3f4   : > { %v13118_v0 = vld [vmem:[#allocation2 + $0x1778] sm:$0xf0]  ;;  %6434 = vmatpush.bf16.msrb.mxu0 %v11585_v42 }
 0x3f5   : > { %v14465_v2 = vld [vmem:[#allocation2 + $0xabc] sm:$0xf]  ;;  %v13121_v11 = vor.u32 %v14865_v56, %v13118_v0  ;;  %6462 = vmatpush.bf16.msrb.mxu2 %v12609_v61  ;;  %v6163_v20 = vadd.f32 %v6162_v21, %v17756_v14 }
 0x3f6   : > { %v11518_v54 = vld [vmem:[#allocation2 + $0xaf8] sm:$0xf0]  ;;  %6448 = vmatpush.bf16.msrb.mxu1 %v12097_v34 }
 0x3f7   : > { %v14593_v45 = vld [vmem:[#allocation2 + $0xebc] sm:$0xf]  ;;  %v11521_v4 = vor.u32 %v14465_v2, %v11518_v54  ;;  %6476 = vmatpush.bf16.msrb.mxu3 %v13121_v11  ;;  %v6176_v2 = vpop.f32.mrf.mxu1 }
 0x3f8   : > { %v12030_v12 = vld [vmem:[#allocation2 + $0xef8] sm:$0xf0] }
 0x3f9   : > { %v14721_v18 = vld [vmem:[#allocation2 + $0x12bc] sm:$0xf]  ;;  %v12033_v27 = vor.u32 %v14593_v45, %v12030_v12  ;;  %6435 = vmatpush.bf16.msrb.mxu0 %v11521_v4 }
 0x3fa   : > { %v12542_v25 = vld [vmem:[#allocation2 + $0x12f8] sm:$0xf0] }
 0x3fb   : > { %v14849_v7 = vld [vmem:[#allocation2 + $0x16bc] sm:$0xf]  ;;  %v12545_v44 = vor.u32 %v14721_v18, %v12542_v25  ;;  %6449 = vmatpush.bf16.msrb.mxu1 %v12033_v27  ;;  %v6177_v18 = vadd.f32 %v6176_v2, %v6163_v20 }
 0x3fc   : > { %v13054_v10 = vld [vmem:[#allocation2 + $0x16f8] sm:$0xf0] }
 0x3fd   : > { %v14449_v29 = vld [vmem:[#allocation2 + $0xa3c] sm:$0xf]  ;;  %v13057_v50 = vor.u32 %v14849_v7, %v13054_v10  ;;  %6463 = vmatpush.bf16.msrb.mxu2 %v12545_v44 }
 0x3fe   : > { %v11454_v47 = vld [vmem:[#allocation2 + $0xa78] sm:$0xf0] }
 0x3ff   : > { %v14577_v9 = vld [vmem:[#allocation2 + $0xe3c] sm:$0xf]  ;;  %v11457_v43 = vor.u32 %v14449_v29, %v11454_v47  ;;  %6477 = vmatpush.bf16.msrb.mxu3 %v13057_v50 }
 0x400   : > { %v11966_v36 = vld [vmem:[#allocation2 + $0xe78] sm:$0xf0] }
 0x401   : > { %v14705_v58 = vld [vmem:[#allocation2 + $0x123c] sm:$0xf]  ;;  %v11969_v56 = vor.u32 %v14577_v9, %v11966_v36  ;;  %6436 = vmatpush.bf16.msrb.mxu0 %v11457_v43  ;;  %v6204_v43 = vpop.f32.mrf.mxu3 }
 0x402   : > { %v12478_v57 = vld [vmem:[#allocation2 + $0x1278] sm:$0xf0] }
 0x403   : > { %v14833_v28 = vld [vmem:[#allocation2 + $0x163c] sm:$0xf]  ;;  %v12481_v0 = vor.u32 %v14705_v58, %v12478_v57  ;;  %6450 = vmatpush.bf16.msrb.mxu1 %v11969_v56  ;;  %v6190_v57 = vpop.f32.mrf.mxu2 }
 0x404   : > { %v12990_v26 = vld [vmem:[#allocation2 + $0x1678] sm:$0xf0]  ;;  %v6191_v21 = vadd.f32 %v6190_v57, %v6177_v18 }
 0x405   : > { %v14433_v42 = vld [vmem:[#allocation2 + $0x9bc] sm:$0xf]  ;;  %v12993_v54 = vor.u32 %v14833_v28, %v12990_v26  ;;  %6464 = vmatpush.bf16.msrb.mxu2 %v12481_v0 }
 0x406   : > { %v11390_v34 = vld [vmem:[#allocation2 + $0x9f8] sm:$0xf0]  ;;  %v16037_v2 = vadd.f32 %v6204_v43, %v6191_v21  ;;  %v13308_v21 = vld [vmem:[#allocation6 + $0xf0] sm:$0xf] }
 0x407   : > { %v14561_v61 = vld [vmem:[#allocation2 + $0xdbc] sm:$0xf]  ;;  %v11393_v10 = vor.u32 %v14433_v42, %v11390_v34  ;;  %6478 = vmatpush.bf16.msrb.mxu3 %v12993_v54 }
 0x408   : > { %v11902_v45 = vld [vmem:[#allocation2 + $0xdf8] sm:$0xf0] }
 0x409   : > { %v14689_v11 = vld [vmem:[#allocation2 + $0x11bc] sm:$0xf]  ;;  %v11905_v4 = vor.u32 %v14561_v61, %v11902_v45  ;;  %6437 = vmatpush.bf16.msrb.mxu0 %v11393_v10 }
 0x40a   : > { %v12414_v12 = vld [vmem:[#allocation2 + $0x11f8] sm:$0xf0] }
 0x40b   : > { %v14817_v25 = vld [vmem:[#allocation2 + $0x15bc] sm:$0xf]  ;;  %v12417_v27 = vor.u32 %v14689_v11, %v12414_v12  ;;  %6451 = vmatpush.bf16.msrb.mxu1 %v11905_v4 }
 0x40c   : > { %v12926_v7 = vld [vmem:[#allocation2 + $0x15f8] sm:$0xf0] }
 0x40d   : > { %v14417_v44 = vld [vmem:[#allocation2 + $0x93c] sm:$0xf]  ;;  %v12929_v9 = vor.u32 %v14817_v25, %v12926_v7  ;;  %6465 = vmatpush.bf16.msrb.mxu2 %v12417_v27 }
 0x40e   : > { %v11326_v29 = vld [vmem:[#allocation2 + $0x978] sm:$0xf0] }
 0x40f   : > { %v14545_v47 = vld [vmem:[#allocation2 + $0xd3c] sm:$0xf]  ;;  %v11329_v20 = vor.u32 %v14417_v44, %v11326_v29  ;;  %6479 = vmatpush.bf16.msrb.mxu3 %v12929_v9 }
 0x410   : > { %v11838_v36 = vld [vmem:[#allocation2 + $0xd78] sm:$0xf0] }
 0x411   : > { %v14673_v50 = vld [vmem:[#allocation2 + $0x113c] sm:$0xf]  ;;  %v11841_v56 = vor.u32 %v14545_v47, %v11838_v36  ;;  %6438 = vmatpush.bf16.msrb.mxu0 %v11329_v20  ;;  %v18038_v20 = vperm.slane %v15702_v46, 1 }
 0x412   : > { %v12350_v58 = vld [vmem:[#allocation2 + $0x1178] sm:$0xf0] }
 0x413   : > { %v14801_v28 = vld [vmem:[#allocation2 + $0x153c] sm:$0xf]  ;;  %v12353_v0 = vor.u32 %v14673_v50, %v12350_v58  ;;  %6452 = vmatpush.bf16.msrb.mxu1 %v11841_v56  ;;  %v5241_v43 = vadd.f32 %v15740_v55, %v18038_v20  ;;  %v13228_v20 = vld [vmem:[#allocation6 + $0x50] sm:$0xf] }
 0x414   : > { %v12862_v26 = vld [vmem:[#allocation2 + $0x1578] sm:$0xf0] }
 0x415   : > { %v14401_v42 = vld [vmem:[#allocation2 + $0x8bc] sm:$0xf]  ;;  %v12865_v54 = vor.u32 %v14801_v28, %v12862_v26  ;;  %6466 = vmatpush.bf16.msrb.mxu2 %v12353_v0  ;;  %v13244_v28 = vld [vmem:[#allocation6 + $0x70] sm:$0xf]  ;;  %v14905_v26 = vld [vmem:[#allocation6 + $0x74] sm:$0xf0] }
 0x416   : > { %v11262_v34 = vld [vmem:[#allocation2 + $0x8f8] sm:$0xf0]  ;;  %v14921_v0 = vld [vmem:[#allocation6 + $0xf4] sm:$0xf0]  ;;  %v16045_v14 = vor.u32 %v14905_v26, %v13244_v28 }
 0x417   : > { %v14529_v61 = vld [vmem:[#allocation2 + $0xcbc] sm:$0xf]  ;;  %v11265_v18 = vor.u32 %v14401_v42, %v11262_v34  ;;  %6480 = vmatpush.bf16.msrb.mxu3 %v12865_v54  ;;  %v13372_v42 = vld [vmem:[#allocation6 + $0x170] sm:$0xf]  ;;  %v14937_v34 = vld [vmem:[#allocation6 + $0x174] sm:$0xf0]  ;;  %v16047_v55 = vor.u32 %v14921_v0, %v13308_v21 }
 0x418   : > { %v11774_v45 = vld [vmem:[#allocation2 + $0xcf8] sm:$0xf0]  ;;  %18040 = vst [vmem:[#allocation81_spill] sm:$0xff] %v16045_v14 }
 0x419   : > { %v14657_v11 = vld [vmem:[#allocation2 + $0x10bc] sm:$0xf]  ;;  %v11777_v4 = vor.u32 %v14529_v61, %v11774_v45  ;;  %6439 = vmatpush.bf16.msrb.mxu0 %v11265_v18  ;;  %v13436_v45 = vld [vmem:[#allocation6 + $0x1f0] sm:$0xf]  ;;  %18041 = vst [vmem:[#allocation82_spill] sm:$0xff] %v16047_v55  ;;  %v16049_v18 = vor.u32 %v14937_v34, %v13372_v42 }
 0x41a   : > { %v12286_v12 = vld [vmem:[#allocation2 + $0x10f8] sm:$0xf0]  ;;  %v14917_v42 = vld [vmem:[#allocation6 + $0xd4] sm:$0xf0]  ;;  %v13356_v34 = vld [vmem:[#allocation6 + $0x150] sm:$0xf] }
 0x41b   : > { %v14785_v25 = vld [vmem:[#allocation2 + $0x14bc] sm:$0xf]  ;;  %v12289_v27 = vor.u32 %v14657_v11, %v12286_v12  ;;  %6453 = vmatpush.bf16.msrb.mxu1 %v11777_v4  ;;  %v14953_v11 = vld [vmem:[#allocation6 + $0x1f4] sm:$0xf0]  ;;  %v18039_v12 = vperm.slane %v15702_v46, 0  ;;  %18042 = vst [vmem:[#allocation83_spill] sm:$0xff] %v16049_v18 }
 0x41c   : > { %v12798_v7 = vld [vmem:[#allocation2 + $0x14f8] sm:$0xf0]  ;;  %v14903_v4 = vld [vmem:[#allocation6 + $0x64] sm:$0xf0] }
 0x41d   : > { %v14385_v10 = vld [vmem:[#allocation2 + $0x83c] sm:$0xf]  ;;  %v12801_v50 = vor.u32 %v14785_v25, %v12798_v7  ;;  %6467 = vmatpush.bf16.msrb.mxu2 %v12289_v27  ;;  %v5157_v25 = vadd.f32 %v15713_v19, %v18039_v12  ;;  %v13300_v27 = vld [vmem:[#allocation6 + $0xe0] sm:$0xf] }
 0x41e   : > { %v11198_v44 = vld [vmem:[#allocation2 + $0x878] sm:$0xf0]  ;;  %v13364_v19 = vld [vmem:[#allocation6 + $0x160] sm:$0xf] }
 0x41f   : > { %v14513_v29 = vld [vmem:[#allocation2 + $0xc3c] sm:$0xf]  ;;  %v11201_v56 = vor.u32 %v14385_v10, %v11198_v44  ;;  %6481 = vmatpush.bf16.msrb.mxu3 %v12801_v50  ;;  %v16051_v10 = vpop.f32.mrf.mxu0  ;;  %v13236_v44 = vld [vmem:[#allocation6 + $0x60] sm:$0xf]  ;;  %v14935_v50 = vld [vmem:[#allocation6 + $0x164] sm:$0xf0]  ;;  %v5171_v28 = vadd.f32 %v15715_v31, %v5157_v25 }
 0x420   : > { %v11710_v47 = vld [vmem:[#allocation2 + $0xc78] sm:$0xf0]  ;;  %18043 = vst [vmem:[#allocation84_spill] sm:$0xff] %v16051_v10  ;;  %v16060_v26 = vor.u32 %v14903_v4, %v13236_v44  ;;  %v16066_v21 = vor.u32 %v14935_v50, %v13364_v19  ;;  %v13284_v25 = vld [vmem:[#allocation6 + $0xc0] sm:$0xf] }
 0x421   : > { %v14641_v36 = vld [vmem:[#allocation2 + $0x103c] sm:$0xf]  ;;  %v11713_v61 = vor.u32 %v14513_v29, %v11710_v47  ;;  %v5255_v29 = vadd.f32 %v15743_v60, %v5241_v43  ;;  %6440 = vmatpush.bf16.msrb.mxu0 %v11201_v56  ;;  %v16054_v47 = vor.u32 %v14953_v11, %v13436_v45  ;;  %v14901_v43 = vld [vmem:[#allocation6 + $0x54] sm:$0xf0]  ;;  %v13292_v56 = vld [vmem:[#allocation6 + $0xd0] sm:$0xf]  ;;  %v5185_v11 = vadd.f32 %v15721_v59, %v5171_v28  ;;  %v16098_v28 = vpop.f32.mrf.mxu3 }
 0x422   : > { %v12222_v9 = vld [vmem:[#allocation2 + $0x1078] sm:$0xf0]  ;;  %18046 = vst [vmem:[#allocation87_spill] sm:$0xff] %v16060_v26  ;;  %v14949_v45 = vld [vmem:[#allocation6 + $0x1d4] sm:$0xf0] }
 0x423   : > { %v14769_v58 = vld [vmem:[#allocation2 + $0x143c] sm:$0xf]  ;;  %v12225_v54 = vor.u32 %v14641_v36, %v12222_v9  ;;  %18044 = vst [vmem:[#allocation85_spill] sm:$0xff] %v16054_v47  ;;  %v14919_v36 = vld [vmem:[#allocation6 + $0xe4] sm:$0xf0]  ;;  %6454 = vmatpush.bf16.msrb.mxu1 %v11713_v61  ;;  %v5269_v0 = vadd.f32 %v15749_v53, %v5255_v29  ;;  %v16078_v53 = vor.u32 %v14901_v43, %v13228_v20 }
 0x424   : > { %v12734_v57 = vld [vmem:[#allocation2 + $0x1478] sm:$0xf0]  ;;  %v13428_v9 = vld [vmem:[#allocation6 + $0x1e0] sm:$0xf]  ;;  %v16064_v60 = vor.u32 %v14919_v36, %v13300_v27  ;;  %18048 = vst [vmem:[#allocation89_spill] sm:$0xff] %v16066_v21  ;;  %6441 = vmatmul.bf16.vlgmr.msrb.gmra.mxu0 %v15676_v22  ;;  %v16082_v22 = vor.u32 %v14917_v42, %v13292_v56  ;;  %v16090_v27 = vpop.f32.mrf.mxu2  ;;  %v5199_v50 = vadd.f32 %v15724_v1, %v5185_v11 }
 0x425   : > { %v12737_v7 = vor.u32 %v14769_v58, %v12734_v57  ;;  %6468 = vmatpush.bf16.msrb.mxu2 %v12225_v54  ;;  %v14951_v58 = vld [vmem:[#allocation6 + $0x1e4] sm:$0xf0]  ;;  %v16056_v57 = vpop.f32.mrf.mxu1  ;;  %7199 = vmatpush.bf16.msra.mxu0 %v16045_v14  ;;  %v14933_v61 = vld [vmem:[#allocation6 + $0x154] sm:$0xf0]  ;;  %v13420_v54 = vld [vmem:[#allocation6 + $0x1d0] sm:$0xf] }
 0x426   : > { %18045 = vst [vmem:[#allocation86_spill] sm:$0xff] %v16056_v57  ;;  %v16071_v31 = vor.u32 %v14951_v58, %v13428_v9  ;;  %6455 = vmatmul.bf16.vlgmr.msrb.gmra.mxu1 %v15678_v23  ;;  %v16084_v12 = vor.u32 %v14933_v61, %v13356_v34  ;;  %v14899_v23 = vld [vmem:[#allocation6 + $0x44] sm:$0xf0]  ;;  %v13348_v44 = vld [vmem:[#allocation6 + $0x140] sm:$0xf] }
 0x427   : > { %6482 = vmatpush.bf16.msrb.mxu3 %v12737_v7  ;;  %7213 = vmatpush.bf16.msra.mxu1 %v16047_v55  ;;  %18047 = vst [vmem:[#allocation88_spill] sm:$0xff] %v16064_v60  ;;  %v5283_v7 = vadd.f32 %v15751_v62, %v5269_v0  ;;  %v14915_v59 = vld [vmem:[#allocation6 + $0xc4] sm:$0xf0]  ;;  %v6218_v29 = vpop.f32.mrf.mxu0  ;;  %v13412_v36 = vld [vmem:[#allocation6 + $0x1c0] sm:$0xf] }
 0x428   : > { %18049 = vst [vmem:[#allocation90_spill] sm:$0xff] %v16071_v31  ;;  %6469 = vmatmul.bf16.vlgmr.msrb.gmra.mxu2 %v15686_v35  ;;  %v13220_v35 = vld [vmem:[#allocation6 + $0x40] sm:$0xf]  ;;  %v14931_v4 = vld [vmem:[#allocation6 + $0x144] sm:$0xf0]  ;;  %v6219_v62 = vadd.f32 %v6218_v29, %v16037_v2  ;;  %v16102_v20 = vor.u32 %v14915_v59, %v13284_v25 }
 0x429   : > { %7227 = vmatpush.bf16.msra.mxu2 %v16049_v18  ;;  %7200 = vmatpush.bf16.msra.mxu0 %v16060_v26  ;;  %18050 = vst [vmem:[#allocation91_spill] sm:$0xff] %v16078_v53  ;;  %v14947_v19 = vld [vmem:[#allocation6 + $0x1c4] sm:$0xf0]  ;;  %v5297_v9 = vadd.f32 %v15758_v24, %v5283_v7  ;;  %v16096_v58 = vor.u32 %v14899_v23, %v13220_v35  ;;  %v13212_v1 = vld [vmem:[#allocation6 + $0x30] sm:$0xf]  ;;  %v17757_v35 = vperm.slane %v15999_v49, 5 }
 0x42a   : > { %6483 = vmatmul.bf16.vlgmr.msrb.gmra.mxu3 %v15688_v39  ;;  %18051 = vst [vmem:[#allocation92_spill] sm:$0xff] %v16082_v22  ;;  %v16088_v39 = vor.u32 %v14949_v45, %v13420_v54  ;;  %v16104_v43 = vor.u32 %v14931_v4, %v13348_v44  ;;  %v14897_v0 = vld [vmem:[#allocation6 + $0x34] sm:$0xf0]  ;;  %v13276_v24 = vld [vmem:[#allocation6 + $0xb0] sm:$0xf]  ;;  %v16107_v42 = vor.u32 %v14947_v19, %v13412_v36 }
 0x42b   : > { %7241 = vmatpush.bf16.msra.mxu3 %v16054_v47  ;;  %7214 = vmatpush.bf16.msra.mxu1 %v16064_v60  ;;  %18052 = vst [vmem:[#allocation93_spill] sm:$0xff] %v16084_v12  ;;  %v14913_v34 = vld [vmem:[#allocation6 + $0xb4] sm:$0xf0]  ;;  %v13340_v61 = vld [vmem:[#allocation6 + $0x130] sm:$0xf]  ;;  %v5213_v23 = vadd.f32 %v15733_v33, %v5199_v50  ;;  %v5311_v25 = vadd.f32 %v15760_v32, %v5297_v9 }
 0x42c   : > { %18053 = vst [vmem:[#allocation94_spill] sm:$0xff] %v16088_v39  ;;  %v14929_v54 = vld [vmem:[#allocation6 + $0x134] sm:$0xf0]  ;;  %v13404_v45 = vld [vmem:[#allocation6 + $0x1b0] sm:$0xf]  ;;  %v16115_v7 = vor.u32 %v14897_v0, %v13212_v1  ;;  %v16119_v59 = vor.u32 %v14913_v34, %v13276_v24  ;;  %v6246_v9 = vpop.f32.mrf.mxu2 }
 0x42d   : > { %7228 = vmatpush.bf16.msra.mxu2 %v16066_v21  ;;  %18054 = vst [vmem:[#allocation95_spill] sm:$0xff] %v16090_v27  ;;  %7201 = vmatpush.bf16.msra.mxu0 %v16078_v53  ;;  %v6232_v56 = vpop.f32.mrf.mxu1  ;;  %v14945_v11 = vld [vmem:[#allocation6 + $0x1b4] sm:$0xf0]  ;;  %v16121_v44 = vor.u32 %v14929_v54, %v13340_v61  ;;  %v13204_v4 = vld [vmem:[#allocation6 + $0x20] sm:$0xf]  ;;  %v6247_v1 = vadd.f32 %v6246_v9, %v17757_v35  ;;  %v6506_v24 = vmax.f32 %v5311_v25, 0.0  ;;  %v6260_v61 = vpop.f32.mrf.mxu3 }
 0x42e   : > { %18055 = vst [vmem:[#allocation96_spill] sm:$0xff] %v16096_v58  ;;  %v16109_v2 = vadd.f32 %v6232_v56, %v6219_v62  ;;  %v14895_v29 = vld [vmem:[#allocation6 + $0x24] sm:$0xf0]  ;;  %v13268_v36 = vld [vmem:[#allocation6 + $0xa0] sm:$0xf]  ;;  %v16124_v33 = vor.u32 %v14945_v11, %v13404_v45  ;;  %v5227_v0 = vadd.f32 %v15735_v38, %v5213_v23 }
 0x42f   : > { %7242 = vmatpush.bf16.msra.mxu3 %v16071_v31  ;;  %18056 = vst [vmem:[#allocation97_spill] sm:$0xff] %v16098_v28  ;;  %7215 = vmatpush.bf16.msra.mxu1 %v16082_v22  ;;  %v14911_v32 = vld [vmem:[#allocation6 + $0xa4] sm:$0xf0]  ;;  %v13332_v19 = vld [vmem:[#allocation6 + $0x120] sm:$0xf]  ;;  %v16130_v34 = vor.u32 %v14895_v29, %v13204_v4  ;;  %v16138_v9 = vadd.f32 %v6260_v61, %v6247_v1 }
 0x430   : > { %18057 = vst [vmem:[#allocation98_spill] sm:$0xff] %v16102_v20  ;;  %v14927_v50 = vld [vmem:[#allocation6 + $0x124] sm:$0xf0]  ;;  %v13396_v62 = vld [vmem:[#allocation6 + $0x1a0] sm:$0xf]  ;;  %v16134_v54 = vor.u32 %v14911_v32, %v13268_v36  ;;  %v6505_v57 = vmax.f32 %v5227_v0, 0.0 }
 0x431   : > { %7229 = vmatpush.bf16.msra.mxu2 %v16084_v12  ;;  %18058 = vst [vmem:[#allocation99_spill] sm:$0xff] %v16104_v43  ;;  %7202 = vmatpush.bf16.msra.mxu0 %v16096_v58  ;;  %v14943_v56 = vld [vmem:[#allocation6 + $0x1a4] sm:$0xf0]  ;;  %v16136_v45 = vor.u32 %v14927_v50, %v13332_v19  ;;  %v13196_v11 = vld [vmem:[#allocation6 + $0x10] sm:$0xf] }
 0x432   : > { %18059 = vst [vmem:[#allocation100_spill] sm:$0xff] %v16107_v42  ;;  %v14893_v28 = vld [vmem:[#allocation6 + $0x14] sm:$0xf0]  ;;  %v13260_v27 = vld [vmem:[#allocation6 + $0x90] sm:$0xf]  ;;  %v16141_v38 = vor.u32 %v14943_v56, %v13396_v62  ;;  %v6529_v10 = vpack.c.bf16 %v6506_v24, %v6505_v57 }
 0x433   : > { %7243 = vmatpush.bf16.msra.mxu3 %v16088_v39  ;;  %18060 = vst [vmem:[#allocation101_spill] sm:$0xff] %v16115_v7  ;;  %7216 = vmatpush.bf16.msra.mxu1 %v16102_v20  ;;  %v14909_v23 = vld [vmem:[#allocation6 + $0x94] sm:$0xf0]  ;;  %v13324_v25 = vld [vmem:[#allocation6 + $0x110] sm:$0xf]  ;;  %v16144_v36 = vor.u32 %v14893_v28, %v13196_v11 }
 0x434   : > { %18061 = vst [vmem:[#allocation102_spill] sm:$0xff] %v16119_v59  ;;  %v14925_v4 = vld [vmem:[#allocation6 + $0x114] sm:$0xf0]  ;;  %v13388_v29 = vld [vmem:[#allocation6 + $0x190] sm:$0xf]  ;;  %v16148_v50 = vor.u32 %v14909_v23, %v13260_v27  ;;  %v5409_v27 = vadd.f32 %v15795_v63, %v18072_v48  ;;  %v6569_v49 = vunpack.c.l.b16 %v6529_v10  ;;  %v18076_v63 = vperm.slane %v15702_v46, 2 }
 0x435   : > { %7230 = vmatpush.bf16.msra.mxu2 %v16104_v43  ;;  %18062 = vst [vmem:[#allocation103_spill] sm:$0xff] %v16121_v44  ;;  %7203 = vmatpush.bf16.msra.mxu0 %v16115_v7  ;;  %v14941_v35 = vld [vmem:[#allocation6 + $0x194] sm:$0xf0]  ;;  %v13188_v32 = vld [vmem:[#allocation6] sm:$0xf]  ;;  %v16150_v62 = vor.u32 %v14925_v4, %v13324_v25  ;;  %v6570_v40 = vunpack.c.h.b16 %v6529_v10 }
 0x436   : > { %18063 = vst [vmem:[#allocation104_spill] sm:$0xff] %v16124_v33  ;;  %v14891_v19 = vld [vmem:[#allocation6 + $0x4] sm:$0xf0]  ;;  %v13252_v56 = vld [vmem:[#allocation6 + $0x80] sm:$0xf]  ;;  %v16153_v0 = vor.u32 %v14941_v35, %v13388_v29  ;;  %v5325_v48 = vadd.f32 %v15766_v17, %v18076_v63  ;;  %v5423_v46 = vadd.f32 %v15798_v3, %v5409_v27 }
 0x437   : > { %7244 = vmatpush.bf16.msra.mxu3 %v16107_v42  ;;  %18064 = vst [vmem:[#allocation105_spill] sm:$0xff] %v16130_v34  ;;  %7217 = vmatpush.bf16.msra.mxu1 %v16119_v59  ;;  %v14907_v1 = vld [vmem:[#allocation6 + $0x84] sm:$0xf0]  ;;  %v13316_v61 = vld [vmem:[#allocation6 + $0x100] sm:$0xf]  ;;  %v16159_v23 = vor.u32 %v14891_v19, %v13188_v32  ;;  %v16173_v19 = vor.u32 %v14969_v51, %v13500_v52  ;;  %v6554_v52 = vunpack.c.h.b16 %v15747_v13 }
 0x438   : > { %18065 = vst [vmem:[#allocation106_spill] sm:$0xff] %v16134_v54  ;;  %v14923_v28 = vld [vmem:[#allocation6 + $0x104] sm:$0xf0]  ;;  %v13380_v11 = vld [vmem:[#allocation6 + $0x180] sm:$0xf]  ;;  %v16163_v35 = vor.u32 %v14907_v1, %v13252_v56  ;;  %v5339_v3 = vadd.f32 %v15768_v30, %v5325_v48  ;;  %v5437_v63 = vadd.f32 %v15804_v41, %v5423_v46  ;;  %v16218_v46 = vpop.f32.mrf.mxu2 }
 0x439   : > { %7231 = vmatpush.bf16.msra.mxu2 %v16121_v44  ;;  %18066 = vst [vmem:[#allocation107_spill] sm:$0xff] %v16136_v45  ;;  %7204 = vmatpush.bf16.msra.mxu0 %v16130_v34  ;;  %v14985_v25 = vld [vmem:[#allocation6 + $0x2f4] sm:$0xf0]  ;;  %v14904_v57 = vld [vmem:[#allocation6 + $0x74] sm:$0xf]  ;;  %v16165_v4 = vor.u32 %v14923_v28, %v13316_v61  ;;  %v16171_v32 = vor.u32 %v14939_v6, %v13380_v11 }
 0x43a   : > { %18067 = vst [vmem:[#allocation108_spill] sm:$0xff] %v16141_v38  ;;  %v13246_v24 = vld [vmem:[#allocation6 + $0x78] sm:$0xf0]  ;;  %v14920_v29 = vld [vmem:[#allocation6 + $0xf4] sm:$0xf]  ;;  %v16196_v27 = vpack.c.b16 %v6570_v40, %v6554_v52 }
 0x43b   : > { %7245 = vmatpush.bf16.msra.mxu3 %v16124_v33  ;;  %18068 = vst [vmem:[#allocation109_spill] sm:$0xff] %v16144_v36  ;;  %7218 = vmatpush.bf16.msra.mxu1 %v16134_v54  ;;  %v16177_v56 = vor.u32 %v14904_v57, %v13246_v24  ;;  %v13492_v1 = vld [vmem:[#allocation6 + $0x260] sm:$0xf]  ;;  %v14967_v61 = vld [vmem:[#allocation6 + $0x264] sm:$0xf0]  ;;  %v16182_v17 = vor.u32 %v14920_v29, %v13310_v37 }
 0x43c   : > { %18069 = vst [vmem:[#allocation110_spill] sm:$0xff] %v16148_v50  ;;  %v13556_v28 = vld [vmem:[#allocation6 + $0x2e0] sm:$0xf]  ;;  %v14983_v6 = vld [vmem:[#allocation6 + $0x2e4] sm:$0xf0]  ;;  %v16194_v37 = vor.u32 %v14967_v61, %v13492_v1 }
 0x43d   : > { %7232 = vmatpush.bf16.msra.mxu2 %v16136_v45  ;;  %18070 = vst [vmem:[#allocation111_spill] sm:$0xff] %v16150_v62  ;;  %7205 = vmatpush.bf16.msra.mxu0 %v16144_v36  ;;  %v14902_v11 = vld [vmem:[#allocation6 + $0x64] sm:$0xf]  ;;  %v13238_v51 = vld [vmem:[#allocation6 + $0x68] sm:$0xf0]  ;;  %v16202_v24 = vor.u32 %v14983_v6, %v13556_v28  ;;  %v17766_v28 = vmov 0  }
 0x43e   : > { %18071 = vst [vmem:[#allocation112_spill] sm:$0xff] %v16153_v0  ;;  %v14918_v10 = vld [vmem:[#allocation6 + $0xe4] sm:$0xf]  ;;  %v14965_v30 = vld [vmem:[#allocation6 + $0x254] sm:$0xf0] }
 0x43f   : > { %7246 = vmatpush.bf16.msra.mxu3 %v16141_v38  ;;  %18073 = vst [vmem:[#allocation113_spill] sm:$0xff] %v16159_v23  ;;  %7219 = vmatpush.bf16.msra.mxu1 %v16148_v50  ;;  %v16175_v50 = vor.u32 %v14985_v25, %v13564_v16  ;;  %v16185_v16 = vpop.f32.mrf.mxu0  ;;  %v13302_v25 = vld [vmem:[#allocation6 + $0xe8] sm:$0xf0]  ;;  %v13548_v29 = vld [vmem:[#allocation6 + $0x2d0] sm:$0xf] }
 0x440   : > { %18074 = vst [vmem:[#allocation114_spill] sm:$0xff] %v16163_v35  ;;  %v16209_v40 = vor.u32 %v14918_v10, %v13302_v25  ;;  %v14981_v48 = vld [vmem:[#allocation6 + $0x2d4] sm:$0xf0]  ;;  %v14900_v1 = vld [vmem:[#allocation6 + $0x54] sm:$0xf]  ;;  %v16226_v25 = vpop.f32.mrf.mxu3 }
 0x441   : > { %7233 = vmatpush.bf16.msra.mxu2 %v16150_v62  ;;  %18075 = vst [vmem:[#allocation115_spill] sm:$0xff] %v16165_v4  ;;  %v6553_v62 = vunpack.c.l.b16 %v15747_v13  ;;  %7206 = vmatpush.bf16.msra.mxu0 %v16159_v23  ;;  %v16198_v13 = vpop.f32.mrf.mxu1  ;;  %v13230_v61 = vld [vmem:[#allocation6 + $0x58] sm:$0xf0]  ;;  %v14916_v6 = vld [vmem:[#allocation6 + $0xd4] sm:$0xf]  ;;  %v16222_v52 = vor.u32 %v14981_v48, %v13548_v29 }
 0x442   : > { %18077 = vst [vmem:[#allocation116_spill] sm:$0xff] %v16171_v32  ;;  %v16224_v10 = vor.u32 %v14900_v1, %v13230_v61  ;;  %v13286_v29 = vld [vmem:[#allocation6 + $0xc8] sm:$0xf0] }
 0x443   : > { %7247 = vmatpush.bf16.msra.mxu3 %v16153_v0  ;;  %18078 = vst [vmem:[#allocation117_spill] sm:$0xff] %v16173_v19  ;;  %7220 = vmatpush.bf16.msra.mxu1 %v16163_v35  ;;  %v16189_v57 = vpack.c.b16 %v6569_v49, %v6553_v62  ;;  %v16204_v49 = vor.u32 %v14902_v11, %v13238_v51  ;;  %v13484_v62 = vld [vmem:[#allocation6 + $0x250] sm:$0xf]  ;;  %v13294_v11 = vld [vmem:[#allocation6 + $0xd8] sm:$0xf0]  ;;  %v18094_v1 = vld [vmem:[#allocation24_spill] sm:$0xff] }
 0x444   : > { %18079 = vst [vmem:[#allocation118_spill] sm:$0xff] %v16175_v50  ;;  %7207 = vmatmul.bf16.vlgmr.msra.gmra.mxu0 %v17766_v28  ;;  %v5353_v51 = vadd.f32 %v15774_v5, %v5339_v3  ;;  %v16216_v41 = vor.u32 %v14965_v30, %v13484_v62  ;;  %v14963_v5 = vld [vmem:[#allocation6 + $0x244] sm:$0xf0]  ;;  %v13540_v3 = vld [vmem:[#allocation6 + $0x2c0] sm:$0xf]  ;;  %v16230_v62 = vor.u32 %v14916_v6, %v13294_v11 }
 0x445   : > { %18080 = vst [vmem:[#allocation119_spill] sm:$0xff] %v16177_v56  ;;  %7234 = vmatpush.bf16.msra.mxu2 %v16165_v4  ;;  %7255 = vmatpush.bf16.msrb.mxu0 %v16173_v19  ;;  %v14979_v30 = vld [vmem:[#allocation6 + $0x2c4] sm:$0xf0]  ;;  %v13468_v11 = vld [vmem:[#allocation6 + $0x230] sm:$0xf] }
 0x446   : > { %18081 = vst [vmem:[#allocation120_spill] sm:$0xff] %v16182_v17  ;;  %7221 = vmatmul.bf16.vlgmr.msra.gmra.mxu1 %v17766_v28  ;;  %v14898_v28 = vld [vmem:[#allocation6 + $0x44] sm:$0xf]  ;;  %v5367_v48 = vadd.f32 %v15777_v15, %v5353_v51  ;;  %v13532_v15 = vld [vmem:[#allocation6 + $0x2b0] sm:$0xf] }
 0x447   : > { %18082 = vst [vmem:[#allocation121_spill] sm:$0xff] %v16185_v16  ;;  %7248 = vmatpush.bf16.msra.mxu3 %v16171_v32  ;;  %7269 = vmatpush.bf16.msrb.mxu1 %v16175_v50  ;;  %v5451_v16 = vadd.f32 %v15806_v8, %v5437_v63  ;;  %v16240_v8 = vor.u32 %v14979_v30, %v13540_v3  ;;  %v18100_v3 = vld [vmem:[#allocation25_spill] sm:$0xff] }
 0x448   : > { %18083 = vst [vmem:[#allocation122_spill] sm:$0xff] %v16194_v37  ;;  %7235 = vmatmul.bf16.vlgmr.msra.gmra.mxu2 %v16189_v57 }
 0x449   : > { %18084 = vst [vmem:[#allocation123_spill] sm:$0xff] %v16198_v13  ;;  %7283 = vmatpush.bf16.msrb.mxu2 %v16177_v56  ;;  %7256 = vmatpush.bf16.msrb.mxu0 %v16194_v37  ;;  %v13476_v13 = vld [vmem:[#allocation6 + $0x240] sm:$0xf]  ;;  %v5465_v61 = vadd.f32 %v18094_v1, %v5451_v16  ;;  %v6288_v6 = vpop.f32.mrf.mxu1  ;;  %v13278_v1 = vld [vmem:[#allocation6 + $0xb8] sm:$0xf0] }
 0x44a   : > { %18085 = vst [vmem:[#allocation124_spill] sm:$0xff] %v16202_v24  ;;  %7249 = vmatmul.bf16.vlgmr.msra.gmra.mxu3 %v16196_v27  ;;  %v16236_v37 = vor.u32 %v14963_v5, %v13476_v13  ;;  %v14896_v13 = vld [vmem:[#allocation6 + $0x34] sm:$0xf] }
 0x44b   : > { %18086 = vst [vmem:[#allocation125_spill] sm:$0xff] %v16204_v49  ;;  %7297 = vmatpush.bf16.msrb.mxu3 %v16182_v17  ;;  %7270 = vmatpush.bf16.msrb.mxu1 %v16202_v24  ;;  %v6274_v24 = vpop.f32.mrf.mxu0  ;;  %v14912_v5 = vld [vmem:[#allocation6 + $0xb4] sm:$0xf]  ;;  %v5479_v30 = vadd.f32 %v18100_v3, %v5465_v61  ;;  %v14975_v61 = vld [vmem:[#allocation6 + $0x2a4] sm:$0xf0] }
 0x44c   : > { %18087 = vst [vmem:[#allocation126_spill] sm:$0xff] %v16209_v40  ;;  %v14894_v3 = vld [vmem:[#allocation6 + $0x24] sm:$0xf] }
 0x44d   : > { %18088 = vst [vmem:[#allocation127_spill] sm:$0xff] %v16216_v41  ;;  %7284 = vmatpush.bf16.msrb.mxu2 %v16204_v49  ;;  %v14914_v49 = vld [vmem:[#allocation6 + $0xc4] sm:$0xf]  ;;  %7257 = vmatpush.bf16.msrb.mxu0 %v16216_v41  ;;  %v13430_v41 = vld [vmem:[#allocation6 + $0x1e8] sm:$0xf0] }
 0x44e   : > { %18089 = vst [vmem:[#allocation128_spill] sm:$0xff] %v16218_v46  ;;  %v13222_v46 = vld [vmem:[#allocation6 + $0x48] sm:$0xf0]  ;;  %v16245_v16 = vor.u32 %v14914_v49, %v13286_v29  ;;  %v14959_v29 = vld [vmem:[#allocation6 + $0x224] sm:$0xf0] }
 0x44f   : > { %18090 = vst [vmem:[#allocation129_spill] sm:$0xff] %v16222_v52  ;;  %7298 = vmatpush.bf16.msrb.mxu3 %v16209_v40  ;;  %7271 = vmatpush.bf16.msrb.mxu1 %v16222_v52  ;;  %v16242_v63 = vor.u32 %v14898_v28, %v13222_v46  ;;  %v14961_v40 = vld [vmem:[#allocation6 + $0x234] sm:$0xf0]  ;;  %v18099_v52 = vld [vmem:[#allocation21_spill] sm:$0xff] }
 0x450   : > { %18091 = vst [vmem:[#allocation130_spill] sm:$0xff] %v16224_v10  ;;  %v16250_v28 = vor.u32 %v14961_v40, %v13468_v11  ;;  %v13206_v40 = vld [vmem:[#allocation6 + $0x28] sm:$0xf0] }
 0x451   : > { %18092 = vst [vmem:[#allocation131_spill] sm:$0xff] %v16226_v25  ;;  %v6275_v25 = vadd.f32 %v6274_v24, %v16138_v9  ;;  %7285 = vmatpush.bf16.msrb.mxu2 %v16224_v10  ;;  %v14977_v9 = vld [vmem:[#allocation6 + $0x2b4] sm:$0xf0]  ;;  %v13214_v24 = vld [vmem:[#allocation6 + $0x38] sm:$0xf0]  ;;  %v5381_v10 = vadd.f32 %v18099_v52, %v5367_v48  ;;  %7258 = vmatpush.bf16.msrb.mxu0 %v16236_v37  ;;  %v6302_v48 = vpop.f32.mrf.mxu2 }
 0x452   : > { %18093 = vst [vmem:[#allocation132_spill] sm:$0xff] %v16230_v62  ;;  %v16254_v49 = vor.u32 %v14977_v9, %v13532_v15  ;;  %v16256_v46 = vor.u32 %v14896_v13, %v13214_v24  ;;  %v16259_v52 = vor.u32 %v14912_v5, %v13278_v1  ;;  %v6508_v9 = vmax.f32 %v5479_v30, 0.0  ;;  %v14892_v30 = vld [vmem:[#allocation6 + $0x14] sm:$0xf] }
 0x453   : > { %18095 = vst [vmem:[#allocation24_spill] sm:$0xff] %v16236_v37  ;;  %7299 = vmatpush.bf16.msrb.mxu3 %v16230_v62  ;;  %v6289_v51 = vadd.f32 %v6288_v6, %v6275_v25  ;;  %7272 = vmatpush.bf16.msrb.mxu1 %v16240_v8  ;;  %v13460_v25 = vld [vmem:[#allocation6 + $0x220] sm:$0xf]  ;;  %v6316_v37 = vpop.f32.mrf.mxu3  ;;  %v13270_v62 = vld [vmem:[#allocation6 + $0xa8] sm:$0xf0]  ;;  %v16269_v1 = vor.u32 %v14894_v3, %v13206_v40 }
 0x454   : > { %18096 = vst [vmem:[#allocation133_spill] sm:$0xff] %v16240_v8  ;;  %v13524_v6 = vld [vmem:[#allocation6 + $0x2a0] sm:$0xf]  ;;  %v14910_v8 = vld [vmem:[#allocation6 + $0xa4] sm:$0xf]  ;;  %v16263_v13 = vor.u32 %v14959_v29, %v13460_v25  ;;  %v6501_v29 = vmax.f32 %v16109_v2, 0.0 }
 0x455   : > { %18097 = vst [vmem:[#allocation134_spill] sm:$0xff] %v16242_v63  ;;  %7286 = vmatpush.bf16.msrb.mxu2 %v16242_v63  ;;  %v6303_v11 = vadd.f32 %v6302_v48, %v6289_v51  ;;  %v18105_v63 = vld [vmem:[#allocation22_spill] sm:$0xff]  ;;  %7259 = vmatpush.bf16.msrb.mxu0 %v16250_v28  ;;  %v16267_v5 = vor.u32 %v14975_v61, %v13524_v6  ;;  %v13452_v51 = vld [vmem:[#allocation6 + $0x210] sm:$0xf]  ;;  %v13444_v61 = vld [vmem:[#allocation6 + $0x200] sm:$0xf] }
 0x456   : > { %18098 = vst [vmem:[#allocation135_spill] sm:$0xff] %v16245_v16  ;;  %v5395_v15 = vadd.f32 %v18105_v63, %v5381_v10  ;;  %v14957_v48 = vld [vmem:[#allocation6 + $0x214] sm:$0xf0]  ;;  %v16272_v10 = vor.u32 %v14910_v8, %v13270_v62  ;;  %v13198_v25 = vld [vmem:[#allocation6 + $0x18] sm:$0xf0] }
 0x457   : > { %18101 = vst [vmem:[#allocation21_spill] sm:$0xff] %v16250_v28  ;;  %7300 = vmatpush.bf16.msrb.mxu3 %v16245_v16  ;;  %7273 = vmatpush.bf16.msrb.mxu1 %v16254_v49  ;;  %v6317_v24 = vadd.f32 %v6316_v37, %v6303_v11  ;;  %v13516_v16 = vld [vmem:[#allocation6 + $0x290] sm:$0xf]  ;;  %v14973_v63 = vld [vmem:[#allocation6 + $0x294] sm:$0xf0]  ;;  %v16276_v6 = vor.u32 %v14957_v48, %v13452_v51 }
 0x458   : > { %18102 = vst [vmem:[#allocation25_spill] sm:$0xff] %v16254_v49  ;;  %v14908_v28 = vld [vmem:[#allocation6 + $0x94] sm:$0xf]  ;;  %v6507_v37 = vmax.f32 %v5395_v15, 0.0  ;;  %v14955_v3 = vld [vmem:[#allocation6 + $0x204] sm:$0xf0]  ;;  %v16282_v62 = vor.u32 %v14973_v63, %v13516_v16  ;;  %v16284_v8 = vor.u32 %v14892_v30, %v13198_v25 }
 0x459   : > { %18103 = vst [vmem:[#allocation136_spill] sm:$0xff] %v16256_v46  ;;  %7287 = vmatpush.bf16.msrb.mxu2 %v16256_v46  ;;  %v6502_v49 = vmax.f32 %v6317_v24, 0.0  ;;  %v13262_v46 = vld [vmem:[#allocation6 + $0x98] sm:$0xf0]  ;;  %7260 = vmatpush.bf16.msrb.mxu0 %v16263_v13  ;;  %v13508_v2 = vld [vmem:[#allocation6 + $0x280] sm:$0xf]  ;;  %v16290_v16 = vor.u32 %v14955_v3, %v13444_v61 }
 0x45a   : > { %18104 = vst [vmem:[#allocation137_spill] sm:$0xff] %v16259_v52  ;;  %v14971_v11 = vld [vmem:[#allocation6 + $0x284] sm:$0xf0]  ;;  %v14890_v24 = vld [vmem:[#allocation6 + $0x4] sm:$0xf]  ;;  %v6530_v15 = vpack.c.bf16 %v6508_v9, %v6507_v37  ;;  %v16287_v51 = vor.u32 %v14908_v28, %v13262_v46 }
 0x45b   : > { %18106 = vst [vmem:[#allocation22_spill] sm:$0xff] %v16263_v13  ;;  %7301 = vmatpush.bf16.msrb.mxu3 %v16259_v52  ;;  %v16278_v40 = vpack.c.bf16 %v6502_v49, %v6501_v29  ;;  %7274 = vmatpush.bf16.msrb.mxu1 %v16267_v5  ;;  %v13190_v48 = vld [vmem:[#allocation6 + $0x8] sm:$0xf0]  ;;  %v14906_v13 = vld [vmem:[#allocation6 + $0x84] sm:$0xf]  ;;  %v16294_v9 = vor.u32 %v14971_v11, %v13508_v2 }
 0x45c   : > { %18107 = vst [vmem:[#allocation138_spill] sm:$0xff] %v16267_v5  ;;  %v13254_v49 = vld [vmem:[#allocation6 + $0x88] sm:$0xf0]  ;;  %v14936_v29 = vld [vmem:[#allocation6 + $0x174] sm:$0xf]  ;;  %v16296_v28 = vor.u32 %v14890_v24, %v13190_v48  ;;  %v6572_v3 = vunpack.c.h.b16 %v6530_v15  ;;  %v18122_v11 = vld [vmem:[#allocation23_spill] sm:$0xff] }
 0x45d   : > { %18108 = vst [vmem:[#allocation139_spill] sm:$0xff] %v16269_v1  ;;  %7288 = vmatpush.bf16.msrb.mxu2 %v16269_v1  ;;  %v14952_v5 = vld [vmem:[#allocation6 + $0x1f4] sm:$0xf]  ;;  %7261 = vmatpush.bf16.msrb.mxu0 %v16276_v6  ;;  %v13438_v63 = vld [vmem:[#allocation6 + $0x1f8] sm:$0xf0]  ;;  %v16299_v1 = vor.u32 %v14906_v13, %v13254_v49  ;;  %v6555_v24 = vunpack.c.l.b16 %v18122_v11  ;;  %v16312_v49 = vpop.f32.mrf.mxu0 }
 0x45e   : > { %18109 = vst [vmem:[#allocation140_spill] sm:$0xff] %v16272_v10  ;;  %v14968_v30 = vld [vmem:[#allocation6 + $0x274] sm:$0xf]  ;;  %v13502_v25 = vld [vmem:[#allocation6 + $0x278] sm:$0xf0] }
 0x45f   : > { %18110 = vst [vmem:[#allocation141_spill] sm:$0xff] %v16276_v6  ;;  %7302 = vmatpush.bf16.msrb.mxu3 %v16272_v10  ;;  %7275 = vmatpush.bf16.msrb.mxu1 %v16282_v62  ;;  %v14984_v46 = vld [vmem:[#allocation6 + $0x2f4] sm:$0xf]  ;;  %v13566_v37 = vld [vmem:[#allocation6 + $0x2f8] sm:$0xf0]  ;;  %v6571_v10 = vunpack.c.l.b16 %v6530_v15  ;;  %v16303_v6 = vor.u32 %v14952_v5, %v13438_v63  ;;  %v16305_v52 = vor.u32 %v14968_v30, %v13502_v25  ;;  %v16324_v25 = vpop.f32.mrf.mxu1 }
 0x460   : > { %18111 = vst [vmem:[#allocation142_spill] sm:$0xff] %v16278_v40  ;;  %v13374_v40 = vld [vmem:[#allocation6 + $0x178] sm:$0xf0]  ;;  %v14950_v2 = vld [vmem:[#allocation6 + $0x1e4] sm:$0xf]  ;;  %v16309_v48 = vor.u32 %v14984_v46, %v13566_v37 }
 0x461   : > { %18112 = vst [vmem:[#allocation143_spill] sm:$0xff] %v16282_v62  ;;  %7289 = vmatpush.bf16.msrb.mxu2 %v16284_v8  ;;  %v16301_v61 = vor.u32 %v14936_v29, %v13374_v40  ;;  %v14934_v62 = vld [vmem:[#allocation6 + $0x164] sm:$0xf]  ;;  %7262 = vmatpush.bf16.msrb.mxu0 %v16290_v16  ;;  %v13494_v13 = vld [vmem:[#allocation6 + $0x268] sm:$0xf0]  ;;  %v6556_v40 = vunpack.c.h.b16 %v18122_v11  ;;  %v16316_v29 = vpack.c.b16 %v6571_v10, %v6555_v24 }
 0x462   : > { %18113 = vst [vmem:[#allocation144_spill] sm:$0xff] %v16284_v8  ;;  %v13366_v8 = vld [vmem:[#allocation6 + $0x168] sm:$0xf0]  ;;  %v14982_v5 = vld [vmem:[#allocation6 + $0x2e4] sm:$0xf]  ;;  %v16328_v46 = vor.u32 %v14950_v2, %v13430_v41  ;;  %v18130_v41 = vmov 0  }
 0x463   : > { %18114 = vst [vmem:[#allocation145_spill] sm:$0xff] %v16287_v51  ;;  %7303 = vmatpush.bf16.msrb.mxu3 %v16287_v51  ;;  %v14966_v51 = vld [vmem:[#allocation6 + $0x264] sm:$0xf]  ;;  %7276 = vmatpush.bf16.msrb.mxu1 %v16294_v9  ;;  %v13558_v15 = vld [vmem:[#allocation6 + $0x2e8] sm:$0xf0]  ;;  %v16320_v63 = vor.u32 %v14934_v62, %v13366_v8  ;;  %v16322_v30 = vpack.c.b16 %v6572_v3, %v6556_v40  ;;  %v16342_v2 = vld [vmem:[#allocation4 + $0x8] sm:$0xff] }
 0x464   : > { %18115 = vst [vmem:[#allocation146_spill] sm:$0xff] %v16290_v16  ;;  %v16330_v37 = vor.u32 %v14966_v51, %v13494_v13  ;;  %v14932_v10 = vld [vmem:[#allocation6 + $0x154] sm:$0xf]  ;;  %v13358_v11 = vld [vmem:[#allocation6 + $0x158] sm:$0xf0]  ;;  %7263 = vmatmul.bf16.vlgmr.msrb.gmra.mxu0 %v16316_v29  ;;  %v16334_v62 = vor.u32 %v14982_v5, %v13558_v15 }
 0x465   : > { %18116 = vst [vmem:[#allocation147_spill] sm:$0xff] %v16294_v9  ;;  %7290 = vmatpush.bf16.msrb.mxu2 %v16296_v28  ;;  %7311 = vmatpush.bf16.msra.mxu0 %v16301_v61  ;;  %v14948_v24 = vld [vmem:[#allocation6 + $0x1d4] sm:$0xf]  ;;  %v13422_v8 = vld [vmem:[#allocation6 + $0x1d8] sm:$0xf0]  ;;  %v16339_v51 = vor.u32 %v14932_v10, %v13358_v11 }
 0x466   : > { %18117 = vst [vmem:[#allocation148_spill] sm:$0xff] %v16296_v28  ;;  %v14964_v3 = vld [vmem:[#allocation6 + $0x254] sm:$0xf]  ;;  %v13486_v40 = vld [vmem:[#allocation6 + $0x258] sm:$0xf0]  ;;  %7277 = vmatmul.bf16.vlgmr.msrb.gmra.mxu1 %v16322_v30  ;;  %v16347_v5 = vor.u32 %v14948_v24, %v13422_v8  ;;  %v18139_v8 = vperm.slane %v16342_v2, 6 }
 0x467   : > { %18118 = vst [vmem:[#allocation149_spill] sm:$0xff] %v16299_v1  ;;  %7304 = vmatpush.bf16.msrb.mxu3 %v16299_v1  ;;  %7325 = vmatpush.bf16.msra.mxu1 %v16303_v6  ;;  %v16349_v15 = vor.u32 %v14964_v3, %v13486_v40  ;;  %v13414_v11 = vld [vmem:[#allocation6 + $0x1c8] sm:$0xf0]  ;;  %v6330_v1 = vpop.f32.mrf.mxu0  ;;  %v14928_v40 = vld [vmem:[#allocation6 + $0x134] sm:$0xf]  ;;  %v6344_v28 = vpop.f32.mrf.mxu1 }
 0x468   : > { %18119 = vst [vmem:[#allocation150_spill] sm:$0xff] %v16301_v61  ;;  %7291 = vmatmul.bf16.vlgmr.msrb.gmra.mxu2 %v18130_v41  ;;  %v13478_v13 = vld [vmem:[#allocation6 + $0x248] sm:$0xf0]  ;;  %v14978_v61 = vld [vmem:[#allocation6 + $0x2c4] sm:$0xf]  ;;  %v6331_v3 = vadd.f32 %v6330_v1, %v18139_v8 }
 0x469   : > { %18120 = vst [vmem:[#allocation151_spill] sm:$0xff] %v16303_v6  ;;  %7339 = vmatpush.bf16.msra.mxu2 %v16305_v52  ;;  %7312 = vmatpush.bf16.msra.mxu0 %v16320_v63  ;;  %v14946_v6 = vld [vmem:[#allocation6 + $0x1c4] sm:$0xf]  ;;  %v14976_v8 = vld [vmem:[#allocation6 + $0x2b4] sm:$0xf] }
 0x46a   : > { %18121 = vst [vmem:[#allocation152_spill] sm:$0xff] %v16305_v52  ;;  %7305 = vmatmul.bf16.vlgmr.msrb.gmra.mxu3 %v18130_v41  ;;  %v13350_v52 = vld [vmem:[#allocation6 + $0x148] sm:$0xf0]  ;;  %v14962_v41 = vld [vmem:[#allocation6 + $0x244] sm:$0xf]  ;;  %v6345_v1 = vadd.f32 %v6344_v28, %v6331_v3 }
 0x46b   : > { %18123 = vst [vmem:[#allocation23_spill] sm:$0xff] %v16309_v48  ;;  %7353 = vmatpush.bf16.msra.mxu3 %v16309_v48  ;;  %7326 = vmatpush.bf16.msra.mxu1 %v16328_v46  ;;  %v14930_v48 = vld [vmem:[#allocation6 + $0x144] sm:$0xf]  ;;  %v13398_v3 = vld [vmem:[#allocation6 + $0x1a8] sm:$0xf0] }
 0x46c   : > { %18124 = vst [vmem:[#allocation153_spill] sm:$0xff] %v16312_v49  ;;  %v13550_v49 = vld [vmem:[#allocation6 + $0x2d8] sm:$0xf0]  ;;  %v16359_v24 = vor.u32 %v14930_v48, %v13350_v52  ;;  %v14960_v48 = vld [vmem:[#allocation6 + $0x234] sm:$0xf] }
 0x46d   : > { %18125 = vst [vmem:[#allocation154_spill] sm:$0xff] %v16320_v63  ;;  %7340 = vmatpush.bf16.msra.mxu2 %v16330_v37  ;;  %v16351_v63 = vpop.f32.mrf.mxu2  ;;  %7313 = vmatpush.bf16.msra.mxu0 %v16339_v51  ;;  %v13406_v52 = vld [vmem:[#allocation6 + $0x1b8] sm:$0xf0] }
 0x46e   : > { %18126 = vst [vmem:[#allocation155_spill] sm:$0xff] %v16324_v25  ;;  %v14980_v25 = vld [vmem:[#allocation6 + $0x2d4] sm:$0xf]  ;;  %v13518_v9 = vld [vmem:[#allocation6 + $0x298] sm:$0xf0] }
 0x46f   : > { %18127 = vst [vmem:[#allocation156_spill] sm:$0xff] %v16328_v46  ;;  %7354 = vmatpush.bf16.msra.mxu3 %v16334_v62  ;;  %v16354_v10 = vor.u32 %v14980_v25, %v13550_v49  ;;  %v13542_v46 = vld [vmem:[#allocation6 + $0x2c8] sm:$0xf0]  ;;  %7327 = vmatpush.bf16.msra.mxu1 %v16347_v5  ;;  %v16365_v49 = vor.u32 %v14946_v6, %v13414_v11  ;;  %v14942_v11 = vld [vmem:[#allocation6 + $0x1a4] sm:$0xf] }
 0x470   : > { %18128 = vst [vmem:[#allocation157_spill] sm:$0xff] %v16330_v37  ;;  %v16356_v37 = vpop.f32.mrf.mxu3  ;;  %v16367_v25 = vor.u32 %v14962_v41, %v13478_v13 }
 0x471   : > { %18129 = vst [vmem:[#allocation158_spill] sm:$0xff] %v16334_v62  ;;  %7341 = vmatpush.bf16.msra.mxu2 %v16349_v15  ;;  %v14944_v62 = vld [vmem:[#allocation6 + $0x1b4] sm:$0xf]  ;;  %7314 = vmatpush.bf16.msra.mxu0 %v16359_v24 }
 0x472   : > { %18131 = vst [vmem:[#allocation159_spill] sm:$0xff] %v16339_v51  ;;  %v13470_v51 = vld [vmem:[#allocation6 + $0x238] sm:$0xf0]  ;;  %v16377_v41 = vor.u32 %v14944_v62, %v13406_v52  ;;  %v16389_v52 = vor.u32 %v14942_v11, %v13398_v3  ;;  %v14938_v11 = vld [vmem:[#allocation6 + $0x184] sm:$0xf] }
 0x473   : > { %18132 = vst [vmem:[#allocation160_spill] sm:$0xff] %v16342_v2  ;;  %7355 = vmatpush.bf16.msra.mxu3 %v16354_v10  ;;  %7328 = vmatpush.bf16.msra.mxu1 %v16365_v49  ;;  %v16379_v13 = vor.u32 %v14960_v48, %v13470_v51  ;;  %v14924_v48 = vld [vmem:[#allocation6 + $0x114] sm:$0xf] }
 0x474   : > { %18133 = vst [vmem:[#allocation161_spill] sm:$0xff] %v16347_v5  ;;  %v13534_v5 = vld [vmem:[#allocation6 + $0x2b8] sm:$0xf0] }
 0x475   : > { %18134 = vst [vmem:[#allocation162_spill] sm:$0xff] %v16349_v15  ;;  %7342 = vmatpush.bf16.msra.mxu2 %v16367_v25  ;;  %v16382_v28 = vor.u32 %v14976_v8, %v13534_v5  ;;  %v13526_v15 = vld [vmem:[#allocation6 + $0x2a8] sm:$0xf0]  ;;  %v13326_v8 = vld [vmem:[#allocation6 + $0x118] sm:$0xf0] }
 0x476   : > { %18135 = vst [vmem:[#allocation163_spill] sm:$0xff] %v16351_v63  ;;  %v13342_v63 = vld [vmem:[#allocation6 + $0x138] sm:$0xf0] }
 0x477   : > { %18136 = vst [vmem:[#allocation164_spill] sm:$0xff] %v16354_v10  ;;  %v16373_v6 = vor.u32 %v14928_v40, %v13342_v63  ;;  %v14958_v10 = vld [vmem:[#allocation6 + $0x224] sm:$0xf]  ;;  %v6358_v63 = vpop.f32.mrf.mxu2  ;;  %7329 = vmatpush.bf16.msra.mxu1 %v16377_v41 }
 0x478   : > { %18137 = vst [vmem:[#allocation165_spill] sm:$0xff] %v16356_v37  ;;  %v16370_v37 = vor.u32 %v14978_v61, %v13542_v46  ;;  %v14926_v61 = vld [vmem:[#allocation6 + $0x124] sm:$0xf]  ;;  %v13334_v46 = vld [vmem:[#allocation6 + $0x128] sm:$0xf0]  ;;  %v6372_v51 = vpop.f32.mrf.mxu3 }
 0x479   : > { %18138 = vst [vmem:[#allocation166_spill] sm:$0xff] %v16359_v24  ;;  %v13462_v24 = vld [vmem:[#allocation6 + $0x228] sm:$0xf0]  ;;  %v14974_v40 = vld [vmem:[#allocation6 + $0x2a4] sm:$0xf]  ;;  %7315 = vmatpush.bf16.msra.mxu0 %v16373_v6  ;;  %v16385_v62 = vor.u32 %v14926_v61, %v13334_v46  ;;  %7343 = vmatpush.bf16.msra.mxu2 %v16379_v13 }
 0x47a   : > { %18140 = vst [vmem:[#allocation167_spill] sm:$0xff] %v16365_v49  ;;  %7356 = vmatpush.bf16.msra.mxu3 %v16370_v37  ;;  %v6359_v49 = vadd.f32 %v6358_v63, %v6345_v1  ;;  %v16391_v5 = vor.u32 %v14958_v10, %v13462_v24  ;;  %v16394_v1 = vor.u32 %v14974_v40, %v13526_v15  ;;  %v13390_v63 = vld [vmem:[#allocation6 + $0x198] sm:$0xf0]  ;;  %v14956_v61 = vld [vmem:[#allocation6 + $0x214] sm:$0xf] }
 0x47b   : > { %18141 = vst [vmem:[#allocation168_spill] sm:$0xff] %v16367_v25  ;;  %v13454_v46 = vld [vmem:[#allocation6 + $0x218] sm:$0xf0]  ;;  %7330 = vmatpush.bf16.msra.mxu1 %v16389_v52  ;;  %v13318_v15 = vld [vmem:[#allocation6 + $0x108] sm:$0xf0] }
 0x47c   : > { %18142 = vst [vmem:[#allocation169_spill] sm:$0xff] %v16370_v37  ;;  %v14940_v37 = vld [vmem:[#allocation6 + $0x194] sm:$0xf]  ;;  %v6373_v25 = vadd.f32 %v6372_v51, %v6359_v49  ;;  %v16403_v24 = vor.u32 %v14956_v61, %v13454_v46  ;;  %v14922_v49 = vld [vmem:[#allocation6 + $0x104] sm:$0xf]  ;;  %v16425_v61 = vpop.f32.mrf.mxu1 }
 0x47d   : > { %18143 = vst [vmem:[#allocation170_spill] sm:$0xff] %v16373_v6  ;;  %v14972_v6 = vld [vmem:[#allocation6 + $0x294] sm:$0xf]  ;;  %7316 = vmatpush.bf16.msra.mxu0 %v16385_v62  ;;  %7344 = vmatpush.bf16.msra.mxu2 %v16391_v5  ;;  %v16401_v10 = vor.u32 %v14940_v37, %v13390_v63  ;;  %v13382_v40 = vld [vmem:[#allocation6 + $0x188] sm:$0xf0] }
 0x47e   : > { %18144 = vst [vmem:[#allocation171_spill] sm:$0xff] %v16377_v41  ;;  %7357 = vmatpush.bf16.msra.mxu3 %v16382_v28  ;;  %v16406_v3 = vor.u32 %v14972_v6, %v13518_v9  ;;  %v14954_v51 = vld [vmem:[#allocation6 + $0x204] sm:$0xf]  ;;  %v16413_v37 = vor.u32 %v14938_v11, %v13382_v40  ;;  %v16420_v6 = vpop.f32.mrf.mxu0 }
 0x47f   : > { %18145 = vst [vmem:[#allocation172_spill] sm:$0xff] %v16379_v13  ;;  %v16397_v13 = vor.u32 %v14924_v48, %v13326_v8  ;;  %v14970_v48 = vld [vmem:[#allocation6 + $0x284] sm:$0xf]  ;;  %v13510_v8 = vld [vmem:[#allocation6 + $0x288] sm:$0xf0]  ;;  %7331 = vmatpush.bf16.msra.mxu1 %v16401_v10 }
 0x480   : > { %18146 = vst [vmem:[#allocation173_spill] sm:$0xff] %v16382_v28  ;;  %v16418_v9 = vor.u32 %v14970_v48, %v13510_v8 }
 0x481   : > { %18147 = vst [vmem:[#allocation174_spill] sm:$0xff] %v16385_v62  ;;  %v13446_v62 = vld [vmem:[#allocation6 + $0x208] sm:$0xf0]  ;;  %7317 = vmatpush.bf16.msra.mxu0 %v16397_v13  ;;  %7345 = vmatpush.bf16.msra.mxu2 %v16403_v24 }
 0x482   : > { %18148 = vst [vmem:[#allocation175_spill] sm:$0xff] %v16389_v52  ;;  %7358 = vmatpush.bf16.msra.mxu3 %v16394_v1  ;;  %v16409_v52 = vor.u32 %v14922_v49, %v13318_v15  ;;  %v16415_v63 = vor.u32 %v14954_v51, %v13446_v62  ;;  %v16440_v62 = vpop.f32.mrf.mxu2  ;;  %v16443_v15 = vpop.f32.mrf.mxu3  ;;  %v17864_v51 = vperm.slane %v16342_v2, 7  ;;  %v18171_v2 = vld [vmem:[#allocation27_spill] sm:$0xff] }
 0x483   : > { %18149 = vst [vmem:[#allocation176_spill] sm:$0xff] %v16391_v5  ;;  %7332 = vmatpush.bf16.msra.mxu1 %v16413_v37 }
 0x484   : > { %18150 = vst [vmem:[#allocation177_spill] sm:$0xff] %v16394_v1  ;;  %v6400_v11 = vpop.f32.mrf.mxu1 }
 0x485   : > { %18151 = vst [vmem:[#allocation178_spill] sm:$0xff] %v16397_v13  ;;  %7318 = vmatpush.bf16.msra.mxu0 %v16409_v52  ;;  %7346 = vmatpush.bf16.msra.mxu2 %v16415_v63 }
 0x486   : > { %18152 = vst [vmem:[#allocation179_spill] sm:$0xff] %v16401_v10  ;;  %7359 = vmatpush.bf16.msra.mxu3 %v16406_v3  ;;  %7333 = vmatmul.bf16.vlgmr.msra.gmra.mxu1 %v16196_v27  ;;  %v6386_v46 = vpop.f32.mrf.mxu0 }
 0x487   : > { %18153 = vst [vmem:[#allocation180_spill] sm:$0xff] %v16403_v24  ;;  %7385 = vmatpush.bf16.msrb.mxu1 %v16047_v55  ;;  %v6387_v49 = vadd.f32 %v6386_v46, %v6373_v25 }
 0x488   : > { %18154 = vst [vmem:[#allocation181_spill] sm:$0xff] %v16406_v3  ;;  %7319 = vmatmul.bf16.vlgmr.msra.gmra.mxu0 %v16189_v57  ;;  %7347 = vmatmul.bf16.vlgmr.msra.gmra.mxu2 %v16316_v29 }
 0x489   : > { %18155 = vst [vmem:[#allocation182_spill] sm:$0xff] %v16409_v52  ;;  %7371 = vmatpush.bf16.msrb.mxu0 %v16045_v14  ;;  %7399 = vmatpush.bf16.msrb.mxu2 %v16049_v18  ;;  %v16448_v40 = vadd.f32 %v6400_v11, %v6387_v49  ;;  %v18163_v49 = vld [vmem:[#allocation110_spill] sm:$0xff]  ;;  %v18164_v11 = vld [vmem:[#allocation111_spill] sm:$0xff] }
 0x48a   : > { %18156 = vst [vmem:[#allocation183_spill] sm:$0xff] %v16413_v37  ;;  %7360 = vmatpush.bf16.msra.mxu3 %v16418_v9  ;;  %v6414_v25 = vpop.f32.mrf.mxu2  ;;  %v6428_v8 = vpop.f32.mrf.mxu3 }
 0x48b   : > { %18157 = vst [vmem:[#allocation184_spill] sm:$0xff] %v16415_v63  ;;  %7386 = vmatpush.bf16.msrb.mxu1 %v16064_v60  ;;  %v6415_v48 = vadd.f32 %v6414_v25, %v17864_v51  ;;  %v18165_v25 = vld [vmem:[#allocation20_spill] sm:$0xff] }
 0x48c   : > { %18158 = vst [vmem:[#allocation185_spill] sm:$0xff] %v16418_v9  ;;  %v18166_v51 = vperm.slane %v18165_v25, 4 }
 0x48d   : > { %18159 = vst [vmem:[#allocation186_spill] sm:$0xff] %v16420_v6  ;;  %7361 = vmatmul.bf16.vlgmr.msra.gmra.mxu3 %v16322_v30  ;;  %7372 = vmatpush.bf16.msrb.mxu0 %v16060_v26  ;;  %v6429_v46 = vadd.f32 %v6428_v8, %v6415_v48  ;;  %v18168_v8 = vperm.slane %v18165_v25, 5 }
 0x48e   : > { %18160 = vst [vmem:[#allocation187_spill] sm:$0xff] %v16425_v61  ;;  %7413 = vmatpush.bf16.msrb.mxu3 %v16054_v47  ;;  %7400 = vmatpush.bf16.msrb.mxu2 %v16066_v21  ;;  %v16476_v6 = vpop.f32.mrf.mxu0 }
 0x48f   : > { %18161 = vst [vmem:[#allocation188_spill] sm:$0xff] %v16440_v62  ;;  %7387 = vmatpush.bf16.msrb.mxu1 %v16082_v22  ;;  %v18169_v62 = vld [vmem:[#allocation32_spill] sm:$0xff] }
 0x490   : > { %18162 = vst [vmem:[#allocation189_spill] sm:$0xff] %v16443_v15  ;;  %v18167_v15 = vld [vmem:[#allocation26_spill] sm:$0xff]  ;;  %v5577_v61 = vadd.f32 %v18169_v62, %v18168_v8  ;;  %v18175_v62 = vld [vmem:[#allocation35_spill] sm:$0xff]  ;;  %v18179_v8 = vld [vmem:[#allocation125_spill] sm:$0xff] }
 0x491   : > { %7373 = vmatpush.bf16.msrb.mxu0 %v16078_v53  ;;  %v5493_v48 = vadd.f32 %v18167_v15, %v18166_v51  ;;  %18170 = vst [vmem:[#allocation20_spill] sm:$0xff] %v16476_v6  ;;  %v16484_v15 = vpop.f32.mrf.mxu1  ;;  %v18181_v6 = vld [vmem:[#allocation126_spill] sm:$0xff] }
 0x492   : > { %7414 = vmatpush.bf16.msrb.mxu3 %v16071_v31  ;;  %7401 = vmatpush.bf16.msrb.mxu2 %v16084_v12  ;;  %18173 = vst [vmem:[#allocation26_spill] sm:$0xff] %v16484_v15  ;;  %v16496_v25 = vpop.f32.mrf.mxu2  ;;  %v16500_v15 = vpop.f32.mrf.mxu3 }
 0x493   : > { %7388 = vmatpush.bf16.msrb.mxu1 %v16102_v20  ;;  %18177 = vst [vmem:[#allocation32_spill] sm:$0xff] %v16496_v25 }
 0x494   : > { %18180 = vst [vmem:[#allocation27_spill] sm:$0xff] %v16500_v15 }
 0x495   : > { %7374 = vmatpush.bf16.msrb.mxu0 %v16096_v58 }
 0x496   : > { %7415 = vmatpush.bf16.msrb.mxu3 %v16088_v39  ;;  %7402 = vmatpush.bf16.msrb.mxu2 %v16104_v43 }
 0x497   : > { %7389 = vmatpush.bf16.msrb.mxu1 %v16119_v59 }
 0x499   : > { %7375 = vmatpush.bf16.msrb.mxu0 %v16115_v7 }
 0x49a   : > { %7416 = vmatpush.bf16.msrb.mxu3 %v16107_v42  ;;  %7403 = vmatpush.bf16.msrb.mxu2 %v16121_v44 }
 0x49b   : > { %7390 = vmatpush.bf16.msrb.mxu1 %v16134_v54 }
 0x49d   : > { %7376 = vmatpush.bf16.msrb.mxu0 %v16130_v34 }
 0x49e   : > { %7417 = vmatpush.bf16.msrb.mxu3 %v16124_v33  ;;  %7404 = vmatpush.bf16.msrb.mxu2 %v16136_v45 }
 0x49f   : > { %7391 = vmatpush.bf16.msrb.mxu1 %v18163_v49  ;;  %v18172_v49 = vld [vmem:[#allocation33_spill] sm:$0xff] }
 0x4a1   : > { %7377 = vmatpush.bf16.msrb.mxu0 %v16144_v36  ;;  %v5591_v36 = vadd.f32 %v18172_v49, %v5577_v61  ;;  %v18176_v49 = vld [vmem:[#allocation122_spill] sm:$0xff] }
 0x4a2   : > { %7418 = vmatpush.bf16.msrb.mxu3 %v16141_v38  ;;  %7405 = vmatpush.bf16.msrb.mxu2 %v18164_v11  ;;  %v5507_v11 = vadd.f32 %v18171_v2, %v5493_v48  ;;  %v18174_v2 = vld [vmem:[#allocation28_spill] sm:$0xff] }
 0x4a3   : > { %7392 = vmatpush.bf16.msrb.mxu1 %v16163_v35  ;;  %v5605_v51 = vadd.f32 %v18175_v62, %v5591_v36  ;;  %v18178_v48 = vld [vmem:[#allocation124_spill] sm:$0xff]  ;;  %v18184_v36 = vld [vmem:[#allocation127_spill] sm:$0xff]  ;;  %v6456_v25 = vpop.f32.mrf.mxu1 }
 0x4a4   : > { %v5521_v61 = vadd.f32 %v18174_v2, %v5507_v11  ;;  %v18183_v11 = vld [vmem:[#allocation36_spill] sm:$0xff] }
 0x4a5   : > { %7378 = vmatpush.bf16.msrb.mxu0 %v16159_v23  ;;  %v5619_v2 = vadd.f32 %v18183_v11, %v5605_v51  ;;  %v18190_v35 = vld [vmem:[#allocation24_spill] sm:$0xff]  ;;  %v18193_v51 = vld [vmem:[#allocation39_spill] sm:$0xff] }
 0x4a6   : > { %7419 = vmatpush.bf16.msrb.mxu3 %v16153_v0  ;;  %7406 = vmatpush.bf16.msrb.mxu2 %v16165_v4  ;;  %v18189_v4 = vld [vmem:[#allocation30_spill] sm:$0xff] }
 0x4a7   : > { %7441 = vmatpush.bf16.msra.mxu1 %v16175_v50 }
 0x4a8   : > { %7379 = vmatmul.bf16.vlgmr.msrb.gmra.mxu0 %v16189_v57  ;;  %7393 = vmatmul.bf16.vlgmr.msrb.gmra.mxu1 %v16196_v27 }
 0x4a9   : > { %7427 = vmatpush.bf16.msra.mxu0 %v16173_v19  ;;  %7407 = vmatmul.bf16.vlgmr.msrb.gmra.mxu2 %v16316_v29  ;;  %v18185_v19 = vld [vmem:[#allocation129_spill] sm:$0xff] }
 0x4aa   : > { %7420 = vmatpush.bf16.msrb.mxu3 %v16171_v32  ;;  %7455 = vmatpush.bf16.msra.mxu2 %v16177_v56  ;;  %v18182_v56 = vld [vmem:[#allocation29_spill] sm:$0xff] }
 0x4ab   : > { %7442 = vmatpush.bf16.msra.mxu1 %v18178_v48  ;;  %v5535_v50 = vadd.f32 %v18182_v56, %v5521_v61  ;;  %v18187_v48 = vld [vmem:[#allocation38_spill] sm:$0xff]  ;;  %v18191_v56 = vld [vmem:[#allocation133_spill] sm:$0xff]  ;;  %v6470_v11 = vpop.f32.mrf.mxu2 }
 0x4ac   : > { %v5633_v32 = vadd.f32 %v18187_v48, %v5619_v2  ;;  %v18192_v61 = vld [vmem:[#allocation134_spill] sm:$0xff]  ;;  %v18196_v2 = vld [vmem:[#allocation21_spill] sm:$0xff] }
 0x4ad   : > { %7421 = vmatmul.bf16.vlgmr.msrb.gmra.mxu3 %v16322_v30  ;;  %7428 = vmatpush.bf16.msra.mxu0 %v18176_v49  ;;  %v18186_v49 = vld [vmem:[#allocation130_spill] sm:$0xff] }
 0x4ae   : > { %7469 = vmatpush.bf16.msra.mxu3 %v16182_v17  ;;  %7456 = vmatpush.bf16.msra.mxu2 %v18179_v8  ;;  %v6442_v17 = vpop.f32.mrf.mxu0  ;;  %v18188_v8 = vld [vmem:[#allocation132_spill] sm:$0xff] }
 0x4af   : > { %v6443_v62 = vadd.f32 %v6442_v17, %v6429_v46  ;;  %7443 = vmatpush.bf16.msra.mxu1 %v18185_v19  ;;  %v5647_v17 = vadd.f32 %v18193_v51, %v5633_v32  ;;  %v18194_v46 = vld [vmem:[#allocation135_spill] sm:$0xff]  ;;  %v6484_v19 = vpop.f32.mrf.mxu3 }
 0x4b1   : > { %7429 = vmatpush.bf16.msra.mxu0 %v18184_v36  ;;  %v6457_v15 = vadd.f32 %v6456_v25, %v6443_v62  ;;  %v18195_v36 = vld [vmem:[#allocation31_spill] sm:$0xff]  ;;  %v18197_v25 = vld [vmem:[#allocation25_spill] sm:$0xff]  ;;  %v6510_v62 = vmax.f32 %v5647_v17, 0.0 }
 0x4b2   : > { %7470 = vmatpush.bf16.msra.mxu3 %v18181_v6  ;;  %7457 = vmatpush.bf16.msra.mxu2 %v18186_v49  ;;  %v5549_v6 = vadd.f32 %v18189_v4, %v5535_v50  ;;  %v18198_v50 = vld [vmem:[#allocation136_spill] sm:$0xff]  ;;  %v18208_v17 = vld [vmem:[#allocation145_spill] sm:$0xff] }
 0x4b3   : > { %7444 = vmatpush.bf16.msra.mxu1 %v18191_v56  ;;  %v6471_v49 = vadd.f32 %v6470_v11, %v6457_v15  ;;  %v18199_v56 = vld [vmem:[#allocation137_spill] sm:$0xff]  ;;  %v18202_v11 = vld [vmem:[#allocation138_spill] sm:$0xff] }
 0x4b4   : > { %v5563_v48 = vadd.f32 %v18195_v36, %v5549_v6  ;;  %v18203_v6 = vld [vmem:[#allocation139_spill] sm:$0xff] }
 0x4b5   : > { %7430 = vmatpush.bf16.msra.mxu0 %v18190_v35  ;;  %v6485_v4 = vadd.f32 %v6484_v19, %v6471_v49  ;;  %v18206_v19 = vld [vmem:[#allocation143_spill] sm:$0xff]  ;;  %v18207_v49 = vld [vmem:[#allocation144_spill] sm:$0xff] }
 0x4b6   : > { %7471 = vmatpush.bf16.msra.mxu3 %v18188_v8  ;;  %7458 = vmatpush.bf16.msra.mxu2 %v18192_v61  ;;  %v6503_v61 = vmax.f32 %v16448_v40, 0.0  ;;  %v6509_v51 = vmax.f32 %v5563_v48, 0.0 }
 0x4b7   : > { %7445 = vmatpush.bf16.msra.mxu1 %v18197_v25  ;;  %v6504_v32 = vmax.f32 %v6485_v4, 0.0  ;;  %v18204_v25 = vld [vmem:[#allocation140_spill] sm:$0xff]  ;;  %v18209_v4 = vld [vmem:[#allocation34_spill] sm:$0xff] }
 0x4b8   : > { %v6531_v36 = vpack.c.bf16 %v6510_v62, %v6509_v51  ;;  %v18211_v62 = vld [vmem:[#allocation148_spill] sm:$0xff] }
 0x4b9   : > { %7431 = vmatpush.bf16.msra.mxu0 %v18196_v2  ;;  %v16523_v15 = vpack.c.bf16 %v6504_v32, %v6503_v61  ;;  %v6557_v61 = vunpack.c.l.b16 %v18209_v4  ;;  %v6558_v32 = vunpack.c.h.b16 %v18209_v4  ;;  %v18218_v4 = vld [vmem:[#allocation23_spill] sm:$0xff] }
 0x4ba   : > { %7472 = vmatpush.bf16.msra.mxu3 %v18194_v46  ;;  %7459 = vmatpush.bf16.msra.mxu2 %v18198_v50  ;;  %v18200_v46 = vld [vmem:[#allocation22_spill] sm:$0xff]  ;;  %v18205_v50 = vld [vmem:[#allocation141_spill] sm:$0xff]  ;;  %v6573_v40 = vunpack.c.l.b16 %v6531_v36  ;;  %v6574_v48 = vunpack.c.h.b16 %v6531_v36  ;;  %v16545_v36 = vpop.f32.mrf.mxu1 }
 0x4bb   : > { %18201 = vst [vmem:[#allocation33_spill] sm:$0xff] %v16523_v15  ;;  %7446 = vmatpush.bf16.msra.mxu1 %v18202_v11  ;;  %v18210_v15 = vld [vmem:[#allocation147_spill] sm:$0xff] }
 0x4bc   : > { %v16537_v51 = vpack.c.b16 %v6573_v40, %v6557_v61  ;;  %18215 = vst [vmem:[#allocation35_spill] sm:$0xff] %v16545_v36  ;;  %v16551_v40 = vld [vmem:[#allocation7] sm:$0x3]  ;;  %v16557_v61 = vpop.f32.mrf.mxu2  ;;  %v18222_v36 = vld [vmem:[#allocation157_spill] sm:$0xff] }
 0x4bd   : > { %7432 = vmatpush.bf16.msra.mxu0 %v18200_v46  ;;  %18220 = vst [vmem:[#allocation29_spill] sm:$0xff] %v16557_v61 }
 0x4be   : > { %7473 = vmatpush.bf16.msra.mxu3 %v18199_v56  ;;  %7460 = vmatpush.bf16.msra.mxu2 %v18203_v6 }
 0x4bf   : > { %7447 = vmatpush.bf16.msra.mxu1 %v18206_v19  ;;  %v18213_v19 = vld [vmem:[#allocation149_spill] sm:$0xff] }
 0x4c1   : > { %7433 = vmatpush.bf16.msra.mxu0 %v18205_v50  ;;  %v16539_v50 = vpop.f32.mrf.mxu0 }
 0x4c2   : > { %7474 = vmatpush.bf16.msra.mxu3 %v18204_v25  ;;  %7461 = vmatpush.bf16.msra.mxu2 %v18207_v49  ;;  %18212 = vst [vmem:[#allocation28_spill] sm:$0xff] %v16539_v50  ;;  %v18214_v49 = vld [vmem:[#allocation150_spill] sm:$0xff]  ;;  %v18216_v25 = vld [vmem:[#allocation151_spill] sm:$0xff]  ;;  %v16562_v50 = vperm.slane %v16551_v40, 0 }
 0x4c3   : > { %7448 = vmatpush.bf16.msra.mxu1 %v18210_v15  ;;  %v18233_v15 = vld [vmem:[#allocation169_spill] sm:$0xff] }
 0x4c4   : > { %18223 = vst [vmem:[#allocation36_spill] sm:$0xff] %v16562_v50 }
 0x4c5   : > { %7434 = vmatpush.bf16.msra.mxu0 %v16290_v16  ;;  %v18217_v16 = vld [vmem:[#allocation152_spill] sm:$0xff] }
 0x4c6   : > { %7475 = vmatpush.bf16.msra.mxu3 %v18208_v17  ;;  %7462 = vmatpush.bf16.msra.mxu2 %v18211_v62  ;;  %v16543_v17 = vpack.c.b16 %v6574_v48, %v6558_v32  ;;  %v18219_v48 = vld [vmem:[#allocation154_spill] sm:$0xff]  ;;  %v18221_v32 = vld [vmem:[#allocation156_spill] sm:$0xff]  ;;  %v18231_v62 = vld [vmem:[#allocation167_spill] sm:$0xff] }
 0x4c7   : > { %7497 = vmatpush.bf16.msrb.mxu1 %v18216_v25  ;;  %v18226_v25 = vld [vmem:[#allocation159_spill] sm:$0xff] }
 0x4c8   : > { %7435 = vmatmul.bf16.vlgmr.msra.gmra.mxu0 %v16537_v51  ;;  %7449 = vmatmul.bf16.vlgmr.msra.gmra.mxu1 %v16543_v17 }
 0x4c9   : > { %7483 = vmatpush.bf16.msrb.mxu0 %v18214_v49  ;;  %7463 = vmatmul.bf16.vlgmr.msra.gmra.mxu2 %v16189_v57  ;;  %v7208_v57 = vpop.f32.mrf.mxu0  ;;  %v18227_v49 = vld [vmem:[#allocation161_spill] sm:$0xff] }
 0x4ca   : > { %7476 = vmatpush.bf16.msra.mxu3 %v18213_v19  ;;  %7511 = vmatpush.bf16.msrb.mxu2 %v18217_v16  ;;  %v16565_v16 = vpop.f32.mrf.mxu3  ;;  %v7209_v61 = vadd.f32 %v7208_v57, %v16562_v50  ;;  %v18230_v19 = vld [vmem:[#allocation166_spill] sm:$0xff]  ;;  %v18235_v57 = vld [vmem:[#allocation172_spill] sm:$0xff] }
 0x4cb   : > { %7498 = vmatpush.bf16.msrb.mxu1 %v18221_v32  ;;  %18225 = vst [vmem:[#allocation38_spill] sm:$0xff] %v16565_v16  ;;  %v18229_v32 = vld [vmem:[#allocation164_spill] sm:$0xff]  ;;  %v7236_v16 = vpop.f32.mrf.mxu2 }
 0x4cd   : > { %7477 = vmatmul.bf16.vlgmr.msra.gmra.mxu3 %v16196_v27  ;;  %7484 = vmatpush.bf16.msrb.mxu0 %v18219_v48  ;;  %v18228_v27 = vld [vmem:[#allocation162_spill] sm:$0xff]  ;;  %v7222_v48 = vpop.f32.mrf.mxu1 }
 0x4ce   : > { %7525 = vmatpush.bf16.msrb.mxu3 %v18218_v4  ;;  %7512 = vmatpush.bf16.msrb.mxu2 %v18222_v36  ;;  %v18224_v4 = vld [vmem:[#allocation158_spill] sm:$0xff]  ;;  %v7223_v36 = vadd.f32 %v7222_v48, %v7209_v61  ;;  %v18237_v61 = vld [vmem:[#allocation175_spill] sm:$0xff] }
 0x4cf   : > { %7499 = vmatpush.bf16.msrb.mxu1 %v18227_v49  ;;  %v18234_v49 = vld [vmem:[#allocation170_spill] sm:$0xff] }
 0x4d0   : > { %v18236_v48 = vld [vmem:[#allocation174_spill] sm:$0xff] }
 0x4d1   : > { %7485 = vmatpush.bf16.msrb.mxu0 %v18226_v25  ;;  %v7237_v25 = vadd.f32 %v7236_v16, %v7223_v36  ;;  %v16589_v16 = vpop.f32.mrf.mxu0 }
 0x4d2   : > { %7526 = vmatpush.bf16.msrb.mxu3 %v18224_v4  ;;  %7513 = vmatpush.bf16.msrb.mxu2 %v18228_v27  ;;  %v18232_v4 = vld [vmem:[#allocation168_spill] sm:$0xff]  ;;  %v7250_v6 = vpop.f32.mrf.mxu3  ;;  %18238 = vst [vmem:[#allocation132_spill] sm:$0xff] %v16589_v16 }
 0x4d3   : > { %7500 = vmatpush.bf16.msrb.mxu1 %v18231_v62  ;;  %v7251_v27 = vadd.f32 %v7250_v6, %v7237_v25  ;;  %v16607_v6 = vpop.f32.mrf.mxu2 }
 0x4d4   : > { %18240 = vst [vmem:[#allocation24_spill] sm:$0xff] %v16607_v6 }
 0x4d5   : > { %7486 = vmatpush.bf16.msrb.mxu0 %v18230_v19  ;;  %v16595_v25 = vpop.f32.mrf.mxu1 }
 0x4d6   : > { %7527 = vmatpush.bf16.msrb.mxu3 %v18229_v32  ;;  %7514 = vmatpush.bf16.msrb.mxu2 %v18232_v4  ;;  %18239 = vst [vmem:[#allocation30_spill] sm:$0xff] %v16595_v25 }
 0x4d7   : > { %7501 = vmatpush.bf16.msrb.mxu1 %v16377_v41 }
 0x4d9   : > { %7487 = vmatpush.bf16.msrb.mxu0 %v18234_v49 }
 0x4da   : > { %7528 = vmatpush.bf16.msrb.mxu3 %v18233_v15  ;;  %7515 = vmatpush.bf16.msrb.mxu2 %v18235_v57  ;;  %v16610_v25 = vpop.f32.mrf.mxu3 }
 0x4db   : > { %7502 = vmatpush.bf16.msrb.mxu1 %v18237_v61  ;;  %18241 = vst [vmem:[#allocation39_spill] sm:$0xff] %v16610_v25 }
 0x4dd   : > { %7488 = vmatpush.bf16.msrb.mxu0 %v18236_v48 }
 0x4de   : > { %7529 = vmatpush.bf16.msrb.mxu3 %v16382_v28  ;;  %7516 = vmatpush.bf16.msrb.mxu2 %v16391_v5 }
 0x4df   : > { %7503 = vmatpush.bf16.msrb.mxu1 %v16401_v10 }
 0x4e1   : > { %7489 = vmatpush.bf16.msrb.mxu0 %v16397_v13  ;;  %v7264_v36 = vpop.f32.mrf.mxu0 }
 0x4e2   : > { %7530 = vmatpush.bf16.msrb.mxu3 %v16394_v1  ;;  %7517 = vmatpush.bf16.msrb.mxu2 %v16403_v24  ;;  %v7265_v16 = vadd.f32 %v7264_v36, %v7251_v27 }
 0x4e3   : > { %7504 = vmatpush.bf16.msrb.mxu1 %v16413_v37 }
 0x4e5   : > { %7490 = vmatpush.bf16.msrb.mxu0 %v16409_v52 }
 0x4e6   : > { %7531 = vmatpush.bf16.msrb.mxu3 %v16406_v3  ;;  %7518 = vmatpush.bf16.msrb.mxu2 %v16415_v63 }
 0x4e7   : > { %7557 = vmatpush.bf16.msra.mxu1 %v16047_v55 }
 0x4e8   : > { %7491 = vmatmul.bf16.vlgmr.msrb.gmra.mxu0 %v16316_v29  ;;  %7505 = vmatmul.bf16.vlgmr.msrb.gmra.mxu1 %v16322_v30 }
 0x4e9   : > { %7543 = vmatpush.bf16.msra.mxu0 %v16045_v14  ;;  %7519 = vmatmul.bf16.vlgmr.msrb.gmra.mxu2 %v16537_v51 }
 0x4ea   : > { %7532 = vmatpush.bf16.msrb.mxu3 %v16418_v9  ;;  %7571 = vmatpush.bf16.msra.mxu2 %v16049_v18 }
 0x4eb   : > { %7558 = vmatpush.bf16.msra.mxu1 %v16064_v60  ;;  %v7292_v27 = vpop.f32.mrf.mxu2 }
 0x4ed   : > { %7533 = vmatmul.bf16.vlgmr.msrb.gmra.mxu3 %v16543_v17  ;;  %7544 = vmatpush.bf16.msra.mxu0 %v16060_v26  ;;  %v7306_v25 = vpop.f32.mrf.mxu3 }
 0x4ee   : > { %7585 = vmatpush.bf16.msra.mxu3 %v16054_v47  ;;  %7572 = vmatpush.bf16.msra.mxu2 %v16066_v21  ;;  %v7278_v47 = vpop.f32.mrf.mxu1  ;;  %v16619_v21 = vperm.slane %v16551_v40, 1  ;;  %v18244_v40 = vld [vmem:[#allocation109_spill] sm:$0xff] }
 0x4ef   : > { %7559 = vmatpush.bf16.msra.mxu1 %v16082_v22  ;;  %v16616_v60 = vadd.f32 %v7278_v47, %v7265_v16  ;;  %v18245_v16 = vld [vmem:[#allocation110_spill] sm:$0xff] }
 0x4f0   : > { %18243 = vst [vmem:[#allocation21_spill] sm:$0xff] %v16619_v21  ;;  %v7293_v36 = vadd.f32 %v7292_v27, %v16619_v21  ;;  %v18246_v27 = vld [vmem:[#allocation111_spill] sm:$0xff] }
 0x4f1   : > { %7545 = vmatpush.bf16.msra.mxu0 %v16078_v53  ;;  %18242 = vst [vmem:[#allocation31_spill] sm:$0xff] %v16616_v60  ;;  %v18247_v60 = vld [vmem:[#allocation37_spill] sm:$0xff] }
 0x4f2   : > { %7586 = vmatpush.bf16.msra.mxu3 %v16071_v31  ;;  %7573 = vmatpush.bf16.msra.mxu2 %v16084_v12  ;;  %v7307_v47 = vadd.f32 %v7306_v25, %v7293_v36  ;;  %v18248_v6 = vperm.slane %v18247_v60, 6  ;;  %v18250_v36 = vperm.slane %v18247_v60, 7 }
 0x4f3   : > { %7560 = vmatpush.bf16.msra.mxu1 %v16102_v20 }
 0x4f5   : > { %7546 = vmatpush.bf16.msra.mxu0 %v16096_v58 }
 0x4f6   : > { %7587 = vmatpush.bf16.msra.mxu3 %v16088_v39  ;;  %7574 = vmatpush.bf16.msra.mxu2 %v16104_v43  ;;  %v16653_v60 = vpop.f32.mrf.mxu1 }
 0x4f7   : > { %7561 = vmatpush.bf16.msra.mxu1 %v16119_v59  ;;  %18259 = vst [vmem:[#allocation34_spill] sm:$0xff] %v16653_v60  ;;  %v16665_v60 = vpop.f32.mrf.mxu2 }
 0x4f8   : > { %18266 = vst [vmem:[#allocation164_spill] sm:$0xff] %v16665_v60 }
 0x4f9   : > { %7547 = vmatpush.bf16.msra.mxu0 %v16115_v7  ;;  %v18257_v7 = vld [vmem:[#allocation116_spill] sm:$0xff] }
 0x4fa   : > { %7588 = vmatpush.bf16.msra.mxu3 %v16107_v42  ;;  %7575 = vmatpush.bf16.msra.mxu2 %v16121_v44  ;;  %v18249_v44 = vld [vmem:[#allocation40_spill] sm:$0xff] }
 0x4fb   : > { %7562 = vmatpush.bf16.msra.mxu1 %v16134_v54  ;;  %v5661_v25 = vadd.f32 %v18249_v44, %v18248_v6  ;;  %v18256_v54 = vld [vmem:[#allocation47_spill] sm:$0xff]  ;;  %v18258_v44 = vld [vmem:[#allocation117_spill] sm:$0xff] }
 0x4fc   : > { %v18261_v6 = vld [vmem:[#allocation119_spill] sm:$0xff] }
 0x4fd   : > { %7548 = vmatpush.bf16.msra.mxu0 %v16130_v34 }
 0x4fe   : > { %7589 = vmatpush.bf16.msra.mxu3 %v16124_v33  ;;  %7576 = vmatpush.bf16.msra.mxu2 %v16136_v45  ;;  %v18251_v33 = vld [vmem:[#allocation46_spill] sm:$0xff]  ;;  %v16645_v45 = vpop.f32.mrf.mxu0 }
 0x4ff   : > { %7563 = vmatpush.bf16.msra.mxu1 %v18245_v16  ;;  %v5745_v34 = vadd.f32 %v18251_v33, %v18250_v36  ;;  %18252 = vst [vmem:[#allocation137_spill] sm:$0xff] %v16645_v45  ;;  %v18255_v16 = vld [vmem:[#allocation41_spill] sm:$0xff]  ;;  %v18260_v33 = vld [vmem:[#allocation118_spill] sm:$0xff]  ;;  %v18262_v36 = vld [vmem:[#allocation120_spill] sm:$0xff] }
 0x500   : > { %v18265_v45 = vld [vmem:[#allocation122_spill] sm:$0xff] }
 0x501   : > { %7549 = vmatpush.bf16.msra.mxu0 %v18244_v40  ;;  %v18254_v40 = vld [vmem:[#allocation115_spill] sm:$0xff]  ;;  %v5759_v59 = vadd.f32 %v18256_v54, %v5745_v34  ;;  %v18264_v54 = vld [vmem:[#allocation49_spill] sm:$0xff] }
 0x502   : > { %7590 = vmatpush.bf16.msra.mxu3 %v16141_v38  ;;  %7577 = vmatpush.bf16.msra.mxu2 %v18246_v27  ;;  %v18253_v38 = vld [vmem:[#allocation114_spill] sm:$0xff]  ;;  %v5675_v27 = vadd.f32 %v18255_v16, %v5661_v25 }
 0x503   : > { %7564 = vmatpush.bf16.msra.mxu1 %v18253_v38  ;;  %v18263_v16 = vld [vmem:[#allocation42_spill] sm:$0xff]  ;;  %v5773_v25 = vadd.f32 %v18264_v54, %v5759_v59  ;;  %v18273_v59 = vld [vmem:[#allocation127_spill] sm:$0xff]  ;;  %v7334_v60 = vpop.f32.mrf.mxu1 }
 0x504   : > { %v5689_v34 = vadd.f32 %v18263_v16, %v5675_v27  ;;  %v18272_v27 = vld [vmem:[#allocation50_spill] sm:$0xff] }
 0x505   : > { %7550 = vmatpush.bf16.msra.mxu0 %v16159_v23  ;;  %v5787_v16 = vadd.f32 %v18272_v27, %v5773_v25  ;;  %v18274_v23 = vld [vmem:[#allocation129_spill] sm:$0xff] }
 0x506   : > { %7591 = vmatpush.bf16.msra.mxu3 %v16153_v0  ;;  %7578 = vmatpush.bf16.msra.mxu2 %v18254_v40  ;;  %v18271_v40 = vld [vmem:[#allocation43_spill] sm:$0xff]  ;;  %v18280_v25 = vld [vmem:[#allocation53_spill] sm:$0xff] }
 0x507   : > { %7613 = vmatpush.bf16.msrb.mxu1 %v18260_v33  ;;  %v18267_v33 = vld [vmem:[#allocation124_spill] sm:$0xff]  ;;  %v5703_v38 = vadd.f32 %v18271_v40, %v5689_v34  ;;  %v18278_v40 = vld [vmem:[#allocation133_spill] sm:$0xff]  ;;  %v18279_v34 = vld [vmem:[#allocation134_spill] sm:$0xff] }
 0x508   : > { %7551 = vmatmul.bf16.vlgmr.msra.gmra.mxu0 %v16316_v29  ;;  %7565 = vmatmul.bf16.vlgmr.msra.gmra.mxu1 %v16322_v30 }
 0x509   : > { %7599 = vmatpush.bf16.msrb.mxu0 %v18258_v44  ;;  %7579 = vmatmul.bf16.vlgmr.msra.gmra.mxu2 %v16537_v51  ;;  %v16670_v44 = vpop.f32.mrf.mxu3 }
 0x50a   : > { %7592 = vmatpush.bf16.msra.mxu3 %v18257_v7  ;;  %7627 = vmatpush.bf16.msrb.mxu2 %v18261_v6  ;;  %v18268_v6 = vld [vmem:[#allocation125_spill] sm:$0xff]  ;;  %18270 = vst [vmem:[#allocation166_spill] sm:$0xff] %v16670_v44  ;;  %v7320_v7 = vpop.f32.mrf.mxu0 }
 0x50b   : > { %7614 = vmatpush.bf16.msrb.mxu1 %v18267_v33  ;;  %v7321_v54 = vadd.f32 %v7320_v7, %v7307_v47  ;;  %v18276_v33 = vld [vmem:[#allocation52_spill] sm:$0xff]  ;;  %v18281_v47 = vld [vmem:[#allocation135_spill] sm:$0xff]  ;;  %v7348_v27 = vpop.f32.mrf.mxu2 }
 0x50c   : > { %v5801_v0 = vadd.f32 %v18276_v33, %v5787_v16 }
 0x50d   : > { %7593 = vmatmul.bf16.vlgmr.msra.gmra.mxu3 %v16543_v17  ;;  %7600 = vmatpush.bf16.msrb.mxu0 %v18265_v45  ;;  %v18275_v45 = vld [vmem:[#allocation130_spill] sm:$0xff] }
 0x50e   : > { %7641 = vmatpush.bf16.msrb.mxu3 %v18262_v36  ;;  %7628 = vmatpush.bf16.msrb.mxu2 %v18268_v6  ;;  %v18269_v36 = vld [vmem:[#allocation126_spill] sm:$0xff]  ;;  %v18277_v6 = vld [vmem:[#allocation44_spill] sm:$0xff]  ;;  %v5815_v7 = vadd.f32 %v18280_v25, %v5801_v0  ;;  %v18286_v0 = vld [vmem:[#allocation139_spill] sm:$0xff] }
 0x50f   : > { %7615 = vmatpush.bf16.msrb.mxu1 %v18274_v23  ;;  %v5717_v44 = vadd.f32 %v18277_v6, %v5703_v38  ;;  %v18282_v23 = vld [vmem:[#allocation45_spill] sm:$0xff]  ;;  %v18284_v38 = vld [vmem:[#allocation136_spill] sm:$0xff]  ;;  %v18289_v25 = vld [vmem:[#allocation143_spill] sm:$0xff] }
 0x510   : > { %v6512_v16 = vmax.f32 %v5815_v7, 0.0  ;;  %v18291_v7 = vld [vmem:[#allocation145_spill] sm:$0xff] }
 0x511   : > { %7601 = vmatpush.bf16.msrb.mxu0 %v18273_v59  ;;  %v5731_v59 = vadd.f32 %v18282_v23, %v5717_v44  ;;  %v7362_v33 = vpop.f32.mrf.mxu3  ;;  %v18287_v44 = vld [vmem:[#allocation140_spill] sm:$0xff] }
 0x512   : > { %7642 = vmatpush.bf16.msrb.mxu3 %v18269_v36  ;;  %7629 = vmatpush.bf16.msrb.mxu2 %v18275_v45  ;;  %v7335_v36 = vadd.f32 %v7334_v60, %v7321_v54  ;;  %v18283_v60 = vld [vmem:[#allocation25_spill] sm:$0xff] }
 0x513   : > { %7616 = vmatpush.bf16.msrb.mxu1 %v18278_v40  ;;  %v6511_v54 = vmax.f32 %v5731_v59, 0.0  ;;  %v18292_v59 = vld [vmem:[#allocation48_spill] sm:$0xff] }
 0x514   : > { %v7349_v45 = vadd.f32 %v7348_v27, %v7335_v36  ;;  %v18288_v36 = vld [vmem:[#allocation141_spill] sm:$0xff]  ;;  %v18290_v27 = vld [vmem:[#allocation144_spill] sm:$0xff] }
 0x515   : > { %7602 = vmatpush.bf16.msrb.mxu0 %v18190_v35  ;;  %v6532_v23 = vpack.c.bf16 %v6512_v16, %v6511_v54  ;;  %v18295_v16 = vld [vmem:[#allocation147_spill] sm:$0xff]  ;;  %v18296_v54 = vld [vmem:[#allocation148_spill] sm:$0xff] }
 0x516   : > { %7643 = vmatpush.bf16.msrb.mxu3 %v18188_v8  ;;  %7630 = vmatpush.bf16.msrb.mxu2 %v18279_v34  ;;  %v16689_v6 = vadd.f32 %v7362_v33, %v7349_v45 }
 0x517   : > { %7617 = vmatpush.bf16.msrb.mxu1 %v18283_v60  ;;  %v6575_v45 = vunpack.c.l.b16 %v6532_v23  ;;  %v6576_v33 = vunpack.c.h.b16 %v6532_v23  ;;  %v16713_v23 = vpop.f32.mrf.mxu1 }
 0x518   : > { %18285 = vst [vmem:[#allocation167_spill] sm:$0xff] %v16689_v6  ;;  %v6559_v6 = vunpack.c.l.b16 %v18292_v59 }
 0x519   : > { %7603 = vmatpush.bf16.msrb.mxu0 %v18196_v2  ;;  %18299 = vst [vmem:[#allocation37_spill] sm:$0xff] %v16713_v23  ;;  %v18307_v23 = vld [vmem:[#allocation158_spill] sm:$0xff] }
 0x51a   : > { %7644 = vmatpush.bf16.msrb.mxu3 %v18281_v47  ;;  %7631 = vmatpush.bf16.msrb.mxu2 %v18284_v38 }
 0x51b   : > { %7618 = vmatpush.bf16.msrb.mxu1 %v18202_v11  ;;  %v6560_v11 = vunpack.c.h.b16 %v18292_v59  ;;  %v18302_v59 = vld [vmem:[#allocation23_spill] sm:$0xff] }
 0x51d   : > { %7604 = vmatpush.bf16.msrb.mxu0 %v18200_v46  ;;  %v18293_v46 = vld [vmem:[#allocation146_spill] sm:$0xff] }
 0x51e   : > { %7645 = vmatpush.bf16.msrb.mxu3 %v18199_v56  ;;  %7632 = vmatpush.bf16.msrb.mxu2 %v18286_v0  ;;  %v16703_v0 = vpop.f32.mrf.mxu0 }
 0x51f   : > { %7619 = vmatpush.bf16.msrb.mxu1 %v18289_v25  ;;  %18294 = vst [vmem:[#allocation168_spill] sm:$0xff] %v16703_v0  ;;  %v18297_v25 = vld [vmem:[#allocation149_spill] sm:$0xff] }
 0x521   : > { %7605 = vmatpush.bf16.msrb.mxu0 %v18288_v36  ;;  %v16707_v36 = vpack.c.b16 %v6575_v45, %v6559_v6  ;;  %v18303_v6 = vld [vmem:[#allocation154_spill] sm:$0xff]  ;;  %v18305_v45 = vld [vmem:[#allocation157_spill] sm:$0xff] }
 0x522   : > { %7646 = vmatpush.bf16.msrb.mxu3 %v18287_v44  ;;  %7633 = vmatpush.bf16.msrb.mxu2 %v18290_v27  ;;  %v18298_v27 = vld [vmem:[#allocation150_spill] sm:$0xff]  ;;  %v18300_v44 = vld [vmem:[#allocation151_spill] sm:$0xff] }
 0x523   : > { %7620 = vmatpush.bf16.msrb.mxu1 %v18295_v16 }
 0x525   : > { %7606 = vmatpush.bf16.msrb.mxu0 %v18293_v46  ;;  %v18301_v46 = vld [vmem:[#allocation152_spill] sm:$0xff] }
 0x526   : > { %7647 = vmatpush.bf16.msrb.mxu3 %v18291_v7  ;;  %7634 = vmatpush.bf16.msrb.mxu2 %v18296_v54  ;;  %v16711_v7 = vpack.c.b16 %v6576_v33, %v6560_v11  ;;  %v18304_v11 = vld [vmem:[#allocation156_spill] sm:$0xff]  ;;  %v16725_v33 = vpop.f32.mrf.mxu2  ;;  %v7380_v0 = vpop.f32.mrf.mxu0 }
 0x527   : > { %7669 = vmatpush.bf16.msra.mxu1 %v18300_v44  ;;  %18306 = vst [vmem:[#allocation40_spill] sm:$0xff] %v16725_v33  ;;  %v7381_v44 = vadd.f32 %v7380_v0, %v16562_v50 }
 0x528   : > { %7607 = vmatmul.bf16.vlgmr.msrb.gmra.mxu0 %v16707_v36  ;;  %7621 = vmatmul.bf16.vlgmr.msrb.gmra.mxu1 %v16711_v7 }
 0x529   : > { %7655 = vmatpush.bf16.msra.mxu0 %v18298_v27  ;;  %7635 = vmatmul.bf16.vlgmr.msrb.gmra.mxu2 %v16316_v29  ;;  %v18310_v29 = vld [vmem:[#allocation161_spill] sm:$0xff] }
 0x52a   : > { %7648 = vmatpush.bf16.msrb.mxu3 %v18297_v25  ;;  %7683 = vmatpush.bf16.msra.mxu2 %v18301_v46  ;;  %v18309_v46 = vld [vmem:[#allocation159_spill] sm:$0xff] }
 0x52b   : > { %7670 = vmatpush.bf16.msra.mxu1 %v18304_v11 }
 0x52d   : > { %7649 = vmatmul.bf16.vlgmr.msrb.gmra.mxu3 %v16322_v30  ;;  %7656 = vmatpush.bf16.msra.mxu0 %v18303_v6  ;;  %v18311_v30 = vld [vmem:[#allocation162_spill] sm:$0xff]  ;;  %v7394_v6 = vpop.f32.mrf.mxu1 }
 0x52e   : > { %7697 = vmatpush.bf16.msra.mxu3 %v18302_v59  ;;  %7684 = vmatpush.bf16.msra.mxu2 %v18305_v45  ;;  %v16728_v59 = vpop.f32.mrf.mxu3  ;;  %v7395_v11 = vadd.f32 %v7394_v6, %v7381_v44  ;;  %v16752_v44 = vpop.f32.mrf.mxu0  ;;  %v18314_v6 = vld [vmem:[#allocation85_spill] sm:$0xff] }
 0x52f   : > { %18308 = vst [vmem:[#allocation46_spill] sm:$0xff] %v16728_v59  ;;  %7671 = vmatpush.bf16.msra.mxu1 %v18310_v29  ;;  %v7408_v59 = vpop.f32.mrf.mxu2 }
 0x530   : > { %v7409_v33 = vadd.f32 %v7408_v59, %v7395_v11  ;;  %18312 = vst [vmem:[#allocation41_spill] sm:$0xff] %v16752_v44  ;;  %v18315_v11 = vld [vmem:[#allocation88_spill] sm:$0xff] }
 0x531   : > { %7657 = vmatpush.bf16.msra.mxu0 %v18309_v46 }
 0x532   : > { %7698 = vmatpush.bf16.msra.mxu3 %v18307_v23  ;;  %7685 = vmatpush.bf16.msra.mxu2 %v18311_v30 }
 0x533   : > { %7672 = vmatpush.bf16.msra.mxu1 %v18231_v62 }
 0x535   : > { %7658 = vmatpush.bf16.msra.mxu0 %v18230_v19  ;;  %v16758_v59 = vpop.f32.mrf.mxu1 }
 0x536   : > { %7699 = vmatpush.bf16.msra.mxu3 %v18229_v32  ;;  %7686 = vmatpush.bf16.msra.mxu2 %v18232_v4  ;;  %v7422_v0 = vpop.f32.mrf.mxu3  ;;  %18313 = vst [vmem:[#allocation47_spill] sm:$0xff] %v16758_v59 }
 0x537   : > { %7673 = vmatpush.bf16.msra.mxu1 %v16377_v41  ;;  %v7423_v30 = vadd.f32 %v7422_v0, %v7409_v33  ;;  %v18316_v33 = vld [vmem:[#allocation89_spill] sm:$0xff]  ;;  %v16770_v0 = vpop.f32.mrf.mxu2 }
 0x538   : > { %18317 = vst [vmem:[#allocation42_spill] sm:$0xff] %v16770_v0 }
 0x539   : > { %7659 = vmatpush.bf16.msra.mxu0 %v18234_v49 }
 0x53a   : > { %7700 = vmatpush.bf16.msra.mxu3 %v18233_v15  ;;  %7687 = vmatpush.bf16.msra.mxu2 %v18235_v57 }
 0x53b   : > { %7674 = vmatpush.bf16.msra.mxu1 %v18237_v61 }
 0x53d   : > { %7660 = vmatpush.bf16.msra.mxu0 %v18236_v48 }
 0x53e   : > { %7701 = vmatpush.bf16.msra.mxu3 %v16382_v28  ;;  %7688 = vmatpush.bf16.msra.mxu2 %v16391_v5  ;;  %v16773_v44 = vpop.f32.mrf.mxu3 }
 0x53f   : > { %7675 = vmatpush.bf16.msra.mxu1 %v16401_v10  ;;  %18318 = vst [vmem:[#allocation49_spill] sm:$0xff] %v16773_v44 }
 0x541   : > { %7661 = vmatpush.bf16.msra.mxu0 %v16397_v13 }
 0x542   : > { %7702 = vmatpush.bf16.msra.mxu3 %v16394_v1  ;;  %7689 = vmatpush.bf16.msra.mxu2 %v16403_v24 }
 0x543   : > { %7676 = vmatpush.bf16.msra.mxu1 %v16413_v37 }
 0x545   : > { %7662 = vmatpush.bf16.msra.mxu0 %v16409_v52  ;;  %v7436_v59 = vpop.f32.mrf.mxu0 }
 0x546   : > { %7703 = vmatpush.bf16.msra.mxu3 %v16406_v3  ;;  %7690 = vmatpush.bf16.msra.mxu2 %v16415_v63 }
 0x547   : > { %7729 = vmatpush.bf16.msrb.mxu1 %v16047_v55 }
 0x548   : > { %7663 = vmatmul.bf16.vlgmr.msra.gmra.mxu0 %v16537_v51  ;;  %7677 = vmatmul.bf16.vlgmr.msra.gmra.mxu1 %v16543_v17 }
 0x549   : > { %7715 = vmatpush.bf16.msrb.mxu0 %v16045_v14  ;;  %7691 = vmatmul.bf16.vlgmr.msra.gmra.mxu2 %v16707_v36 }
 0x54a   : > { %7704 = vmatpush.bf16.msra.mxu3 %v16418_v9  ;;  %7743 = vmatpush.bf16.msrb.mxu2 %v16049_v18  ;;  %v7450_v18 = vpop.f32.mrf.mxu1 }
 0x54b   : > { %7730 = vmatpush.bf16.msrb.mxu1 %v18315_v11 }
 0x54c   : > { %v7464_v44 = vpop.f32.mrf.mxu2 }
 0x54d   : > { %7705 = vmatmul.bf16.vlgmr.msra.gmra.mxu3 %v16711_v7  ;;  %7716 = vmatpush.bf16.msrb.mxu0 %v16060_v26 }
 0x54e   : > { %7757 = vmatpush.bf16.msrb.mxu3 %v18314_v6  ;;  %7744 = vmatpush.bf16.msrb.mxu2 %v18316_v33  ;;  %v7437_v6 = vadd.f32 %v7436_v59, %v7423_v30  ;;  %v7465_v30 = vadd.f32 %v7464_v44, %v16619_v21  ;;  %v18320_v59 = vld [vmem:[#allocation101_spill] sm:$0xff]  ;;  %v18329_v44 = vld [vmem:[#allocation110_spill] sm:$0xff]  ;;  %v18343_v33 = vld [vmem:[#allocation116_spill] sm:$0xff] }
 0x54f   : > { %7731 = vmatpush.bf16.msrb.mxu1 %v16082_v22  ;;  %v18322_v22 = vld [vmem:[#allocation103_spill] sm:$0xff] }
 0x550   : > { %v16779_v11 = vadd.f32 %v7450_v18, %v7437_v6  ;;  %v7478_v0 = vpop.f32.mrf.mxu3  ;;  %v18323_v6 = vld [vmem:[#allocation104_spill] sm:$0xff] }
 0x551   : > { %7717 = vmatpush.bf16.msrb.mxu0 %v16078_v53  ;;  %v7479_v18 = vadd.f32 %v7478_v0, %v7465_v30  ;;  %v18342_v53 = vld [vmem:[#allocation61_spill] sm:$0xff] }
 0x552   : > { %7758 = vmatpush.bf16.msrb.mxu3 %v16071_v31  ;;  %7745 = vmatpush.bf16.msrb.mxu2 %v16084_v12  ;;  %18319 = vst [vmem:[#allocation43_spill] sm:$0xff] %v16779_v11  ;;  %v18321_v12 = vld [vmem:[#allocation102_spill] sm:$0xff]  ;;  %v18324_v11 = vld [vmem:[#allocation105_spill] sm:$0xff] }
 0x553   : > { %7732 = vmatpush.bf16.msrb.mxu1 %v16102_v20  ;;  %v18325_v20 = vld [vmem:[#allocation106_spill] sm:$0xff] }
 0x555   : > { %7718 = vmatpush.bf16.msrb.mxu0 %v16096_v58  ;;  %v18328_v58 = vld [vmem:[#allocation109_spill] sm:$0xff] }
 0x556   : > { %7759 = vmatpush.bf16.msrb.mxu3 %v16088_v39  ;;  %7746 = vmatpush.bf16.msrb.mxu2 %v16104_v43  ;;  %v18326_v43 = vld [vmem:[#allocation107_spill] sm:$0xff]  ;;  %v18336_v39 = vld [vmem:[#allocation112_spill] sm:$0xff] }
 0x557   : > { %7733 = vmatpush.bf16.msrb.mxu1 %v18321_v12  ;;  %v18331_v12 = vld [vmem:[#allocation51_spill] sm:$0xff] }
 0x558   : > { %v18332_v21 = vperm.slane %v18331_v12, 0  ;;  %v18334_v30 = vperm.slane %v18331_v12, 1 }
 0x559   : > { %7719 = vmatpush.bf16.msrb.mxu0 %v18320_v59  ;;  %v18330_v59 = vld [vmem:[#allocation111_spill] sm:$0xff] }
 0x55a   : > { %7760 = vmatpush.bf16.msrb.mxu3 %v16107_v42  ;;  %7747 = vmatpush.bf16.msrb.mxu2 %v18322_v22  ;;  %v18327_v42 = vld [vmem:[#allocation108_spill] sm:$0xff]  ;;  %v18333_v22 = vld [vmem:[#allocation54_spill] sm:$0xff] }
 0x55b   : > { %7734 = vmatpush.bf16.msrb.mxu1 %v18325_v20  ;;  %v5829_v0 = vadd.f32 %v18333_v22, %v18332_v21  ;;  %v18337_v20 = vld [vmem:[#allocation113_spill] sm:$0xff]  ;;  %v16813_v22 = vpop.f32.mrf.mxu1 }
 0x55c   : > { %v18344_v21 = vld [vmem:[#allocation117_spill] sm:$0xff]  ;;  %18345 = vst [vmem:[#allocation52_spill] sm:$0xff] %v16813_v22  ;;  %v18352_v22 = vld [vmem:[#allocation124_spill] sm:$0xff] }
 0x55d   : > { %7720 = vmatpush.bf16.msrb.mxu0 %v18324_v11 }
 0x55e   : > { %7761 = vmatpush.bf16.msrb.mxu3 %v18323_v6  ;;  %7748 = vmatpush.bf16.msrb.mxu2 %v18326_v43  ;;  %v18335_v6 = vld [vmem:[#allocation60_spill] sm:$0xff]  ;;  %v16805_v43 = vpop.f32.mrf.mxu0 }
 0x55f   : > { %7735 = vmatpush.bf16.msrb.mxu1 %v18329_v44  ;;  %v5913_v11 = vadd.f32 %v18335_v6, %v18334_v30  ;;  %18338 = vst [vmem:[#allocation50_spill] sm:$0xff] %v16805_v43  ;;  %v18341_v44 = vld [vmem:[#allocation55_spill] sm:$0xff]  ;;  %v18346_v6 = vld [vmem:[#allocation118_spill] sm:$0xff] }
 0x560   : > { %v18347_v30 = vld [vmem:[#allocation119_spill] sm:$0xff]  ;;  %v18351_v43 = vld [vmem:[#allocation122_spill] sm:$0xff] }
 0x561   : > { %7721 = vmatpush.bf16.msrb.mxu0 %v18328_v58  ;;  %v18340_v58 = vld [vmem:[#allocation115_spill] sm:$0xff]  ;;  %v5927_v31 = vadd.f32 %v18342_v53, %v5913_v11 }
 0x562   : > { %7762 = vmatpush.bf16.msrb.mxu3 %v18327_v42  ;;  %7749 = vmatpush.bf16.msrb.mxu2 %v18330_v59  ;;  %v18339_v42 = vld [vmem:[#allocation114_spill] sm:$0xff]  ;;  %v5843_v59 = vadd.f32 %v18341_v44, %v5829_v0  ;;  %v18349_v44 = vld [vmem:[#allocation56_spill] sm:$0xff]  ;;  %v18350_v11 = vld [vmem:[#allocation63_spill] sm:$0xff] }
 0x563   : > { %7736 = vmatpush.bf16.msrb.mxu1 %v18339_v42  ;;  %v5941_v0 = vadd.f32 %v18350_v11, %v5927_v31  ;;  %v18357_v42 = vld [vmem:[#allocation64_spill] sm:$0xff]  ;;  %v18359_v31 = vld [vmem:[#allocation127_spill] sm:$0xff]  ;;  %v18360_v11 = vld [vmem:[#allocation129_spill] sm:$0xff] }
 0x564   : > { %v5857_v53 = vadd.f32 %v18349_v44, %v5843_v59  ;;  %v16832_v59 = vpop.f32.mrf.mxu3 }
 0x565   : > { %7722 = vmatpush.bf16.msrb.mxu0 %v18337_v20  ;;  %v18348_v20 = vld [vmem:[#allocation120_spill] sm:$0xff]  ;;  %18358 = vst [vmem:[#allocation133_spill] sm:$0xff] %v16832_v59  ;;  %v18376_v59 = vld [vmem:[#allocation146_spill] sm:$0xff] }
 0x566   : > { %7763 = vmatpush.bf16.msrb.mxu3 %v18336_v39  ;;  %7750 = vmatpush.bf16.msrb.mxu2 %v18340_v58  ;;  %v5955_v39 = vadd.f32 %v18357_v42, %v5941_v0  ;;  %v18364_v42 = vld [vmem:[#allocation66_spill] sm:$0xff] }
 0x567   : > { %7785 = vmatpush.bf16.msra.mxu1 %v18346_v6  ;;  %v18353_v6 = vld [vmem:[#allocation125_spill] sm:$0xff] }
 0x568   : > { %7723 = vmatmul.bf16.vlgmr.msrb.gmra.mxu0 %v16537_v51  ;;  %7737 = vmatmul.bf16.vlgmr.msrb.gmra.mxu1 %v16543_v17 }
 0x569   : > { %7771 = vmatpush.bf16.msra.mxu0 %v18344_v21  ;;  %7751 = vmatmul.bf16.vlgmr.msrb.gmra.mxu2 %v16707_v36  ;;  %v7492_v21 = vpop.f32.mrf.mxu0 }
 0x56a   : > { %7764 = vmatpush.bf16.msrb.mxu3 %v18343_v33  ;;  %7799 = vmatpush.bf16.msra.mxu2 %v18347_v30  ;;  %v16827_v30 = vpop.f32.mrf.mxu2  ;;  %v18356_v33 = vld [vmem:[#allocation57_spill] sm:$0xff]  ;;  %v7493_v44 = vadd.f32 %v7492_v21, %v7479_v18 }
 0x56b   : > { %7786 = vmatpush.bf16.msra.mxu1 %v18352_v22  ;;  %18354 = vst [vmem:[#allocation44_spill] sm:$0xff] %v16827_v30  ;;  %v5871_v58 = vadd.f32 %v18356_v33, %v5857_v53  ;;  %v7506_v22 = vpop.f32.mrf.mxu1  ;;  %v18365_v53 = vld [vmem:[#allocation59_spill] sm:$0xff] }
 0x56c   : > { %v7507_v30 = vadd.f32 %v7506_v22, %v7493_v44  ;;  %v18370_v44 = vld [vmem:[#allocation140_spill] sm:$0xff] }
 0x56d   : > { %7765 = vmatmul.bf16.vlgmr.msrb.gmra.mxu3 %v16711_v7  ;;  %7772 = vmatpush.bf16.msra.mxu0 %v18351_v43  ;;  %v18361_v43 = vld [vmem:[#allocation130_spill] sm:$0xff] }
 0x56e   : > { %7813 = vmatpush.bf16.msra.mxu3 %v18348_v20  ;;  %7800 = vmatpush.bf16.msra.mxu2 %v18353_v6  ;;  %v18355_v20 = vld [vmem:[#allocation126_spill] sm:$0xff]  ;;  %v18362_v6 = vld [vmem:[#allocation65_spill] sm:$0xff] }
 0x56f   : > { %7787 = vmatpush.bf16.msra.mxu1 %v18360_v11  ;;  %v5969_v12 = vadd.f32 %v18362_v6, %v5955_v39  ;;  %v18368_v6 = vld [vmem:[#allocation138_spill] sm:$0xff] }
 0x570   : > { %v7534_v39 = vpop.f32.mrf.mxu3 }
 0x571   : > { %7773 = vmatpush.bf16.msra.mxu0 %v18359_v31  ;;  %v5983_v33 = vadd.f32 %v18364_v42, %v5969_v12  ;;  %v18367_v12 = vld [vmem:[#allocation22_spill] sm:$0xff]  ;;  %v18371_v42 = vld [vmem:[#allocation141_spill] sm:$0xff] }
 0x572   : > { %7814 = vmatpush.bf16.msra.mxu3 %v18355_v20  ;;  %7801 = vmatpush.bf16.msra.mxu2 %v18361_v43  ;;  %v18363_v20 = vld [vmem:[#allocation58_spill] sm:$0xff]  ;;  %v7520_v18 = vpop.f32.mrf.mxu2 }
 0x573   : > { %v5885_v26 = vadd.f32 %v18363_v20, %v5871_v58  ;;  %7788 = vmatpush.bf16.msra.mxu1 %v18278_v40  ;;  %v7521_v21 = vadd.f32 %v7520_v18, %v7507_v30  ;;  %v6514_v20 = vmax.f32 %v5983_v33, 0.0  ;;  %v18369_v30 = vld [vmem:[#allocation139_spill] sm:$0xff]  ;;  %v18374_v33 = vld [vmem:[#allocation145_spill] sm:$0xff] }
 0x574   : > { %v18372_v18 = vld [vmem:[#allocation143_spill] sm:$0xff] }
 0x575   : > { %7774 = vmatpush.bf16.msra.mxu0 %v18190_v35  ;;  %v5899_v0 = vadd.f32 %v18365_v53, %v5885_v26  ;;  %v16849_v58 = vadd.f32 %v7534_v39, %v7521_v21  ;;  %v18373_v53 = vld [vmem:[#allocation144_spill] sm:$0xff] }
 0x576   : > { %7815 = vmatpush.bf16.msra.mxu3 %v18188_v8  ;;  %7802 = vmatpush.bf16.msra.mxu2 %v18279_v34 }
 0x577   : > { %7789 = vmatpush.bf16.msra.mxu1 %v18283_v60  ;;  %18366 = vst [vmem:[#allocation134_spill] sm:$0xff] %v16849_v58  ;;  %v6513_v22 = vmax.f32 %v5899_v0, 0.0  ;;  %v18375_v0 = vld [vmem:[#allocation62_spill] sm:$0xff] }
 0x578   : > { %v6561_v58 = vunpack.c.l.b16 %v18375_v0 }
 0x579   : > { %7775 = vmatpush.bf16.msra.mxu0 %v18196_v2  ;;  %v6533_v26 = vpack.c.bf16 %v6514_v20, %v6513_v22 }
 0x57a   : > { %7816 = vmatpush.bf16.msra.mxu3 %v18281_v47  ;;  %7803 = vmatpush.bf16.msra.mxu2 %v18284_v38 }
 0x57b   : > { %7790 = vmatpush.bf16.msra.mxu1 %v18368_v6  ;;  %v6577_v21 = vunpack.c.l.b16 %v6533_v26  ;;  %v6578_v39 = vunpack.c.h.b16 %v6533_v26  ;;  %v6562_v6 = vunpack.c.h.b16 %v18375_v0  ;;  %v16873_v26 = vpop.f32.mrf.mxu1  ;;  %v18381_v0 = vld [vmem:[#allocation23_spill] sm:$0xff] }
 0x57c   : > { %18378 = vst [vmem:[#allocation135_spill] sm:$0xff] %v16873_v26  ;;  %v16888_v26 = vpop.f32.mrf.mxu3 }
 0x57d   : > { %7776 = vmatpush.bf16.msra.mxu0 %v18367_v12  ;;  %v16867_v20 = vpack.c.b16 %v6577_v21, %v6561_v58  ;;  %v16871_v22 = vpack.c.b16 %v6578_v39, %v6562_v6  ;;  %v18382_v58 = vld [vmem:[#allocation154_spill] sm:$0xff]  ;;  %v18383_v6 = vld [vmem:[#allocation156_spill] sm:$0xff]  ;;  %v16885_v21 = vpop.f32.mrf.mxu2  ;;  %18385 = vst [vmem:[#allocation25_spill] sm:$0xff] %v16888_v26 }
 0x57e   : > { %7817 = vmatpush.bf16.msra.mxu3 %v18199_v56  ;;  %7804 = vmatpush.bf16.msra.mxu2 %v18369_v30  ;;  %v16863_v30 = vpop.f32.mrf.mxu0  ;;  %18384 = vst [vmem:[#allocation45_spill] sm:$0xff] %v16885_v21 }
 0x57f   : > { %7791 = vmatpush.bf16.msra.mxu1 %v18372_v18  ;;  %18377 = vst [vmem:[#allocation53_spill] sm:$0xff] %v16863_v30 }
 0x581   : > { %7777 = vmatpush.bf16.msra.mxu0 %v18371_v42 }
 0x582   : > { %7818 = vmatpush.bf16.msra.mxu3 %v18370_v44  ;;  %7805 = vmatpush.bf16.msra.mxu2 %v18373_v53 }
 0x583   : > { %7792 = vmatpush.bf16.msra.mxu1 %v18295_v16 }
 0x585   : > { %7778 = vmatpush.bf16.msra.mxu0 %v18376_v59  ;;  %v18380_v59 = vld [vmem:[#allocation152_spill] sm:$0xff] }
 0x586   : > { %7819 = vmatpush.bf16.msra.mxu3 %v18374_v33  ;;  %7806 = vmatpush.bf16.msra.mxu2 %v18296_v54  ;;  %v18379_v33 = vld [vmem:[#allocation151_spill] sm:$0xff]  ;;  %v7552_v39 = vpop.f32.mrf.mxu0 }
 0x587   : > { %7841 = vmatpush.bf16.msrb.mxu1 %v18379_v33  ;;  %v7553_v30 = vadd.f32 %v7552_v39, %v16562_v50 }
 0x588   : > { %7779 = vmatmul.bf16.vlgmr.msra.gmra.mxu0 %v16867_v20  ;;  %7793 = vmatmul.bf16.vlgmr.msra.gmra.mxu1 %v16871_v22 }
 0x589   : > { %7827 = vmatpush.bf16.msrb.mxu0 %v18298_v27  ;;  %7807 = vmatmul.bf16.vlgmr.msra.gmra.mxu2 %v16537_v51  ;;  %v7566_v51 = vpop.f32.mrf.mxu1 }
 0x58a   : > { %7820 = vmatpush.bf16.msra.mxu3 %v18297_v25  ;;  %7855 = vmatpush.bf16.msrb.mxu2 %v18380_v59 }
 0x58b   : > { %7842 = vmatpush.bf16.msrb.mxu1 %v18383_v6  ;;  %v7567_v6 = vadd.f32 %v7566_v51, %v7553_v30  ;;  %v18391_v51 = vld [vmem:[#allocation87_spill] sm:$0xff] }
 0x58c   : > { %v7580_v26 = vpop.f32.mrf.mxu2 }
 0x58d   : > { %7821 = vmatmul.bf16.vlgmr.msra.gmra.mxu3 %v16543_v17  ;;  %7828 = vmatpush.bf16.msrb.mxu0 %v18382_v58  ;;  %v18386_v17 = vld [vmem:[#allocation162_spill] sm:$0xff]  ;;  %v7581_v21 = vadd.f32 %v7580_v26, %v7567_v6  ;;  %v18389_v6 = vld [vmem:[#allocation83_spill] sm:$0xff] }
 0x58e   : > { %7869 = vmatpush.bf16.msrb.mxu3 %v18381_v0  ;;  %7856 = vmatpush.bf16.msrb.mxu2 %v18305_v45  ;;  %v16912_v30 = vpop.f32.mrf.mxu0 }
 0x58f   : > { %7843 = vmatpush.bf16.msrb.mxu1 %v18310_v29  ;;  %18387 = vst [vmem:[#allocation136_spill] sm:$0xff] %v16912_v30  ;;  %v18393_v30 = vld [vmem:[#allocation89_spill] sm:$0xff] }
 0x590   : > { %v7594_v39 = vpop.f32.mrf.mxu3 }
 0x591   : > { %7829 = vmatpush.bf16.msrb.mxu0 %v18309_v46  ;;  %v16918_v26 = vpop.f32.mrf.mxu1 }
 0x592   : > { %7870 = vmatpush.bf16.msrb.mxu3 %v18307_v23  ;;  %7857 = vmatpush.bf16.msrb.mxu2 %v18386_v17  ;;  %v7595_v17 = vadd.f32 %v7594_v39, %v7581_v21  ;;  %18388 = vst [vmem:[#allocation48_spill] sm:$0xff] %v16918_v26  ;;  %v18390_v21 = vld [vmem:[#allocation85_spill] sm:$0xff]  ;;  %v18392_v39 = vld [vmem:[#allocation88_spill] sm:$0xff] }
 0x593   : > { %7844 = vmatpush.bf16.msrb.mxu1 %v18231_v62 }
 0x594   : > { %v16930_v26 = vpop.f32.mrf.mxu2 }
 0x595   : > { %7830 = vmatpush.bf16.msrb.mxu0 %v18230_v19  ;;  %18394 = vst [vmem:[#allocation147_spill] sm:$0xff] %v16930_v26  ;;  %v18403_v26 = vld [vmem:[#allocation98_spill] sm:$0xff] }
 0x596   : > { %7871 = vmatpush.bf16.msrb.mxu3 %v18229_v32  ;;  %7858 = vmatpush.bf16.msrb.mxu2 %v18232_v4 }
 0x597   : > { %7845 = vmatpush.bf16.msrb.mxu1 %v16377_v41 }
 0x599   : > { %7831 = vmatpush.bf16.msrb.mxu0 %v18234_v49 }
 0x59a   : > { %7872 = vmatpush.bf16.msrb.mxu3 %v18233_v15  ;;  %7859 = vmatpush.bf16.msrb.mxu2 %v18235_v57 }
 0x59b   : > { %7846 = vmatpush.bf16.msrb.mxu1 %v18237_v61 }
 0x59d   : > { %7832 = vmatpush.bf16.msrb.mxu0 %v18236_v48 }
 0x59e   : > { %7873 = vmatpush.bf16.msrb.mxu3 %v16382_v28  ;;  %7860 = vmatpush.bf16.msrb.mxu2 %v16391_v5 }
 0x59f   : > { %7847 = vmatpush.bf16.msrb.mxu1 %v16401_v10  ;;  %v18424_v10 = vld [vmem:[#allocation112_spill] sm:$0xff] }
 0x5a1   : > { %7833 = vmatpush.bf16.msrb.mxu0 %v16397_v13  ;;  %v18430_v13 = vld [vmem:[#allocation75_spill] sm:$0xff] }
 0x5a2   : > { %7874 = vmatpush.bf16.msrb.mxu3 %v16394_v1  ;;  %7861 = vmatpush.bf16.msrb.mxu2 %v16403_v24  ;;  %v18409_v24 = vld [vmem:[#allocation103_spill] sm:$0xff]  ;;  %v18431_v1 = vld [vmem:[#allocation116_spill] sm:$0xff] }
 0x5a3   : > { %7848 = vmatpush.bf16.msrb.mxu1 %v16413_v37  ;;  %v18399_v37 = vld [vmem:[#allocation93_spill] sm:$0xff] }
 0x5a5   : > { %7834 = vmatpush.bf16.msrb.mxu0 %v16409_v52  ;;  %v7622_v52 = vpop.f32.mrf.mxu1 }
 0x5a6   : > { %7875 = vmatpush.bf16.msrb.mxu3 %v16406_v3  ;;  %7862 = vmatpush.bf16.msrb.mxu2 %v16415_v63  ;;  %v18398_v63 = vld [vmem:[#allocation92_spill] sm:$0xff] }
 0x5a7   : > { %7901 = vmatpush.bf16.msra.mxu1 %v16047_v55  ;;  %v18395_v55 = vld [vmem:[#allocation90_spill] sm:$0xff]  ;;  %v18405_v3 = vld [vmem:[#allocation100_spill] sm:$0xff] }
 0x5a8   : > { %7835 = vmatmul.bf16.vlgmr.msrb.gmra.mxu0 %v16707_v36  ;;  %7849 = vmatmul.bf16.vlgmr.msrb.gmra.mxu1 %v16711_v7 }
 0x5a9   : > { %7887 = vmatpush.bf16.msra.mxu0 %v16045_v14  ;;  %7863 = vmatmul.bf16.vlgmr.msrb.gmra.mxu2 %v16867_v20  ;;  %v18397_v14 = vld [vmem:[#allocation91_spill] sm:$0xff] }
 0x5aa   : > { %7876 = vmatpush.bf16.msrb.mxu3 %v16418_v9  ;;  %7915 = vmatpush.bf16.msra.mxu2 %v18389_v6  ;;  %v7608_v6 = vpop.f32.mrf.mxu0 }
 0x5ab   : > { %7902 = vmatpush.bf16.msra.mxu1 %v18392_v39  ;;  %v7609_v9 = vadd.f32 %v7608_v6, %v7595_v17  ;;  %v18407_v6 = vld [vmem:[#allocation101_spill] sm:$0xff] }
 0x5ad   : > { %7877 = vmatmul.bf16.vlgmr.msrb.gmra.mxu3 %v16871_v22  ;;  %7888 = vmatpush.bf16.msra.mxu0 %v18391_v51  ;;  %v18400_v51 = vld [vmem:[#allocation94_spill] sm:$0xff]  ;;  %v16939_v39 = vadd.f32 %v7622_v52, %v7609_v9  ;;  %v18410_v9 = vld [vmem:[#allocation104_spill] sm:$0xff] }
 0x5ae   : > { %7929 = vmatpush.bf16.msra.mxu3 %v18390_v21  ;;  %7916 = vmatpush.bf16.msra.mxu2 %v18393_v30  ;;  %v16933_v21 = vpop.f32.mrf.mxu3  ;;  %v18402_v30 = vld [vmem:[#allocation96_spill] sm:$0xff] }
 0x5af   : > { %18396 = vst [vmem:[#allocation148_spill] sm:$0xff] %v16933_v21  ;;  %7903 = vmatpush.bf16.msra.mxu1 %v18398_v63  ;;  %v7636_v21 = vpop.f32.mrf.mxu2 }
 0x5b0   : > { %18401 = vst [vmem:[#allocation149_spill] sm:$0xff] %v16939_v39  ;;  %v18411_v39 = vld [vmem:[#allocation105_spill] sm:$0xff] }
 0x5b1   : > { %7889 = vmatpush.bf16.msra.mxu0 %v18397_v14  ;;  %v18406_v14 = vld [vmem:[#allocation21_spill] sm:$0xff] }
 0x5b2   : > { %7930 = vmatpush.bf16.msra.mxu3 %v18395_v55  ;;  %7917 = vmatpush.bf16.msra.mxu2 %v18399_v37  ;;  %v18404_v55 = vld [vmem:[#allocation99_spill] sm:$0xff]  ;;  %v7637_v17 = vadd.f32 %v7636_v21, %v18406_v14  ;;  %v18408_v37 = vld [vmem:[#allocation102_spill] sm:$0xff] }
 0x5b3   : > { %7904 = vmatpush.bf16.msra.mxu1 %v18403_v26  ;;  %v18412_v26 = vld [vmem:[#allocation106_spill] sm:$0xff] }
 0x5b4   : > { %v18416_v21 = vld [vmem:[#allocation110_spill] sm:$0xff] }
 0x5b5   : > { %7890 = vmatpush.bf16.msra.mxu0 %v18402_v30  ;;  %v18415_v30 = vld [vmem:[#allocation109_spill] sm:$0xff] }
 0x5b6   : > { %7931 = vmatpush.bf16.msra.mxu3 %v18400_v51  ;;  %7918 = vmatpush.bf16.msra.mxu2 %v18404_v55  ;;  %v7650_v63 = vpop.f32.mrf.mxu3  ;;  %v18413_v55 = vld [vmem:[#allocation107_spill] sm:$0xff]  ;;  %v18423_v51 = vld [vmem:[#allocation74_spill] sm:$0xff] }
 0x5b7   : > { %7905 = vmatpush.bf16.msra.mxu1 %v18408_v37  ;;  %v7651_v52 = vadd.f32 %v7650_v63, %v7637_v17  ;;  %v18418_v37 = vld [vmem:[#allocation51_spill] sm:$0xff] }
 0x5b8   : > { %v18419_v14 = vperm.slane %v18418_v37, 2  ;;  %v18421_v17 = vld [vmem:[#allocation71_spill] sm:$0xff] }
 0x5b9   : > { %7891 = vmatpush.bf16.msra.mxu0 %v18407_v6  ;;  %v18417_v6 = vld [vmem:[#allocation111_spill] sm:$0xff] }
 0x5ba   : > { %7932 = vmatpush.bf16.msra.mxu3 %v18405_v3  ;;  %7919 = vmatpush.bf16.msra.mxu2 %v18409_v24  ;;  %v18414_v3 = vld [vmem:[#allocation108_spill] sm:$0xff]  ;;  %v18420_v24 = vld [vmem:[#allocation67_spill] sm:$0xff] }
 0x5bb   : > { %7906 = vmatpush.bf16.msra.mxu1 %v18412_v26  ;;  %v5997_v63 = vadd.f32 %v18420_v24, %v18419_v14  ;;  %v18425_v26 = vld [vmem:[#allocation113_spill] sm:$0xff]  ;;  %v16973_v24 = vpop.f32.mrf.mxu1 }
 0x5bc   : > { %v18432_v14 = vld [vmem:[#allocation117_spill] sm:$0xff]  ;;  %18433 = vst [vmem:[#allocation157_spill] sm:$0xff] %v16973_v24  ;;  %v18440_v24 = vld [vmem:[#allocation124_spill] sm:$0xff] }
 0x5bd   : > { %7892 = vmatpush.bf16.msra.mxu0 %v18411_v39 }
 0x5be   : > { %7933 = vmatpush.bf16.msra.mxu3 %v18410_v9  ;;  %7920 = vmatpush.bf16.msra.mxu2 %v18413_v55  ;;  %v18422_v9 = vperm.slane %v18421_v17, 3  ;;  %v16965_v55 = vpop.f32.mrf.mxu0 }
 0x5bf   : > { %7907 = vmatpush.bf16.msra.mxu1 %v18416_v21  ;;  %18426 = vst [vmem:[#allocation150_spill] sm:$0xff] %v16965_v55  ;;  %v18429_v21 = vld [vmem:[#allocation68_spill] sm:$0xff]  ;;  %v18439_v55 = vld [vmem:[#allocation122_spill] sm:$0xff] }
 0x5c0   : > { %v6081_v39 = vadd.f32 %v18423_v51, %v18422_v9  ;;  %v18434_v51 = vld [vmem:[#allocation118_spill] sm:$0xff]  ;;  %v18435_v9 = vld [vmem:[#allocation119_spill] sm:$0xff] }
 0x5c1   : > { %7893 = vmatpush.bf16.msra.mxu0 %v18415_v30  ;;  %v18428_v30 = vld [vmem:[#allocation115_spill] sm:$0xff] }
 0x5c2   : > { %7934 = vmatpush.bf16.msra.mxu3 %v18414_v3  ;;  %7921 = vmatpush.bf16.msra.mxu2 %v18417_v6  ;;  %v18427_v3 = vld [vmem:[#allocation114_spill] sm:$0xff]  ;;  %v6011_v6 = vadd.f32 %v18429_v21, %v5997_v63  ;;  %v6095_v37 = vadd.f32 %v18430_v13, %v6081_v39  ;;  %v18437_v21 = vld [vmem:[#allocation69_spill] sm:$0xff] }
 0x5c3   : > { %7908 = vmatpush.bf16.msra.mxu1 %v18427_v3  ;;  %v18438_v39 = vld [vmem:[#allocation77_spill] sm:$0xff]  ;;  %v18445_v3 = vld [vmem:[#allocation78_spill] sm:$0xff] }
 0x5c4   : > { %v6025_v13 = vadd.f32 %v18437_v21, %v6011_v6  ;;  %v6109_v63 = vadd.f32 %v18438_v39, %v6095_v37  ;;  %v16992_v6 = vpop.f32.mrf.mxu3  ;;  %v18447_v39 = vld [vmem:[#allocation79_spill] sm:$0xff] }
 0x5c5   : > { %7894 = vmatpush.bf16.msra.mxu0 %v18425_v26  ;;  %v18436_v26 = vld [vmem:[#allocation120_spill] sm:$0xff]  ;;  %18446 = vst [vmem:[#allocation159_spill] sm:$0xff] %v16992_v6  ;;  %v7678_v21 = vpop.f32.mrf.mxu1 }
 0x5c6   : > { %7935 = vmatpush.bf16.msra.mxu3 %v18424_v10  ;;  %7922 = vmatpush.bf16.msra.mxu2 %v18428_v30  ;;  %v6123_v10 = vadd.f32 %v18445_v3, %v6109_v63  ;;  %v18471_v6 = vld [vmem:[#allocation184_spill] sm:$0xff] }
 0x5c7   : > { %7957 = vmatpush.bf16.msrb.mxu1 %v18434_v51  ;;  %v18441_v51 = vld [vmem:[#allocation125_spill] sm:$0xff] }
 0x5c8   : > { %7895 = vmatmul.bf16.vlgmr.msra.gmra.mxu0 %v16707_v36  ;;  %7909 = vmatmul.bf16.vlgmr.msra.gmra.mxu1 %v16711_v7 }
 0x5c9   : > { %7943 = vmatpush.bf16.msrb.mxu0 %v18432_v14  ;;  %7923 = vmatmul.bf16.vlgmr.msra.gmra.mxu2 %v16867_v20  ;;  %v7664_v14 = vpop.f32.mrf.mxu0 }
 0x5ca   : > { %7936 = vmatpush.bf16.msra.mxu3 %v18431_v1  ;;  %7971 = vmatpush.bf16.msrb.mxu2 %v18435_v9  ;;  %v16987_v9 = vpop.f32.mrf.mxu2  ;;  %v18444_v1 = vld [vmem:[#allocation70_spill] sm:$0xff]  ;;  %v7665_v37 = vadd.f32 %v7664_v14, %v7651_v52 }
 0x5cb   : > { %7958 = vmatpush.bf16.msrb.mxu1 %v18440_v24  ;;  %18442 = vst [vmem:[#allocation158_spill] sm:$0xff] %v16987_v9  ;;  %v6039_v30 = vadd.f32 %v18444_v1, %v6025_v13  ;;  %v18449_v1 = vld [vmem:[#allocation80_spill] sm:$0xff]  ;;  %v18450_v13 = vld [vmem:[#allocation73_spill] sm:$0xff] }
 0x5cc   : > { %v7679_v9 = vadd.f32 %v7678_v21, %v7665_v37 }
 0x5cd   : > { %7937 = vmatmul.bf16.vlgmr.msra.gmra.mxu3 %v16871_v22  ;;  %7944 = vmatpush.bf16.msrb.mxu0 %v18439_v55 }
 0x5ce   : > { %7985 = vmatpush.bf16.msrb.mxu3 %v18436_v26  ;;  %7972 = vmatpush.bf16.msrb.mxu2 %v18441_v51  ;;  %v18443_v26 = vld [vmem:[#allocation126_spill] sm:$0xff]  ;;  %v6137_v51 = vadd.f32 %v18447_v39, %v6123_v10  ;;  %v18454_v39 = vld [vmem:[#allocation145_spill] sm:$0xff] }
 0x5cf   : > { %7959 = vmatpush.bf16.msrb.mxu1 %v18360_v11 }
 0x5d0   : > { %v6151_v3 = vadd.f32 %v18449_v1, %v6137_v51  ;;  %v7706_v10 = vpop.f32.mrf.mxu3  ;;  %v18452_v51 = vld [vmem:[#allocation138_spill] sm:$0xff] }
 0x5d1   : > { %7945 = vmatpush.bf16.msrb.mxu0 %v18359_v31 }
 0x5d2   : > { %7986 = vmatpush.bf16.msrb.mxu3 %v18443_v26  ;;  %7973 = vmatpush.bf16.msrb.mxu2 %v18361_v43  ;;  %v18448_v26 = vld [vmem:[#allocation72_spill] sm:$0xff]  ;;  %v7692_v52 = vpop.f32.mrf.mxu2 }
 0x5d3   : > { %v6053_v24 = vadd.f32 %v18448_v26, %v6039_v30  ;;  %7960 = vmatpush.bf16.msrb.mxu1 %v18278_v40  ;;  %v7693_v14 = vadd.f32 %v7692_v52, %v7679_v9  ;;  %v6516_v26 = vmax.f32 %v6151_v3, 0.0  ;;  %v18453_v9 = vld [vmem:[#allocation139_spill] sm:$0xff]  ;;  %v18455_v3 = vld [vmem:[#allocation76_spill] sm:$0xff] }
 0x5d4   : > { %v6563_v52 = vunpack.c.l.b16 %v18455_v3 }
 0x5d5   : > { %7946 = vmatpush.bf16.msrb.mxu0 %v18190_v35  ;;  %v6067_v63 = vadd.f32 %v18450_v13, %v6053_v24  ;;  %v17009_v30 = vadd.f32 %v7706_v10, %v7693_v14  ;;  %v18456_v14 = vld [vmem:[#allocation146_spill] sm:$0xff]  ;;  %v6564_v13 = vunpack.c.h.b16 %v18455_v3 }
 0x5d6   : > { %7987 = vmatpush.bf16.msrb.mxu3 %v18188_v8  ;;  %7974 = vmatpush.bf16.msrb.mxu2 %v18279_v34 }
 0x5d7   : > { %7961 = vmatpush.bf16.msrb.mxu1 %v18283_v60  ;;  %18451 = vst [vmem:[#allocation161_spill] sm:$0xff] %v17009_v30  ;;  %v6515_v37 = vmax.f32 %v6067_v63, 0.0  ;;  %v17023_v63 = vpop.f32.mrf.mxu0 }
 0x5d8   : > { %18457 = vst [vmem:[#allocation54_spill] sm:$0xff] %v17023_v63  ;;  %v17048_v3 = vpop.f32.mrf.mxu3  ;;  %v18468_v63 = vld [vmem:[#allocation182_spill] sm:$0xff] }
 0x5d9   : > { %7947 = vmatpush.bf16.msrb.mxu0 %v18196_v2  ;;  %v6534_v24 = vpack.c.bf16 %v6516_v26, %v6515_v37  ;;  %v17033_v37 = vpop.f32.mrf.mxu1  ;;  %18461 = vst [vmem:[#allocation61_spill] sm:$0xff] %v17048_v3 }
 0x5da   : > { %7988 = vmatpush.bf16.msrb.mxu3 %v18281_v47  ;;  %7975 = vmatpush.bf16.msrb.mxu2 %v18284_v38  ;;  %18458 = vst [vmem:[#allocation60_spill] sm:$0xff] %v17033_v37  ;;  %v18467_v37 = vld [vmem:[#allocation181_spill] sm:$0xff] }
 0x5db   : > { %7962 = vmatpush.bf16.msrb.mxu1 %v18452_v51  ;;  %v6579_v21 = vunpack.c.l.b16 %v6534_v24  ;;  %v6580_v1 = vunpack.c.h.b16 %v6534_v24  ;;  %v18459_v24 = vld [vmem:[#allocation156_spill] sm:$0xff] }
 0x5dd   : > { %7948 = vmatpush.bf16.msrb.mxu0 %v18367_v12  ;;  %v17027_v10 = vpack.c.b16 %v6579_v21, %v6563_v52  ;;  %v17031_v26 = vpack.c.b16 %v6580_v1, %v6564_v13  ;;  %v17045_v21 = vpop.f32.mrf.mxu2 }
 0x5de   : > { %7989 = vmatpush.bf16.msrb.mxu3 %v18199_v56  ;;  %7976 = vmatpush.bf16.msrb.mxu2 %v18453_v9  ;;  %18460 = vst [vmem:[#allocation55_spill] sm:$0xff] %v17045_v21 }
 0x5df   : > { %7963 = vmatpush.bf16.msrb.mxu1 %v18372_v18 }
 0x5e1   : > { %7949 = vmatpush.bf16.msrb.mxu0 %v18371_v42 }
 0x5e2   : > { %7990 = vmatpush.bf16.msrb.mxu3 %v18370_v44  ;;  %7977 = vmatpush.bf16.msrb.mxu2 %v18373_v53 }
 0x5e3   : > { %7964 = vmatpush.bf16.msrb.mxu1 %v18295_v16 }
 0x5e5   : > { %7950 = vmatpush.bf16.msrb.mxu0 %v18456_v14  ;;  %v7724_v1 = vpop.f32.mrf.mxu0 }
 0x5e6   : > { %7991 = vmatpush.bf16.msrb.mxu3 %v18454_v39  ;;  %7978 = vmatpush.bf16.msrb.mxu2 %v18296_v54  ;;  %v7725_v52 = vadd.f32 %v7724_v1, %v16562_v50 }
 0x5e7   : > { %8013 = vmatpush.bf16.msra.mxu1 %v18379_v33 }
 0x5e8   : > { %7951 = vmatmul.bf16.vlgmr.msrb.gmra.mxu0 %v17027_v10  ;;  %7965 = vmatmul.bf16.vlgmr.msrb.gmra.mxu1 %v17031_v26 }
 0x5e9   : > { %7999 = vmatpush.bf16.msra.mxu0 %v18298_v27  ;;  %7979 = vmatmul.bf16.vlgmr.msrb.gmra.mxu2 %v16707_v36  ;;  %v18462_v36 = vld [vmem:[#allocation162_spill] sm:$0xff] }
 0x5ea   : > { %7992 = vmatpush.bf16.msrb.mxu3 %v18297_v25  ;;  %8027 = vmatpush.bf16.msra.mxu2 %v18380_v59 }
 0x5eb   : > { %8014 = vmatpush.bf16.msra.mxu1 %v18459_v24 }
 0x5ec   : > { %v7752_v30 = vpop.f32.mrf.mxu2 }
 0x5ed   : > { %7993 = vmatmul.bf16.vlgmr.msrb.gmra.mxu3 %v16711_v7  ;;  %8000 = vmatpush.bf16.msra.mxu0 %v18382_v58  ;;  %v7738_v7 = vpop.f32.mrf.mxu1 }
 0x5ee   : > { %8041 = vmatpush.bf16.msra.mxu3 %v18381_v0  ;;  %8028 = vmatpush.bf16.msra.mxu2 %v18305_v45  ;;  %v7739_v13 = vadd.f32 %v7738_v7, %v7725_v52  ;;  %v18463_v52 = vld [vmem:[#allocation177_spill] sm:$0xff]  ;;  %v18464_v7 = vld [vmem:[#allocation178_spill] sm:$0xff] }
 0x5ef   : > { %8015 = vmatpush.bf16.msra.mxu1 %v18310_v29 }
 0x5f0   : > { %v7753_v3 = vadd.f32 %v7752_v30, %v7739_v13  ;;  %v7766_v1 = vpop.f32.mrf.mxu3  ;;  %v18465_v30 = vld [vmem:[#allocation179_spill] sm:$0xff]  ;;  %v18466_v13 = vld [vmem:[#allocation180_spill] sm:$0xff] }
 0x5f1   : > { %8001 = vmatpush.bf16.msra.mxu0 %v18309_v46 }
 0x5f2   : > { %8042 = vmatpush.bf16.msra.mxu3 %v18307_v23  ;;  %8029 = vmatpush.bf16.msra.mxu2 %v18462_v36  ;;  %v7767_v21 = vadd.f32 %v7766_v1, %v7753_v3  ;;  %v17072_v3 = vpop.f32.mrf.mxu0  ;;  %v18470_v1 = vld [vmem:[#allocation183_spill] sm:$0xff] }
 0x5f3   : > { %8016 = vmatpush.bf16.msra.mxu1 %v18231_v62  ;;  %18469 = vst [vmem:[#allocation56_spill] sm:$0xff] %v17072_v3  ;;  %v18478_v3 = vld [vmem:[#allocation87_spill] sm:$0xff] }
 0x5f5   : > { %8002 = vmatpush.bf16.msra.mxu0 %v18230_v19 }
 0x5f6   : > { %8043 = vmatpush.bf16.msra.mxu3 %v18229_v32  ;;  %8030 = vmatpush.bf16.msra.mxu2 %v18232_v4 }
 0x5f7   : > { %8017 = vmatpush.bf16.msra.mxu1 %v16377_v41 }
 0x5f9   : > { %8003 = vmatpush.bf16.msra.mxu0 %v18234_v49  ;;  %v18516_v49 = vld [vmem:[#allocation116_spill] sm:$0xff] }
 0x5fa   : > { %8044 = vmatpush.bf16.msra.mxu3 %v18233_v15  ;;  %8031 = vmatpush.bf16.msra.mxu2 %v18235_v57  ;;  %v18496_v57 = vld [vmem:[#allocation103_spill] sm:$0xff] }
 0x5fb   : > { %8018 = vmatpush.bf16.msra.mxu1 %v18237_v61  ;;  %v18472_v61 = vld [vmem:[#allocation185_spill] sm:$0xff] }
 0x5fd   : > { %8004 = vmatpush.bf16.msra.mxu0 %v18236_v48 }
 0x5fe   : > { %8045 = vmatpush.bf16.msra.mxu3 %v16382_v28  ;;  %8032 = vmatpush.bf16.msra.mxu2 %v16391_v5  ;;  %v18473_v5 = vld [vmem:[#allocation81_spill] sm:$0xff]  ;;  %v18492_v28 = vld [vmem:[#allocation100_spill] sm:$0xff] }
 0x5ff   : > { %8019 = vmatpush.bf16.msra.mxu1 %v18465_v30  ;;  %v18476_v30 = vld [vmem:[#allocation83_spill] sm:$0xff] }
 0x601   : > { %8005 = vmatpush.bf16.msra.mxu0 %v18464_v7  ;;  %v18475_v7 = vld [vmem:[#allocation82_spill] sm:$0xff] }
 0x602   : > { %8046 = vmatpush.bf16.msra.mxu3 %v18463_v52  ;;  %8033 = vmatpush.bf16.msra.mxu2 %v18466_v13  ;;  %v17078_v52 = vpop.f32.mrf.mxu1  ;;  %v18477_v13 = vld [vmem:[#allocation85_spill] sm:$0xff] }
 0x603   : > { %8020 = vmatpush.bf16.msra.mxu1 %v18470_v1  ;;  %18474 = vst [vmem:[#allocation63_spill] sm:$0xff] %v17078_v52  ;;  %v17090_v52 = vpop.f32.mrf.mxu2 }
 0x604   : > { %18481 = vst [vmem:[#allocation57_spill] sm:$0xff] %v17090_v52  ;;  %v18490_v52 = vld [vmem:[#allocation98_spill] sm:$0xff] }
 0x605   : > { %8006 = vmatpush.bf16.msra.mxu0 %v18468_v63  ;;  %v18485_v63 = vld [vmem:[#allocation92_spill] sm:$0xff] }
 0x606   : > { %8047 = vmatpush.bf16.msra.mxu3 %v18467_v37  ;;  %8034 = vmatpush.bf16.msra.mxu2 %v18471_v6  ;;  %v18484_v6 = vld [vmem:[#allocation91_spill] sm:$0xff]  ;;  %v18486_v37 = vld [vmem:[#allocation93_spill] sm:$0xff] }
 0x607   : > { %8073 = vmatpush.bf16.msrb.mxu1 %v18475_v7  ;;  %v18482_v7 = vld [vmem:[#allocation90_spill] sm:$0xff] }
 0x608   : > { %8007 = vmatmul.bf16.vlgmr.msra.gmra.mxu0 %v16867_v20  ;;  %8021 = vmatmul.bf16.vlgmr.msra.gmra.mxu1 %v16871_v22 }
 0x609   : > { %8059 = vmatpush.bf16.msrb.mxu0 %v18473_v5  ;;  %8035 = vmatmul.bf16.vlgmr.msra.gmra.mxu2 %v17027_v10  ;;  %v18480_v5 = vld [vmem:[#allocation89_spill] sm:$0xff] }
 0x60a   : > { %8048 = vmatpush.bf16.msra.mxu3 %v18472_v61  ;;  %8087 = vmatpush.bf16.msrb.mxu2 %v18476_v30  ;;  %v18479_v61 = vld [vmem:[#allocation88_spill] sm:$0xff]  ;;  %v7780_v30 = vpop.f32.mrf.mxu0  ;;  %v7794_v48 = vpop.f32.mrf.mxu1 }
 0x60b   : > { %8074 = vmatpush.bf16.msrb.mxu1 %v18479_v61  ;;  %v7781_v1 = vadd.f32 %v7780_v30, %v7767_v21  ;;  %v18494_v30 = vld [vmem:[#allocation101_spill] sm:$0xff] }
 0x60d   : > { %8049 = vmatmul.bf16.vlgmr.msra.gmra.mxu3 %v17031_v26  ;;  %8060 = vmatpush.bf16.msrb.mxu0 %v18478_v3  ;;  %v18487_v3 = vld [vmem:[#allocation94_spill] sm:$0xff]  ;;  %v17099_v61 = vadd.f32 %v7794_v48, %v7781_v1  ;;  %v18497_v1 = vld [vmem:[#allocation104_spill] sm:$0xff] }
 0x60e   : > { %8101 = vmatpush.bf16.msrb.mxu3 %v18477_v13  ;;  %8088 = vmatpush.bf16.msrb.mxu2 %v18480_v5  ;;  %v17093_v13 = vpop.f32.mrf.mxu3  ;;  %v18489_v5 = vld [vmem:[#allocation96_spill] sm:$0xff] }
 0x60f   : > { %18483 = vst [vmem:[#allocation64_spill] sm:$0xff] %v17093_v13  ;;  %8075 = vmatpush.bf16.msrb.mxu1 %v18485_v63  ;;  %v7808_v13 = vpop.f32.mrf.mxu2 }
 0x610   : > { %18488 = vst [vmem:[#allocation127_spill] sm:$0xff] %v17099_v61  ;;  %v18498_v61 = vld [vmem:[#allocation105_spill] sm:$0xff] }
 0x611   : > { %8061 = vmatpush.bf16.msrb.mxu0 %v18484_v6  ;;  %v18493_v6 = vld [vmem:[#allocation21_spill] sm:$0xff] }
 0x612   : > { %8102 = vmatpush.bf16.msrb.mxu3 %v18482_v7  ;;  %8089 = vmatpush.bf16.msrb.mxu2 %v18486_v37  ;;  %v18491_v7 = vld [vmem:[#allocation99_spill] sm:$0xff]  ;;  %v7809_v21 = vadd.f32 %v7808_v13, %v18493_v6  ;;  %v18495_v37 = vld [vmem:[#allocation102_spill] sm:$0xff]  ;;  %v18509_v6 = vld [vmem:[#allocation112_spill] sm:$0xff] }
 0x613   : > { %8076 = vmatpush.bf16.msrb.mxu1 %v18490_v52  ;;  %v18499_v52 = vld [vmem:[#allocation106_spill] sm:$0xff] }
 0x614   : > { %v18503_v13 = vld [vmem:[#allocation110_spill] sm:$0xff] }
 0x615   : > { %8062 = vmatpush.bf16.msrb.mxu0 %v18489_v5  ;;  %v18502_v5 = vld [vmem:[#allocation109_spill] sm:$0xff] }
 0x616   : > { %8103 = vmatpush.bf16.msrb.mxu3 %v18487_v3  ;;  %8090 = vmatpush.bf16.msrb.mxu2 %v18491_v7  ;;  %v7822_v63 = vpop.f32.mrf.mxu3  ;;  %v18500_v7 = vld [vmem:[#allocation107_spill] sm:$0xff] }
 0x617   : > { %8077 = vmatpush.bf16.msrb.mxu1 %v18495_v37  ;;  %v7823_v48 = vadd.f32 %v7822_v63, %v7809_v21  ;;  %v18505_v37 = vperm.slane %v18421_v17, 4  ;;  %v18507_v21 = vperm.slane %v18421_v17, 5  ;;  %v18515_v3 = vld [vmem:[#allocation131_spill] sm:$0xff]  ;;  %v17133_v17 = vpop.f32.mrf.mxu1 }
 0x618   : > { %18518 = vst [vmem:[#allocation130_spill] sm:$0xff] %v17133_v17  ;;  %v18524_v17 = vld [vmem:[#allocation124_spill] sm:$0xff] }
 0x619   : > { %8063 = vmatpush.bf16.msrb.mxu0 %v18494_v30  ;;  %v18504_v30 = vld [vmem:[#allocation111_spill] sm:$0xff] }
 0x61a   : > { %8104 = vmatpush.bf16.msrb.mxu3 %v18492_v28  ;;  %8091 = vmatpush.bf16.msrb.mxu2 %v18496_v57  ;;  %v18501_v28 = vld [vmem:[#allocation108_spill] sm:$0xff] }
 0x61b   : > { %8078 = vmatpush.bf16.msrb.mxu1 %v18499_v52  ;;  %v18506_v57 = vld [vmem:[#allocation84_spill] sm:$0xff]  ;;  %v18510_v52 = vld [vmem:[#allocation113_spill] sm:$0xff] }
 0x61c   : > { %v6165_v63 = vadd.f32 %v18506_v57, %v18505_v37  ;;  %v18517_v57 = vld [vmem:[#allocation117_spill] sm:$0xff]  ;;  %v18519_v37 = vld [vmem:[#allocation118_spill] sm:$0xff] }
 0x61d   : > { %8064 = vmatpush.bf16.msrb.mxu0 %v18498_v61 }
 0x61e   : > { %8105 = vmatpush.bf16.msrb.mxu3 %v18497_v1  ;;  %8092 = vmatpush.bf16.msrb.mxu2 %v18500_v7  ;;  %v18508_v1 = vld [vmem:[#allocation128_spill] sm:$0xff]  ;;  %v17125_v7 = vpop.f32.mrf.mxu0 }
 0x61f   : > { %8079 = vmatpush.bf16.msrb.mxu1 %v18503_v13  ;;  %v6249_v61 = vadd.f32 %v18508_v1, %v18507_v21  ;;  %18511 = vst [vmem:[#allocation129_spill] sm:$0xff] %v17125_v7  ;;  %v18514_v13 = vld [vmem:[#allocation86_spill] sm:$0xff]  ;;  %v18520_v1 = vld [vmem:[#allocation119_spill] sm:$0xff]  ;;  %v18521_v21 = vld [vmem:[#allocation120_spill] sm:$0xff] }
 0x620   : > { %v18525_v7 = vld [vmem:[#allocation125_spill] sm:$0xff] }
 0x621   : > { %8065 = vmatpush.bf16.msrb.mxu0 %v18502_v5  ;;  %v18513_v5 = vld [vmem:[#allocation115_spill] sm:$0xff]  ;;  %v6263_v41 = vadd.f32 %v18515_v3, %v6249_v61  ;;  %v18523_v3 = vld [vmem:[#allocation153_spill] sm:$0xff] }
 0x622   : > { %8106 = vmatpush.bf16.msrb.mxu3 %v18501_v28  ;;  %8093 = vmatpush.bf16.msrb.mxu2 %v18504_v30  ;;  %v18512_v28 = vld [vmem:[#allocation114_spill] sm:$0xff]  ;;  %v6179_v30 = vadd.f32 %v18514_v13, %v6165_v63  ;;  %v18522_v13 = vld [vmem:[#allocation95_spill] sm:$0xff] }
 0x623   : > { %8080 = vmatpush.bf16.msrb.mxu1 %v18512_v28  ;;  %v6277_v63 = vadd.f32 %v18523_v3, %v6263_v41  ;;  %v18531_v3 = vld [vmem:[#allocation163_spill] sm:$0xff] }
 0x624   : > { %v6193_v61 = vadd.f32 %v18522_v13, %v6179_v30  ;;  %v17152_v30 = vpop.f32.mrf.mxu3 }
 0x625   : > { %8066 = vmatpush.bf16.msrb.mxu0 %v18510_v52  ;;  %18530 = vst [vmem:[#allocation58_spill] sm:$0xff] %v17152_v30  ;;  %v7850_v13 = vpop.f32.mrf.mxu1  ;;  %v18553_v30 = vld [vmem:[#allocation182_spill] sm:$0xff] }
 0x626   : > { %8107 = vmatpush.bf16.msrb.mxu3 %v18509_v6  ;;  %8094 = vmatpush.bf16.msrb.mxu2 %v18513_v5  ;;  %v18529_v5 = vld [vmem:[#allocation155_spill] sm:$0xff] }
 0x627   : > { %8129 = vmatpush.bf16.msra.mxu1 %v18519_v37  ;;  %v7836_v37 = vpop.f32.mrf.mxu0  ;;  %v6291_v28 = vadd.f32 %v18529_v5, %v6277_v63  ;;  %v18533_v5 = vld [vmem:[#allocation165_spill] sm:$0xff] }
 0x628   : > { %8067 = vmatmul.bf16.vlgmr.msrb.gmra.mxu0 %v16867_v20  ;;  %8081 = vmatmul.bf16.vlgmr.msrb.gmra.mxu1 %v16871_v22  ;;  %v7837_v41 = vadd.f32 %v7836_v37, %v7823_v48 }
 0x629   : > { %8115 = vmatpush.bf16.msra.mxu0 %v18517_v57  ;;  %8095 = vmatmul.bf16.vlgmr.msrb.gmra.mxu2 %v17027_v10  ;;  %v18528_v57 = vld [vmem:[#allocation97_spill] sm:$0xff] }
 0x62a   : > { %8108 = vmatpush.bf16.msrb.mxu3 %v18516_v49  ;;  %8143 = vmatpush.bf16.msra.mxu2 %v18520_v1  ;;  %v17147_v1 = vpop.f32.mrf.mxu2  ;;  %v6207_v49 = vadd.f32 %v18528_v57, %v6193_v61  ;;  %v18534_v61 = vld [vmem:[#allocation123_spill] sm:$0xff] }
 0x62b   : > { %8130 = vmatpush.bf16.msra.mxu1 %v18524_v17  ;;  %18526 = vst [vmem:[#allocation65_spill] sm:$0xff] %v17147_v1  ;;  %v7851_v1 = vadd.f32 %v7850_v13, %v7837_v41  ;;  %v18536_v13 = vld [vmem:[#allocation142_spill] sm:$0xff] }
 0x62d   : > { %8109 = vmatmul.bf16.vlgmr.msrb.gmra.mxu3 %v17031_v26  ;;  %8116 = vmatpush.bf16.msra.mxu0 %v18439_v55 }
 0x62e   : > { %8157 = vmatpush.bf16.msra.mxu3 %v18521_v21  ;;  %8144 = vmatpush.bf16.msra.mxu2 %v18525_v7  ;;  %v18527_v21 = vld [vmem:[#allocation126_spill] sm:$0xff]  ;;  %v6305_v7 = vadd.f32 %v18531_v3, %v6291_v28  ;;  %v6565_v3 = vunpack.c.l.b16 %v18536_v13 }
 0x62f   : > { %8131 = vmatpush.bf16.msra.mxu1 %v18360_v11 }
 0x630   : > { %v6319_v48 = vadd.f32 %v18533_v5, %v6305_v7  ;;  %v7878_v28 = vpop.f32.mrf.mxu3  ;;  %v6566_v5 = vunpack.c.h.b16 %v18536_v13 }
 0x631   : > { %8117 = vmatpush.bf16.msra.mxu0 %v18359_v31 }
 0x632   : > { %8158 = vmatpush.bf16.msra.mxu3 %v18527_v21  ;;  %8145 = vmatpush.bf16.msra.mxu2 %v18361_v43  ;;  %v18532_v21 = vld [vmem:[#allocation121_spill] sm:$0xff]  ;;  %v7864_v57 = vpop.f32.mrf.mxu2 }
 0x633   : > { %v6221_v17 = vadd.f32 %v18532_v21, %v6207_v49  ;;  %8132 = vmatpush.bf16.msra.mxu1 %v18278_v40  ;;  %v7865_v37 = vadd.f32 %v7864_v57, %v7851_v1  ;;  %v6518_v21 = vmax.f32 %v6319_v48, 0.0  ;;  %v17183_v48 = vpop.f32.mrf.mxu0 }
 0x634   : > { %18537 = vst [vmem:[#allocation59_spill] sm:$0xff] %v17183_v48  ;;  %v18552_v48 = vld [vmem:[#allocation181_spill] sm:$0xff] }
 0x635   : > { %8118 = vmatpush.bf16.msra.mxu0 %v18190_v35  ;;  %v6235_v63 = vadd.f32 %v18534_v61, %v6221_v17  ;;  %v17169_v49 = vadd.f32 %v7878_v28, %v7865_v37  ;;  %v17193_v61 = vpop.f32.mrf.mxu1 }
 0x636   : > { %8159 = vmatpush.bf16.msra.mxu3 %v18188_v8  ;;  %8146 = vmatpush.bf16.msra.mxu2 %v18279_v34  ;;  %18538 = vst [vmem:[#allocation22_spill] sm:$0xff] %v17193_v61  ;;  %v18549_v61 = vld [vmem:[#allocation178_spill] sm:$0xff] }
 0x637   : > { %8133 = vmatpush.bf16.msra.mxu1 %v18283_v60  ;;  %18535 = vst [vmem:[#allocation66_spill] sm:$0xff] %v17169_v49  ;;  %v6517_v41 = vmax.f32 %v6235_v63, 0.0  ;;  %v18544_v49 = vld [vmem:[#allocation173_spill] sm:$0xff] }
 0x639   : > { %8119 = vmatpush.bf16.msra.mxu0 %v18196_v2  ;;  %v6535_v7 = vpack.c.bf16 %v6518_v21, %v6517_v41  ;;  %v17208_v21 = vpop.f32.mrf.mxu3 }
 0x63a   : > { %8160 = vmatpush.bf16.msra.mxu3 %v18281_v47  ;;  %8147 = vmatpush.bf16.msra.mxu2 %v18284_v38  ;;  %v17205_v63 = vpop.f32.mrf.mxu2  ;;  %18540 = vst [vmem:[#allocation141_spill] sm:$0xff] %v17208_v21  ;;  %v18547_v21 = vld [vmem:[#allocation176_spill] sm:$0xff] }
 0x63b   : > { %8134 = vmatpush.bf16.msra.mxu1 %v18452_v51  ;;  %v6581_v17 = vunpack.c.l.b16 %v6535_v7  ;;  %v6582_v1 = vunpack.c.h.b16 %v6535_v7  ;;  %18539 = vst [vmem:[#allocation140_spill] sm:$0xff] %v17205_v63  ;;  %v18548_v63 = vld [vmem:[#allocation177_spill] sm:$0xff] }
 0x63d   : > { %8120 = vmatpush.bf16.msra.mxu0 %v18367_v12  ;;  %v17187_v57 = vpack.c.b16 %v6581_v17, %v6565_v3  ;;  %v17191_v37 = vpack.c.b16 %v6582_v1, %v6566_v5  ;;  %v18541_v1 = vld [vmem:[#allocation170_spill] sm:$0xff]  ;;  %v18542_v3 = vld [vmem:[#allocation171_spill] sm:$0xff]  ;;  %v18543_v5 = vld [vmem:[#allocation172_spill] sm:$0xff] }
 0x63e   : > { %8161 = vmatpush.bf16.msra.mxu3 %v18199_v56  ;;  %8148 = vmatpush.bf16.msra.mxu2 %v18453_v9 }
 0x63f   : > { %8135 = vmatpush.bf16.msra.mxu1 %v18372_v18 }
 0x641   : > { %8121 = vmatpush.bf16.msra.mxu0 %v18371_v42 }
 0x642   : > { %8162 = vmatpush.bf16.msra.mxu3 %v18370_v44  ;;  %8149 = vmatpush.bf16.msra.mxu2 %v18373_v53 }
 0x643   : > { %8136 = vmatpush.bf16.msra.mxu1 %v18295_v16 }
 0x645   : > { %8122 = vmatpush.bf16.msra.mxu0 %v18456_v14  ;;  %v7896_v28 = vpop.f32.mrf.mxu0 }
 0x646   : > { %8163 = vmatpush.bf16.msra.mxu3 %v18454_v39  ;;  %8150 = vmatpush.bf16.msra.mxu2 %v18296_v54  ;;  %v7897_v41 = vadd.f32 %v7896_v28, %v16562_v50 }
 0x647   : > { %8185 = vmatpush.bf16.msrb.mxu1 %v18379_v33 }
 0x648   : > { %8123 = vmatmul.bf16.vlgmr.msra.gmra.mxu0 %v17187_v57  ;;  %8137 = vmatmul.bf16.vlgmr.msra.gmra.mxu1 %v17191_v37 }
 0x649   : > { %8171 = vmatpush.bf16.msrb.mxu0 %v18298_v27  ;;  %8151 = vmatmul.bf16.vlgmr.msra.gmra.mxu2 %v16867_v20  ;;  %v7910_v20 = vpop.f32.mrf.mxu1 }
 0x64a   : > { %8164 = vmatpush.bf16.msra.mxu3 %v18297_v25  ;;  %8199 = vmatpush.bf16.msrb.mxu2 %v18380_v59 }
 0x64b   : > { %8186 = vmatpush.bf16.msrb.mxu1 %v18459_v24 }
 0x64c   : > { %v7924_v7 = vpop.f32.mrf.mxu2 }
 0x64d   : > { %8165 = vmatmul.bf16.vlgmr.msra.gmra.mxu3 %v16871_v22  ;;  %8172 = vmatpush.bf16.msrb.mxu0 %v18382_v58  ;;  %v7911_v22 = vadd.f32 %v7910_v20, %v7897_v41  ;;  %v18545_v41 = vld [vmem:[#allocation174_spill] sm:$0xff]  ;;  %v18546_v20 = vld [vmem:[#allocation175_spill] sm:$0xff] }
 0x64e   : > { %8213 = vmatpush.bf16.msrb.mxu3 %v18381_v0  ;;  %8200 = vmatpush.bf16.msrb.mxu2 %v18305_v45 }
 0x64f   : > { %8187 = vmatpush.bf16.msrb.mxu1 %v18310_v29  ;;  %v7925_v17 = vadd.f32 %v7924_v7, %v7911_v22  ;;  %v18550_v22 = vld [vmem:[#allocation179_spill] sm:$0xff]  ;;  %v18551_v7 = vld [vmem:[#allocation180_spill] sm:$0xff] }
 0x650   : > { %v7938_v13 = vpop.f32.mrf.mxu3 }
 0x651   : > { %8173 = vmatpush.bf16.msrb.mxu0 %v18309_v46  ;;  %v7939_v28 = vadd.f32 %v7938_v13, %v7925_v17  ;;  %v17232_v17 = vpop.f32.mrf.mxu0  ;;  %v18555_v13 = vld [vmem:[#allocation183_spill] sm:$0xff] }
 0x652   : > { %8214 = vmatpush.bf16.msrb.mxu3 %v18307_v23  ;;  %8201 = vmatpush.bf16.msrb.mxu2 %v18462_v36  ;;  %18554 = vst [vmem:[#allocation143_spill] sm:$0xff] %v17232_v17  ;;  %v18563_v17 = vld [vmem:[#allocation87_spill] sm:$0xff] }
 0x653   : > { %8188 = vmatpush.bf16.msrb.mxu1 %v18231_v62 }
 0x655   : > { %8174 = vmatpush.bf16.msrb.mxu0 %v18230_v19 }
 0x656   : > { %8215 = vmatpush.bf16.msrb.mxu3 %v18229_v32  ;;  %8202 = vmatpush.bf16.msrb.mxu2 %v18232_v4 }
 0x657   : > { %8189 = vmatpush.bf16.msrb.mxu1 %v18542_v3  ;;  %v18581_v3 = vld [vmem:[#allocation103_spill] sm:$0xff] }
 0x659   : > { %8175 = vmatpush.bf16.msrb.mxu0 %v18541_v1  ;;  %v18600_v1 = vld [vmem:[#allocation116_spill] sm:$0xff] }
 0x65a   : > { %8216 = vmatpush.bf16.msrb.mxu3 %v18233_v15  ;;  %8203 = vmatpush.bf16.msrb.mxu2 %v18543_v5  ;;  %v18577_v5 = vld [vmem:[#allocation100_spill] sm:$0xff] }
 0x65b   : > { %8190 = vmatpush.bf16.msrb.mxu1 %v18546_v20  ;;  %v18557_v20 = vld [vmem:[#allocation185_spill] sm:$0xff] }
 0x65d   : > { %8176 = vmatpush.bf16.msrb.mxu0 %v18545_v41  ;;  %v18556_v41 = vld [vmem:[#allocation184_spill] sm:$0xff] }
 0x65e   : > { %8217 = vmatpush.bf16.msrb.mxu3 %v18544_v49  ;;  %8204 = vmatpush.bf16.msrb.mxu2 %v18547_v21  ;;  %v18558_v21 = vld [vmem:[#allocation81_spill] sm:$0xff] }
 0x65f   : > { %8191 = vmatpush.bf16.msrb.mxu1 %v18550_v22  ;;  %v18561_v22 = vld [vmem:[#allocation83_spill] sm:$0xff] }
 0x661   : > { %8177 = vmatpush.bf16.msrb.mxu0 %v18549_v61  ;;  %v18560_v61 = vld [vmem:[#allocation82_spill] sm:$0xff] }
 0x662   : > { %8218 = vmatpush.bf16.msrb.mxu3 %v18548_v63  ;;  %8205 = vmatpush.bf16.msrb.mxu2 %v18551_v7  ;;  %v17238_v63 = vpop.f32.mrf.mxu1  ;;  %v18562_v7 = vld [vmem:[#allocation85_spill] sm:$0xff] }
 0x663   : > { %8192 = vmatpush.bf16.msrb.mxu1 %v18555_v13  ;;  %18559 = vst [vmem:[#allocation144_spill] sm:$0xff] %v17238_v63  ;;  %v17250_v63 = vpop.f32.mrf.mxu2 }
 0x664   : > { %18566 = vst [vmem:[#allocation62_spill] sm:$0xff] %v17250_v63  ;;  %v18575_v63 = vld [vmem:[#allocation98_spill] sm:$0xff] }
 0x665   : > { %8178 = vmatpush.bf16.msrb.mxu0 %v18553_v30  ;;  %v18570_v30 = vld [vmem:[#allocation92_spill] sm:$0xff] }
 0x666   : > { %8219 = vmatpush.bf16.msrb.mxu3 %v18552_v48  ;;  %8206 = vmatpush.bf16.msrb.mxu2 %v18556_v41  ;;  %v18569_v41 = vld [vmem:[#allocation91_spill] sm:$0xff]  ;;  %v18571_v48 = vld [vmem:[#allocation93_spill] sm:$0xff] }
 0x667   : > { %8245 = vmatpush.bf16.msra.mxu1 %v18560_v61  ;;  %v18567_v61 = vld [vmem:[#allocation90_spill] sm:$0xff] }
 0x668   : > { %8179 = vmatmul.bf16.vlgmr.msrb.gmra.mxu0 %v17027_v10  ;;  %8193 = vmatmul.bf16.vlgmr.msrb.gmra.mxu1 %v17031_v26 }
 0x669   : > { %8231 = vmatpush.bf16.msra.mxu0 %v18558_v21  ;;  %8207 = vmatmul.bf16.vlgmr.msrb.gmra.mxu2 %v17187_v57  ;;  %v18565_v21 = vld [vmem:[#allocation89_spill] sm:$0xff] }
 0x66a   : > { %8220 = vmatpush.bf16.msrb.mxu3 %v18557_v20  ;;  %8259 = vmatpush.bf16.msra.mxu2 %v18561_v22  ;;  %v18564_v20 = vld [vmem:[#allocation88_spill] sm:$0xff]  ;;  %v7952_v22 = vpop.f32.mrf.mxu0  ;;  %v7966_v49 = vpop.f32.mrf.mxu1 }
 0x66b   : > { %8246 = vmatpush.bf16.msra.mxu1 %v18564_v20  ;;  %v7953_v13 = vadd.f32 %v7952_v22, %v7939_v28  ;;  %v18579_v22 = vld [vmem:[#allocation101_spill] sm:$0xff] }
 0x66d   : > { %8221 = vmatmul.bf16.vlgmr.msrb.gmra.mxu3 %v17191_v37  ;;  %8232 = vmatpush.bf16.msra.mxu0 %v18563_v17  ;;  %v18572_v17 = vld [vmem:[#allocation94_spill] sm:$0xff]  ;;  %v17259_v20 = vadd.f32 %v7966_v49, %v7953_v13  ;;  %v18582_v13 = vld [vmem:[#allocation104_spill] sm:$0xff] }
 0x66e   : > { %8273 = vmatpush.bf16.msra.mxu3 %v18562_v7  ;;  %8260 = vmatpush.bf16.msra.mxu2 %v18565_v21  ;;  %v17253_v7 = vpop.f32.mrf.mxu3  ;;  %v18574_v21 = vld [vmem:[#allocation96_spill] sm:$0xff] }
 0x66f   : > { %18568 = vst [vmem:[#allocation151_spill] sm:$0xff] %v17253_v7  ;;  %8247 = vmatpush.bf16.msra.mxu1 %v18570_v30  ;;  %v7980_v7 = vpop.f32.mrf.mxu2 }
 0x670   : > { %18573 = vst [vmem:[#allocation152_spill] sm:$0xff] %v17259_v20  ;;  %v18583_v20 = vld [vmem:[#allocation105_spill] sm:$0xff] }
 0x671   : > { %8233 = vmatpush.bf16.msra.mxu0 %v18569_v41  ;;  %v18578_v41 = vld [vmem:[#allocation21_spill] sm:$0xff] }
 0x672   : > { %8274 = vmatpush.bf16.msra.mxu3 %v18567_v61  ;;  %8261 = vmatpush.bf16.msra.mxu2 %v18571_v48  ;;  %v18576_v61 = vld [vmem:[#allocation99_spill] sm:$0xff]  ;;  %v7981_v28 = vadd.f32 %v7980_v7, %v18578_v41  ;;  %v18580_v48 = vld [vmem:[#allocation102_spill] sm:$0xff] }
 0x673   : > { %8248 = vmatpush.bf16.msra.mxu1 %v18575_v63  ;;  %v18584_v63 = vld [vmem:[#allocation106_spill] sm:$0xff]  ;;  %v18589_v41 = vld [vmem:[#allocation111_spill] sm:$0xff] }
 0x674   : > { %v18588_v7 = vld [vmem:[#allocation110_spill] sm:$0xff] }
 0x675   : > { %8234 = vmatpush.bf16.msra.mxu0 %v18574_v21  ;;  %v18587_v21 = vld [vmem:[#allocation109_spill] sm:$0xff] }
 0x676   : > { %8275 = vmatpush.bf16.msra.mxu3 %v18572_v17  ;;  %8262 = vmatpush.bf16.msra.mxu2 %v18576_v61  ;;  %v7994_v30 = vpop.f32.mrf.mxu3  ;;  %v18585_v61 = vld [vmem:[#allocation107_spill] sm:$0xff] }
 0x677   : > { %8249 = vmatpush.bf16.msra.mxu1 %v18580_v48  ;;  %v7995_v49 = vadd.f32 %v7994_v30, %v7981_v28  ;;  %v18590_v48 = vld [vmem:[#allocation160_spill] sm:$0xff] }
 0x678   : > { %v18593_v28 = vperm.slane %v18590_v48, 7 }
 0x679   : > { %8235 = vmatpush.bf16.msra.mxu0 %v18579_v22  ;;  %v18591_v22 = vperm.slane %v18590_v48, 6  ;;  %v17293_v48 = vpop.f32.mrf.mxu1 }
 0x67a   : > { %8276 = vmatpush.bf16.msra.mxu3 %v18577_v5  ;;  %8263 = vmatpush.bf16.msra.mxu2 %v18581_v3  ;;  %v18586_v5 = vld [vmem:[#allocation108_spill] sm:$0xff]  ;;  %v18592_v3 = vld [vmem:[#allocation186_spill] sm:$0xff]  ;;  %18602 = vst [vmem:[#allocation154_spill] sm:$0xff] %v17293_v48 }
 0x67b   : > { %8250 = vmatpush.bf16.msra.mxu1 %v18584_v63  ;;  %v6333_v30 = vadd.f32 %v18592_v3, %v18591_v22  ;;  %v18599_v63 = vld [vmem:[#allocation27_spill] sm:$0xff]  ;;  %v18601_v3 = vld [vmem:[#allocation117_spill] sm:$0xff]  ;;  %v18603_v22 = vld [vmem:[#allocation118_spill] sm:$0xff] }
 0x67c   : > { %v18608_v48 = vld [vmem:[#allocation124_spill] sm:$0xff] }
 0x67d   : > { %8236 = vmatpush.bf16.msra.mxu0 %v18583_v20 }
 0x67e   : > { %8277 = vmatpush.bf16.msra.mxu3 %v18582_v13  ;;  %8264 = vmatpush.bf16.msra.mxu2 %v18585_v61  ;;  %v18594_v13 = vld [vmem:[#allocation32_spill] sm:$0xff]  ;;  %v17285_v61 = vpop.f32.mrf.mxu0 }
 0x67f   : > { %8251 = vmatpush.bf16.msra.mxu1 %v18588_v7  ;;  %v6417_v20 = vadd.f32 %v18594_v13, %v18593_v28  ;;  %18595 = vst [vmem:[#allocation23_spill] sm:$0xff] %v17285_v61  ;;  %v18598_v7 = vld [vmem:[#allocation187_spill] sm:$0xff]  ;;  %v18605_v28 = vld [vmem:[#allocation120_spill] sm:$0xff]  ;;  %v18609_v61 = vld [vmem:[#allocation125_spill] sm:$0xff] }
 0x680   : > { %v18604_v13 = vld [vmem:[#allocation119_spill] sm:$0xff] }
 0x681   : > { %8237 = vmatpush.bf16.msra.mxu0 %v18587_v21  ;;  %v18597_v21 = vld [vmem:[#allocation115_spill] sm:$0xff]  ;;  %v6431_v17 = vadd.f32 %v18599_v63, %v6417_v20  ;;  %v18607_v20 = vld [vmem:[#allocation28_spill] sm:$0xff] }
 0x682   : > { %8278 = vmatpush.bf16.msra.mxu3 %v18586_v5  ;;  %8265 = vmatpush.bf16.msra.mxu2 %v18589_v41  ;;  %v18596_v5 = vld [vmem:[#allocation114_spill] sm:$0xff]  ;;  %v6347_v41 = vadd.f32 %v18598_v7, %v6333_v30  ;;  %v18606_v7 = vld [vmem:[#allocation188_spill] sm:$0xff] }
 0x683   : > { %8252 = vmatpush.bf16.msra.mxu1 %v18596_v5  ;;  %v6445_v30 = vadd.f32 %v18607_v20, %v6431_v17  ;;  %v18615_v20 = vld [vmem:[#allocation29_spill] sm:$0xff] }
 0x684   : > { %v6361_v63 = vadd.f32 %v18606_v7, %v6347_v41  ;;  %v17312_v41 = vpop.f32.mrf.mxu3 }
 0x685   : > { %8238 = vmatpush.bf16.msra.mxu0 %v18510_v52  ;;  %18614 = vst [vmem:[#allocation67_spill] sm:$0xff] %v17312_v41  ;;  %v8022_v7 = vpop.f32.mrf.mxu1  ;;  %v18637_v41 = vld [vmem:[#allocation182_spill] sm:$0xff] }
 0x686   : > { %8279 = vmatpush.bf16.msra.mxu3 %v18509_v6  ;;  %8266 = vmatpush.bf16.msra.mxu2 %v18597_v21  ;;  %v18613_v21 = vld [vmem:[#allocation35_spill] sm:$0xff] }
 0x687   : > { %8301 = vmatpush.bf16.msrb.mxu1 %v18603_v22  ;;  %v8008_v22 = vpop.f32.mrf.mxu0  ;;  %v6459_v5 = vadd.f32 %v18613_v21, %v6445_v30  ;;  %v18617_v21 = vld [vmem:[#allocation38_spill] sm:$0xff] }
 0x688   : > { %8239 = vmatmul.bf16.vlgmr.msra.gmra.mxu0 %v17027_v10  ;;  %8253 = vmatmul.bf16.vlgmr.msra.gmra.mxu1 %v17031_v26  ;;  %v8009_v17 = vadd.f32 %v8008_v22, %v7995_v49 }
 0x689   : > { %8287 = vmatpush.bf16.msrb.mxu0 %v18601_v3  ;;  %8267 = vmatmul.bf16.vlgmr.msra.gmra.mxu2 %v17187_v57  ;;  %v18612_v3 = vld [vmem:[#allocation189_spill] sm:$0xff] }
 0x68a   : > { %8280 = vmatpush.bf16.msra.mxu3 %v18600_v1  ;;  %8315 = vmatpush.bf16.msrb.mxu2 %v18604_v13  ;;  %v17307_v13 = vpop.f32.mrf.mxu2  ;;  %v6375_v1 = vadd.f32 %v18612_v3, %v6361_v63  ;;  %v18618_v63 = vld [vmem:[#allocation26_spill] sm:$0xff] }
 0x68b   : > { %8302 = vmatpush.bf16.msrb.mxu1 %v18608_v48  ;;  %18610 = vst [vmem:[#allocation51_spill] sm:$0xff] %v17307_v13  ;;  %v8023_v13 = vadd.f32 %v8022_v7, %v8009_v17  ;;  %v18620_v7 = vld [vmem:[#allocation33_spill] sm:$0xff] }
 0x68d   : > { %8281 = vmatmul.bf16.vlgmr.msra.gmra.mxu3 %v17191_v37  ;;  %8288 = vmatpush.bf16.msrb.mxu0 %v18439_v55 }
 0x68e   : > { %8329 = vmatpush.bf16.msrb.mxu3 %v18605_v28  ;;  %8316 = vmatpush.bf16.msrb.mxu2 %v18609_v61  ;;  %v18611_v28 = vld [vmem:[#allocation126_spill] sm:$0xff]  ;;  %v6473_v61 = vadd.f32 %v18615_v20, %v6459_v5  ;;  %v6567_v20 = vunpack.c.l.b16 %v18620_v7 }
 0x68f   : > { %8303 = vmatpush.bf16.msrb.mxu1 %v18360_v11 }
 0x690   : > { %v6487_v49 = vadd.f32 %v18617_v21, %v6473_v61  ;;  %v8050_v5 = vpop.f32.mrf.mxu3  ;;  %v6568_v21 = vunpack.c.h.b16 %v18620_v7 }
 0x691   : > { %8289 = vmatpush.bf16.msrb.mxu0 %v18359_v31 }
 0x692   : > { %8330 = vmatpush.bf16.msrb.mxu3 %v18611_v28  ;;  %8317 = vmatpush.bf16.msrb.mxu2 %v18361_v43  ;;  %v18616_v28 = vld [vmem:[#allocation20_spill] sm:$0xff]  ;;  %v8036_v3 = vpop.f32.mrf.mxu2 }
 0x693   : > { %v6389_v48 = vadd.f32 %v18616_v28, %v6375_v1  ;;  %8304 = vmatpush.bf16.msrb.mxu1 %v18278_v40  ;;  %v8037_v22 = vadd.f32 %v8036_v3, %v8023_v13  ;;  %v6520_v28 = vmax.f32 %v6487_v49, 0.0  ;;  %v17343_v49 = vpop.f32.mrf.mxu0 }
 0x694   : > { %18621 = vst [vmem:[#allocation74_spill] sm:$0xff] %v17343_v49  ;;  %v18636_v49 = vld [vmem:[#allocation181_spill] sm:$0xff] }
 0x695   : > { %8290 = vmatpush.bf16.msrb.mxu0 %v18190_v35  ;;  %v6403_v30 = vadd.f32 %v18618_v63, %v6389_v48  ;;  %v17329_v1 = vadd.f32 %v8050_v5, %v8037_v22  ;;  %v17353_v63 = vpop.f32.mrf.mxu1 }
 0x696   : > { %8331 = vmatpush.bf16.msrb.mxu3 %v18188_v8  ;;  %8318 = vmatpush.bf16.msrb.mxu2 %v18279_v34  ;;  %18622 = vst [vmem:[#allocation68_spill] sm:$0xff] %v17353_v63  ;;  %v18633_v63 = vld [vmem:[#allocation178_spill] sm:$0xff] }
 0x697   : > { %8305 = vmatpush.bf16.msrb.mxu1 %v18283_v60  ;;  %18619 = vst [vmem:[#allocation71_spill] sm:$0xff] %v17329_v1  ;;  %v6519_v17 = vmax.f32 %v6403_v30, 0.0  ;;  %v18628_v1 = vld [vmem:[#allocation173_spill] sm:$0xff] }
 0x699   : > { %8291 = vmatpush.bf16.msrb.mxu0 %v18196_v2  ;;  %v6536_v61 = vpack.c.bf16 %v6520_v28, %v6519_v17  ;;  %v17368_v28 = vpop.f32.mrf.mxu3 }
 0x69a   : > { %8332 = vmatpush.bf16.msrb.mxu3 %v18281_v47  ;;  %8319 = vmatpush.bf16.msrb.mxu2 %v18284_v38  ;;  %v17365_v30 = vpop.f32.mrf.mxu2  ;;  %18624 = vst [vmem:[#allocation69_spill] sm:$0xff] %v17368_v28  ;;  %v18631_v28 = vld [vmem:[#allocation176_spill] sm:$0xff] }
 0x69b   : > { %8306 = vmatpush.bf16.msrb.mxu1 %v18452_v51  ;;  %v6583_v48 = vunpack.c.l.b16 %v6536_v61  ;;  %v6584_v13 = vunpack.c.h.b16 %v6536_v61  ;;  %18623 = vst [vmem:[#allocation75_spill] sm:$0xff] %v17365_v30  ;;  %v18632_v30 = vld [vmem:[#allocation177_spill] sm:$0xff] }
 0x69d   : > { %8292 = vmatpush.bf16.msrb.mxu0 %v18367_v12  ;;  %v17347_v3 = vpack.c.b16 %v6583_v48, %v6567_v20  ;;  %v17351_v22 = vpack.c.b16 %v6584_v13, %v6568_v21  ;;  %v18625_v13 = vld [vmem:[#allocation170_spill] sm:$0xff]  ;;  %v18626_v20 = vld [vmem:[#allocation171_spill] sm:$0xff]  ;;  %v18627_v21 = vld [vmem:[#allocation172_spill] sm:$0xff] }
 0x69e   : > { %8333 = vmatpush.bf16.msrb.mxu3 %v18199_v56  ;;  %8320 = vmatpush.bf16.msrb.mxu2 %v18453_v9 }
 0x69f   : > { %8307 = vmatpush.bf16.msrb.mxu1 %v18372_v18 }
 0x6a1   : > { %8293 = vmatpush.bf16.msrb.mxu0 %v18371_v42 }
 0x6a2   : > { %8334 = vmatpush.bf16.msrb.mxu3 %v18370_v44  ;;  %8321 = vmatpush.bf16.msrb.mxu2 %v18373_v53 }
 0x6a3   : > { %8308 = vmatpush.bf16.msrb.mxu1 %v18295_v16 }
 0x6a5   : > { %8294 = vmatpush.bf16.msrb.mxu0 %v18456_v14  ;;  %v8068_v5 = vpop.f32.mrf.mxu0 }
 0x6a6   : > { %8335 = vmatpush.bf16.msrb.mxu3 %v18454_v39  ;;  %8322 = vmatpush.bf16.msrb.mxu2 %v18296_v54  ;;  %v8069_v17 = vadd.f32 %v8068_v5, %v16562_v50 }
 0x6a7   : > { %8357 = vmatpush.bf16.msra.mxu1 %v18379_v33 }
 0x6a8   : > { %8295 = vmatmul.bf16.vlgmr.msrb.gmra.mxu0 %v17347_v3  ;;  %8309 = vmatmul.bf16.vlgmr.msrb.gmra.mxu1 %v17351_v22 }
 0x6a9   : > { %8343 = vmatpush.bf16.msra.mxu0 %v18298_v27  ;;  %8323 = vmatmul.bf16.vlgmr.msrb.gmra.mxu2 %v17027_v10  ;;  %v8082_v10 = vpop.f32.mrf.mxu1 }
 0x6aa   : > { %8336 = vmatpush.bf16.msrb.mxu3 %v18297_v25  ;;  %8371 = vmatpush.bf16.msra.mxu2 %v18380_v59 }
 0x6ab   : > { %8358 = vmatpush.bf16.msra.mxu1 %v18459_v24 }
 0x6ac   : > { %v8096_v61 = vpop.f32.mrf.mxu2 }
 0x6ad   : > { %8337 = vmatmul.bf16.vlgmr.msrb.gmra.mxu3 %v17031_v26  ;;  %8344 = vmatpush.bf16.msra.mxu0 %v18382_v58  ;;  %v8083_v26 = vadd.f32 %v8082_v10, %v8069_v17  ;;  %v18629_v17 = vld [vmem:[#allocation174_spill] sm:$0xff]  ;;  %v18630_v10 = vld [vmem:[#allocation175_spill] sm:$0xff] }
 0x6ae   : > { %8385 = vmatpush.bf16.msra.mxu3 %v18381_v0  ;;  %8372 = vmatpush.bf16.msra.mxu2 %v18305_v45 }
 0x6af   : > { %8359 = vmatpush.bf16.msra.mxu1 %v18310_v29  ;;  %v8097_v48 = vadd.f32 %v8096_v61, %v8083_v26  ;;  %v18634_v26 = vld [vmem:[#allocation179_spill] sm:$0xff]  ;;  %v18635_v61 = vld [vmem:[#allocation180_spill] sm:$0xff] }
 0x6b0   : > { %v8110_v7 = vpop.f32.mrf.mxu3 }
 0x6b1   : > { %8345 = vmatpush.bf16.msra.mxu0 %v18309_v46  ;;  %v8111_v5 = vadd.f32 %v8110_v7, %v8097_v48  ;;  %v8070_v48 = vpop.f32.mrf.mxu0  ;;  %v18638_v7 = vld [vmem:[#allocation183_spill] sm:$0xff] }
 0x6b2   : > { %8386 = vmatpush.bf16.msra.mxu3 %v18307_v23  ;;  %8373 = vmatpush.bf16.msra.mxu2 %v18462_v36 }
 0x6b3   : > { %8360 = vmatpush.bf16.msra.mxu1 %v18231_v62 }
 0x6b5   : > { %8346 = vmatpush.bf16.msra.mxu0 %v18230_v19 }
 0x6b6   : > { %8387 = vmatpush.bf16.msra.mxu3 %v18229_v32  ;;  %8374 = vmatpush.bf16.msra.mxu2 %v18232_v4 }
 0x6b7   : > { %8361 = vmatpush.bf16.msra.mxu1 %v18626_v20  ;;  %v18650_v20 = vld [vmem:[#allocation92_spill] sm:$0xff] }
 0x6b9   : > { %8347 = vmatpush.bf16.msra.mxu0 %v18625_v13  ;;  %v18652_v13 = vld [vmem:[#allocation94_spill] sm:$0xff] }
 0x6ba   : > { %8388 = vmatpush.bf16.msra.mxu3 %v18233_v15  ;;  %8375 = vmatpush.bf16.msra.mxu2 %v18627_v21  ;;  %v18654_v15 = vld [vmem:[#allocation98_spill] sm:$0xff] }
 0x6bb   : > { %8362 = vmatpush.bf16.msra.mxu1 %v18630_v10  ;;  %v8084_v10 = vpop.f32.mrf.mxu1 }
 0x6bd   : > { %8348 = vmatpush.bf16.msra.mxu0 %v18629_v17  ;;  %v18639_v17 = vld [vmem:[#allocation184_spill] sm:$0xff] }
 0x6be   : > { %8389 = vmatpush.bf16.msra.mxu3 %v18628_v1  ;;  %8376 = vmatpush.bf16.msra.mxu2 %v18631_v28  ;;  %v18640_v1 = vld [vmem:[#allocation185_spill] sm:$0xff] }
 0x6bf   : > { %8363 = vmatpush.bf16.msra.mxu1 %v18634_v26  ;;  %v18641_v28 = vld [vmem:[#allocation81_spill] sm:$0xff] }
 0x6c0   : > { %v18644_v26 = vld [vmem:[#allocation85_spill] sm:$0xff] }
 0x6c1   : > { %8349 = vmatpush.bf16.msra.mxu0 %v18633_v63  ;;  %v18643_v63 = vld [vmem:[#allocation83_spill] sm:$0xff] }
 0x6c2   : > { %8390 = vmatpush.bf16.msra.mxu3 %v18632_v30  ;;  %8377 = vmatpush.bf16.msra.mxu2 %v18635_v61  ;;  %v18642_v30 = vld [vmem:[#allocation82_spill] sm:$0xff] }
 0x6c3   : > { %8364 = vmatpush.bf16.msra.mxu1 %v18638_v7  ;;  %v8071_v7 = vadd.f32 %v8070_v48, %v16562_v50  ;;  %v18651_v48 = vld [vmem:[#allocation93_spill] sm:$0xff] }
 0x6c5   : > { %8350 = vmatpush.bf16.msra.mxu0 %v18637_v41  ;;  %v8085_v41 = vadd.f32 %v8084_v10, %v8071_v7  ;;  %v8138_v21 = vpop.f32.mrf.mxu1  ;;  %v18656_v7 = vld [vmem:[#allocation100_spill] sm:$0xff] }
 0x6c6   : > { %8391 = vmatpush.bf16.msra.mxu3 %v18636_v49  ;;  %8378 = vmatpush.bf16.msra.mxu2 %v18639_v17  ;;  %v18645_v17 = vld [vmem:[#allocation87_spill] sm:$0xff] }
 0x6c7   : > { %8417 = vmatpush.bf16.msrb.mxu1 %v18642_v30  ;;  %v18648_v30 = vld [vmem:[#allocation90_spill] sm:$0xff]  ;;  %v18649_v49 = vld [vmem:[#allocation91_spill] sm:$0xff] }
 0x6c8   : > { %8351 = vmatmul.bf16.vlgmr.msra.gmra.mxu0 %v17187_v57  ;;  %8365 = vmatmul.bf16.vlgmr.msra.gmra.mxu1 %v17191_v37 }
 0x6c9   : > { %8403 = vmatpush.bf16.msrb.mxu0 %v18641_v28  ;;  %8379 = vmatmul.bf16.vlgmr.msra.gmra.mxu2 %v17347_v3  ;;  %v18647_v28 = vld [vmem:[#allocation89_spill] sm:$0xff] }
 0x6ca   : > { %8392 = vmatpush.bf16.msra.mxu3 %v18640_v1  ;;  %8431 = vmatpush.bf16.msrb.mxu2 %v18643_v63  ;;  %v18646_v1 = vld [vmem:[#allocation88_spill] sm:$0xff]  ;;  %v8098_v63 = vpop.f32.mrf.mxu2 }
 0x6cb   : > { %8418 = vmatpush.bf16.msrb.mxu1 %v18646_v1  ;;  %v8099_v50 = vadd.f32 %v8098_v63, %v8085_v41  ;;  %v18653_v1 = vld [vmem:[#allocation96_spill] sm:$0xff]  ;;  %v18659_v41 = vld [vmem:[#allocation103_spill] sm:$0xff] }
 0x6cd   : > { %8393 = vmatmul.bf16.vlgmr.msra.gmra.mxu3 %v17351_v22  ;;  %8404 = vmatpush.bf16.msrb.mxu0 %v18645_v17 }
 0x6ce   : > { %8445 = vmatpush.bf16.msrb.mxu3 %v18644_v26  ;;  %8432 = vmatpush.bf16.msrb.mxu2 %v18647_v28  ;;  %v8124_v26 = vpop.f32.mrf.mxu0  ;;  %v8112_v28 = vpop.f32.mrf.mxu3 }
 0x6cf   : > { %v8125_v61 = vadd.f32 %v8124_v26, %v8111_v5  ;;  %8419 = vmatpush.bf16.msrb.mxu1 %v18650_v20  ;;  %v8113_v10 = vadd.f32 %v8112_v28, %v8099_v50  ;;  %v18657_v5 = vld [vmem:[#allocation101_spill] sm:$0xff]  ;;  %v18658_v26 = vld [vmem:[#allocation102_spill] sm:$0xff]  ;;  %v18663_v50 = vld [vmem:[#allocation107_spill] sm:$0xff] }
 0x6d1   : > { %8405 = vmatpush.bf16.msrb.mxu0 %v18649_v49  ;;  %v8139_v17 = vadd.f32 %v8138_v21, %v8125_v61  ;;  %v18660_v21 = vld [vmem:[#allocation104_spill] sm:$0xff] }
 0x6d2   : > { %8446 = vmatpush.bf16.msrb.mxu3 %v18648_v30  ;;  %8433 = vmatpush.bf16.msrb.mxu2 %v18651_v48  ;;  %v18655_v30 = vld [vmem:[#allocation99_spill] sm:$0xff] }
 0x6d3   : > { %8420 = vmatpush.bf16.msrb.mxu1 %v18654_v15  ;;  %v8227_v63 = vmax.f32 %v8139_v17, 0.0  ;;  %v18661_v15 = vld [vmem:[#allocation105_spill] sm:$0xff]  ;;  %v18668_v17 = vld [vmem:[#allocation114_spill] sm:$0xff] }
 0x6d5   : > { %8406 = vmatpush.bf16.msrb.mxu0 %v18653_v1  ;;  %v18662_v1 = vld [vmem:[#allocation106_spill] sm:$0xff] }
 0x6d6   : > { %8447 = vmatpush.bf16.msrb.mxu3 %v18652_v13  ;;  %8434 = vmatpush.bf16.msrb.mxu2 %v18655_v30  ;;  %v8126_v49 = vpop.f32.mrf.mxu0  ;;  %v8140_v13 = vpop.f32.mrf.mxu1  ;;  %v18664_v30 = vld [vmem:[#allocation108_spill] sm:$0xff] }
 0x6d7   : > { %v8127_v20 = vadd.f32 %v8126_v49, %v8113_v10  ;;  %8421 = vmatpush.bf16.msrb.mxu1 %v18658_v26  ;;  %v18665_v10 = vld [vmem:[#allocation109_spill] sm:$0xff]  ;;  %v18667_v49 = vld [vmem:[#allocation111_spill] sm:$0xff] }
 0x6d8   : > { %v18671_v26 = vld [vmem:[#allocation117_spill] sm:$0xff] }
 0x6d9   : > { %8407 = vmatpush.bf16.msrb.mxu0 %v18657_v5  ;;  %v8141_v61 = vadd.f32 %v8140_v13, %v8127_v20  ;;  %v18669_v5 = vld [vmem:[#allocation115_spill] sm:$0xff]  ;;  %v18670_v20 = vld [vmem:[#allocation116_spill] sm:$0xff] }
 0x6da   : > { %8448 = vmatpush.bf16.msrb.mxu3 %v18656_v7  ;;  %8435 = vmatpush.bf16.msrb.mxu2 %v18659_v41  ;;  %v18666_v7 = vld [vmem:[#allocation110_spill] sm:$0xff]  ;;  %v18673_v13 = vld [vmem:[#allocation119_spill] sm:$0xff] }
 0x6db   : > { %v8229_v48 = vmax.f32 %v8141_v61, 0.0  ;;  %8422 = vmatpush.bf16.msrb.mxu1 %v18662_v1  ;;  %v18672_v41 = vld [vmem:[#allocation118_spill] sm:$0xff] }
 0x6dc   : > { %v18677_v61 = vld [vmem:[#allocation126_spill] sm:$0xff] }
 0x6dd   : > { %8408 = vmatpush.bf16.msrb.mxu0 %v18661_v15  ;;  %v17423_v28 = vpack.c.bf16 %v8229_v48, %v8227_v63  ;;  %v14990_v48 = vld [vmem:[#allocation9 + $0x20] sm:$0xff]  ;;  %v18703_v15 = vld [vmem:[#allocation166_spill] sm:$0xff] }
 0x6de   : > { %8449 = vmatpush.bf16.msrb.mxu3 %v18660_v21  ;;  %8436 = vmatpush.bf16.msrb.mxu2 %v18663_v50  ;;  %v18674_v21 = vld [vmem:[#allocation120_spill] sm:$0xff] }
 0x6df   : > { %8423 = vmatpush.bf16.msrb.mxu1 %v18666_v7  ;;  %v15006_v7 = vld [vmem:[#allocation9 + $0xa0] sm:$0xff] }
 0x6e1   : > { %8409 = vmatpush.bf16.msrb.mxu0 %v18665_v10  ;;  %v14998_v10 = vld [vmem:[#allocation9 + $0x60] sm:$0xff] }
 0x6e2   : > { %8450 = vmatpush.bf16.msrb.mxu3 %v18664_v30  ;;  %8437 = vmatpush.bf16.msrb.mxu2 %v18667_v49  ;;  %v15014_v49 = vld [vmem:[#allocation9 + $0xe0] sm:$0xff] }
 0x6e3   : > { %8424 = vmatpush.bf16.msrb.mxu1 %v18668_v17  ;;  %v18704_v17 = vld [vmem:[#allocation47_spill] sm:$0xff] }
 0x6e5   : > { %8410 = vmatpush.bf16.msrb.mxu0 %v18510_v52  ;;  %v18676_v52 = vld [vmem:[#allocation125_spill] sm:$0xff]  ;;  %v17528_v30 = vpop.f32.mrf.mxu1 }
 0x6e6   : > { %8451 = vmatpush.bf16.msrb.mxu3 %v18509_v6  ;;  %8438 = vmatpush.bf16.msrb.mxu2 %v18669_v5  ;;  %v18675_v6 = vld [vmem:[#allocation124_spill] sm:$0xff] }
 0x6e7   : > { %8473 = vmatpush.bf16.msra.mxu1 %v18672_v41  ;;  %v18706_v41 = vld [vmem:[#allocation133_spill] sm:$0xff] }
 0x6e8   : > { %8411 = vmatmul.bf16.vlgmr.msrb.gmra.mxu0 %v17187_v57  ;;  %8425 = vmatmul.bf16.vlgmr.msrb.gmra.mxu1 %v17191_v37 }
 0x6e9   : > { %8459 = vmatpush.bf16.msra.mxu0 %v18671_v26  ;;  %8439 = vmatmul.bf16.vlgmr.msrb.gmra.mxu2 %v17347_v3 }
 0x6ea   : > { %8452 = vmatpush.bf16.msrb.mxu3 %v18670_v20  ;;  %8487 = vmatpush.bf16.msra.mxu2 %v18673_v13  ;;  %v18705_v20 = vld [vmem:[#allocation24_spill] sm:$0xff] }
 0x6eb   : > { %8474 = vmatpush.bf16.msra.mxu1 %v18675_v6  ;;  %v18707_v6 = vld [vmem:[#allocation168_spill] sm:$0xff] }
 0x6ed   : > { %8453 = vmatmul.bf16.vlgmr.msrb.gmra.mxu3 %v17351_v22  ;;  %8460 = vmatpush.bf16.msra.mxu0 %v18439_v55  ;;  %v18678_v55 = vmov 0  }
 0x6ee   : > { %8501 = vmatpush.bf16.msra.mxu3 %v18674_v21  ;;  %8488 = vmatpush.bf16.msra.mxu2 %v18676_v52  ;;  %v14989_v21 = vld [vmem:[#allocation9 + $0x18] sm:$0xff] }
 0x6ef   : > { %8475 = vmatpush.bf16.msra.mxu1 %v18360_v11  ;;  %v15008_v11 = vld [vmem:[#allocation9 + $0xb0] sm:$0xff] }
 0x6f1   : > { %8461 = vmatpush.bf16.msra.mxu0 %v18359_v31  ;;  %v15000_v31 = vld [vmem:[#allocation9 + $0x70] sm:$0xff] }
 0x6f2   : > { %8502 = vmatpush.bf16.msra.mxu3 %v18677_v61  ;;  %8489 = vmatpush.bf16.msra.mxu2 %v18361_v43  ;;  %v18679_v43 = vld [vmem:[#allocation169_spill] sm:$0xff]  ;;  %v18708_v61 = vld [vmem:[#allocation42_spill] sm:$0xff] }
 0x6f3   : > { %8476 = vmatpush.bf16.msra.mxu1 %v18278_v40  ;;  %v18685_v40 = vld [vmem:[#allocation175_spill] sm:$0xff] }
 0x6f5   : > { %8462 = vmatpush.bf16.msra.mxu0 %v18190_v35  ;;  %v18680_v35 = vld [vmem:[#allocation170_spill] sm:$0xff] }
 0x6f6   : > { %8503 = vmatpush.bf16.msra.mxu3 %v18188_v8  ;;  %8490 = vmatpush.bf16.msra.mxu2 %v18279_v34  ;;  %v18681_v8 = vld [vmem:[#allocation171_spill] sm:$0xff]  ;;  %v18690_v34 = vld [vmem:[#allocation180_spill] sm:$0xff] }
 0x6f7   : > { %8477 = vmatpush.bf16.msra.mxu1 %v18283_v60  ;;  %v14993_v60 = vld [vmem:[#allocation9 + $0x38] sm:$0xff] }
 0x6f9   : > { %8463 = vmatpush.bf16.msra.mxu0 %v18196_v2  ;;  %v18684_v2 = vld [vmem:[#allocation174_spill] sm:$0xff] }
 0x6fa   : > { %8504 = vmatpush.bf16.msra.mxu3 %v18281_v47  ;;  %8491 = vmatpush.bf16.msra.mxu2 %v18284_v38  ;;  %v18691_v47 = vld [vmem:[#allocation181_spill] sm:$0xff]  ;;  %v15001_v38 = vld [vmem:[#allocation9 + $0x78] sm:$0xff] }
 0x6fb   : > { %8478 = vmatpush.bf16.msra.mxu1 %v18452_v51  ;;  %v17516_v51 = vpop.f32.mrf.mxu3 }
 0x6fd   : > { %8464 = vmatpush.bf16.msra.mxu0 %v18367_v12  ;;  %v15016_v12 = vld [vmem:[#allocation9 + $0xf0] sm:$0xff] }
 0x6fe   : > { %8505 = vmatpush.bf16.msra.mxu3 %v18199_v56  ;;  %8492 = vmatpush.bf16.msra.mxu2 %v18453_v9  ;;  %v18682_v56 = vld [vmem:[#allocation172_spill] sm:$0xff] }
 0x6ff   : > { %8479 = vmatpush.bf16.msra.mxu1 %v18372_v18  ;;  %v14999_v9 = vld [vmem:[#allocation9 + $0x68] sm:$0xff] }
 0x701   : > { %8465 = vmatpush.bf16.msra.mxu0 %v18371_v42  ;;  %v18697_v42 = vld [vmem:[#allocation132_spill] sm:$0xff] }
 0x702   : > { %8506 = vmatpush.bf16.msra.mxu3 %v18370_v44  ;;  %8493 = vmatpush.bf16.msra.mxu2 %v18373_v53  ;;  %v18696_v44 = vld [vmem:[#allocation36_spill] sm:$0xff] }
 0x703   : > { %8480 = vmatpush.bf16.msra.mxu1 %v18295_v16  ;;  %v15017_v16 = vld [vmem:[#allocation9 + $0xf8] sm:$0xff]  ;;  %v7211_v18 = vadd.f32 %v18697_v42, %v18696_v44  ;;  %v14991_v53 = vld [vmem:[#allocation9 + $0x28] sm:$0xff] }
 0x705   : > { %8466 = vmatpush.bf16.msra.mxu0 %v18456_v14  ;;  %v15015_v14 = vld [vmem:[#allocation9 + $0xe8] sm:$0xff] }
 0x706   : > { %8507 = vmatpush.bf16.msra.mxu3 %v18454_v39  ;;  %8494 = vmatpush.bf16.msra.mxu2 %v18296_v54  ;;  %v17503_v54 = vpop.f32.mrf.mxu2  ;;  %v15007_v39 = vld [vmem:[#allocation9 + $0xa8] sm:$0xff] }
 0x707   : > { %8529 = vmatpush.bf16.msrb.mxu1 %v18379_v33  ;;  %v18698_v33 = vld [vmem:[#allocation21_spill] sm:$0xff] }
 0x708   : > { %8467 = vmatmul.bf16.vlgmr.msra.gmra.mxu0 %v18678_v55  ;;  %8481 = vmatmul.bf16.vlgmr.msra.gmra.mxu1 %v18678_v55 }
 0x709   : > { %8515 = vmatpush.bf16.msrb.mxu0 %v18298_v27  ;;  %8495 = vmatmul.bf16.vlgmr.msra.gmra.mxu2 %v17187_v57  ;;  %v18692_v27 = vld [vmem:[#allocation182_spill] sm:$0xff]  ;;  %v17520_v57 = vpop.f32.mrf.mxu0 }
 0x70a   : > { %8508 = vmatpush.bf16.msra.mxu3 %v18297_v25  ;;  %8543 = vmatpush.bf16.msrb.mxu2 %v18380_v59  ;;  %v15009_v25 = vld [vmem:[#allocation9 + $0xb8] sm:$0xff]  ;;  %v14992_v59 = vld [vmem:[#allocation9 + $0x30] sm:$0xff] }
 0x70b   : > { %8530 = vmatpush.bf16.msrb.mxu1 %v18459_v24  ;;  %v18700_v24 = vld [vmem:[#allocation41_spill] sm:$0xff] }
 0x70d   : > { %8509 = vmatmul.bf16.vlgmr.msra.gmra.mxu3 %v17191_v37  ;;  %8516 = vmatpush.bf16.msrb.mxu0 %v18382_v58  ;;  %v18701_v37 = vld [vmem:[#allocation30_spill] sm:$0xff] }
 0x70e   : > { %8557 = vmatpush.bf16.msrb.mxu3 %v18381_v0  ;;  %8544 = vmatpush.bf16.msrb.mxu2 %v18305_v45  ;;  %v18694_v45 = vld [vmem:[#allocation184_spill] sm:$0xff]  ;;  %v17526_v50 = vpop.f32.mrf.mxu2 }
 0x70f   : > { %8531 = vmatpush.bf16.msrb.mxu1 %v18310_v29  ;;  %v18695_v29 = vld [vmem:[#allocation185_spill] sm:$0xff]  ;;  %v18699_v0 = vld [vmem:[#allocation164_spill] sm:$0xff] }
 0x710   : > { %v7295_v58 = vadd.f32 %v18699_v0, %v18698_v33 }
 0x711   : > { %8517 = vmatpush.bf16.msrb.mxu0 %v18309_v46  ;;  %v18683_v46 = vld [vmem:[#allocation173_spill] sm:$0xff] }
 0x712   : > { %8558 = vmatpush.bf16.msrb.mxu3 %v18307_v23  ;;  %8545 = vmatpush.bf16.msrb.mxu2 %v18462_v36  ;;  %v18693_v23 = vld [vmem:[#allocation183_spill] sm:$0xff]  ;;  %v7383_v36 = vadd.f32 %v18700_v24, %v18696_v44  ;;  %v7309_v1 = vadd.f32 %v18703_v15, %v7295_v58  ;;  %v14987_v58 = vld [vmem:[#allocation9 + $0x8] sm:$0xff] }
 0x713   : > { %8532 = vmatpush.bf16.msrb.mxu1 %v18231_v62  ;;  %v18688_v62 = vld [vmem:[#allocation178_spill] sm:$0xff]  ;;  %v18721_v15 = vld [vmem:[#allocation25_spill] sm:$0xff] }
 0x714   : > { %v7397_v5 = vadd.f32 %v18704_v17, %v7383_v36  ;;  %v7323_v52 = vadd.f32 %v18707_v6, %v7309_v1  ;;  %v15011_v36 = vld [vmem:[#allocation9 + $0xc8] sm:$0xff]  ;;  %v15002_v17 = vld [vmem:[#allocation9 + $0x80] sm:$0xff] }
 0x715   : > { %8518 = vmatpush.bf16.msrb.mxu0 %v18230_v19  ;;  %v18687_v19 = vld [vmem:[#allocation177_spill] sm:$0xff] }
 0x716   : > { %8559 = vmatpush.bf16.msrb.mxu3 %v18229_v32  ;;  %8546 = vmatpush.bf16.msrb.mxu2 %v18232_v4  ;;  %v18686_v32 = vld [vmem:[#allocation176_spill] sm:$0xff]  ;;  %v18689_v4 = vld [vmem:[#allocation179_spill] sm:$0xff] }
 0x717   : > { %8533 = vmatpush.bf16.msrb.mxu1 %v18681_v8  ;;  %v18709_v8 = vld [vmem:[#allocation53_spill] sm:$0xff] }
 0x719   : > { %8519 = vmatpush.bf16.msrb.mxu0 %v18680_v35  ;;  %v15005_v35 = vld [vmem:[#allocation9 + $0x98] sm:$0xff] }
 0x71a   : > { %8560 = vmatpush.bf16.msrb.mxu3 %v18679_v43  ;;  %8547 = vmatpush.bf16.msrb.mxu2 %v18682_v56  ;;  %v14997_v43 = vld [vmem:[#allocation9 + $0x58] sm:$0xff] }
 0x71b   : > { %8534 = vmatpush.bf16.msrb.mxu1 %v18685_v40  ;;  %v18710_v40 = vld [vmem:[#allocation39_spill] sm:$0xff] }
 0x71d   : > { %8520 = vmatpush.bf16.msrb.mxu0 %v18684_v2  ;;  %v17536_v2 = vpop.f32.mrf.mxu3 }
 0x71e   : > { %8561 = vmatpush.bf16.msrb.mxu3 %v18683_v46  ;;  %8548 = vmatpush.bf16.msrb.mxu2 %v18686_v32  ;;  %v15013_v46 = vld [vmem:[#allocation9 + $0xd8] sm:$0xff] }
 0x71f   : > { %8535 = vmatpush.bf16.msrb.mxu1 %v18689_v4 }
 0x721   : > { %8521 = vmatpush.bf16.msrb.mxu0 %v18688_v62  ;;  %v18711_v62 = vld [vmem:[#allocation37_spill] sm:$0xff] }
 0x722   : > { %8562 = vmatpush.bf16.msrb.mxu3 %v18687_v19  ;;  %8549 = vmatpush.bf16.msrb.mxu2 %v18690_v34  ;;  %v14988_v19 = vld [vmem:[#allocation9 + $0x10] sm:$0xff]  ;;  %v7337_v4 = vadd.f32 %v18711_v62, %v7323_v52  ;;  %v15033_v52 = vld [vmem:[#allocation9 + $0x178] sm:$0xff] }
 0x723   : > { %8536 = vmatpush.bf16.msrb.mxu1 %v18693_v23  ;;  %v18712_v34 = vld [vmem:[#allocation49_spill] sm:$0xff]  ;;  %v18725_v62 = vld [vmem:[#allocation134_spill] sm:$0xff] }
 0x725   : > { %8522 = vmatpush.bf16.msrb.mxu0 %v18692_v27  ;;  %v15004_v27 = vld [vmem:[#allocation9 + $0x90] sm:$0xff] }
 0x726   : > { %8563 = vmatpush.bf16.msrb.mxu3 %v18691_v47  ;;  %8550 = vmatpush.bf16.msrb.mxu2 %v18694_v45  ;;  %v18714_v45 = vld [vmem:[#allocation135_spill] sm:$0xff] }
 0x727   : > { %9633 = vmatpush.bf16.msra.mxu1 %v15001_v38  ;;  %v17543_v38 = vpop.f32.mrf.mxu0 }
 0x728   : > { %8523 = vmatmul.bf16.vlgmr.msrb.gmra.mxu0 %v17347_v3  ;;  %8537 = vmatmul.bf16.vlgmr.msrb.gmra.mxu1 %v17351_v22  ;;  %v7225_v3 = vadd.f32 %v18701_v37, %v7211_v18  ;;  %v18702_v22 = vld [vmem:[#allocation44_spill] sm:$0xff]  ;;  %v17549_v18 = vpop.f32.mrf.mxu1  ;;  %v18719_v37 = vld [vmem:[#allocation46_spill] sm:$0xff] }
 0x729   : > { %9619 = vmatpush.bf16.msra.mxu0 %v14993_v60  ;;  %8551 = vmatmul.bf16.vlgmr.msrb.gmra.mxu2 %v18678_v55  ;;  %v7467_v63 = vadd.f32 %v18702_v22, %v18698_v33  ;;  %v17541_v60 = vpop.f32.mrf.mxu2  ;;  %v18720_v22 = vld [vmem:[#allocation52_spill] sm:$0xff] }
 0x72a   : > { %8564 = vmatpush.bf16.msrb.mxu3 %v18695_v29  ;;  %9647 = vmatpush.bf16.msra.mxu2 %v15009_v25  ;;  %v7239_v26 = vadd.f32 %v18705_v20, %v7225_v3  ;;  %v14996_v25 = vld [vmem:[#allocation9 + $0x50] sm:$0xff]  ;;  %v15010_v20 = vld [vmem:[#allocation9 + $0xc0] sm:$0xff] }
 0x72b   : > { %9634 = vmatpush.bf16.msra.mxu1 %v15000_v31  ;;  %v7481_v13 = vadd.f32 %v18706_v41, %v7467_v63  ;;  %v18715_v31 = vld [vmem:[#allocation40_spill] sm:$0xff] }
 0x72c   : > { %v7253_v32 = vadd.f32 %v18710_v40, %v7239_v26  ;;  %v15025_v26 = vld [vmem:[#allocation9 + $0x138] sm:$0xff] }
 0x72d   : > { %8565 = vmatmul.bf16.vlgmr.msrb.gmra.mxu3 %v18678_v55  ;;  %9620 = vmatpush.bf16.msra.mxu0 %v14992_v59  ;;  %v7411_v55 = vadd.f32 %v18708_v61, %v7397_v5  ;;  %v7495_v56 = vadd.f32 %v18709_v8, %v7481_v13  ;;  %v15012_v59 = vld [vmem:[#allocation9 + $0xd0] sm:$0xff]  ;;  %v15041_v61 = vld [vmem:[#allocation9 + $0x1b8] sm:$0xff] }
 0x72e   : > { %9661 = vmatpush.bf16.msra.mxu3 %v15017_v16  ;;  %9648 = vmatpush.bf16.msra.mxu2 %v15008_v11  ;;  %v18713_v16 = vld [vmem:[#allocation137_spill] sm:$0xff]  ;;  %v7351_v11 = vadd.f32 %v18715_v31, %v7337_v4  ;;  %v15049_v8 = vld [vmem:[#allocation9 + $0x1f8] sm:$0xff]  ;;  %v7540_v4 = vmax.f32 %v18725_v62, 0.0 }
 0x72f   : > { %9635 = vmatpush.bf16.msra.mxu1 %v14999_v9  ;;  %v7425_v47 = vadd.f32 %v18712_v34, %v7411_v55  ;;  %v7267_v23 = vadd.f32 %v18713_v16, %v7253_v32  ;;  %v7509_v29 = vadd.f32 %v18714_v45, %v7495_v56  ;;  %v14995_v9 = vld [vmem:[#allocation9 + $0x48] sm:$0xff]  ;;  %v18722_v55 = vld [vmem:[#allocation31_spill] sm:$0xff]  ;;  %v15024_v34 = vld [vmem:[#allocation9 + $0x130] sm:$0xff] }
 0x730   : > { %v7365_v3 = vadd.f32 %v18719_v37, %v7351_v11  ;;  %v17562_v6 = vpop.f32.mrf.mxu1  ;;  %v18723_v56 = vld [vmem:[#allocation167_spill] sm:$0xff]  ;;  %v15040_v16 = vld [vmem:[#allocation9 + $0x1b0] sm:$0xff] }
 0x731   : > { %9621 = vmatpush.bf16.msra.mxu0 %v14991_v53  ;;  %v18717_v53 = vld [vmem:[#allocation45_spill] sm:$0xff]  ;;  %v18724_v40 = vld [vmem:[#allocation43_spill] sm:$0xff] }
 0x732   : > { %9662 = vmatpush.bf16.msra.mxu3 %v15016_v12  ;;  %9649 = vmatpush.bf16.msra.mxu2 %v15007_v39  ;;  %v18716_v12 = vld [vmem:[#allocation50_spill] sm:$0xff]  ;;  %v7523_v0 = vadd.f32 %v18717_v53, %v7509_v29  ;;  %v15003_v39 = vld [vmem:[#allocation9 + $0x88] sm:$0xff]  ;;  %v7370_v41 = vmax.f32 %v7365_v3, 0.0  ;;  %v7539_v32 = vmax.f32 %v18724_v40, 0.0  ;;  %v18737_v62 = vld [vmem:[#allocation59_spill] sm:$0xff] }
 0x733   : > { %9636 = vmatpush.bf16.msra.mxu1 %v14998_v10  ;;  %v7439_v42 = vadd.f32 %v18716_v12, %v7425_v47  ;;  %v14986_v10 = vld [vmem:[#allocation9] sm:$0xff]  ;;  %v15048_v45 = vld [vmem:[#allocation9 + $0x1f0] sm:$0xff]  ;;  %v15031_v12 = vld [vmem:[#allocation9 + $0x168] sm:$0xff] }
 0x734   : > { %v7537_v1 = vadd.f32 %v18721_v15, %v7523_v0  ;;  %v18726_v53 = vld [vmem:[#allocation136_spill] sm:$0xff]  ;;  %v18729_v37 = vld [vmem:[#allocation65_spill] sm:$0xff] }
 0x735   : > { %9622 = vmatpush.bf16.msra.mxu0 %v14990_v48  ;;  %v7453_v63 = vadd.f32 %v18720_v22, %v7439_v42  ;;  %v17555_v48 = vpop.f32.mrf.mxu3  ;;  %v15039_v42 = vld [vmem:[#allocation9 + $0x1a8] sm:$0xff]  ;;  %v7555_v0 = vadd.f32 %v18726_v53, %v18696_v44  ;;  %v7811_v3 = vadd.f32 %v18729_v37, %v18698_v33  ;;  %v15022_v22 = vld [vmem:[#allocation9 + $0x120] sm:$0xff]  ;;  %v15028_v53 = vld [vmem:[#allocation9 + $0x150] sm:$0xff] }
 0x736   : > { %9663 = vmatpush.bf16.msra.mxu3 %v15015_v14  ;;  %9650 = vmatpush.bf16.msra.mxu2 %v15006_v7  ;;  %v18718_v14 = vld [vmem:[#allocation34_spill] sm:$0xff]  ;;  %v17558_v7 = vpop.f32.mrf.mxu0  ;;  %v15038_v15 = vld [vmem:[#allocation9 + $0x1a0] sm:$0xff] }
 0x737   : > { %9637 = vmatpush.bf16.msra.mxu1 %v14997_v43  ;;  %v7281_v24 = vadd.f32 %v18718_v14, %v7267_v23  ;;  %v7541_v13 = vmax.f32 %v7453_v63, 0.0  ;;  %v7367_v43 = vmax.f32 %v18722_v55, 0.0  ;;  %v18728_v14 = vld [vmem:[#allocation56_spill] sm:$0xff]  ;;  %v18743_v37 = vld [vmem:[#allocation55_spill] sm:$0xff] }
 0x738   : > { %v15030_v63 = vld [vmem:[#allocation9 + $0x160] sm:$0xff] }
 0x739   : > { %9623 = vmatpush.bf16.msra.mxu0 %v14989_v21  ;;  %v7369_v5 = vmax.f32 %v7281_v24, 0.0  ;;  %v17560_v21 = vpop.f32.mrf.mxu2  ;;  %v7727_v24 = vadd.f32 %v18728_v14, %v18696_v44 }
 0x73a   : > { %9664 = vmatpush.bf16.msra.mxu3 %v15014_v49  ;;  %9651 = vmatpush.bf16.msra.mxu2 %v15005_v35  ;;  %v14994_v49 = vld [vmem:[#allocation9 + $0x40] sm:$0xff]  ;;  %v7542_v35 = vmax.f32 %v7537_v1, 0.0 }
 0x73b   : > { %9638 = vmatpush.bf16.msra.mxu1 %v14996_v25  ;;  %v8577_v25 = vpack.c.bf16 %v7541_v13, %v7539_v32  ;;  %v18730_v1 = vld [vmem:[#allocation48_spill] sm:$0xff]  ;;  %v18733_v13 = vld [vmem:[#allocation147_spill] sm:$0xff] }
 0x73c   : > { %v8578_v23 = vpack.c.bf16 %v7542_v35, %v7540_v4  ;;  %v18735_v35 = vld [vmem:[#allocation54_spill] sm:$0xff] }
 0x73d   : > { %9624 = vmatpush.bf16.msra.mxu0 %v14988_v19  ;;  %v8575_v19 = vpack.c.bf16 %v7369_v5, %v7367_v43  ;;  %v17568_v29 = vpop.f32.mrf.mxu3  ;;  %v15021_v43 = vld [vmem:[#allocation9 + $0x118] sm:$0xff] }
 0x73e   : > { %9665 = vmatpush.bf16.msra.mxu3 %v15013_v46  ;;  %9652 = vmatpush.bf16.msra.mxu2 %v15004_v27  ;;  %v7368_v46 = vmax.f32 %v18723_v56, 0.0  ;;  %v15032_v27 = vld [vmem:[#allocation9 + $0x170] sm:$0xff]  ;;  %v17572_v11 = vpop.f32.mrf.mxu0  ;;  %v15029_v32 = vld [vmem:[#allocation9 + $0x158] sm:$0xff] }
 0x73f   : > { %9639 = vmatpush.bf16.msra.mxu1 %v14995_v9  ;;  %v18727_v9 = vld [vmem:[#allocation158_spill] sm:$0xff]  ;;  %v18736_v56 = vld [vmem:[#allocation57_spill] sm:$0xff] }
 0x740   : > { %v8576_v47 = vpack.c.bf16 %v7370_v41, %v7368_v46 }
 0x741   : > { %9625 = vmatpush.bf16.msra.mxu0 %v14987_v58  ;;  %v17570_v31 = vpop.f32.mrf.mxu2  ;;  %v15047_v58 = vld [vmem:[#allocation9 + $0x1e8] sm:$0xff] }
 0x742   : > { %9666 = vmatpush.bf16.msra.mxu3 %v15012_v59  ;;  %9653 = vmatpush.bf16.msra.mxu2 %v15003_v39  ;;  %v15023_v59 = vld [vmem:[#allocation9 + $0x128] sm:$0xff]  ;;  %v7639_v39 = vadd.f32 %v18727_v9, %v18698_v33 }
 0x743   : > { %9640 = vmatpush.bf16.msra.mxu1 %v14994_v49  ;;  %v15046_v49 = vld [vmem:[#allocation9 + $0x1e0] sm:$0xff] }
 0x745   : > { %9626 = vmatpush.bf16.msra.mxu0 %v14986_v10  ;;  %v7569_v10 = vadd.f32 %v18730_v1, %v7555_v0  ;;  %v17587_v41 = vpop.f32.mrf.mxu3  ;;  %v15036_v0 = vld [vmem:[#allocation9 + $0x190] sm:$0xff] }
 0x746   : > { %9667 = vmatpush.bf16.msra.mxu3 %v15011_v36  ;;  %9654 = vmatpush.bf16.msra.mxu2 %v15002_v17  ;;  %v17580_v36 = vpop.f32.mrf.mxu1  ;;  %v18731_v17 = vld [vmem:[#allocation159_spill] sm:$0xff]  ;;  %v17593_v40 = vpop.f32.mrf.mxu0 }
 0x747   : > { %9689 = vmatpush.bf16.msrb.mxu1 %v15033_v52  ;;  %v7653_v5 = vadd.f32 %v18731_v17, %v7639_v39  ;;  %v7583_v52 = vadd.f32 %v18733_v13, %v7569_v10  ;;  %v18742_v39 = vld [vmem:[#allocation22_spill] sm:$0xff]  ;;  %v15019_v10 = vld [vmem:[#allocation9 + $0x108] sm:$0xff] }
 0x748   : > { %9627 = vmatmul.bf16.vlgmr.msra.gmra.mxu0 %v8575_v19  ;;  %9641 = vmatmul.bf16.vlgmr.msra.gmra.mxu1 %v8576_v47  ;;  %v15037_v19 = vld [vmem:[#allocation9 + $0x198] sm:$0xff]  ;;  %v15027_v17 = vld [vmem:[#allocation9 + $0x148] sm:$0xff] }
 0x749   : > { %9675 = vmatpush.bf16.msrb.mxu0 %v15025_v26  ;;  %9655 = vmatmul.bf16.vlgmr.msra.gmra.mxu2 %v8577_v25  ;;  %v17596_v47 = vpop.f32.mrf.mxu2  ;;  %v15043_v13 = vld [vmem:[#allocation9 + $0x1c8] sm:$0xff] }
 0x74a   : > { %9668 = vmatpush.bf16.msra.mxu3 %v15010_v20  ;;  %9703 = vmatpush.bf16.msrb.mxu2 %v15041_v61  ;;  %v18732_v20 = vld [vmem:[#allocation63_spill] sm:$0xff]  ;;  %v18734_v61 = vld [vmem:[#allocation58_spill] sm:$0xff] }
 0x74b   : > { %9690 = vmatpush.bf16.msrb.mxu1 %v15032_v27  ;;  %v7741_v26 = vadd.f32 %v18732_v20, %v7727_v24  ;;  %v7825_v55 = vadd.f32 %v18734_v61, %v7811_v3  ;;  %v18738_v27 = vld [vmem:[#allocation148_spill] sm:$0xff]  ;;  %v15044_v24 = vld [vmem:[#allocation9 + $0x1d0] sm:$0xff] }
 0x74c   : > { %v18746_v20 = vld [vmem:[#allocation157_spill] sm:$0xff] }
 0x74d   : > { %9669 = vmatmul.bf16.vlgmr.msra.gmra.mxu3 %v8578_v23  ;;  %9676 = vmatpush.bf16.msrb.mxu0 %v15024_v34  ;;  %v7755_v46 = vadd.f32 %v18736_v56, %v7741_v26  ;;  %v7839_v4 = vadd.f32 %v18737_v62, %v7825_v55  ;;  %v15045_v34 = vld [vmem:[#allocation9 + $0x1d8] sm:$0xff]  ;;  %v15020_v23 = vld [vmem:[#allocation9 + $0x110] sm:$0xff]  ;;  %v15026_v62 = vld [vmem:[#allocation9 + $0x140] sm:$0xff] }
 0x74e   : > { %9717 = vmatpush.bf16.msrb.mxu3 %v15049_v8  ;;  %9704 = vmatpush.bf16.msrb.mxu2 %v15040_v16  ;;  %v7667_v8 = vadd.f32 %v18735_v35, %v7653_v5  ;;  %v17598_v25 = vpop.f32.mrf.mxu1  ;;  %v7597_v16 = vadd.f32 %v18738_v27, %v7583_v52  ;;  %v15035_v5 = vld [vmem:[#allocation9 + $0x188] sm:$0xff]  ;;  %v18748_v55 = vld [vmem:[#allocation130_spill] sm:$0xff]  ;;  %v15042_v27 = vld [vmem:[#allocation9 + $0x1c0] sm:$0xff] }
 0x74f   : > { %9691 = vmatpush.bf16.msrb.mxu1 %v15031_v12  ;;  %v18740_v12 = vld [vmem:[#allocation64_spill] sm:$0xff]  ;;  %v7853_v14 = vadd.f32 %v18742_v39, %v7839_v4  ;;  %v18747_v52 = vld [vmem:[#allocation61_spill] sm:$0xff] }
 0x750   : > { %v18749_v56 = vld [vmem:[#allocation141_spill] sm:$0xff]  ;;  %v15034_v4 = vld [vmem:[#allocation9 + $0x180] sm:$0xff] }
 0x751   : > { %9677 = vmatpush.bf16.msrb.mxu0 %v15023_v59  ;;  %v17613_v35 = vpop.f32.mrf.mxu2 }
 0x752   : > { %9718 = vmatpush.bf16.msrb.mxu3 %v15048_v45  ;;  %9705 = vmatpush.bf16.msrb.mxu2 %v15039_v42  ;;  %v18739_v45 = vld [vmem:[#allocation60_spill] sm:$0xff]  ;;  %v7769_v42 = vadd.f32 %v18740_v12, %v7755_v46  ;;  %v15073_v12 = vld [vmem:[#allocation9 + $0x2b8] sm:$0xff] }
 0x753   : > { %9692 = vmatpush.bf16.msrb.mxu1 %v15030_v63  ;;  %v7681_v59 = vadd.f32 %v18739_v45, %v7667_v8  ;;  %v17615_v8 = vpop.f32.mrf.mxu0 }
 0x755   : > { %9678 = vmatpush.bf16.msrb.mxu0 %v15022_v22  ;;  %v7695_v3 = vadd.f32 %v18743_v37, %v7681_v59  ;;  %v18744_v22 = vld [vmem:[#allocation129_spill] sm:$0xff]  ;;  %v15065_v59 = vld [vmem:[#allocation9 + $0x278] sm:$0xff] }
 0x756   : > { %9719 = vmatpush.bf16.msrb.mxu3 %v15047_v58  ;;  %9706 = vmatpush.bf16.msrb.mxu2 %v15038_v15  ;;  %v18741_v58 = vld [vmem:[#allocation150_spill] sm:$0xff]  ;;  %v7783_v63 = vadd.f32 %v18744_v22, %v7769_v42  ;;  %v18745_v15 = vld [vmem:[#allocation140_spill] sm:$0xff]  ;;  %v18750_v42 = vld [vmem:[#allocation149_spill] sm:$0xff] }
 0x757   : > { %9693 = vmatpush.bf16.msrb.mxu1 %v15029_v32  ;;  %v7611_v9 = vadd.f32 %v18741_v58, %v7597_v16  ;;  %v7867_v1 = vadd.f32 %v18745_v15, %v7853_v14  ;;  %v7709_v61 = vadd.f32 %v18747_v52, %v7695_v3  ;;  %v15018_v32 = vld [vmem:[#allocation9 + $0x100] sm:$0xff]  ;;  %v15057_v16 = vld [vmem:[#allocation9 + $0x238] sm:$0xff]  ;;  %v15056_v15 = vld [vmem:[#allocation9 + $0x230] sm:$0xff] }
 0x758   : > { %v15081_v58 = vld [vmem:[#allocation9 + $0x2f8] sm:$0xff] }
 0x759   : > { %9679 = vmatpush.bf16.msrb.mxu0 %v15021_v43  ;;  %v7625_v26 = vadd.f32 %v18746_v20, %v7611_v9  ;;  %v7797_v43 = vadd.f32 %v18748_v55, %v7783_v63  ;;  %v7881_v46 = vadd.f32 %v18749_v56, %v7867_v1  ;;  %v18751_v9 = vld [vmem:[#allocation161_spill] sm:$0xff]  ;;  %v18752_v14 = vld [vmem:[#allocation127_spill] sm:$0xff]  ;;  %v18753_v22 = vld [vmem:[#allocation66_spill] sm:$0xff]  ;;  %v17628_v52 = vpop.f32.mrf.mxu2 }
 0x75a   : > { %9720 = vmatpush.bf16.msrb.mxu3 %v15046_v49  ;;  %9707 = vmatpush.bf16.msrb.mxu2 %v15037_v19  ;;  %v17608_v49 = vpop.f32.mrf.mxu3  ;;  %v17618_v19 = vpop.f32.mrf.mxu1  ;;  %v7712_v39 = vmax.f32 %v18751_v9, 0.0  ;;  %v7884_v63 = vmax.f32 %v18753_v22, 0.0  ;;  %v15072_v20 = vld [vmem:[#allocation9 + $0x2b0] sm:$0xff]  ;;  %v15055_v55 = vld [vmem:[#allocation9 + $0x228] sm:$0xff]  ;;  %v15078_v9 = vld [vmem:[#allocation9 + $0x2e0] sm:$0xff] }
 0x75b   : > { %9694 = vmatpush.bf16.msrb.mxu1 %v15028_v53  ;;  %v7885_v45 = vmax.f32 %v7797_v43, 0.0  ;;  %v7711_v53 = vmax.f32 %v18750_v42, 0.0  ;;  %v15063_v43 = vld [vmem:[#allocation9 + $0x268] sm:$0xff] }
 0x75c   : > { %v15071_v56 = vld [vmem:[#allocation9 + $0x2a8] sm:$0xff] }
 0x75d   : > { %9680 = vmatpush.bf16.msrb.mxu0 %v15020_v23  ;;  %v7714_v23 = vmax.f32 %v7709_v61, 0.0  ;;  %v18756_v42 = vld [vmem:[#allocation144_spill] sm:$0xff] }
 0x75e   : > { %9721 = vmatpush.bf16.msrb.mxu3 %v15045_v34  ;;  %9708 = vmatpush.bf16.msrb.mxu2 %v15036_v0  ;;  %v7713_v34 = vmax.f32 %v7625_v26, 0.0  ;;  %v7886_v0 = vmax.f32 %v7881_v46, 0.0  ;;  %v18754_v46 = vld [vmem:[#allocation143_spill] sm:$0xff] }
 0x75f   : > { %9695 = vmatpush.bf16.msrb.mxu1 %v15027_v17  ;;  %v8580_v1 = vpack.c.bf16 %v7714_v23, %v7712_v39  ;;  %v17626_v17 = vpop.f32.mrf.mxu0  ;;  %v8153_v23 = vadd.f32 %v17503_v54, %v18698_v33 }
 0x760   : > { %v8579_v3 = vpack.c.bf16 %v7713_v34, %v7711_v53  ;;  %v8582_v26 = vpack.c.bf16 %v7886_v0, %v7884_v63  ;;  %v15079_v34 = vld [vmem:[#allocation9 + $0x2e8] sm:$0xff]  ;;  %v18757_v0 = vld [vmem:[#allocation67_spill] sm:$0xff] }
 0x761   : > { %9681 = vmatpush.bf16.msrb.mxu0 %v15019_v10  ;;  %v15053_v63 = vld [vmem:[#allocation9 + $0x218] sm:$0xff] }
 0x762   : > { %9722 = vmatpush.bf16.msrb.mxu3 %v15044_v24  ;;  %9709 = vmatpush.bf16.msrb.mxu2 %v15035_v5  ;;  %v7883_v24 = vmax.f32 %v18752_v14, 0.0  ;;  %v17623_v37 = vpop.f32.mrf.mxu3  ;;  %v15064_v5 = vld [vmem:[#allocation9 + $0x270] sm:$0xff]  ;;  %v17630_v61 = vpop.f32.mrf.mxu1 }
 0x763   : > { %9696 = vmatpush.bf16.msrb.mxu1 %v15026_v62  ;;  %v18755_v62 = vld [vmem:[#allocation51_spill] sm:$0xff] }
 0x764   : > { %v8581_v10 = vpack.c.bf16 %v7885_v45, %v7883_v24  ;;  %v18758_v24 = vld [vmem:[#allocation62_spill] sm:$0xff] }
 0x765   : > { %9682 = vmatpush.bf16.msrb.mxu0 %v15018_v32  ;;  %v7899_v32 = vadd.f32 %v18754_v46, %v18696_v44  ;;  %v15052_v46 = vld [vmem:[#allocation9 + $0x210] sm:$0xff] }
 0x766   : > { %9723 = vmatpush.bf16.msrb.mxu3 %v15043_v13  ;;  %9710 = vmatpush.bf16.msrb.mxu2 %v15034_v4  ;;  %v15080_v13 = vld [vmem:[#allocation9 + $0x2f0] sm:$0xff]  ;;  %v7983_v4 = vadd.f32 %v18755_v62, %v18698_v33 }
 0x767   : > { %9745 = vmatpush.bf16.msra.mxu1 %v15065_v59  ;;  %v15062_v59 = vld [vmem:[#allocation9 + $0x260] sm:$0xff]  ;;  %v7913_v53 = vadd.f32 %v18756_v42, %v7899_v32  ;;  %v17647_v14 = vpop.f32.mrf.mxu0  ;;  %v15068_v62 = vld [vmem:[#allocation9 + $0x290] sm:$0xff] }
 0x768   : > { %9683 = vmatmul.bf16.vlgmr.msrb.gmra.mxu0 %v8579_v3  ;;  %9697 = vmatmul.bf16.vlgmr.msrb.gmra.mxu1 %v8580_v1  ;;  %v18759_v3 = vld [vmem:[#allocation74_spill] sm:$0xff] }
 0x769   : > { %9731 = vmatpush.bf16.msra.mxu0 %v15057_v16  ;;  %9711 = vmatmul.bf16.vlgmr.msrb.gmra.mxu2 %v8581_v10  ;;  %v15054_v16 = vld [vmem:[#allocation9 + $0x220] sm:$0xff]  ;;  %v7927_v54 = vadd.f32 %v18758_v24, %v7913_v53 }
 0x76a   : > { %9724 = vmatpush.bf16.msrb.mxu3 %v15042_v27  ;;  %9759 = vmatpush.bf16.msra.mxu2 %v15073_v12  ;;  %v8155_v27 = vadd.f32 %v17526_v50, %v18698_v33  ;;  %v17640_v45 = vpop.f32.mrf.mxu3  ;;  %v15070_v12 = vld [vmem:[#allocation9 + $0x2a0] sm:$0xff]  ;;  %v17645_v50 = vpop.f32.mrf.mxu2 }
 0x76b   : > { %9746 = vmatpush.bf16.msra.mxu1 %v15064_v5  ;;  %v17653_v10 = vpop.f32.mrf.mxu1  ;;  %v15061_v5 = vld [vmem:[#allocation9 + $0x258] sm:$0xff] }
 0x76c   : > { %v8169_v39 = vadd.f32 %v17536_v2, %v8155_v27  ;;  %v15069_v2 = vld [vmem:[#allocation9 + $0x298] sm:$0xff] }
 0x76d   : > { %9725 = vmatmul.bf16.vlgmr.msrb.gmra.mxu3 %v8582_v26  ;;  %9732 = vmatpush.bf16.msra.mxu0 %v15056_v15  ;;  %v8167_v15 = vadd.f32 %v17516_v51, %v8153_v23  ;;  %v18763_v27 = vld [vmem:[#allocation75_spill] sm:$0xff] }
 0x76e   : > { %9773 = vmatpush.bf16.msra.mxu3 %v15081_v58  ;;  %9760 = vmatpush.bf16.msra.mxu2 %v15072_v20  ;;  %v7997_v58 = vadd.f32 %v18757_v0, %v7983_v4  ;;  %v8183_v1 = vadd.f32 %v17543_v38, %v8169_v39  ;;  %v15077_v20 = vld [vmem:[#allocation9 + $0x2d8] sm:$0xff]  ;;  %v15060_v38 = vld [vmem:[#allocation9 + $0x250] sm:$0xff] }
 0x76f   : > { %9747 = vmatpush.bf16.msra.mxu1 %v15063_v43  ;;  %v8181_v26 = vadd.f32 %v17520_v57, %v8167_v15  ;;  %v18761_v43 = vld [vmem:[#allocation68_spill] sm:$0xff]  ;;  %v18762_v4 = vld [vmem:[#allocation23_spill] sm:$0xff]  ;;  %v15076_v57 = vld [vmem:[#allocation9 + $0x2d0] sm:$0xff] }
 0x770   : > { %v8011_v22 = vadd.f32 %v18759_v3, %v7997_v58  ;;  %v8197_v51 = vadd.f32 %v17549_v18, %v8183_v1  ;;  %v15051_v18 = vld [vmem:[#allocation9 + $0x208] sm:$0xff]  ;;  %v18764_v39 = vld [vmem:[#allocation154_spill] sm:$0xff]  ;;  %v15066_v15 = vld [vmem:[#allocation9 + $0x280] sm:$0xff] }
 0x771   : > { %9733 = vmatpush.bf16.msra.mxu0 %v15055_v55  ;;  %v8195_v23 = vadd.f32 %v17528_v30, %v8181_v26  ;;  %v15059_v58 = vld [vmem:[#allocation9 + $0x248] sm:$0xff] }
 0x772   : > { %9774 = vmatpush.bf16.msra.mxu3 %v15080_v13  ;;  %9761 = vmatpush.bf16.msra.mxu2 %v15071_v56  ;;  %v18760_v13 = vld [vmem:[#allocation151_spill] sm:$0xff]  ;;  %v8025_v56 = vadd.f32 %v18761_v43, %v8011_v22  ;;  %v17659_v32 = vpop.f32.mrf.mxu3  ;;  %v17668_v53 = vpop.f32.mrf.mxu2 }
 0x773   : > { %9748 = vmatpush.bf16.msra.mxu1 %v15062_v59  ;;  %v7941_v55 = vadd.f32 %v18760_v13, %v7927_v54  ;;  %v8211_v59 = vadd.f32 %v17560_v21, %v8197_v51  ;;  %v8209_v42 = vadd.f32 %v17541_v60, %v8195_v23  ;;  %v17670_v0 = vpop.f32.mrf.mxu1  ;;  %v18765_v54 = vld [vmem:[#allocation69_spill] sm:$0xff]  ;;  %v15050_v22 = vld [vmem:[#allocation9 + $0x200] sm:$0xff]  ;;  %v15105_v43 = vld [vmem:[#allocation9 + $0x3b8] sm:$0xff] }
 0x774   : > { %v15075_v21 = vld [vmem:[#allocation9 + $0x2c8] sm:$0xff] }
 0x775   : > { %9734 = vmatpush.bf16.msra.mxu0 %v15054_v16  ;;  %v8039_v16 = vadd.f32 %v18763_v27, %v8025_v56  ;;  %v8225_v3 = vadd.f32 %v17568_v29, %v8211_v59  ;;  %v8223_v60 = vadd.f32 %v17555_v48, %v8209_v42  ;;  %v18766_v56 = vld [vmem:[#allocation152_spill] sm:$0xff]  ;;  %v15088_v27 = vld [vmem:[#allocation9 + $0x330] sm:$0xff] }
 0x776   : > { %9775 = vmatpush.bf16.msra.mxu3 %v15079_v34  ;;  %9762 = vmatpush.bf16.msra.mxu2 %v15070_v12  ;;  %v7955_v34 = vadd.f32 %v18762_v4, %v7941_v55  ;;  %v17665_v12 = vpop.f32.mrf.mxu0  ;;  %v15097_v55 = vld [vmem:[#allocation9 + $0x378] sm:$0xff]  ;;  %v8055_v29 = vmax.f32 %v18766_v56, 0.0  ;;  %v15096_v59 = vld [vmem:[#allocation9 + $0x370] sm:$0xff]  ;;  %v15087_v42 = vld [vmem:[#allocation9 + $0x328] sm:$0xff] }
 0x777   : > { %9749 = vmatpush.bf16.msra.mxu1 %v15061_v5  ;;  %v8053_v30 = vadd.f32 %v18765_v54, %v8039_v16  ;;  %v8230_v26 = vmax.f32 %v8225_v3, 0.0  ;;  %v8228_v48 = vmax.f32 %v8223_v60, 0.0  ;;  %v15113_v16 = vld [vmem:[#allocation9 + $0x3f8] sm:$0xff]  ;;  %v15103_v54 = vld [vmem:[#allocation9 + $0x3a8] sm:$0xff]  ;;  %v8325_v3 = vadd.f32 %v17613_v35, %v18698_v33  ;;  %v15086_v60 = vld [vmem:[#allocation9 + $0x320] sm:$0xff] }
 0x778   : > { %v7969_v24 = vadd.f32 %v18764_v39, %v7955_v34  ;;  %v15110_v56 = vld [vmem:[#allocation9 + $0x3e0] sm:$0xff] }
 0x779   : > { %9735 = vmatpush.bf16.msra.mxu0 %v15053_v63  ;;  %v15058_v63 = vld [vmem:[#allocation9 + $0x240] sm:$0xff]  ;;  %v8058_v5 = vmax.f32 %v8053_v30, 0.0  ;;  %v8327_v30 = vadd.f32 %v17628_v52, %v18698_v33 }
 0x77a   : > { %9776 = vmatpush.bf16.msra.mxu3 %v15078_v9  ;;  %9763 = vmatpush.bf16.msra.mxu2 %v15069_v2  ;;  %v15067_v9 = vld [vmem:[#allocation9 + $0x288] sm:$0xff]  ;;  %v8057_v1 = vmax.f32 %v7969_v24, 0.0  ;;  %v15074_v2 = vld [vmem:[#allocation9 + $0x2c0] sm:$0xff]  ;;  %v17676_v13 = vpop.f32.mrf.mxu3 }
 0x77b   : > { %9750 = vmatpush.bf16.msra.mxu1 %v15060_v38  ;;  %v17680_v38 = vpop.f32.mrf.mxu2  ;;  %v8428_v23 = vpop.f32.mrf.mxu1  ;;  %v15095_v24 = vld [vmem:[#allocation9 + $0x368] sm:$0xff]  ;;  %v15094_v52 = vld [vmem:[#allocation9 + $0x360] sm:$0xff] }
 0x77c   : > { %v8583_v4 = vpack.c.bf16 %v8057_v1, %v8055_v29 }
 0x77d   : > { %9736 = vmatpush.bf16.msra.mxu0 %v15052_v46  ;;  %v18767_v46 = vld [vmem:[#allocation71_spill] sm:$0xff] }
 0x77e   : > { %9777 = vmatpush.bf16.msra.mxu3 %v15077_v20  ;;  %9764 = vmatpush.bf16.msra.mxu2 %v15068_v62  ;;  %v15089_v20 = vld [vmem:[#allocation9 + $0x338] sm:$0xff]  ;;  %v8056_v51 = vmax.f32 %v18767_v46, 0.0  ;;  %v8414_v62 = vpop.f32.mrf.mxu0 }
 0x77f   : > { %9751 = vmatpush.bf16.msra.mxu1 %v15059_v58  ;;  %v15112_v58 = vld [vmem:[#allocation9 + $0x3f0] sm:$0xff]  ;;  %v15101_v46 = vld [vmem:[#allocation9 + $0x398] sm:$0xff] }
 0x780   : > { %v8584_v34 = vpack.c.bf16 %v8058_v5, %v8056_v51  ;;  %v15102_v5 = vld [vmem:[#allocation9 + $0x3a0] sm:$0xff] }
 0x781   : > { %9737 = vmatpush.bf16.msra.mxu0 %v15051_v18  ;;  %v15104_v18 = vld [vmem:[#allocation9 + $0x3b0] sm:$0xff] }
 0x782   : > { %9778 = vmatpush.bf16.msra.mxu3 %v15076_v57  ;;  %9765 = vmatpush.bf16.msra.mxu2 %v15067_v9  ;;  %v8586_v57 = vpack.c.bf16 %v8230_v26, %v8228_v48  ;;  %v8243_v9 = vadd.f32 %v17572_v11, %v18696_v44  ;;  %v8454_v39 = vpop.f32.mrf.mxu3  ;;  %v8413_v11 = vadd.f32 %v17665_v12, %v18696_v44 }
 0x783   : > { %9752 = vmatpush.bf16.msra.mxu1 %v15058_v63  ;;  %v15111_v63 = vld [vmem:[#allocation9 + $0x3e8] sm:$0xff]  ;;  %v8442_v1 = vpop.f32.mrf.mxu2 }
 0x785   : > { %9738 = vmatpush.bf16.msra.mxu0 %v15050_v22 }
 0x786   : > { %9779 = vmatpush.bf16.msra.mxu3 %v15075_v21  ;;  %9766 = vmatpush.bf16.msra.mxu2 %v15066_v15  ;;  %v8415_v21 = vadd.f32 %v8414_v62, %v18696_v44  ;;  %v8468_v22 = vpop.f32.mrf.mxu0  ;;  %v8257_v15 = vadd.f32 %v17580_v36, %v8243_v9  ;;  %v15084_v62 = vld [vmem:[#allocation9 + $0x310] sm:$0xff] }
 0x787   : > { %9801 = vmatpush.bf16.msrb.mxu1 %v15097_v55  ;;  %v8427_v55 = vadd.f32 %v17670_v0, %v8413_v11 }
 0x788   : > { %9739 = vmatmul.bf16.vlgmr.msra.gmra.mxu0 %v8583_v4  ;;  %9753 = vmatmul.bf16.vlgmr.msra.gmra.mxu1 %v8584_v34  ;;  %v8271_v26 = vadd.f32 %v17596_v47, %v8257_v15  ;;  %v15109_v4 = vld [vmem:[#allocation9 + $0x3d8] sm:$0xff] }
 0x789   : > { %9787 = vmatpush.bf16.msrb.mxu0 %v15089_v20  ;;  %9767 = vmatmul.bf16.vlgmr.msra.gmra.mxu2 %v17423_v28  ;;  %v8241_v28 = vadd.f32 %v17558_v7, %v18696_v44  ;;  %v8341_v7 = vadd.f32 %v17640_v45, %v8327_v30  ;;  %v8429_v20 = vadd.f32 %v8428_v23, %v8415_v21  ;;  %v15093_v45 = vld [vmem:[#allocation9 + $0x358] sm:$0xff]  ;;  %v15098_v21 = vld [vmem:[#allocation9 + $0x380] sm:$0xff] }
 0x78a   : > { %9780 = vmatpush.bf16.msra.mxu3 %v15074_v2  ;;  %9815 = vmatpush.bf16.msrb.mxu2 %v15105_v43  ;;  %v8482_v2 = vpop.f32.mrf.mxu1  ;;  %v8339_v44 = vadd.f32 %v17623_v37, %v8325_v3  ;;  %v15085_v43 = vld [vmem:[#allocation9 + $0x318] sm:$0xff]  ;;  %v8441_v47 = vadd.f32 %v17680_v38, %v8427_v55  ;;  %v8285_v37 = vadd.f32 %v17608_v49, %v8271_v26 }
 0x78b   : > { %9802 = vmatpush.bf16.msrb.mxu1 %v15096_v59  ;;  %v8255_v35 = vadd.f32 %v17562_v6, %v8241_v28  ;;  %v8355_v12 = vadd.f32 %v17647_v14, %v8341_v7  ;;  %v8443_v36 = vadd.f32 %v8442_v1, %v8429_v20  ;;  %v8456_v14 = vpop.f32.mrf.mxu3 }
 0x78c   : > { %v8353_v6 = vadd.f32 %v17626_v17, %v8339_v44  ;;  %v8299_v34 = vadd.f32 %v17615_v8, %v8285_v37  ;;  %v15092_v17 = vld [vmem:[#allocation9 + $0x350] sm:$0xff]  ;;  %v8496_v3 = vpop.f32.mrf.mxu2 }
 0x78d   : > { %9781 = vmatmul.bf16.vlgmr.msra.gmra.mxu3 %v8586_v57  ;;  %9788 = vmatpush.bf16.msrb.mxu0 %v15088_v27  ;;  %v8269_v29 = vadd.f32 %v17570_v31, %v8255_v35  ;;  %v8369_v0 = vadd.f32 %v17653_v10, %v8355_v12  ;;  %v8457_v48 = vadd.f32 %v8456_v14, %v8443_v36  ;;  %v15100_v27 = vld [vmem:[#allocation9 + $0x390] sm:$0xff] }
 0x78e   : > { %9829 = vmatpush.bf16.msrb.mxu3 %v15113_v16  ;;  %9816 = vmatpush.bf16.msrb.mxu2 %v15104_v18  ;;  %v8470_v51 = vpop.f32.mrf.mxu0  ;;  %v8367_v38 = vadd.f32 %v17630_v61, %v8353_v6  ;;  %v8455_v16 = vadd.f32 %v8454_v39, %v8441_v47  ;;  %v15108_v8 = vld [vmem:[#allocation9 + $0x3d0] sm:$0xff]  ;;  %v15099_v61 = vld [vmem:[#allocation9 + $0x388] sm:$0xff] }
 0x78f   : > { %9803 = vmatpush.bf16.msrb.mxu1 %v15095_v24  ;;  %v8283_v31 = vadd.f32 %v17587_v41, %v8269_v29  ;;  %v8383_v49 = vadd.f32 %v17668_v53, %v8369_v0  ;;  %v8471_v57 = vadd.f32 %v8470_v51, %v8457_v48  ;;  %v15083_v41 = vld [vmem:[#allocation9 + $0x308] sm:$0xff] }
 0x790   : > { %v8381_v59 = vadd.f32 %v17645_v50, %v8367_v38  ;;  %v8469_v18 = vadd.f32 %v8468_v22, %v8455_v16  ;;  %v15082_v50 = vld [vmem:[#allocation9 + $0x300] sm:$0xff] }
 0x791   : > { %9789 = vmatpush.bf16.msrb.mxu0 %v15087_v42  ;;  %v8297_v10 = vadd.f32 %v17593_v40, %v8283_v31  ;;  %v8313_v42 = vadd.f32 %v17618_v19, %v8299_v34  ;;  %v8397_v53 = vadd.f32 %v17676_v13, %v8383_v49  ;;  %v15090_v19 = vld [vmem:[#allocation9 + $0x340] sm:$0xff] }
 0x792   : > { %9830 = vmatpush.bf16.msrb.mxu3 %v15112_v58  ;;  %9817 = vmatpush.bf16.msrb.mxu2 %v15103_v54  ;;  %v8484_v23 = vpop.f32.mrf.mxu1  ;;  %v15091_v58 = vld [vmem:[#allocation9 + $0x348] sm:$0xff]  ;;  %v8395_v40 = vadd.f32 %v17659_v32, %v8381_v59  ;;  %v8483_v24 = vadd.f32 %v8482_v2, %v8469_v18  ;;  %v15106_v32 = vld [vmem:[#allocation9 + $0x3c0] sm:$0xff] }
 0x793   : > { %9804 = vmatpush.bf16.msrb.mxu1 %v15094_v52  ;;  %v8485_v9 = vadd.f32 %v8484_v23, %v8471_v57  ;;  %v8311_v39 = vadd.f32 %v17598_v25, %v8297_v10  ;;  %v15107_v54 = vld [vmem:[#allocation9 + $0x3c8] sm:$0xff]  ;;  %v8401_v30 = vmax.f32 %v8313_v42, 0.0  ;;  %v8402_v28 = vmax.f32 %v8397_v53, 0.0  ;;  %v8510_v13 = vpop.f32.mrf.mxu3  ;;  %v15121_v38 = vld [vmem:[#allocation12 + $0x38] sm:$0xff]  ;;  %v15120_v57 = vld [vmem:[#allocation12 + $0x30] sm:$0xff] }
 0x794   : > { %v8498_v52 = vpop.f32.mrf.mxu2  ;;  %v15119_v23 = vld [vmem:[#allocation12 + $0x28] sm:$0xff]  ;;  %v15218_v42 = vld [vmem:[#allocation10] ss:$0 sm:$0xff] }
 0x795   : > { %9790 = vmatpush.bf16.msrb.mxu0 %v15086_v60  ;;  %v8573_v22 = vmax.f32 %v8485_v9, 0.0  ;;  %v8399_v11 = vmax.f32 %v8311_v39, 0.0  ;;  %v8400_v60 = vmax.f32 %v8395_v40, 0.0  ;;  %v8499_v26 = vadd.f32 %v8498_v52, %v18698_v33 }
 0x796   : > { %9831 = vmatpush.bf16.msrb.mxu3 %v15111_v63  ;;  %9818 = vmatpush.bf16.msrb.mxu2 %v15102_v5  ;;  %v8571_v63 = vmax.f32 %v8483_v24, 0.0  ;;  %v8497_v5 = vadd.f32 %v8496_v3, %v18698_v33 }
 0x797   : > { %9805 = vmatpush.bf16.msrb.mxu1 %v15093_v45  ;;  %v8587_v25 = vpack.c.bf16 %v8401_v30, %v8399_v11  ;;  %v8588_v15 = vpack.c.bf16 %v8402_v28, %v8400_v60  ;;  %v15117_v30 = vld [vmem:[#allocation12 + $0x18] sm:$0xff]  ;;  %v15116_v28 = vld [vmem:[#allocation12 + $0x10] sm:$0xff] }
 0x798   : > { %v8589_v1 = vpack.c.bf16 %v8573_v22, %v8571_v63  ;;  %v8511_v35 = vadd.f32 %v8510_v13, %v8497_v5 }
 0x799   : > { %9791 = vmatpush.bf16.msrb.mxu0 %v15085_v43 }
 0x79a   : > { %9832 = vmatpush.bf16.msrb.mxu3 %v15110_v56  ;;  %9819 = vmatpush.bf16.msrb.mxu2 %v15101_v46 }
 0x79b   : > { %9806 = vmatpush.bf16.msrb.mxu1 %v15092_v17  ;;  %v8512_v2 = vpop.f32.mrf.mxu3 }
 0x79c   : > { %v8513_v55 = vadd.f32 %v8512_v2, %v8499_v26  ;;  %v15114_v2 = vld [vmem:[#allocation12] sm:$0xff] }
 0x79d   : > { %9792 = vmatpush.bf16.msrb.mxu0 %v15084_v62 }
 0x79e   : > { %9833 = vmatpush.bf16.msrb.mxu3 %v15109_v4  ;;  %9820 = vmatpush.bf16.msrb.mxu2 %v15100_v27 }
 0x79f   : > { %9807 = vmatpush.bf16.msrb.mxu1 %v15091_v58 }
 0x7a1   : > { %9793 = vmatpush.bf16.msrb.mxu0 %v15083_v41 }
 0x7a2   : > { %9834 = vmatpush.bf16.msrb.mxu3 %v15108_v8  ;;  %9821 = vmatpush.bf16.msrb.mxu2 %v15099_v61  ;;  %v15118_v8 = vld [vmem:[#allocation12 + $0x20] sm:$0xff] }
 0x7a3   : > { %9808 = vmatpush.bf16.msrb.mxu1 %v15090_v19 }
 0x7a5   : > { %9794 = vmatpush.bf16.msrb.mxu0 %v15082_v50  ;;  %v8524_v7 = vpop.f32.mrf.mxu0  ;;  %v8538_v20 = vpop.f32.mrf.mxu1 }
 0x7a6   : > { %9835 = vmatpush.bf16.msrb.mxu3 %v15107_v54  ;;  %9822 = vmatpush.bf16.msrb.mxu2 %v15098_v21  ;;  %v8525_v44 = vadd.f32 %v8524_v7, %v8511_v35 }
 0x7a7   : > { %9809 = vmatmul.bf16.vlgmr.msrb.gmra.mxu1 %v8588_v15 }
 0x7a8   : > { %9795 = vmatmul.bf16.vlgmr.msrb.gmra.mxu0 %v8587_v25  ;;  %v8539_v56 = vadd.f32 %v8538_v20, %v8525_v44 }
 0x7a9   : > { %9823 = vmatmul.bf16.vlgmr.msrb.gmra.mxu2 %v8589_v1  ;;  %9914 = vmatpush.bf16.msra.mxu0 %v15121_v38 }
 0x7aa   : > { %9836 = vmatpush.bf16.msrb.mxu3 %v15106_v32  ;;  %v15115_v32 = vld [vmem:[#allocation12 + $0x8] sm:$0xff] }
 0x7ac   : > { %v8552_v12 = vpop.f32.mrf.mxu2 }
 0x7ad   : > { %v8526_v43 = vpop.f32.mrf.mxu0  ;;  %v8553_v45 = vadd.f32 %v8552_v12, %v8539_v56  ;;  %v8540_v46 = vpop.f32.mrf.mxu1  ;;  %9915 = vmatpush.bf16.msra.mxu0 %v15120_v57 }
 0x7ae   : > { %v8527_v29 = vadd.f32 %v8526_v43, %v8513_v55 }
 0x7b0   : > { %v8566_v36 = vpop.f32.mrf.mxu3  ;;  %v8541_v6 = vadd.f32 %v8540_v46, %v8527_v29 }
 0x7b1   : > { %v8567_v37 = vadd.f32 %v8566_v36, %v8553_v45  ;;  %9916 = vmatpush.bf16.msra.mxu0 %v15119_v23 }
 0x7b3   : > { %v8572_v48 = vmax.f32 %v8567_v37, 0.0 }
 0x7b4   : > { %v8554_v47 = vpop.f32.mrf.mxu2 }
 0x7b5   : > { %v8555_v14 = vadd.f32 %v8554_v47, %v8541_v6  ;;  %9917 = vmatpush.bf16.msra.mxu0 %v15118_v8 }
 0x7b8   : > { %v8568_v51 = vpop.f32.mrf.mxu3 }
 0x7b9   : > { %v8569_v0 = vadd.f32 %v8568_v51, %v8555_v14  ;;  %9918 = vmatpush.bf16.msra.mxu0 %v15117_v30 }
 0x7bb   : > { %v8574_v62 = vmax.f32 %v8569_v0, 0.0 }
 0x7bd   : > { %v8590_v4 = vpack.c.bf16 %v8574_v62, %v8572_v48  ;;  %9919 = vmatpush.bf16.msra.mxu0 %v15116_v28 }
 0x7bf   : > { %9837 = vmatmul.bf16.vlgmr.msrb.gmra.mxu3 %v8590_v4 }
 0x7c1   : > { %9920 = vmatpush.bf16.msra.mxu0 %v15115_v32 }
 0x7c5   : > { %v9628_v33 = vpop.f32.mrf.mxu0  ;;  %v9642_v31 = vpop.f32.mrf.mxu1  ;;  %9921 = vmatpush.bf16.msra.mxu0 %v15114_v2 }
 0x7c6   : > { %v9629_v61 = vadd.f32 %v15218_v42, %v9628_v33 }
 0x7c8   : > { %v9643_v39 = vadd.f32 %v9642_v31, %v9629_v61 }
 0x7cc   : > { %v9656_v34 = vpop.f32.mrf.mxu2 }
 0x7cd   : > { %v9630_v17 = vpop.f32.mrf.mxu0  ;;  %v9644_v49 = vpop.f32.mrf.mxu1  ;;  %v9657_v50 = vadd.f32 %v9656_v34, %v9643_v39 }
 0x7ce   : > { %v9631_v9 = vadd.f32 %v15218_v42, %v9630_v17 }
 0x7d0   : > { %v9670_v27 = vpop.f32.mrf.mxu3  ;;  %v9645_v54 = vadd.f32 %v9644_v49, %v9631_v9 }
 0x7d1   : > { %v9671_v3 = vadd.f32 %v9670_v27, %v9657_v50 }
 0x7d4   : > { %v9658_v16 = vpop.f32.mrf.mxu2 }
 0x7d5   : > { %v9659_v21 = vadd.f32 %v9658_v16, %v9645_v54 }
 0x7d8   : > { %v9672_v59 = vpop.f32.mrf.mxu3 }
 0x7d9   : > { %v9673_v11 = vadd.f32 %v9672_v59, %v9659_v21 }
 0x7e5   : > { %v9684_v10 = vpop.f32.mrf.mxu0  ;;  %v9698_v18 = vpop.f32.mrf.mxu1 }
 0x7e6   : > { %v9685_v13 = vadd.f32 %v9684_v10, %v9671_v3 }
 0x7e8   : > { %v9699_v15 = vadd.f32 %v9698_v18, %v9685_v13  ;;  %v15219_v18 = vld [vmem:[#allocation13] ss:$0 sm:$0xff] }
 0x7ec   : > { %v9712_v41 = vpop.f32.mrf.mxu2 }
 0x7ed   : > { %v9686_v58 = vpop.f32.mrf.mxu0  ;;  %v9700_v40 = vpop.f32.mrf.mxu1  ;;  %v9713_v52 = vadd.f32 %v9712_v41, %v9699_v15 }
 0x7ee   : > { %v9687_v25 = vadd.f32 %v9686_v58, %v9673_v11 }
 0x7f0   : > { %v9726_v53 = vpop.f32.mrf.mxu3  ;;  %v9701_v5 = vadd.f32 %v9700_v40, %v9687_v25 }
 0x7f1   : > { %v9727_v35 = vadd.f32 %v9726_v53, %v9713_v52 }
 0x7f4   : > { %v9714_v24 = vpop.f32.mrf.mxu2 }
 0x7f5   : > { %v9715_v20 = vadd.f32 %v9714_v24, %v9701_v5 }
 0x7f8   : > { %v9728_v22 = vpop.f32.mrf.mxu3 }
 0x7f9   : > { %v9729_v12 = vadd.f32 %v9728_v22, %v9715_v20 }
 0x805   : > { %v9740_v19 = vpop.f32.mrf.mxu0  ;;  %v9754_v60 = vpop.f32.mrf.mxu1 }
 0x806   : > { %v9741_v55 = vadd.f32 %v9740_v19, %v9727_v35 }
 0x808   : > { %v9755_v56 = vadd.f32 %v9754_v60, %v9741_v55 }
 0x80c   : > { %v9768_v63 = vpop.f32.mrf.mxu2 }
 0x80d   : > { %v9742_v1 = vpop.f32.mrf.mxu0  ;;  %v9756_v26 = vpop.f32.mrf.mxu1  ;;  %v9769_v45 = vadd.f32 %v9768_v63, %v9755_v56 }
 0x80e   : > { %v9743_v43 = vadd.f32 %v9742_v1, %v9729_v12 }
 0x810   : > { %v9782_v7 = vpop.f32.mrf.mxu3  ;;  %v9757_v46 = vadd.f32 %v9756_v26, %v9743_v43 }
 0x811   : > { %v9783_v14 = vadd.f32 %v9782_v7, %v9769_v45 }
 0x814   : > { %v9770_v44 = vpop.f32.mrf.mxu2 }
 0x815   : > { %v9771_v37 = vadd.f32 %v9770_v44, %v9757_v46 }
 0x818   : > { %v9784_v29 = vpop.f32.mrf.mxu3 }
 0x819   : > { %v9785_v0 = vadd.f32 %v9784_v29, %v9771_v37 }
 0x824   : > { %v9810_v6 = vpop.f32.mrf.mxu1 }
 0x825   : > { %v9796_v36 = vpop.f32.mrf.mxu0 }
 0x826   : > { %v9797_v48 = vadd.f32 %v9796_v36, %v9783_v14 }
 0x828   : > { %v9811_v33 = vadd.f32 %v9810_v6, %v9797_v48 }
 0x82c   : > { %v9824_v47 = vpop.f32.mrf.mxu2  ;;  %v9812_v31 = vpop.f32.mrf.mxu1 }
 0x82d   : > { %v9798_v51 = vpop.f32.mrf.mxu0  ;;  %v9825_v17 = vadd.f32 %v9824_v47, %v9811_v33 }
 0x82e   : > { %v9799_v4 = vadd.f32 %v9798_v51, %v9785_v0 }
 0x830   : > { %v9813_v27 = vadd.f32 %v9812_v31, %v9799_v4 }
 0x834   : > { %v9826_v34 = vpop.f32.mrf.mxu2 }
 0x835   : > { %v9827_v38 = vadd.f32 %v9826_v34, %v9813_v27 }
 0x842   : > { %v9838_v62 = vpop.f32.mrf.mxu3 }
 0x843   : > { %v9839_v49 = vadd.f32 %v9838_v62, %v9825_v17 }
 0x845   : > { %v9843_v10 = vmax.f32 %v9839_v49, 0.0 }
 0x84a   : > { %v9840_v16 = vpop.f32.mrf.mxu3 }
 0x84b   : > { %v9841_v57 = vadd.f32 %v9840_v16, %v9827_v38 }
 0x84d   : > { %v9844_v23 = vmax.f32 %v9841_v57, 0.0 }
 0x84f   : > { %v9845_v59 = vpack.c.bf16 %v9844_v23, %v9843_v10 }
 0x851   : > { %9922 = vmatmul.bf16.vlgmr.msra.gmra.mxu0 %v9845_v59 }
 0x8ce   : > { %v9923_v41 = vpop.f32.mrf.mxu0 }
 0x8cf   : > { %v9924_v8 = vadd.f32 %v15219_v18, %v9923_v41 }
 0x8d1   : > { %9928 = vst [vmem:[%s462_s16] sm:$0xff] %v9924_v8 }
 0x8d6   : > { %v9925_v42 = vpop.f32.mrf.mxu0 }
 0x8d7   : > { %v9926_v58 = vadd.f32 %v15219_v18, %v9925_v42 }
 0x8d9   : > { %9929 = vst [vmem:[%s462_s16 + $0x8] sm:$0xff] %v9926_v58 }
 0x8da PF: > { %s24_s30 = sadd.s32 1, %s15490_s30  }
 0x8db   : > { %p21_p7 = scmp.ge.s32.totalorder %s24_s30, 4  }
 0x8dd   :  { %23 = sbr.rel (!%p21_p7) target bundleno = 5 (0x5), region = 119 }
 0x8e2   :  { %9952 = vsyncpa [#allocation3], 1 }
 0x8e3   :  { %9954 = vsyncpa [#allocation3 + $0x1], 1 }
 0x8e4   :  { %9955 = vsyncpa [#allocation5], 1 }
 0x8e5   :  { %9956 = vsyncpa [#allocation8], 1 }
 0x8e6   :  { %9957 = vsyncpa [#allocation11], 1 }
 0x8e7   :  { %9958 = vsyncpa [#allocation14], 1 }

</bundles_post_ra>
